<compile_context>
chip_gen: v5e
topology: v5e:2x2
jax: 0.10.0
libtpu: 0.0.40
codegen_flags: <defaults>
</compile_context>

<pallas_src>
import functools

import numpy as np

import jax
import jax.numpy as jnp
from jax.experimental import pallas as pl
from jax.experimental.pallas import tpu as pltpu


_MM_DTYPE = jnp.bfloat16     # MXU operand dtype (accumulation is always f32)
_ACT_DTYPE = jnp.bfloat16    # inter-kernel activation storage dtype (HBM)
_NEG_INF = -1e30
_VMEM_LIMIT_BYTES = 48 * 1024 * 1024   # explicit scoped-VMEM budget (v5e/v6e/v7x safe)


# ------------------------------------------------------------------
# Pallas kernels
# ------------------------------------------------------------------

def _patch_embed_kernel(x_ref, w_ref, b_ref, o_ref):
  """Patch-embed conv (stride == kernel) expressed as a single matmul."""
  y = jnp.dot(x_ref[...].astype(_MM_DTYPE), w_ref[...],
              preferred_element_type=jnp.float32) + b_ref[...]
  o_ref[...] = y.astype(o_ref.dtype)


def _fused_block_kernel(*refs, n_head, seq_len, act, final_ln):
  """One whole ResidualAttentionBlock on a (R, E) token slab.

  The slab packs all samples back-to-back (seq_len contiguous rows each);
  attention is one packed 2-D MXU matmul per head, restricted to each sample
  by an in-kernel generated block-diagonal mask (no HBM mask input).
  """
  x_ref = refs[0]
  (ln1g_ref, ln1b_ref, wqkv_ref, bqkv_ref, wo_ref, bo_ref,
   ln2g_ref, ln2b_ref, wfc_ref, bfc_ref, wpj_ref, bpj_ref) = refs[1:13]
  if final_ln:
    ln3g_ref, ln3b_ref = refs[13], refs[14]
  o_ref = refs[-1]

  R, E = x_ref.shape
  Dh = E // n_head
  scale = 1.0 / float(Dh) ** 0.5

  x = x_ref[...].astype(jnp.float32)                    # (R, E)

  # Block-diagonal "same sample" mask from iota.  Float-scaled floor instead
  # of int vector division (the +0.5 gives a safe rounding margin).
  inv_l = 1.0 / float(seq_len)
  ri = jax.lax.broadcasted_iota(jnp.int32, (R, R), 0).astype(jnp.float32)
  ci = jax.lax.broadcasted_iota(jnp.int32, (R, R), 1).astype(jnp.float32)
  same = jnp.floor((ri + 0.5) * inv_l) == jnp.floor((ci + 0.5) * inv_l)

  def ln(v, g_ref, b_ref):
    mu = jnp.mean(v, axis=-1, keepdims=True)
    var = jnp.mean((v - mu) ** 2, axis=-1, keepdims=True)
    return (v - mu) * jax.lax.rsqrt(var + 1e-5) * g_ref[...] + b_ref[...]

  def mm(a, w_ref):
    return jnp.dot(a.astype(_MM_DTYPE), w_ref[...],
                   preferred_element_type=jnp.float32)

  # ---- attention branch: x + out_proj(MHA(ln1(x))) ----
  xn = ln(x, ln1g_ref, ln1b_ref)
  qkv = mm(xn, wqkv_ref) + bqkv_ref[...]                # (R, 3E) f32
  wo = wo_ref[...]                                      # (E, E) bf16, hoisted

  attn = None
  for h in range(n_head):                               # tiny static head count
    qh = (qkv[:, h * Dh:(h + 1) * Dh] * scale).astype(_MM_DTYPE)  # pre-scaled q
    kh = qkv[:, E + h * Dh:E + (h + 1) * Dh].astype(_MM_DTYPE)
    vh = qkv[:, 2 * E + h * Dh:2 * E + (h + 1) * Dh].astype(_MM_DTYPE)
    # scores: contract last dims directly (no explicit transpose).
    s = jax.lax.dot_general(qh, kh, (((1,), (1,)), ((), ())),
                            preferred_element_type=jnp.float32)
    s = jnp.where(same, s, _NEG_INF)
    s = s - jnp.max(s, axis=-1, keepdims=True)
    p = jnp.exp(s)
    p = p * pl.reciprocal(jnp.sum(p, axis=-1, keepdims=True), approx=True)
    ctx = jnp.dot(p.astype(_MM_DTYPE), vh, preferred_element_type=jnp.float32)
    # head-wise accumulation into the out-projection (no lane concat of heads).
    part = jnp.dot(ctx.astype(_MM_DTYPE), wo[h * Dh:(h + 1) * Dh, :],
                   preferred_element_type=jnp.float32)
    attn = part if attn is None else attn + part
  x = x + attn + bo_ref[...]

  # ---- MLP branch: x + c_proj(act(c_fc(ln2(x)))) ----
  hmid = mm(ln(x, ln2g_ref, ln2b_ref), wfc_ref) + bfc_ref[...]
  if act == "quick_gelu":
    hmid = hmid * jax.nn.sigmoid(1.702 * hmid)          # QuickGELU
  else:
    hmid = jax.nn.gelu(hmid, approximate=True)          # tanh-approx GELU
  x = x + mm(hmid, wpj_ref) + bpj_ref[...]

  if final_ln:                                          # fused trailing LN
    x = ln(x, ln3g_ref, ln3b_ref)

  o_ref[...] = x.astype(o_ref.dtype)


def _mit_tail_kernel(x_ref, ori_ref, whv_ref, bhv_ref, wuhv_ref, buhv_ref,
                     wcls_ref, bcls_ref, wclsu_ref, bclsu_ref,
                     vf_ref, y_ref, yu_ref):
  """(x + ori).mean(dim=1) + both l2-normed video heads + both cls heads."""
  x = x_ref[...].astype(jnp.float32)
  ori = ori_ref[...].astype(jnp.float32)
  vf = jnp.mean(x + ori, axis=1)                        # (B, E) sublane reduce
  vf_ref[...] = vf.astype(vf_ref.dtype)
  vf_mm = vf.astype(_MM_DTYPE)

  def head(wp_ref, bp_ref, wc_ref, bc_ref, out_ref):
    f = jnp.dot(vf_mm, wp_ref[...],
                preferred_element_type=jnp.float32) + bp_ref[...]
    # x / x.norm(dim=-1, keepdim=True)  (+eps for robustness)
    f = f * jax.lax.rsqrt(jnp.sum(f * f, axis=-1, keepdims=True) + 1e-12)
    g = f * jax.nn.sigmoid(1.702 * f)                   # QuickGELU
    out_ref[...] = (jnp.dot(g.astype(_MM_DTYPE), wc_ref[...],
                            preferred_element_type=jnp.float32)
                    + bc_ref[...]).astype(out_ref.dtype)

  head(whv_ref, bhv_ref, wcls_ref, bcls_ref, y_ref)
  head(wuhv_ref, buhv_ref, wclsu_ref, bclsu_ref, yu_ref)


# ------------------------------------------------------------------
# pallas_call wrappers
# ------------------------------------------------------------------

def patch_embed(x, w, b):
  return pl.pallas_call(
      _patch_embed_kernel,
      out_shape=jax.ShapeDtypeStruct((x.shape[0], w.shape[1]), _ACT_DTYPE),
      compiler_params=pltpu.CompilerParams(vmem_limit_bytes=_VMEM_LIMIT_BYTES),
  )(x, w, b)


def fused_block(x, p, *, n_head, seq_len, act, final_norm=None):
  """x: (R, E) token slab, sample-major with seq_len contiguous rows/sample."""
  R, E = x.shape
  assert R % seq_len == 0, "slab rows must be a whole number of samples"
  args = [x,
          p["ln1_g"], p["ln1_b"],
          p["in_proj"]["w"], p["in_proj"]["b"],
          p["out_proj"]["w"], p["out_proj"]["b"],
          p["ln2_g"], p["ln2_b"],
          p["fc"]["w"], p["fc"]["b"],
          p["proj"]["w"], p["proj"]["b"]]
  final_ln = final_norm is not None
  if final_ln:
    args += [final_norm[0], final_norm[1]]
  # TODO(synk): at real DINOv2 dims add a row-tiled "parallel" grid with
  # pl.Buffered(1) on the grid-invariant weight specs and per-sample
  # flash-style attention; at these demo shapes a single gridless step keeps
  # every weight single-buffered and minimizes step overhead.
  return pl.pallas_call(
      functools.partial(_fused_block_kernel, n_head=n_head, seq_len=seq_len,
                        act=act, final_ln=final_ln),
      out_shape=jax.ShapeDtypeStruct((R, E), x.dtype),
      input_output_aliases={0: 0},               # block output overwrites x
      compiler_params=pltpu.CompilerParams(vmem_limit_bytes=_VMEM_LIMIT_BYTES),
  )(*args)


def transformer_stack(x, blocks, *, n_head, act, final_norm=None):
  """x: (N, L, E) batch-first tokens -> fused blocks on a (N*L, E) slab."""
  N, L, E = x.shape
  xs = x.reshape(N * L, E).astype(_ACT_DTYPE)
  for i, bp in enumerate(blocks):
    last = (i == len(blocks) - 1)
    xs = fused_block(xs, bp, n_head=n_head, seq_len=L, act=act,
                     final_norm=final_norm if last else None)
  return xs.reshape(N, L, E)


def mit_tail(x, ori, head_video, u_head_video, cls_head, cls_head_u):
  B, T, E = x.shape
  n_pad = cls_head["w"].shape[1]                 # lane-padded logit width (128)
  return pl.pallas_call(
      _mit_tail_kernel,
      out_shape=(jax.ShapeDtypeStruct((B, E), jnp.float32),     # video_features
                 jax.ShapeDtypeStruct((B, n_pad), jnp.float32),  # logits (padded)
                 jax.ShapeDtypeStruct((B, n_pad), jnp.float32)),  # logits_u (padded)
      compiler_params=pltpu.CompilerParams(vmem_limit_bytes=_VMEM_LIMIT_BYTES),
  )(x, ori, head_video["w"], head_video["b"],
    u_head_video["w"], u_head_video["b"],
    cls_head["w"], cls_head["b"], cls_head_u["w"], cls_head_u["b"])


# ------------------------------------------------------------------
# Parameter init (deterministic, synthetic; trunc_normal ~ normal(std=0.02))
# ------------------------------------------------------------------

def _normal(key, shape, std=0.02):
  return (std * jax.random.normal(key, shape)).astype(jnp.float32)


def init_linear(key, d_in, d_out, std=0.02, pad_out=None):
  # Stored already transposed (and bf16): y = x @ w + b  <->  torch x @ W^T + b
  w = _normal(key, (d_in, d_out), std)
  b = jnp.zeros((1, d_out), jnp.float32)
  if pad_out is not None and pad_out > d_out:     # lane-dense logit outputs
    w = jnp.pad(w, ((0, 0), (0, pad_out - d_out)))
    b = jnp.pad(b, ((0, 0), (0, pad_out - d_out)))
  return {"w": w.astype(_MM_DTYPE), "b": b}


def init_block(key, d):
  ks = jax.random.split(key, 4)
  return {
      "ln1_g": jnp.ones((1, d), jnp.float32), "ln1_b": jnp.zeros((1, d), jnp.float32),
      "in_proj": init_linear(ks[0], d, 3 * d),          # MHA in_proj (q|k|v)
      "out_proj": init_linear(ks[1], d, d),
      "ln2_g": jnp.ones((1, d), jnp.float32), "ln2_b": jnp.zeros((1, d), jnp.float32),
      "fc": init_linear(ks[2], d, 4 * d),
      "proj": init_linear(ks[3], 4 * d, d),
  }


def init_backbone(key, *, img=16, patch=8, in_ch=3, d=128, depth=2):
  n_patch = (img // patch) ** 2
  ks = jax.random.split(key, depth + 3)
  return {
      "patch": init_linear(ks[0], in_ch * patch * patch, d),
      "cls": _normal(ks[1], (1, 1, d)),
      "pos": _normal(ks[2], (1, n_patch + 1, d)),
      "blocks": [init_block(ks[3 + i], d) for i in range(depth)],
      "norm_g": jnp.ones((1, d), jnp.float32),
      "norm_b": jnp.zeros((1, d), jnp.float32),
  }


def init_model(key, *, T=5, embed_dim=128, mit_layers=2):
  ks = jax.random.split(key, 7)
  return {
      "backbone": init_backbone(ks[0], d=embed_dim),
      "mit_pos": _normal(ks[1], (1, T, embed_dim)),
      "mit_blocks": [init_block(k, embed_dim)
                     for k in jax.random.split(ks[2], mit_layers)],
      "head_video": init_linear(ks[3], embed_dim, embed_dim),
      "u_head_video": init_linear(ks[4], embed_dim, embed_dim),
      "cls_head": init_linear(ks[5], embed_dim, 2, pad_out=128),
      "cls_head_u": init_linear(ks[6], embed_dim, 2, pad_out=128),
  }


# ------------------------------------------------------------------
# Model forward (glue in plain JAX, compute in fused Pallas kernels)
# ------------------------------------------------------------------

def backbone_forward(images, p, *, patch=8):
  """Synthetic mini DINOv2 ViT.  images: (N, C, H, W) NCHW -> (N, D) CLS feats."""
  N, C, H, W = images.shape
  gh, gw = H // patch, W // patch
  # Patch-embed conv (stride == kernel) as im2col + matmul.
  x = images.reshape(N, C, gh, patch, gw, patch)
  x = jnp.transpose(x, (0, 2, 4, 1, 3, 5)).reshape(N * gh * gw, C * patch * patch)
  x = patch_embed(x, p["patch"]["w"], p["patch"]["b"])        # (N*P, D) bf16
  D = x.shape[-1]
  n_head = max(D // 64, 1)
  x = x.reshape(N, gh * gw, D).astype(jnp.float32)
  cls = jnp.broadcast_to(p["cls"], (N, 1, D))
  x = jnp.concatenate([cls, x], axis=1) + p["pos"]            # tiny XLA glue
  x = transformer_stack(x, p["blocks"], n_head=n_head, act="gelu_tanh",
                        final_norm=(p["norm_g"], p["norm_b"]))
  return x[:, 0, :]                                           # LN'd CLS token


def dino_v2_a_forward(params, image, *, embed_dim, mit_heads):
  """Eval-mode DinoV2_A.forward.  image: (b, t, c, h, w)."""
  b, t, c, h, w = image.shape
  frames = image.reshape(b * t, c, h, w)
  feats = backbone_forward(frames, params["backbone"])        # (b*t, D) bf16
  vf = feats.reshape(b, t, embed_dim)

  # MultiframeIntegrationTransformer
  ori = vf
  x = vf.astype(jnp.float32) + params["mit_pos"]
  x = transformer_stack(x, params["mit_blocks"], n_head=mit_heads,
                        act="quick_gelu")

  # Fused tail: (x + ori).mean(1), uda heads (l2-norm), QuickGELU + cls heads.
  video_features, y_pad, yu_pad = mit_tail(
      x, ori, params["head_video"], params["u_head_video"],
      params["cls_head"], params["cls_head_u"])
  return {"y": y_pad[:, :2], "y_cluster_all": yu_pad[:, :2],
          "feature_v": video_features}


# ------------------------------------------------------------------
# Pure-JAX f32 reference (same synthetic weights) for validation
# ------------------------------------------------------------------

def _ref_forward(params, image, *, embed_dim, mit_heads, patch=8):
  f32 = lambda a: jnp.asarray(a, jnp.float32)

  def ln(x, g, b):
    mu = x.mean(-1, keepdims=True)
    var = ((x - mu) ** 2).mean(-1, keepdims=True)
    return (x - mu) * jax.lax.rsqrt(var + 1e-5) * f32(g) + f32(b)

  def block(x, p, n_head, act):
    N, L, E = x.shape
    Dh = E // n_head
    xn = ln(x, p["ln1_g"], p["ln1_b"])
    qkv = xn @ f32(p["in_proj"]["w"]) + f32(p["in_proj"]["b"])
    q, k, v = jnp.split(qkv, 3, axis=-1)
    sh = lambda a: a.reshape(N, L, n_head, Dh).transpose(0, 2, 1, 3)
    q, k, v = sh(q), sh(k), sh(v)
    s = jnp.einsum("nhqd,nhkd->nhqk", q, k) / np.sqrt(Dh)
    pr = jax.nn.softmax(s, axis=-1)
    ctx = jnp.einsum("nhqk,nhkd->nhqd", pr, v).transpose(0, 2, 1, 3).reshape(N, L, E)
    x = x + ctx @ f32(p["out_proj"]["w"]) + f32(p["out_proj"]["b"])
    h = ln(x, p["ln2_g"], p["ln2_b"]) @ f32(p["fc"]["w"]) + f32(p["fc"]["b"])
    if act == "quick_gelu":
      h = h * jax.nn.sigmoid(1.702 * h)
    else:
      h = jax.nn.gelu(h, approximate=True)
    return x + h @ f32(p["proj"]["w"]) + f32(p["proj"]["b"])

  b, t, c, hh, ww = image.shape
  N = b * t
  gh, gw = hh // patch, ww // patch
  bp = params["backbone"]
  x = image.reshape(N, c, gh, patch, gw, patch)
  x = jnp.transpose(x, (0, 2, 4, 1, 3, 5)).reshape(N, gh * gw, c * patch * patch)
  x = x @ f32(bp["patch"]["w"]) + f32(bp["patch"]["b"])
  cls = jnp.broadcast_to(f32(bp["cls"]), (N, 1, embed_dim))
  x = jnp.concatenate([cls, x], axis=1) + f32(bp["pos"])
  n_head_bb = max(embed_dim // 64, 1)
  for blk in bp["blocks"]:
    x = block(x, blk, n_head_bb, "gelu_tanh")
  x = ln(x, bp["norm_g"], bp["norm_b"])
  feats = x[:, 0, :].reshape(b, t, embed_dim)

  ori = feats
  x = feats + f32(params["mit_pos"])
  for blk in params["mit_blocks"]:
    x = block(x, blk, mit_heads, "quick_gelu")
  vf = (x + ori).mean(axis=1)

  def head(hp, cp):
    f = vf @ f32(hp["w"]) + f32(hp["b"])
    f = f / jnp.linalg.norm(f, axis=-1, keepdims=True)
    g = f * jax.nn.sigmoid(1.702 * f)
    return (g @ f32(cp["w"]) + f32(cp["b"]))[:, :2]

  return {"y": head(params["head_video"], params["cls_head"]),
          "y_cluster_all": head(params["u_head_video"], params["cls_head_u"]),
          "feature_v": vf}


# ------------------------------------------------------------------
# Demo
# ------------------------------------------------------------------

if __name__ == "__main__":
  key = jax.random.PRNGKey(0)
  param_key, input_key = jax.random.split(key)

  B, T, C, HW = 2, 5, 3, 16
  EMBED_DIM = 128                      # lane-dense synthetic stand-in for 384
  MIT_LAYERS = 2
  MIT_HEADS = max(EMBED_DIM // 64, 1)  # embed_dim // 64 as in the module

  params = init_model(param_key, T=T, embed_dim=EMBED_DIM, mit_layers=MIT_LAYERS)
  image = jax.random.normal(input_key, (B, T, C, HW, HW), dtype=jnp.float32)

  fwd = jax.jit(functools.partial(dino_v2_a_forward,
                                  embed_dim=EMBED_DIM, mit_heads=MIT_HEADS))
  out = fwd(params, image)
  jax.block_until_ready(out)

  assert out["y"].shape == (B, 2)
  assert out["y_cluster_all"].shape == (B, 2)
  assert out["feature_v"].shape == (B, EMBED_DIM)
  assert all(bool(jnp.all(jnp.isfinite(v))) for v in out.values())

  # Tolerance check vs a pure-JAX f32 reference (bf16 operands / approx recip
  # in the kernels introduce ~1-3% deviation; structural bugs give >>10%).
  ref = _ref_forward(params, image, embed_dim=EMBED_DIM, mit_heads=MIT_HEADS)
  for name in ("y", "y_cluster_all", "feature_v"):
    a = np.asarray(out[name], np.float32)
    r = np.asarray(ref[name], np.float32)
    rel = float(np.linalg.norm(a - r) / (np.linalg.norm(r) + 1e-12))
    assert rel < 0.1, f"{name}: relative L2 error {rel:.4f} too large"

  print("KERNEL_OK")
</pallas_src>

<mosaic_0001>
module attributes {stable_mosaic.version = 11 : i64} {
  func.func @_patch_embed_kernel(%arg0: memref<40x192xf32, #tpu.memory_space<vmem>>, %arg1: memref<192x128xbf16, #tpu.memory_space<vmem>>, %arg2: memref<1x128xf32, #tpu.memory_space<vmem>>, %arg3: memref<40x128xbf16, #tpu.memory_space<vmem>>) attributes {dimension_semantics = [], scalar_prefetch = 0 : i64, scratch_operands = 0 : i64, tpu.core_type = #tpu.core_type<tc>} {
    %c0 = arith.constant 0 : index
    %c0_0 = arith.constant 0 : index
    %0 = vector.load %arg0[%c0, %c0_0] : memref<40x192xf32, #tpu.memory_space<vmem>>, vector<40x192xf32>
    %1 = arith.truncf %0 : vector<40x192xf32> to vector<40x192xbf16>
    %c0_1 = arith.constant 0 : index
    %c0_2 = arith.constant 0 : index
    %2 = vector.load %arg1[%c0_1, %c0_2] : memref<192x128xbf16, #tpu.memory_space<vmem>>, vector<192x128xbf16>
    %cst = arith.constant dense<0.000000e+00> : vector<40x128xf32>
    %3 = tpu.matmul %1, %2, %cst {dimension_numbers = #tpu.dot_dimension_numbers<[1], [0], [0], [1], [0, 0, 1, 1], [], []>} : vector<40x192xbf16>, vector<192x128xbf16>, vector<40x128xf32> -> vector<40x128xf32>
    %c0_3 = arith.constant 0 : index
    %c0_4 = arith.constant 0 : index
    %4 = vector.load %arg2[%c0_3, %c0_4] : memref<1x128xf32, #tpu.memory_space<vmem>>, vector<1x128xf32>
    %5 = vector.broadcast %4 : vector<1x128xf32> to vector<40x128xf32>
    %6 = arith.addf %3, %5 : vector<40x128xf32>
    %7 = arith.truncf %6 : vector<40x128xf32> to vector<40x128xbf16>
    %c0_5 = arith.constant 0 : index
    %c0_6 = arith.constant 0 : index
    %8 = vector.load %arg3[%c0_5, %c0_6] : memref<40x128xbf16, #tpu.memory_space<vmem>>, vector<40x128xbf16>
    tpu.vector_store %arg3[%c0_5, %c0_6], %7 {strides = array<i32>} : memref<40x128xbf16, #tpu.memory_space<vmem>>, vector<40x128xbf16>,
    return
  }
}

module attributes {stable_mosaic.version = 11 : i64} {
  func.func @_fused_block_kernel(%arg0: memref<50x128xbf16, #tpu.memory_space<vmem>>, %arg1: memref<1x128xf32, #tpu.memory_space<vmem>>, %arg2: memref<1x128xf32, #tpu.memory_space<vmem>>, %arg3: memref<128x384xbf16, #tpu.memory_space<vmem>>, %arg4: memref<1x384xf32, #tpu.memory_space<vmem>>, %arg5: memref<128x128xbf16, #tpu.memory_space<vmem>>, %arg6: memref<1x128xf32, #tpu.memory_space<vmem>>, %arg7: memref<1x128xf32, #tpu.memory_space<vmem>>, %arg8: memref<1x128xf32, #tpu.memory_space<vmem>>, %arg9: memref<128x512xbf16, #tpu.memory_space<vmem>>, %arg10: memref<1x512xf32, #tpu.memory_space<vmem>>, %arg11: memref<512x128xbf16, #tpu.memory_space<vmem>>, %arg12: memref<1x128xf32, #tpu.memory_space<vmem>>, %arg13: memref<1x128xf32, #tpu.memory_space<vmem>>, %arg14: memref<1x128xf32, #tpu.memory_space<vmem>>, %arg15: memref<50x128xbf16, #tpu.memory_space<vmem>>) attributes {dimension_semantics = [], scalar_prefetch = 0 : i64, scratch_operands = 0 : i64, tpu.core_type = #tpu.core_type<tc>} {
    %c0 = arith.constant 0 : index
    %c0_0 = arith.constant 0 : index
    %0 = vector.load %arg0[%c0, %c0_0] : memref<50x128xbf16, #tpu.memory_space<vmem>>, vector<50x128xbf16>
    %1 = arith.extf %0 : vector<50x128xbf16> to vector<50x128xf32>
    %2 = tpu.iota {dimensions = array<i32: 0>} : vector<50x50xi32>
    %3 = arith.sitofp %2 : vector<50x50xi32> to vector<50x50xf32>
    %4 = tpu.iota {dimensions = array<i32: 1>} : vector<50x50xi32>
    %5 = arith.sitofp %4 : vector<50x50xi32> to vector<50x50xf32>
    %cst = arith.constant 5.000000e-01 : f32
    %6 = vector.broadcast %cst : f32 to vector<50x50xf32>
    %7 = arith.addf %3, %6 : vector<50x50xf32>
    %cst_1 = arith.constant 2.000000e-01 : f32
    %8 = vector.broadcast %cst_1 : f32 to vector<50x50xf32>
    %9 = arith.mulf %7, %8 : vector<50x50xf32>
    %10 = math.floor %9 : vector<50x50xf32>
    %cst_2 = arith.constant 5.000000e-01 : f32
    %11 = vector.broadcast %cst_2 : f32 to vector<50x50xf32>
    %12 = arith.addf %5, %11 : vector<50x50xf32>
    %cst_3 = arith.constant 2.000000e-01 : f32
    %13 = vector.broadcast %cst_3 : f32 to vector<50x50xf32>
    %14 = arith.mulf %12, %13 : vector<50x50xf32>
    %15 = math.floor %14 : vector<50x50xf32>
    %16 = arith.cmpf oeq, %10, %15 : vector<50x50xf32>
    %cst_4 = arith.constant dense<0.000000e+00> : vector<50xf32>
    %17 = vector.multi_reduction <add>, %1, %cst_4 [1] : vector<50x128xf32> to vector<50xf32>
    %18 = vector.shape_cast %17 : vector<50xf32> to vector<50x1xf32>
    %cst_5 = arith.constant 1.280000e+02 : f32
    %19 = vector.broadcast %cst_5 : f32 to vector<50x1xf32>
    %20 = arith.divf %18, %19 : vector<50x1xf32>
    %21 = vector.broadcast %20 : vector<50x1xf32> to vector<50x128xf32>
    %22 = arith.subf %1, %21 : vector<50x128xf32>
    %23 = arith.mulf %22, %22 : vector<50x128xf32>
    %cst_6 = arith.constant dense<0.000000e+00> : vector<50xf32>
    %24 = vector.multi_reduction <add>, %23, %cst_6 [1] : vector<50x128xf32> to vector<50xf32>
    %25 = vector.shape_cast %24 : vector<50xf32> to vector<50x1xf32>
    %cst_7 = arith.constant 1.280000e+02 : f32
    %26 = vector.broadcast %cst_7 : f32 to vector<50x1xf32>
    %27 = arith.divf %25, %26 : vector<50x1xf32>
    %28 = vector.broadcast %20 : vector<50x1xf32> to vector<50x128xf32>
    %29 = arith.subf %1, %28 : vector<50x128xf32>
    %cst_8 = arith.constant 9.99999974E-6 : f32
    %30 = vector.broadcast %cst_8 : f32 to vector<50x1xf32>
    %31 = arith.addf %27, %30 : vector<50x1xf32>
    %32 = math.rsqrt %31 : vector<50x1xf32>
    %33 = vector.broadcast %32 : vector<50x1xf32> to vector<50x128xf32>
    %34 = arith.mulf %29, %33 : vector<50x128xf32>
    %c0_9 = arith.constant 0 : index
    %c0_10 = arith.constant 0 : index
    %35 = vector.load %arg1[%c0_9, %c0_10] : memref<1x128xf32, #tpu.memory_space<vmem>>, vector<1x128xf32>
    %36 = vector.broadcast %35 : vector<1x128xf32> to vector<50x128xf32>
    %37 = arith.mulf %34, %36 : vector<50x128xf32>
    %c0_11 = arith.constant 0 : index
    %c0_12 = arith.constant 0 : index
    %38 = vector.load %arg2[%c0_11, %c0_12] : memref<1x128xf32, #tpu.memory_space<vmem>>, vector<1x128xf32>
    %39 = vector.broadcast %38 : vector<1x128xf32> to vector<50x128xf32>
    %40 = arith.addf %37, %39 : vector<50x128xf32>
    %41 = arith.truncf %40 : vector<50x128xf32> to vector<50x128xbf16>
    %c0_13 = arith.constant 0 : index
    %c0_14 = arith.constant 0 : index
    %42 = vector.load %arg3[%c0_13, %c0_14] : memref<128x384xbf16, #tpu.memory_space<vmem>>, vector<128x384xbf16>
    %cst_15 = arith.constant dense<0.000000e+00> : vector<50x384xf32>
    %43 = tpu.matmul %41, %42, %cst_15 {dimension_numbers = #tpu.dot_dimension_numbers<[1], [0], [0], [1], [0, 0, 1, 1], [], []>} : vector<50x128xbf16>, vector<128x384xbf16>, vector<50x384xf32> -> vector<50x384xf32>
    %c0_16 = arith.constant 0 : index
    %c0_17 = arith.constant 0 : index
    %44 = vector.load %arg4[%c0_16, %c0_17] : memref<1x384xf32, #tpu.memory_space<vmem>>, vector<1x384xf32>
    %45 = vector.broadcast %44 : vector<1x384xf32> to vector<50x384xf32>
    %46 = arith.addf %43, %45 : vector<50x384xf32>
    %c0_18 = arith.constant 0 : index
    %c0_19 = arith.constant 0 : index
    %47 = vector.load %arg5[%c0_18, %c0_19] : memref<128x128xbf16, #tpu.memory_space<vmem>>, vector<128x128xbf16>
    %48 = vector.extract_strided_slice %46 {offsets = [0, 0], sizes = [50, 64], strides = [1, 1]} : vector<50x384xf32> to vector<50x64xf32>
    %cst_20 = arith.constant 1.250000e-01 : f32
    %49 = vector.broadcast %cst_20 : f32 to vector<50x64xf32>
    %50 = arith.mulf %48, %49 : vector<50x64xf32>
    %51 = arith.truncf %50 : vector<50x64xf32> to vector<50x64xbf16>
    %52 = vector.extract_strided_slice %46 {offsets = [0, 128], sizes = [50, 64], strides = [1, 1]} : vector<50x384xf32> to vector<50x64xf32>
    %53 = arith.truncf %52 : vector<50x64xf32> to vector<50x64xbf16>
    %54 = vector.extract_strided_slice %46 {offsets = [0, 256], sizes = [50, 64], strides = [1, 1]} : vector<50x384xf32> to vector<50x64xf32>
    %55 = arith.truncf %54 : vector<50x64xf32> to vector<50x64xbf16>
    %cst_21 = arith.constant dense<0.000000e+00> : vector<50x50xf32>
    %56 = tpu.matmul %51, %53, %cst_21 {dimension_numbers = #tpu.dot_dimension_numbers<[1], [1], [0], [0], [0, 0, 1, 0], [], []>} : vector<50x64xbf16>, vector<50x64xbf16>, vector<50x50xf32> -> vector<50x50xf32>
    %cst_22 = arith.constant -1.000000e+30 : f32
    %57 = vector.broadcast %cst_22 : f32 to vector<50x50xf32>
    %58 = arith.select %16, %56, %57 : vector<50x50xi1>, vector<50x50xf32>
    %cst_23 = arith.constant dense<0xFF800000> : vector<50xf32>
    %59 = vector.multi_reduction <maximumf>, %58, %cst_23 [1] : vector<50x50xf32> to vector<50xf32>
    %60 = vector.shape_cast %59 : vector<50xf32> to vector<50x1xf32>
    %61 = vector.broadcast %60 : vector<50x1xf32> to vector<50x50xf32>
    %62 = arith.subf %58, %61 : vector<50x50xf32>
    %63 = math.exp %62 : vector<50x50xf32>
    %cst_24 = arith.constant dense<0.000000e+00> : vector<50xf32>
    %64 = vector.multi_reduction <add>, %63, %cst_24 [1] : vector<50x50xf32> to vector<50xf32>
    %65 = vector.shape_cast %64 : vector<50xf32> to vector<50x1xf32>
    %66 = tpu.reciprocal %65 {approx = true} : vector<50x1xf32> -> vector<50x1xf32>
    %67 = vector.broadcast %66 : vector<50x1xf32> to vector<50x50xf32>
    %68 = arith.mulf %63, %67 : vector<50x50xf32>
    %69 = arith.truncf %68 : vector<50x50xf32> to vector<50x50xbf16>
    %cst_25 = arith.constant dense<0.000000e+00> : vector<50x64xf32>
    %70 = tpu.matmul %69, %55, %cst_25 {dimension_numbers = #tpu.dot_dimension_numbers<[1], [0], [0], [1], [0, 0, 1, 1], [], []>} : vector<50x50xbf16>, vector<50x64xbf16>, vector<50x64xf32> -> vector<50x64xf32>
    %71 = arith.truncf %70 : vector<50x64xf32> to vector<50x64xbf16>
    %72 = vector.extract_strided_slice %47 {offsets = [0, 0], sizes = [64, 128], strides = [1, 1]} : vector<128x128xbf16> to vector<64x128xbf16>
    %cst_26 = arith.constant dense<0.000000e+00> : vector<50x128xf32>
    %73 = tpu.matmul %71, %72, %cst_26 {dimension_numbers = #tpu.dot_dimension_numbers<[1], [0], [0], [1], [0, 0, 1, 1], [], []>} : vector<50x64xbf16>, vector<64x128xbf16>, vector<50x128xf32> -> vector<50x128xf32>
    %74 = vector.extract_strided_slice %46 {offsets = [0, 64], sizes = [50, 64], strides = [1, 1]} : vector<50x384xf32> to vector<50x64xf32>
    %cst_27 = arith.constant 1.250000e-01 : f32
    %75 = vector.broadcast %cst_27 : f32 to vector<50x64xf32>
    %76 = arith.mulf %74, %75 : vector<50x64xf32>
    %77 = arith.truncf %76 : vector<50x64xf32> to vector<50x64xbf16>
    %78 = vector.extract_strided_slice %46 {offsets = [0, 192], sizes = [50, 64], strides = [1, 1]} : vector<50x384xf32> to vector<50x64xf32>
    %79 = arith.truncf %78 : vector<50x64xf32> to vector<50x64xbf16>
    %80 = vector.extract_strided_slice %46 {offsets = [0, 320], sizes = [50, 64], strides = [1, 1]} : vector<50x384xf32> to vector<50x64xf32>
    %81 = arith.truncf %80 : vector<50x64xf32> to vector<50x64xbf16>
    %cst_28 = arith.constant dense<0.000000e+00> : vector<50x50xf32>
    %82 = tpu.matmul %77, %79, %cst_28 {dimension_numbers = #tpu.dot_dimension_numbers<[1], [1], [0], [0], [0, 0, 1, 0], [], []>} : vector<50x64xbf16>, vector<50x64xbf16>, vector<50x50xf32> -> vector<50x50xf32>
    %cst_29 = arith.constant -1.000000e+30 : f32
    %83 = vector.broadcast %cst_29 : f32 to vector<50x50xf32>
    %84 = arith.select %16, %82, %83 : vector<50x50xi1>, vector<50x50xf32>
    %cst_30 = arith.constant dense<0xFF800000> : vector<50xf32>
    %85 = vector.multi_reduction <maximumf>, %84, %cst_30 [1] : vector<50x50xf32> to vector<50xf32>
    %86 = vector.shape_cast %85 : vector<50xf32> to vector<50x1xf32>
    %87 = vector.broadcast %86 : vector<50x1xf32> to vector<50x50xf32>
    %88 = arith.subf %84, %87 : vector<50x50xf32>
    %89 = math.exp %88 : vector<50x50xf32>
    %cst_31 = arith.constant dense<0.000000e+00> : vector<50xf32>
    %90 = vector.multi_reduction <add>, %89, %cst_31 [1] : vector<50x50xf32> to vector<50xf32>
    %91 = vector.shape_cast %90 : vector<50xf32> to vector<50x1xf32>
    %92 = tpu.reciprocal %91 {approx = true} : vector<50x1xf32> -> vector<50x1xf32>
    %93 = vector.broadcast %92 : vector<50x1xf32> to vector<50x50xf32>
    %94 = arith.mulf %89, %93 : vector<50x50xf32>
    %95 = arith.truncf %94 : vector<50x50xf32> to vector<50x50xbf16>
    %cst_32 = arith.constant dense<0.000000e+00> : vector<50x64xf32>
    %96 = tpu.matmul %95, %81, %cst_32 {dimension_numbers = #tpu.dot_dimension_numbers<[1], [0], [0], [1], [0, 0, 1, 1], [], []>} : vector<50x50xbf16>, vector<50x64xbf16>, vector<50x64xf32> -> vector<50x64xf32>
    %97 = arith.truncf %96 : vector<50x64xf32> to vector<50x64xbf16>
    %98 = vector.extract_strided_slice %47 {offsets = [64, 0], sizes = [64, 128], strides = [1, 1]} : vector<128x128xbf16> to vector<64x128xbf16>
    %cst_33 = arith.constant dense<0.000000e+00> : vector<50x128xf32>
    %99 = tpu.matmul %97, %98, %cst_33 {dimension_numbers = #tpu.dot_dimension_numbers<[1], [0], [0], [1], [0, 0, 1, 1], [], []>} : vector<50x64xbf16>, vector<64x128xbf16>, vector<50x128xf32> -> vector<50x128xf32>
    %100 = arith.addf %73, %99 : vector<50x128xf32>
    %101 = arith.addf %1, %100 : vector<50x128xf32>
    %c0_34 = arith.constant 0 : index
    %c0_35 = arith.constant 0 : index
    %102 = vector.load %arg6[%c0_34, %c0_35] : memref<1x128xf32, #tpu.memory_space<vmem>>, vector<1x128xf32>
    %103 = vector.broadcast %102 : vector<1x128xf32> to vector<50x128xf32>
    %104 = arith.addf %101, %103 : vector<50x128xf32>
    %cst_36 = arith.constant dense<0.000000e+00> : vector<50xf32>
    %105 = vector.multi_reduction <add>, %104, %cst_36 [1] : vector<50x128xf32> to vector<50xf32>
    %106 = vector.shape_cast %105 : vector<50xf32> to vector<50x1xf32>
    %cst_37 = arith.constant 1.280000e+02 : f32
    %107 = vector.broadcast %cst_37 : f32 to vector<50x1xf32>
    %108 = arith.divf %106, %107 : vector<50x1xf32>
    %109 = vector.broadcast %108 : vector<50x1xf32> to vector<50x128xf32>
    %110 = arith.subf %104, %109 : vector<50x128xf32>
    %111 = arith.mulf %110, %110 : vector<50x128xf32>
    %cst_38 = arith.constant dense<0.000000e+00> : vector<50xf32>
    %112 = vector.multi_reduction <add>, %111, %cst_38 [1] : vector<50x128xf32> to vector<50xf32>
    %113 = vector.shape_cast %112 : vector<50xf32> to vector<50x1xf32>
    %cst_39 = arith.constant 1.280000e+02 : f32
    %114 = vector.broadcast %cst_39 : f32 to vector<50x1xf32>
    %115 = arith.divf %113, %114 : vector<50x1xf32>
    %116 = vector.broadcast %108 : vector<50x1xf32> to vector<50x128xf32>
    %117 = arith.subf %104, %116 : vector<50x128xf32>
    %cst_40 = arith.constant 9.99999974E-6 : f32
    %118 = vector.broadcast %cst_40 : f32 to vector<50x1xf32>
    %119 = arith.addf %115, %118 : vector<50x1xf32>
    %120 = math.rsqrt %119 : vector<50x1xf32>
    %121 = vector.broadcast %120 : vector<50x1xf32> to vector<50x128xf32>
    %122 = arith.mulf %117, %121 : vector<50x128xf32>
    %c0_41 = arith.constant 0 : index
    %c0_42 = arith.constant 0 : index
    %123 = vector.load %arg7[%c0_41, %c0_42] : memref<1x128xf32, #tpu.memory_space<vmem>>, vector<1x128xf32>
    %124 = vector.broadcast %123 : vector<1x128xf32> to vector<50x128xf32>
    %125 = arith.mulf %122, %124 : vector<50x128xf32>
    %c0_43 = arith.constant 0 : index
    %c0_44 = arith.constant 0 : index
    %126 = vector.load %arg8[%c0_43, %c0_44] : memref<1x128xf32, #tpu.memory_space<vmem>>, vector<1x128xf32>
    %127 = vector.broadcast %126 : vector<1x128xf32> to vector<50x128xf32>
    %128 = arith.addf %125, %127 : vector<50x128xf32>
    %129 = arith.truncf %128 : vector<50x128xf32> to vector<50x128xbf16>
    %c0_45 = arith.constant 0 : index
    %c0_46 = arith.constant 0 : index
    %130 = vector.load %arg9[%c0_45, %c0_46] : memref<128x512xbf16, #tpu.memory_space<vmem>>, vector<128x512xbf16>
    %cst_47 = arith.constant dense<0.000000e+00> : vector<50x512xf32>
    %131 = tpu.matmul %129, %130, %cst_47 {dimension_numbers = #tpu.dot_dimension_numbers<[1], [0], [0], [1], [0, 0, 1, 1], [], []>} : vector<50x128xbf16>, vector<128x512xbf16>, vector<50x512xf32> -> vector<50x512xf32>
    %c0_48 = arith.constant 0 : index
    %c0_49 = arith.constant 0 : index
    %132 = vector.load %arg10[%c0_48, %c0_49] : memref<1x512xf32, #tpu.memory_space<vmem>>, vector<1x512xf32>
    %133 = vector.broadcast %132 : vector<1x512xf32> to vector<50x512xf32>
    %134 = arith.addf %131, %133 : vector<50x512xf32>
    %135 = arith.mulf %134, %134 : vector<50x512xf32>
    %136 = arith.mulf %134, %135 : vector<50x512xf32>
    %cst_50 = arith.constant 4.471500e-02 : f32
    %137 = vector.broadcast %cst_50 : f32 to vector<50x512xf32>
    %138 = arith.mulf %137, %136 : vector<50x512xf32>
    %139 = arith.addf %134, %138 : vector<50x512xf32>
    %cst_51 = arith.constant 0.797884583 : f32
    %140 = vector.broadcast %cst_51 : f32 to vector<50x512xf32>
    %141 = arith.mulf %140, %139 : vector<50x512xf32>
    %142 = math.tanh %141 : vector<50x512xf32>
    %cst_52 = arith.constant 1.000000e+00 : f32
    %143 = vector.broadcast %cst_52 : f32 to vector<50x512xf32>
    %144 = arith.addf %143, %142 : vector<50x512xf32>
    %cst_53 = arith.constant 5.000000e-01 : f32
    %145 = vector.broadcast %cst_53 : f32 to vector<50x512xf32>
    %146 = arith.mulf %145, %144 : vector<50x512xf32>
    %147 = arith.mulf %134, %146 : vector<50x512xf32>
    %148 = arith.truncf %147 : vector<50x512xf32> to vector<50x512xbf16>
    %c0_54 = arith.constant 0 : index
    %c0_55 = arith.constant 0 : index
    %149 = vector.load %arg11[%c0_54, %c0_55] : memref<512x128xbf16, #tpu.memory_space<vmem>>, vector<512x128xbf16>
    %cst_56 = arith.constant dense<0.000000e+00> : vector<50x128xf32>
    %150 = tpu.matmul %148, %149, %cst_56 {dimension_numbers = #tpu.dot_dimension_numbers<[1], [0], [0], [1], [0, 0, 1, 1], [], []>} : vector<50x512xbf16>, vector<512x128xbf16>, vector<50x128xf32> -> vector<50x128xf32>
    %151 = arith.addf %104, %150 : vector<50x128xf32>
    %c0_57 = arith.constant 0 : index
    %c0_58 = arith.constant 0 : index
    %152 = vector.load %arg12[%c0_57, %c0_58] : memref<1x128xf32, #tpu.memory_space<vmem>>, vector<1x128xf32>
    %153 = vector.broadcast %152 : vector<1x128xf32> to vector<50x128xf32>
    %154 = arith.addf %151, %153 : vector<50x128xf32>
    %cst_59 = arith.constant dense<0.000000e+00> : vector<50xf32>
    %155 = vector.multi_reduction <add>, %154, %cst_59 [1] : vector<50x128xf32> to vector<50xf32>
    %156 = vector.shape_cast %155 : vector<50xf32> to vector<50x1xf32>
    %cst_60 = arith.constant 1.280000e+02 : f32
    %157 = vector.broadcast %cst_60 : f32 to vector<50x1xf32>
    %158 = arith.divf %156, %157 : vector<50x1xf32>
    %159 = vector.broadcast %158 : vector<50x1xf32> to vector<50x128xf32>
    %160 = arith.subf %154, %159 : vector<50x128xf32>
    %161 = arith.mulf %160, %160 : vector<50x128xf32>
    %cst_61 = arith.constant dense<0.000000e+00> : vector<50xf32>
    %162 = vector.multi_reduction <add>, %161, %cst_61 [1] : vector<50x128xf32> to vector<50xf32>
    %163 = vector.shape_cast %162 : vector<50xf32> to vector<50x1xf32>
    %cst_62 = arith.constant 1.280000e+02 : f32
    %164 = vector.broadcast %cst_62 : f32 to vector<50x1xf32>
    %165 = arith.divf %163, %164 : vector<50x1xf32>
    %166 = vector.broadcast %158 : vector<50x1xf32> to vector<50x128xf32>
    %167 = arith.subf %154, %166 : vector<50x128xf32>
    %cst_63 = arith.constant 9.99999974E-6 : f32
    %168 = vector.broadcast %cst_63 : f32 to vector<50x1xf32>
    %169 = arith.addf %165, %168 : vector<50x1xf32>
    %170 = math.rsqrt %169 : vector<50x1xf32>
    %171 = vector.broadcast %170 : vector<50x1xf32> to vector<50x128xf32>
    %172 = arith.mulf %167, %171 : vector<50x128xf32>
    %c0_64 = arith.constant 0 : index
    %c0_65 = arith.constant 0 : index
    %173 = vector.load %arg13[%c0_64, %c0_65] : memref<1x128xf32, #tpu.memory_space<vmem>>, vector<1x128xf32>
    %174 = vector.broadcast %173 : vector<1x128xf32> to vector<50x128xf32>
    %175 = arith.mulf %172, %174 : vector<50x128xf32>
    %c0_66 = arith.constant 0 : index
    %c0_67 = arith.constant 0 : index
    %176 = vector.load %arg14[%c0_66, %c0_67] : memref<1x128xf32, #tpu.memory_space<vmem>>, vector<1x128xf32>
    %177 = vector.broadcast %176 : vector<1x128xf32> to vector<50x128xf32>
    %178 = arith.addf %175, %177 : vector<50x128xf32>
    %179 = arith.truncf %178 : vector<50x128xf32> to vector<50x128xbf16>
    %c0_68 = arith.constant 0 : index
    %c0_69 = arith.constant 0 : index
    %180 = vector.load %arg15[%c0_68, %c0_69] : memref<50x128xbf16, #tpu.memory_space<vmem>>, vector<50x128xbf16>
    tpu.vector_store %arg15[%c0_68, %c0_69], %179 {strides = array<i32>} : memref<50x128xbf16, #tpu.memory_space<vmem>>, vector<50x128xbf16>,
    return
  }
}

module attributes {stable_mosaic.version = 11 : i64} {
  func.func @_fused_block_kernel(%arg0: memref<50x128xbf16, #tpu.memory_space<vmem>>, %arg1: memref<1x128xf32, #tpu.memory_space<vmem>>, %arg2: memref<1x128xf32, #tpu.memory_space<vmem>>, %arg3: memref<128x384xbf16, #tpu.memory_space<vmem>>, %arg4: memref<1x384xf32, #tpu.memory_space<vmem>>, %arg5: memref<128x128xbf16, #tpu.memory_space<vmem>>, %arg6: memref<1x128xf32, #tpu.memory_space<vmem>>, %arg7: memref<1x128xf32, #tpu.memory_space<vmem>>, %arg8: memref<1x128xf32, #tpu.memory_space<vmem>>, %arg9: memref<128x512xbf16, #tpu.memory_space<vmem>>, %arg10: memref<1x512xf32, #tpu.memory_space<vmem>>, %arg11: memref<512x128xbf16, #tpu.memory_space<vmem>>, %arg12: memref<1x128xf32, #tpu.memory_space<vmem>>, %arg13: memref<50x128xbf16, #tpu.memory_space<vmem>>) attributes {dimension_semantics = [], scalar_prefetch = 0 : i64, scratch_operands = 0 : i64, tpu.core_type = #tpu.core_type<tc>} {
    %c0 = arith.constant 0 : index
    %c0_0 = arith.constant 0 : index
    %0 = vector.load %arg0[%c0, %c0_0] : memref<50x128xbf16, #tpu.memory_space<vmem>>, vector<50x128xbf16>
    %1 = arith.extf %0 : vector<50x128xbf16> to vector<50x128xf32>
    %2 = tpu.iota {dimensions = array<i32: 0>} : vector<50x50xi32>
    %3 = arith.sitofp %2 : vector<50x50xi32> to vector<50x50xf32>
    %4 = tpu.iota {dimensions = array<i32: 1>} : vector<50x50xi32>
    %5 = arith.sitofp %4 : vector<50x50xi32> to vector<50x50xf32>
    %cst = arith.constant 5.000000e-01 : f32
    %6 = vector.broadcast %cst : f32 to vector<50x50xf32>
    %7 = arith.addf %3, %6 : vector<50x50xf32>
    %cst_1 = arith.constant 2.000000e-01 : f32
    %8 = vector.broadcast %cst_1 : f32 to vector<50x50xf32>
    %9 = arith.mulf %7, %8 : vector<50x50xf32>
    %10 = math.floor %9 : vector<50x50xf32>
    %cst_2 = arith.constant 5.000000e-01 : f32
    %11 = vector.broadcast %cst_2 : f32 to vector<50x50xf32>
    %12 = arith.addf %5, %11 : vector<50x50xf32>
    %cst_3 = arith.constant 2.000000e-01 : f32
    %13 = vector.broadcast %cst_3 : f32 to vector<50x50xf32>
    %14 = arith.mulf %12, %13 : vector<50x50xf32>
    %15 = math.floor %14 : vector<50x50xf32>
    %16 = arith.cmpf oeq, %10, %15 : vector<50x50xf32>
    %cst_4 = arith.constant dense<0.000000e+00> : vector<50xf32>
    %17 = vector.multi_reduction <add>, %1, %cst_4 [1] : vector<50x128xf32> to vector<50xf32>
    %18 = vector.shape_cast %17 : vector<50xf32> to vector<50x1xf32>
    %cst_5 = arith.constant 1.280000e+02 : f32
    %19 = vector.broadcast %cst_5 : f32 to vector<50x1xf32>
    %20 = arith.divf %18, %19 : vector<50x1xf32>
    %21 = vector.broadcast %20 : vector<50x1xf32> to vector<50x128xf32>
    %22 = arith.subf %1, %21 : vector<50x128xf32>
    %23 = arith.mulf %22, %22 : vector<50x128xf32>
    %cst_6 = arith.constant dense<0.000000e+00> : vector<50xf32>
    %24 = vector.multi_reduction <add>, %23, %cst_6 [1] : vector<50x128xf32> to vector<50xf32>
    %25 = vector.shape_cast %24 : vector<50xf32> to vector<50x1xf32>
    %cst_7 = arith.constant 1.280000e+02 : f32
    %26 = vector.broadcast %cst_7 : f32 to vector<50x1xf32>
    %27 = arith.divf %25, %26 : vector<50x1xf32>
    %28 = vector.broadcast %20 : vector<50x1xf32> to vector<50x128xf32>
    %29 = arith.subf %1, %28 : vector<50x128xf32>
    %cst_8 = arith.constant 9.99999974E-6 : f32
    %30 = vector.broadcast %cst_8 : f32 to vector<50x1xf32>
    %31 = arith.addf %27, %30 : vector<50x1xf32>
    %32 = math.rsqrt %31 : vector<50x1xf32>
    %33 = vector.broadcast %32 : vector<50x1xf32> to vector<50x128xf32>
    %34 = arith.mulf %29, %33 : vector<50x128xf32>
    %c0_9 = arith.constant 0 : index
    %c0_10 = arith.constant 0 : index
    %35 = vector.load %arg1[%c0_9, %c0_10] : memref<1x128xf32, #tpu.memory_space<vmem>>, vector<1x128xf32>
    %36 = vector.broadcast %35 : vector<1x128xf32> to vector<50x128xf32>
    %37 = arith.mulf %34, %36 : vector<50x128xf32>
    %c0_11 = arith.constant 0 : index
    %c0_12 = arith.constant 0 : index
    %38 = vector.load %arg2[%c0_11, %c0_12] : memref<1x128xf32, #tpu.memory_space<vmem>>, vector<1x128xf32>
    %39 = vector.broadcast %38 : vector<1x128xf32> to vector<50x128xf32>
    %40 = arith.addf %37, %39 : vector<50x128xf32>
    %41 = arith.truncf %40 : vector<50x128xf32> to vector<50x128xbf16>
    %c0_13 = arith.constant 0 : index
    %c0_14 = arith.constant 0 : index
    %42 = vector.load %arg3[%c0_13, %c0_14] : memref<128x384xbf16, #tpu.memory_space<vmem>>, vector<128x384xbf16>
    %cst_15 = arith.constant dense<0.000000e+00> : vector<50x384xf32>
    %43 = tpu.matmul %41, %42, %cst_15 {dimension_numbers = #tpu.dot_dimension_numbers<[1], [0], [0], [1], [0, 0, 1, 1], [], []>} : vector<50x128xbf16>, vector<128x384xbf16>, vector<50x384xf32> -> vector<50x384xf32>
    %c0_16 = arith.constant 0 : index
    %c0_17 = arith.constant 0 : index
    %44 = vector.load %arg4[%c0_16, %c0_17] : memref<1x384xf32, #tpu.memory_space<vmem>>, vector<1x384xf32>
    %45 = vector.broadcast %44 : vector<1x384xf32> to vector<50x384xf32>
    %46 = arith.addf %43, %45 : vector<50x384xf32>
    %c0_18 = arith.constant 0 : index
    %c0_19 = arith.constant 0 : index
    %47 = vector.load %arg5[%c0_18, %c0_19] : memref<128x128xbf16, #tpu.memory_space<vmem>>, vector<128x128xbf16>
    %48 = vector.extract_strided_slice %46 {offsets = [0, 0], sizes = [50, 64], strides = [1, 1]} : vector<50x384xf32> to vector<50x64xf32>
    %cst_20 = arith.constant 1.250000e-01 : f32
    %49 = vector.broadcast %cst_20 : f32 to vector<50x64xf32>
    %50 = arith.mulf %48, %49 : vector<50x64xf32>
    %51 = arith.truncf %50 : vector<50x64xf32> to vector<50x64xbf16>
    %52 = vector.extract_strided_slice %46 {offsets = [0, 128], sizes = [50, 64], strides = [1, 1]} : vector<50x384xf32> to vector<50x64xf32>
    %53 = arith.truncf %52 : vector<50x64xf32> to vector<50x64xbf16>
    %54 = vector.extract_strided_slice %46 {offsets = [0, 256], sizes = [50, 64], strides = [1, 1]} : vector<50x384xf32> to vector<50x64xf32>
    %55 = arith.truncf %54 : vector<50x64xf32> to vector<50x64xbf16>
    %cst_21 = arith.constant dense<0.000000e+00> : vector<50x50xf32>
    %56 = tpu.matmul %51, %53, %cst_21 {dimension_numbers = #tpu.dot_dimension_numbers<[1], [1], [0], [0], [0, 0, 1, 0], [], []>} : vector<50x64xbf16>, vector<50x64xbf16>, vector<50x50xf32> -> vector<50x50xf32>
    %cst_22 = arith.constant -1.000000e+30 : f32
    %57 = vector.broadcast %cst_22 : f32 to vector<50x50xf32>
    %58 = arith.select %16, %56, %57 : vector<50x50xi1>, vector<50x50xf32>
    %cst_23 = arith.constant dense<0xFF800000> : vector<50xf32>
    %59 = vector.multi_reduction <maximumf>, %58, %cst_23 [1] : vector<50x50xf32> to vector<50xf32>
    %60 = vector.shape_cast %59 : vector<50xf32> to vector<50x1xf32>
    %61 = vector.broadcast %60 : vector<50x1xf32> to vector<50x50xf32>
    %62 = arith.subf %58, %61 : vector<50x50xf32>
    %63 = math.exp %62 : vector<50x50xf32>
    %cst_24 = arith.constant dense<0.000000e+00> : vector<50xf32>
    %64 = vector.multi_reduction <add>, %63, %cst_24 [1] : vector<50x50xf32> to vector<50xf32>
    %65 = vector.shape_cast %64 : vector<50xf32> to vector<50x1xf32>
    %66 = tpu.reciprocal %65 {approx = true} : vector<50x1xf32> -> vector<50x1xf32>
    %67 = vector.broadcast %66 : vector<50x1xf32> to vector<50x50xf32>
    %68 = arith.mulf %63, %67 : vector<50x50xf32>
    %69 = arith.truncf %68 : vector<50x50xf32> to vector<50x50xbf16>
    %cst_25 = arith.constant dense<0.000000e+00> : vector<50x64xf32>
    %70 = tpu.matmul %69, %55, %cst_25 {dimension_numbers = #tpu.dot_dimension_numbers<[1], [0], [0], [1], [0, 0, 1, 1], [], []>} : vector<50x50xbf16>, vector<50x64xbf16>, vector<50x64xf32> -> vector<50x64xf32>
    %71 = arith.truncf %70 : vector<50x64xf32> to vector<50x64xbf16>
    %72 = vector.extract_strided_slice %47 {offsets = [0, 0], sizes = [64, 128], strides = [1, 1]} : vector<128x128xbf16> to vector<64x128xbf16>
    %cst_26 = arith.constant dense<0.000000e+00> : vector<50x128xf32>
    %73 = tpu.matmul %71, %72, %cst_26 {dimension_numbers = #tpu.dot_dimension_numbers<[1], [0], [0], [1], [0, 0, 1, 1], [], []>} : vector<50x64xbf16>, vector<64x128xbf16>, vector<50x128xf32> -> vector<50x128xf32>
    %74 = vector.extract_strided_slice %46 {offsets = [0, 64], sizes = [50, 64], strides = [1, 1]} : vector<50x384xf32> to vector<50x64xf32>
    %cst_27 = arith.constant 1.250000e-01 : f32
    %75 = vector.broadcast %cst_27 : f32 to vector<50x64xf32>
    %76 = arith.mulf %74, %75 : vector<50x64xf32>
    %77 = arith.truncf %76 : vector<50x64xf32> to vector<50x64xbf16>
    %78 = vector.extract_strided_slice %46 {offsets = [0, 192], sizes = [50, 64], strides = [1, 1]} : vector<50x384xf32> to vector<50x64xf32>
    %79 = arith.truncf %78 : vector<50x64xf32> to vector<50x64xbf16>
    %80 = vector.extract_strided_slice %46 {offsets = [0, 320], sizes = [50, 64], strides = [1, 1]} : vector<50x384xf32> to vector<50x64xf32>
    %81 = arith.truncf %80 : vector<50x64xf32> to vector<50x64xbf16>
    %cst_28 = arith.constant dense<0.000000e+00> : vector<50x50xf32>
    %82 = tpu.matmul %77, %79, %cst_28 {dimension_numbers = #tpu.dot_dimension_numbers<[1], [1], [0], [0], [0, 0, 1, 0], [], []>} : vector<50x64xbf16>, vector<50x64xbf16>, vector<50x50xf32> -> vector<50x50xf32>
    %cst_29 = arith.constant -1.000000e+30 : f32
    %83 = vector.broadcast %cst_29 : f32 to vector<50x50xf32>
    %84 = arith.select %16, %82, %83 : vector<50x50xi1>, vector<50x50xf32>
    %cst_30 = arith.constant dense<0xFF800000> : vector<50xf32>
    %85 = vector.multi_reduction <maximumf>, %84, %cst_30 [1] : vector<50x50xf32> to vector<50xf32>
    %86 = vector.shape_cast %85 : vector<50xf32> to vector<50x1xf32>
    %87 = vector.broadcast %86 : vector<50x1xf32> to vector<50x50xf32>
    %88 = arith.subf %84, %87 : vector<50x50xf32>
    %89 = math.exp %88 : vector<50x50xf32>
    %cst_31 = arith.constant dense<0.000000e+00> : vector<50xf32>
    %90 = vector.multi_reduction <add>, %89, %cst_31 [1] : vector<50x50xf32> to vector<50xf32>
    %91 = vector.shape_cast %90 : vector<50xf32> to vector<50x1xf32>
    %92 = tpu.reciprocal %91 {approx = true} : vector<50x1xf32> -> vector<50x1xf32>
    %93 = vector.broadcast %92 : vector<50x1xf32> to vector<50x50xf32>
    %94 = arith.mulf %89, %93 : vector<50x50xf32>
    %95 = arith.truncf %94 : vector<50x50xf32> to vector<50x50xbf16>
    %cst_32 = arith.constant dense<0.000000e+00> : vector<50x64xf32>
    %96 = tpu.matmul %95, %81, %cst_32 {dimension_numbers = #tpu.dot_dimension_numbers<[1], [0], [0], [1], [0, 0, 1, 1], [], []>} : vector<50x50xbf16>, vector<50x64xbf16>, vector<50x64xf32> -> vector<50x64xf32>
    %97 = arith.truncf %96 : vector<50x64xf32> to vector<50x64xbf16>
    %98 = vector.extract_strided_slice %47 {offsets = [64, 0], sizes = [64, 128], strides = [1, 1]} : vector<128x128xbf16> to vector<64x128xbf16>
    %cst_33 = arith.constant dense<0.000000e+00> : vector<50x128xf32>
    %99 = tpu.matmul %97, %98, %cst_33 {dimension_numbers = #tpu.dot_dimension_numbers<[1], [0], [0], [1], [0, 0, 1, 1], [], []>} : vector<50x64xbf16>, vector<64x128xbf16>, vector<50x128xf32> -> vector<50x128xf32>
    %100 = arith.addf %73, %99 : vector<50x128xf32>
    %101 = arith.addf %1, %100 : vector<50x128xf32>
    %c0_34 = arith.constant 0 : index
    %c0_35 = arith.constant 0 : index
    %102 = vector.load %arg6[%c0_34, %c0_35] : memref<1x128xf32, #tpu.memory_space<vmem>>, vector<1x128xf32>
    %103 = vector.broadcast %102 : vector<1x128xf32> to vector<50x128xf32>
    %104 = arith.addf %101, %103 : vector<50x128xf32>
    %cst_36 = arith.constant dense<0.000000e+00> : vector<50xf32>
    %105 = vector.multi_reduction <add>, %104, %cst_36 [1] : vector<50x128xf32> to vector<50xf32>
    %106 = vector.shape_cast %105 : vector<50xf32> to vector<50x1xf32>
    %cst_37 = arith.constant 1.280000e+02 : f32
    %107 = vector.broadcast %cst_37 : f32 to vector<50x1xf32>
    %108 = arith.divf %106, %107 : vector<50x1xf32>
    %109 = vector.broadcast %108 : vector<50x1xf32> to vector<50x128xf32>
    %110 = arith.subf %104, %109 : vector<50x128xf32>
    %111 = arith.mulf %110, %110 : vector<50x128xf32>
    %cst_38 = arith.constant dense<0.000000e+00> : vector<50xf32>
    %112 = vector.multi_reduction <add>, %111, %cst_38 [1] : vector<50x128xf32> to vector<50xf32>
    %113 = vector.shape_cast %112 : vector<50xf32> to vector<50x1xf32>
    %cst_39 = arith.constant 1.280000e+02 : f32
    %114 = vector.broadcast %cst_39 : f32 to vector<50x1xf32>
    %115 = arith.divf %113, %114 : vector<50x1xf32>
    %116 = vector.broadcast %108 : vector<50x1xf32> to vector<50x128xf32>
    %117 = arith.subf %104, %116 : vector<50x128xf32>
    %cst_40 = arith.constant 9.99999974E-6 : f32
    %118 = vector.broadcast %cst_40 : f32 to vector<50x1xf32>
    %119 = arith.addf %115, %118 : vector<50x1xf32>
    %120 = math.rsqrt %119 : vector<50x1xf32>
    %121 = vector.broadcast %120 : vector<50x1xf32> to vector<50x128xf32>
    %122 = arith.mulf %117, %121 : vector<50x128xf32>
    %c0_41 = arith.constant 0 : index
    %c0_42 = arith.constant 0 : index
    %123 = vector.load %arg7[%c0_41, %c0_42] : memref<1x128xf32, #tpu.memory_space<vmem>>, vector<1x128xf32>
    %124 = vector.broadcast %123 : vector<1x128xf32> to vector<50x128xf32>
    %125 = arith.mulf %122, %124 : vector<50x128xf32>
    %c0_43 = arith.constant 0 : index
    %c0_44 = arith.constant 0 : index
    %126 = vector.load %arg8[%c0_43, %c0_44] : memref<1x128xf32, #tpu.memory_space<vmem>>, vector<1x128xf32>
    %127 = vector.broadcast %126 : vector<1x128xf32> to vector<50x128xf32>
    %128 = arith.addf %125, %127 : vector<50x128xf32>
    %129 = arith.truncf %128 : vector<50x128xf32> to vector<50x128xbf16>
    %c0_45 = arith.constant 0 : index
    %c0_46 = arith.constant 0 : index
    %130 = vector.load %arg9[%c0_45, %c0_46] : memref<128x512xbf16, #tpu.memory_space<vmem>>, vector<128x512xbf16>
    %cst_47 = arith.constant dense<0.000000e+00> : vector<50x512xf32>
    %131 = tpu.matmul %129, %130, %cst_47 {dimension_numbers = #tpu.dot_dimension_numbers<[1], [0], [0], [1], [0, 0, 1, 1], [], []>} : vector<50x128xbf16>, vector<128x512xbf16>, vector<50x512xf32> -> vector<50x512xf32>
    %c0_48 = arith.constant 0 : index
    %c0_49 = arith.constant 0 : index
    %132 = vector.load %arg10[%c0_48, %c0_49] : memref<1x512xf32, #tpu.memory_space<vmem>>, vector<1x512xf32>
    %133 = vector.broadcast %132 : vector<1x512xf32> to vector<50x512xf32>
    %134 = arith.addf %131, %133 : vector<50x512xf32>
    %135 = arith.mulf %134, %134 : vector<50x512xf32>
    %136 = arith.mulf %134, %135 : vector<50x512xf32>
    %cst_50 = arith.constant 4.471500e-02 : f32
    %137 = vector.broadcast %cst_50 : f32 to vector<50x512xf32>
    %138 = arith.mulf %137, %136 : vector<50x512xf32>
    %139 = arith.addf %134, %138 : vector<50x512xf32>
    %cst_51 = arith.constant 0.797884583 : f32
    %140 = vector.broadcast %cst_51 : f32 to vector<50x512xf32>
    %141 = arith.mulf %140, %139 : vector<50x512xf32>
    %142 = math.tanh %141 : vector<50x512xf32>
    %cst_52 = arith.constant 1.000000e+00 : f32
    %143 = vector.broadcast %cst_52 : f32 to vector<50x512xf32>
    %144 = arith.addf %143, %142 : vector<50x512xf32>
    %cst_53 = arith.constant 5.000000e-01 : f32
    %145 = vector.broadcast %cst_53 : f32 to vector<50x512xf32>
    %146 = arith.mulf %145, %144 : vector<50x512xf32>
    %147 = arith.mulf %134, %146 : vector<50x512xf32>
    %148 = arith.truncf %147 : vector<50x512xf32> to vector<50x512xbf16>
    %c0_54 = arith.constant 0 : index
    %c0_55 = arith.constant 0 : index
    %149 = vector.load %arg11[%c0_54, %c0_55] : memref<512x128xbf16, #tpu.memory_space<vmem>>, vector<512x128xbf16>
    %cst_56 = arith.constant dense<0.000000e+00> : vector<50x128xf32>
    %150 = tpu.matmul %148, %149, %cst_56 {dimension_numbers = #tpu.dot_dimension_numbers<[1], [0], [0], [1], [0, 0, 1, 1], [], []>} : vector<50x512xbf16>, vector<512x128xbf16>, vector<50x128xf32> -> vector<50x128xf32>
    %151 = arith.addf %104, %150 : vector<50x128xf32>
    %c0_57 = arith.constant 0 : index
    %c0_58 = arith.constant 0 : index
    %152 = vector.load %arg12[%c0_57, %c0_58] : memref<1x128xf32, #tpu.memory_space<vmem>>, vector<1x128xf32>
    %153 = vector.broadcast %152 : vector<1x128xf32> to vector<50x128xf32>
    %154 = arith.addf %151, %153 : vector<50x128xf32>
    %155 = arith.truncf %154 : vector<50x128xf32> to vector<50x128xbf16>
    %c0_59 = arith.constant 0 : index
    %c0_60 = arith.constant 0 : index
    %156 = vector.load %arg13[%c0_59, %c0_60] : memref<50x128xbf16, #tpu.memory_space<vmem>>, vector<50x128xbf16>
    tpu.vector_store %arg13[%c0_59, %c0_60], %155 {strides = array<i32>} : memref<50x128xbf16, #tpu.memory_space<vmem>>, vector<50x128xbf16>,
    return
  }
}

module attributes {stable_mosaic.version = 11 : i64} {
  func.func @_fused_block_kernel(%arg0: memref<10x128xbf16, #tpu.memory_space<vmem>>, %arg1: memref<1x128xf32, #tpu.memory_space<vmem>>, %arg2: memref<1x128xf32, #tpu.memory_space<vmem>>, %arg3: memref<128x384xbf16, #tpu.memory_space<vmem>>, %arg4: memref<1x384xf32, #tpu.memory_space<vmem>>, %arg5: memref<128x128xbf16, #tpu.memory_space<vmem>>, %arg6: memref<1x128xf32, #tpu.memory_space<vmem>>, %arg7: memref<1x128xf32, #tpu.memory_space<vmem>>, %arg8: memref<1x128xf32, #tpu.memory_space<vmem>>, %arg9: memref<128x512xbf16, #tpu.memory_space<vmem>>, %arg10: memref<1x512xf32, #tpu.memory_space<vmem>>, %arg11: memref<512x128xbf16, #tpu.memory_space<vmem>>, %arg12: memref<1x128xf32, #tpu.memory_space<vmem>>, %arg13: memref<10x128xbf16, #tpu.memory_space<vmem>>) attributes {dimension_semantics = [], scalar_prefetch = 0 : i64, scratch_operands = 0 : i64, tpu.core_type = #tpu.core_type<tc>} {
    %c0 = arith.constant 0 : index
    %c0_0 = arith.constant 0 : index
    %0 = vector.load %arg0[%c0, %c0_0] : memref<10x128xbf16, #tpu.memory_space<vmem>>, vector<10x128xbf16>
    %1 = arith.extf %0 : vector<10x128xbf16> to vector<10x128xf32>
    %2 = tpu.iota {dimensions = array<i32: 0>} : vector<10x10xi32>
    %3 = arith.sitofp %2 : vector<10x10xi32> to vector<10x10xf32>
    %4 = tpu.iota {dimensions = array<i32: 1>} : vector<10x10xi32>
    %5 = arith.sitofp %4 : vector<10x10xi32> to vector<10x10xf32>
    %cst = arith.constant 5.000000e-01 : f32
    %6 = vector.broadcast %cst : f32 to vector<10x10xf32>
    %7 = arith.addf %3, %6 : vector<10x10xf32>
    %cst_1 = arith.constant 2.000000e-01 : f32
    %8 = vector.broadcast %cst_1 : f32 to vector<10x10xf32>
    %9 = arith.mulf %7, %8 : vector<10x10xf32>
    %10 = math.floor %9 : vector<10x10xf32>
    %cst_2 = arith.constant 5.000000e-01 : f32
    %11 = vector.broadcast %cst_2 : f32 to vector<10x10xf32>
    %12 = arith.addf %5, %11 : vector<10x10xf32>
    %cst_3 = arith.constant 2.000000e-01 : f32
    %13 = vector.broadcast %cst_3 : f32 to vector<10x10xf32>
    %14 = arith.mulf %12, %13 : vector<10x10xf32>
    %15 = math.floor %14 : vector<10x10xf32>
    %16 = arith.cmpf oeq, %10, %15 : vector<10x10xf32>
    %cst_4 = arith.constant dense<0.000000e+00> : vector<10xf32>
    %17 = vector.multi_reduction <add>, %1, %cst_4 [1] : vector<10x128xf32> to vector<10xf32>
    %18 = vector.shape_cast %17 : vector<10xf32> to vector<10x1xf32>
    %cst_5 = arith.constant 1.280000e+02 : f32
    %19 = vector.broadcast %cst_5 : f32 to vector<10x1xf32>
    %20 = arith.divf %18, %19 : vector<10x1xf32>
    %21 = vector.broadcast %20 : vector<10x1xf32> to vector<10x128xf32>
    %22 = arith.subf %1, %21 : vector<10x128xf32>
    %23 = arith.mulf %22, %22 : vector<10x128xf32>
    %cst_6 = arith.constant dense<0.000000e+00> : vector<10xf32>
    %24 = vector.multi_reduction <add>, %23, %cst_6 [1] : vector<10x128xf32> to vector<10xf32>
    %25 = vector.shape_cast %24 : vector<10xf32> to vector<10x1xf32>
    %cst_7 = arith.constant 1.280000e+02 : f32
    %26 = vector.broadcast %cst_7 : f32 to vector<10x1xf32>
    %27 = arith.divf %25, %26 : vector<10x1xf32>
    %28 = vector.broadcast %20 : vector<10x1xf32> to vector<10x128xf32>
    %29 = arith.subf %1, %28 : vector<10x128xf32>
    %cst_8 = arith.constant 9.99999974E-6 : f32
    %30 = vector.broadcast %cst_8 : f32 to vector<10x1xf32>
    %31 = arith.addf %27, %30 : vector<10x1xf32>
    %32 = math.rsqrt %31 : vector<10x1xf32>
    %33 = vector.broadcast %32 : vector<10x1xf32> to vector<10x128xf32>
    %34 = arith.mulf %29, %33 : vector<10x128xf32>
    %c0_9 = arith.constant 0 : index
    %c0_10 = arith.constant 0 : index
    %35 = vector.load %arg1[%c0_9, %c0_10] : memref<1x128xf32, #tpu.memory_space<vmem>>, vector<1x128xf32>
    %36 = vector.broadcast %35 : vector<1x128xf32> to vector<10x128xf32>
    %37 = arith.mulf %34, %36 : vector<10x128xf32>
    %c0_11 = arith.constant 0 : index
    %c0_12 = arith.constant 0 : index
    %38 = vector.load %arg2[%c0_11, %c0_12] : memref<1x128xf32, #tpu.memory_space<vmem>>, vector<1x128xf32>
    %39 = vector.broadcast %38 : vector<1x128xf32> to vector<10x128xf32>
    %40 = arith.addf %37, %39 : vector<10x128xf32>
    %41 = arith.truncf %40 : vector<10x128xf32> to vector<10x128xbf16>
    %c0_13 = arith.constant 0 : index
    %c0_14 = arith.constant 0 : index
    %42 = vector.load %arg3[%c0_13, %c0_14] : memref<128x384xbf16, #tpu.memory_space<vmem>>, vector<128x384xbf16>
    %cst_15 = arith.constant dense<0.000000e+00> : vector<10x384xf32>
    %43 = tpu.matmul %41, %42, %cst_15 {dimension_numbers = #tpu.dot_dimension_numbers<[1], [0], [0], [1], [0, 0, 1, 1], [], []>} : vector<10x128xbf16>, vector<128x384xbf16>, vector<10x384xf32> -> vector<10x384xf32>
    %c0_16 = arith.constant 0 : index
    %c0_17 = arith.constant 0 : index
    %44 = vector.load %arg4[%c0_16, %c0_17] : memref<1x384xf32, #tpu.memory_space<vmem>>, vector<1x384xf32>
    %45 = vector.broadcast %44 : vector<1x384xf32> to vector<10x384xf32>
    %46 = arith.addf %43, %45 : vector<10x384xf32>
    %c0_18 = arith.constant 0 : index
    %c0_19 = arith.constant 0 : index
    %47 = vector.load %arg5[%c0_18, %c0_19] : memref<128x128xbf16, #tpu.memory_space<vmem>>, vector<128x128xbf16>
    %48 = vector.extract_strided_slice %46 {offsets = [0, 0], sizes = [10, 64], strides = [1, 1]} : vector<10x384xf32> to vector<10x64xf32>
    %cst_20 = arith.constant 1.250000e-01 : f32
    %49 = vector.broadcast %cst_20 : f32 to vector<10x64xf32>
    %50 = arith.mulf %48, %49 : vector<10x64xf32>
    %51 = arith.truncf %50 : vector<10x64xf32> to vector<10x64xbf16>
    %52 = vector.extract_strided_slice %46 {offsets = [0, 128], sizes = [10, 64], strides = [1, 1]} : vector<10x384xf32> to vector<10x64xf32>
    %53 = arith.truncf %52 : vector<10x64xf32> to vector<10x64xbf16>
    %54 = vector.extract_strided_slice %46 {offsets = [0, 256], sizes = [10, 64], strides = [1, 1]} : vector<10x384xf32> to vector<10x64xf32>
    %55 = arith.truncf %54 : vector<10x64xf32> to vector<10x64xbf16>
    %cst_21 = arith.constant dense<0.000000e+00> : vector<10x10xf32>
    %56 = tpu.matmul %51, %53, %cst_21 {dimension_numbers = #tpu.dot_dimension_numbers<[1], [1], [0], [0], [0, 0, 1, 0], [], []>} : vector<10x64xbf16>, vector<10x64xbf16>, vector<10x10xf32> -> vector<10x10xf32>
    %cst_22 = arith.constant -1.000000e+30 : f32
    %57 = vector.broadcast %cst_22 : f32 to vector<10x10xf32>
    %58 = arith.select %16, %56, %57 : vector<10x10xi1>, vector<10x10xf32>
    %cst_23 = arith.constant dense<0xFF800000> : vector<10xf32>
    %59 = vector.multi_reduction <maximumf>, %58, %cst_23 [1] : vector<10x10xf32> to vector<10xf32>
    %60 = vector.shape_cast %59 : vector<10xf32> to vector<10x1xf32>
    %61 = vector.broadcast %60 : vector<10x1xf32> to vector<10x10xf32>
    %62 = arith.subf %58, %61 : vector<10x10xf32>
    %63 = math.exp %62 : vector<10x10xf32>
    %cst_24 = arith.constant dense<0.000000e+00> : vector<10xf32>
    %64 = vector.multi_reduction <add>, %63, %cst_24 [1] : vector<10x10xf32> to vector<10xf32>
    %65 = vector.shape_cast %64 : vector<10xf32> to vector<10x1xf32>
    %66 = tpu.reciprocal %65 {approx = true} : vector<10x1xf32> -> vector<10x1xf32>
    %67 = vector.broadcast %66 : vector<10x1xf32> to vector<10x10xf32>
    %68 = arith.mulf %63, %67 : vector<10x10xf32>
    %69 = arith.truncf %68 : vector<10x10xf32> to vector<10x10xbf16>
    %cst_25 = arith.constant dense<0.000000e+00> : vector<10x64xf32>
    %70 = tpu.matmul %69, %55, %cst_25 {dimension_numbers = #tpu.dot_dimension_numbers<[1], [0], [0], [1], [0, 0, 1, 1], [], []>} : vector<10x10xbf16>, vector<10x64xbf16>, vector<10x64xf32> -> vector<10x64xf32>
    %71 = arith.truncf %70 : vector<10x64xf32> to vector<10x64xbf16>
    %72 = vector.extract_strided_slice %47 {offsets = [0, 0], sizes = [64, 128], strides = [1, 1]} : vector<128x128xbf16> to vector<64x128xbf16>
    %cst_26 = arith.constant dense<0.000000e+00> : vector<10x128xf32>
    %73 = tpu.matmul %71, %72, %cst_26 {dimension_numbers = #tpu.dot_dimension_numbers<[1], [0], [0], [1], [0, 0, 1, 1], [], []>} : vector<10x64xbf16>, vector<64x128xbf16>, vector<10x128xf32> -> vector<10x128xf32>
    %74 = vector.extract_strided_slice %46 {offsets = [0, 64], sizes = [10, 64], strides = [1, 1]} : vector<10x384xf32> to vector<10x64xf32>
    %cst_27 = arith.constant 1.250000e-01 : f32
    %75 = vector.broadcast %cst_27 : f32 to vector<10x64xf32>
    %76 = arith.mulf %74, %75 : vector<10x64xf32>
    %77 = arith.truncf %76 : vector<10x64xf32> to vector<10x64xbf16>
    %78 = vector.extract_strided_slice %46 {offsets = [0, 192], sizes = [10, 64], strides = [1, 1]} : vector<10x384xf32> to vector<10x64xf32>
    %79 = arith.truncf %78 : vector<10x64xf32> to vector<10x64xbf16>
    %80 = vector.extract_strided_slice %46 {offsets = [0, 320], sizes = [10, 64], strides = [1, 1]} : vector<10x384xf32> to vector<10x64xf32>
    %81 = arith.truncf %80 : vector<10x64xf32> to vector<10x64xbf16>
    %cst_28 = arith.constant dense<0.000000e+00> : vector<10x10xf32>
    %82 = tpu.matmul %77, %79, %cst_28 {dimension_numbers = #tpu.dot_dimension_numbers<[1], [1], [0], [0], [0, 0, 1, 0], [], []>} : vector<10x64xbf16>, vector<10x64xbf16>, vector<10x10xf32> -> vector<10x10xf32>
    %cst_29 = arith.constant -1.000000e+30 : f32
    %83 = vector.broadcast %cst_29 : f32 to vector<10x10xf32>
    %84 = arith.select %16, %82, %83 : vector<10x10xi1>, vector<10x10xf32>
    %cst_30 = arith.constant dense<0xFF800000> : vector<10xf32>
    %85 = vector.multi_reduction <maximumf>, %84, %cst_30 [1] : vector<10x10xf32> to vector<10xf32>
    %86 = vector.shape_cast %85 : vector<10xf32> to vector<10x1xf32>
    %87 = vector.broadcast %86 : vector<10x1xf32> to vector<10x10xf32>
    %88 = arith.subf %84, %87 : vector<10x10xf32>
    %89 = math.exp %88 : vector<10x10xf32>
    %cst_31 = arith.constant dense<0.000000e+00> : vector<10xf32>
    %90 = vector.multi_reduction <add>, %89, %cst_31 [1] : vector<10x10xf32> to vector<10xf32>
    %91 = vector.shape_cast %90 : vector<10xf32> to vector<10x1xf32>
    %92 = tpu.reciprocal %91 {approx = true} : vector<10x1xf32> -> vector<10x1xf32>
    %93 = vector.broadcast %92 : vector<10x1xf32> to vector<10x10xf32>
    %94 = arith.mulf %89, %93 : vector<10x10xf32>
    %95 = arith.truncf %94 : vector<10x10xf32> to vector<10x10xbf16>
    %cst_32 = arith.constant dense<0.000000e+00> : vector<10x64xf32>
    %96 = tpu.matmul %95, %81, %cst_32 {dimension_numbers = #tpu.dot_dimension_numbers<[1], [0], [0], [1], [0, 0, 1, 1], [], []>} : vector<10x10xbf16>, vector<10x64xbf16>, vector<10x64xf32> -> vector<10x64xf32>
    %97 = arith.truncf %96 : vector<10x64xf32> to vector<10x64xbf16>
    %98 = vector.extract_strided_slice %47 {offsets = [64, 0], sizes = [64, 128], strides = [1, 1]} : vector<128x128xbf16> to vector<64x128xbf16>
    %cst_33 = arith.constant dense<0.000000e+00> : vector<10x128xf32>
    %99 = tpu.matmul %97, %98, %cst_33 {dimension_numbers = #tpu.dot_dimension_numbers<[1], [0], [0], [1], [0, 0, 1, 1], [], []>} : vector<10x64xbf16>, vector<64x128xbf16>, vector<10x128xf32> -> vector<10x128xf32>
    %100 = arith.addf %73, %99 : vector<10x128xf32>
    %101 = arith.addf %1, %100 : vector<10x128xf32>
    %c0_34 = arith.constant 0 : index
    %c0_35 = arith.constant 0 : index
    %102 = vector.load %arg6[%c0_34, %c0_35] : memref<1x128xf32, #tpu.memory_space<vmem>>, vector<1x128xf32>
    %103 = vector.broadcast %102 : vector<1x128xf32> to vector<10x128xf32>
    %104 = arith.addf %101, %103 : vector<10x128xf32>
    %cst_36 = arith.constant dense<0.000000e+00> : vector<10xf32>
    %105 = vector.multi_reduction <add>, %104, %cst_36 [1] : vector<10x128xf32> to vector<10xf32>
    %106 = vector.shape_cast %105 : vector<10xf32> to vector<10x1xf32>
    %cst_37 = arith.constant 1.280000e+02 : f32
    %107 = vector.broadcast %cst_37 : f32 to vector<10x1xf32>
    %108 = arith.divf %106, %107 : vector<10x1xf32>
    %109 = vector.broadcast %108 : vector<10x1xf32> to vector<10x128xf32>
    %110 = arith.subf %104, %109 : vector<10x128xf32>
    %111 = arith.mulf %110, %110 : vector<10x128xf32>
    %cst_38 = arith.constant dense<0.000000e+00> : vector<10xf32>
    %112 = vector.multi_reduction <add>, %111, %cst_38 [1] : vector<10x128xf32> to vector<10xf32>
    %113 = vector.shape_cast %112 : vector<10xf32> to vector<10x1xf32>
    %cst_39 = arith.constant 1.280000e+02 : f32
    %114 = vector.broadcast %cst_39 : f32 to vector<10x1xf32>
    %115 = arith.divf %113, %114 : vector<10x1xf32>
    %116 = vector.broadcast %108 : vector<10x1xf32> to vector<10x128xf32>
    %117 = arith.subf %104, %116 : vector<10x128xf32>
    %cst_40 = arith.constant 9.99999974E-6 : f32
    %118 = vector.broadcast %cst_40 : f32 to vector<10x1xf32>
    %119 = arith.addf %115, %118 : vector<10x1xf32>
    %120 = math.rsqrt %119 : vector<10x1xf32>
    %121 = vector.broadcast %120 : vector<10x1xf32> to vector<10x128xf32>
    %122 = arith.mulf %117, %121 : vector<10x128xf32>
    %c0_41 = arith.constant 0 : index
    %c0_42 = arith.constant 0 : index
    %123 = vector.load %arg7[%c0_41, %c0_42] : memref<1x128xf32, #tpu.memory_space<vmem>>, vector<1x128xf32>
    %124 = vector.broadcast %123 : vector<1x128xf32> to vector<10x128xf32>
    %125 = arith.mulf %122, %124 : vector<10x128xf32>
    %c0_43 = arith.constant 0 : index
    %c0_44 = arith.constant 0 : index
    %126 = vector.load %arg8[%c0_43, %c0_44] : memref<1x128xf32, #tpu.memory_space<vmem>>, vector<1x128xf32>
    %127 = vector.broadcast %126 : vector<1x128xf32> to vector<10x128xf32>
    %128 = arith.addf %125, %127 : vector<10x128xf32>
    %129 = arith.truncf %128 : vector<10x128xf32> to vector<10x128xbf16>
    %c0_45 = arith.constant 0 : index
    %c0_46 = arith.constant 0 : index
    %130 = vector.load %arg9[%c0_45, %c0_46] : memref<128x512xbf16, #tpu.memory_space<vmem>>, vector<128x512xbf16>
    %cst_47 = arith.constant dense<0.000000e+00> : vector<10x512xf32>
    %131 = tpu.matmul %129, %130, %cst_47 {dimension_numbers = #tpu.dot_dimension_numbers<[1], [0], [0], [1], [0, 0, 1, 1], [], []>} : vector<10x128xbf16>, vector<128x512xbf16>, vector<10x512xf32> -> vector<10x512xf32>
    %c0_48 = arith.constant 0 : index
    %c0_49 = arith.constant 0 : index
    %132 = vector.load %arg10[%c0_48, %c0_49] : memref<1x512xf32, #tpu.memory_space<vmem>>, vector<1x512xf32>
    %133 = vector.broadcast %132 : vector<1x512xf32> to vector<10x512xf32>
    %134 = arith.addf %131, %133 : vector<10x512xf32>
    %cst_50 = arith.constant 1.702000e+00 : f32
    %135 = vector.broadcast %cst_50 : f32 to vector<10x512xf32>
    %136 = arith.mulf %135, %134 : vector<10x512xf32>
    %137 = arith.negf %136 : vector<10x512xf32>
    %138 = math.exp %137 : vector<10x512xf32>
    %cst_51 = arith.constant 1.000000e+00 : f32
    %139 = vector.broadcast %cst_51 : f32 to vector<10x512xf32>
    %140 = arith.addf %139, %138 : vector<10x512xf32>
    %141 = arith.divf %139, %140 : vector<10x512xf32>
    %142 = arith.mulf %134, %141 : vector<10x512xf32>
    %143 = arith.truncf %142 : vector<10x512xf32> to vector<10x512xbf16>
    %c0_52 = arith.constant 0 : index
    %c0_53 = arith.constant 0 : index
    %144 = vector.load %arg11[%c0_52, %c0_53] : memref<512x128xbf16, #tpu.memory_space<vmem>>, vector<512x128xbf16>
    %cst_54 = arith.constant dense<0.000000e+00> : vector<10x128xf32>
    %145 = tpu.matmul %143, %144, %cst_54 {dimension_numbers = #tpu.dot_dimension_numbers<[1], [0], [0], [1], [0, 0, 1, 1], [], []>} : vector<10x512xbf16>, vector<512x128xbf16>, vector<10x128xf32> -> vector<10x128xf32>
    %146 = arith.addf %104, %145 : vector<10x128xf32>
    %c0_55 = arith.constant 0 : index
    %c0_56 = arith.constant 0 : index
    %147 = vector.load %arg12[%c0_55, %c0_56] : memref<1x128xf32, #tpu.memory_space<vmem>>, vector<1x128xf32>
    %148 = vector.broadcast %147 : vector<1x128xf32> to vector<10x128xf32>
    %149 = arith.addf %146, %148 : vector<10x128xf32>
    %150 = arith.truncf %149 : vector<10x128xf32> to vector<10x128xbf16>
    %c0_57 = arith.constant 0 : index
    %c0_58 = arith.constant 0 : index
    %151 = vector.load %arg13[%c0_57, %c0_58] : memref<10x128xbf16, #tpu.memory_space<vmem>>, vector<10x128xbf16>
    tpu.vector_store %arg13[%c0_57, %c0_58], %150 {strides = array<i32>} : memref<10x128xbf16, #tpu.memory_space<vmem>>, vector<10x128xbf16>,
    return
  }
}

module attributes {stable_mosaic.version = 11 : i64} {
  func.func @_fused_block_kernel(%arg0: memref<10x128xbf16, #tpu.memory_space<vmem>>, %arg1: memref<1x128xf32, #tpu.memory_space<vmem>>, %arg2: memref<1x128xf32, #tpu.memory_space<vmem>>, %arg3: memref<128x384xbf16, #tpu.memory_space<vmem>>, %arg4: memref<1x384xf32, #tpu.memory_space<vmem>>, %arg5: memref<128x128xbf16, #tpu.memory_space<vmem>>, %arg6: memref<1x128xf32, #tpu.memory_space<vmem>>, %arg7: memref<1x128xf32, #tpu.memory_space<vmem>>, %arg8: memref<1x128xf32, #tpu.memory_space<vmem>>, %arg9: memref<128x512xbf16, #tpu.memory_space<vmem>>, %arg10: memref<1x512xf32, #tpu.memory_space<vmem>>, %arg11: memref<512x128xbf16, #tpu.memory_space<vmem>>, %arg12: memref<1x128xf32, #tpu.memory_space<vmem>>, %arg13: memref<10x128xbf16, #tpu.memory_space<vmem>>) attributes {dimension_semantics = [], scalar_prefetch = 0 : i64, scratch_operands = 0 : i64, tpu.core_type = #tpu.core_type<tc>} {
    %c0 = arith.constant 0 : index
    %c0_0 = arith.constant 0 : index
    %0 = vector.load %arg0[%c0, %c0_0] : memref<10x128xbf16, #tpu.memory_space<vmem>>, vector<10x128xbf16>
    %1 = arith.extf %0 : vector<10x128xbf16> to vector<10x128xf32>
    %2 = tpu.iota {dimensions = array<i32: 0>} : vector<10x10xi32>
    %3 = arith.sitofp %2 : vector<10x10xi32> to vector<10x10xf32>
    %4 = tpu.iota {dimensions = array<i32: 1>} : vector<10x10xi32>
    %5 = arith.sitofp %4 : vector<10x10xi32> to vector<10x10xf32>
    %cst = arith.constant 5.000000e-01 : f32
    %6 = vector.broadcast %cst : f32 to vector<10x10xf32>
    %7 = arith.addf %3, %6 : vector<10x10xf32>
    %cst_1 = arith.constant 2.000000e-01 : f32
    %8 = vector.broadcast %cst_1 : f32 to vector<10x10xf32>
    %9 = arith.mulf %7, %8 : vector<10x10xf32>
    %10 = math.floor %9 : vector<10x10xf32>
    %cst_2 = arith.constant 5.000000e-01 : f32
    %11 = vector.broadcast %cst_2 : f32 to vector<10x10xf32>
    %12 = arith.addf %5, %11 : vector<10x10xf32>
    %cst_3 = arith.constant 2.000000e-01 : f32
    %13 = vector.broadcast %cst_3 : f32 to vector<10x10xf32>
    %14 = arith.mulf %12, %13 : vector<10x10xf32>
    %15 = math.floor %14 : vector<10x10xf32>
    %16 = arith.cmpf oeq, %10, %15 : vector<10x10xf32>
    %cst_4 = arith.constant dense<0.000000e+00> : vector<10xf32>
    %17 = vector.multi_reduction <add>, %1, %cst_4 [1] : vector<10x128xf32> to vector<10xf32>
    %18 = vector.shape_cast %17 : vector<10xf32> to vector<10x1xf32>
    %cst_5 = arith.constant 1.280000e+02 : f32
    %19 = vector.broadcast %cst_5 : f32 to vector<10x1xf32>
    %20 = arith.divf %18, %19 : vector<10x1xf32>
    %21 = vector.broadcast %20 : vector<10x1xf32> to vector<10x128xf32>
    %22 = arith.subf %1, %21 : vector<10x128xf32>
    %23 = arith.mulf %22, %22 : vector<10x128xf32>
    %cst_6 = arith.constant dense<0.000000e+00> : vector<10xf32>
    %24 = vector.multi_reduction <add>, %23, %cst_6 [1] : vector<10x128xf32> to vector<10xf32>
    %25 = vector.shape_cast %24 : vector<10xf32> to vector<10x1xf32>
    %cst_7 = arith.constant 1.280000e+02 : f32
    %26 = vector.broadcast %cst_7 : f32 to vector<10x1xf32>
    %27 = arith.divf %25, %26 : vector<10x1xf32>
    %28 = vector.broadcast %20 : vector<10x1xf32> to vector<10x128xf32>
    %29 = arith.subf %1, %28 : vector<10x128xf32>
    %cst_8 = arith.constant 9.99999974E-6 : f32
    %30 = vector.broadcast %cst_8 : f32 to vector<10x1xf32>
    %31 = arith.addf %27, %30 : vector<10x1xf32>
    %32 = math.rsqrt %31 : vector<10x1xf32>
    %33 = vector.broadcast %32 : vector<10x1xf32> to vector<10x128xf32>
    %34 = arith.mulf %29, %33 : vector<10x128xf32>
    %c0_9 = arith.constant 0 : index
    %c0_10 = arith.constant 0 : index
    %35 = vector.load %arg1[%c0_9, %c0_10] : memref<1x128xf32, #tpu.memory_space<vmem>>, vector<1x128xf32>
    %36 = vector.broadcast %35 : vector<1x128xf32> to vector<10x128xf32>
    %37 = arith.mulf %34, %36 : vector<10x128xf32>
    %c0_11 = arith.constant 0 : index
    %c0_12 = arith.constant 0 : index
    %38 = vector.load %arg2[%c0_11, %c0_12] : memref<1x128xf32, #tpu.memory_space<vmem>>, vector<1x128xf32>
    %39 = vector.broadcast %38 : vector<1x128xf32> to vector<10x128xf32>
    %40 = arith.addf %37, %39 : vector<10x128xf32>
    %41 = arith.truncf %40 : vector<10x128xf32> to vector<10x128xbf16>
    %c0_13 = arith.constant 0 : index
    %c0_14 = arith.constant 0 : index
    %42 = vector.load %arg3[%c0_13, %c0_14] : memref<128x384xbf16, #tpu.memory_space<vmem>>, vector<128x384xbf16>
    %cst_15 = arith.constant dense<0.000000e+00> : vector<10x384xf32>
    %43 = tpu.matmul %41, %42, %cst_15 {dimension_numbers = #tpu.dot_dimension_numbers<[1], [0], [0], [1], [0, 0, 1, 1], [], []>} : vector<10x128xbf16>, vector<128x384xbf16>, vector<10x384xf32> -> vector<10x384xf32>
    %c0_16 = arith.constant 0 : index
    %c0_17 = arith.constant 0 : index
    %44 = vector.load %arg4[%c0_16, %c0_17] : memref<1x384xf32, #tpu.memory_space<vmem>>, vector<1x384xf32>
    %45 = vector.broadcast %44 : vector<1x384xf32> to vector<10x384xf32>
    %46 = arith.addf %43, %45 : vector<10x384xf32>
    %c0_18 = arith.constant 0 : index
    %c0_19 = arith.constant 0 : index
    %47 = vector.load %arg5[%c0_18, %c0_19] : memref<128x128xbf16, #tpu.memory_space<vmem>>, vector<128x128xbf16>
    %48 = vector.extract_strided_slice %46 {offsets = [0, 0], sizes = [10, 64], strides = [1, 1]} : vector<10x384xf32> to vector<10x64xf32>
    %cst_20 = arith.constant 1.250000e-01 : f32
    %49 = vector.broadcast %cst_20 : f32 to vector<10x64xf32>
    %50 = arith.mulf %48, %49 : vector<10x64xf32>
    %51 = arith.truncf %50 : vector<10x64xf32> to vector<10x64xbf16>
    %52 = vector.extract_strided_slice %46 {offsets = [0, 128], sizes = [10, 64], strides = [1, 1]} : vector<10x384xf32> to vector<10x64xf32>
    %53 = arith.truncf %52 : vector<10x64xf32> to vector<10x64xbf16>
    %54 = vector.extract_strided_slice %46 {offsets = [0, 256], sizes = [10, 64], strides = [1, 1]} : vector<10x384xf32> to vector<10x64xf32>
    %55 = arith.truncf %54 : vector<10x64xf32> to vector<10x64xbf16>
    %cst_21 = arith.constant dense<0.000000e+00> : vector<10x10xf32>
    %56 = tpu.matmul %51, %53, %cst_21 {dimension_numbers = #tpu.dot_dimension_numbers<[1], [1], [0], [0], [0, 0, 1, 0], [], []>} : vector<10x64xbf16>, vector<10x64xbf16>, vector<10x10xf32> -> vector<10x10xf32>
    %cst_22 = arith.constant -1.000000e+30 : f32
    %57 = vector.broadcast %cst_22 : f32 to vector<10x10xf32>
    %58 = arith.select %16, %56, %57 : vector<10x10xi1>, vector<10x10xf32>
    %cst_23 = arith.constant dense<0xFF800000> : vector<10xf32>
    %59 = vector.multi_reduction <maximumf>, %58, %cst_23 [1] : vector<10x10xf32> to vector<10xf32>
    %60 = vector.shape_cast %59 : vector<10xf32> to vector<10x1xf32>
    %61 = vector.broadcast %60 : vector<10x1xf32> to vector<10x10xf32>
    %62 = arith.subf %58, %61 : vector<10x10xf32>
    %63 = math.exp %62 : vector<10x10xf32>
    %cst_24 = arith.constant dense<0.000000e+00> : vector<10xf32>
    %64 = vector.multi_reduction <add>, %63, %cst_24 [1] : vector<10x10xf32> to vector<10xf32>
    %65 = vector.shape_cast %64 : vector<10xf32> to vector<10x1xf32>
    %66 = tpu.reciprocal %65 {approx = true} : vector<10x1xf32> -> vector<10x1xf32>
    %67 = vector.broadcast %66 : vector<10x1xf32> to vector<10x10xf32>
    %68 = arith.mulf %63, %67 : vector<10x10xf32>
    %69 = arith.truncf %68 : vector<10x10xf32> to vector<10x10xbf16>
    %cst_25 = arith.constant dense<0.000000e+00> : vector<10x64xf32>
    %70 = tpu.matmul %69, %55, %cst_25 {dimension_numbers = #tpu.dot_dimension_numbers<[1], [0], [0], [1], [0, 0, 1, 1], [], []>} : vector<10x10xbf16>, vector<10x64xbf16>, vector<10x64xf32> -> vector<10x64xf32>
    %71 = arith.truncf %70 : vector<10x64xf32> to vector<10x64xbf16>
    %72 = vector.extract_strided_slice %47 {offsets = [0, 0], sizes = [64, 128], strides = [1, 1]} : vector<128x128xbf16> to vector<64x128xbf16>
    %cst_26 = arith.constant dense<0.000000e+00> : vector<10x128xf32>
    %73 = tpu.matmul %71, %72, %cst_26 {dimension_numbers = #tpu.dot_dimension_numbers<[1], [0], [0], [1], [0, 0, 1, 1], [], []>} : vector<10x64xbf16>, vector<64x128xbf16>, vector<10x128xf32> -> vector<10x128xf32>
    %74 = vector.extract_strided_slice %46 {offsets = [0, 64], sizes = [10, 64], strides = [1, 1]} : vector<10x384xf32> to vector<10x64xf32>
    %cst_27 = arith.constant 1.250000e-01 : f32
    %75 = vector.broadcast %cst_27 : f32 to vector<10x64xf32>
    %76 = arith.mulf %74, %75 : vector<10x64xf32>
    %77 = arith.truncf %76 : vector<10x64xf32> to vector<10x64xbf16>
    %78 = vector.extract_strided_slice %46 {offsets = [0, 192], sizes = [10, 64], strides = [1, 1]} : vector<10x384xf32> to vector<10x64xf32>
    %79 = arith.truncf %78 : vector<10x64xf32> to vector<10x64xbf16>
    %80 = vector.extract_strided_slice %46 {offsets = [0, 320], sizes = [10, 64], strides = [1, 1]} : vector<10x384xf32> to vector<10x64xf32>
    %81 = arith.truncf %80 : vector<10x64xf32> to vector<10x64xbf16>
    %cst_28 = arith.constant dense<0.000000e+00> : vector<10x10xf32>
    %82 = tpu.matmul %77, %79, %cst_28 {dimension_numbers = #tpu.dot_dimension_numbers<[1], [1], [0], [0], [0, 0, 1, 0], [], []>} : vector<10x64xbf16>, vector<10x64xbf16>, vector<10x10xf32> -> vector<10x10xf32>
    %cst_29 = arith.constant -1.000000e+30 : f32
    %83 = vector.broadcast %cst_29 : f32 to vector<10x10xf32>
    %84 = arith.select %16, %82, %83 : vector<10x10xi1>, vector<10x10xf32>
    %cst_30 = arith.constant dense<0xFF800000> : vector<10xf32>
    %85 = vector.multi_reduction <maximumf>, %84, %cst_30 [1] : vector<10x10xf32> to vector<10xf32>
    %86 = vector.shape_cast %85 : vector<10xf32> to vector<10x1xf32>
    %87 = vector.broadcast %86 : vector<10x1xf32> to vector<10x10xf32>
    %88 = arith.subf %84, %87 : vector<10x10xf32>
    %89 = math.exp %88 : vector<10x10xf32>
    %cst_31 = arith.constant dense<0.000000e+00> : vector<10xf32>
    %90 = vector.multi_reduction <add>, %89, %cst_31 [1] : vector<10x10xf32> to vector<10xf32>
    %91 = vector.shape_cast %90 : vector<10xf32> to vector<10x1xf32>
    %92 = tpu.reciprocal %91 {approx = true} : vector<10x1xf32> -> vector<10x1xf32>
    %93 = vector.broadcast %92 : vector<10x1xf32> to vector<10x10xf32>
    %94 = arith.mulf %89, %93 : vector<10x10xf32>
    %95 = arith.truncf %94 : vector<10x10xf32> to vector<10x10xbf16>
    %cst_32 = arith.constant dense<0.000000e+00> : vector<10x64xf32>
    %96 = tpu.matmul %95, %81, %cst_32 {dimension_numbers = #tpu.dot_dimension_numbers<[1], [0], [0], [1], [0, 0, 1, 1], [], []>} : vector<10x10xbf16>, vector<10x64xbf16>, vector<10x64xf32> -> vector<10x64xf32>
    %97 = arith.truncf %96 : vector<10x64xf32> to vector<10x64xbf16>
    %98 = vector.extract_strided_slice %47 {offsets = [64, 0], sizes = [64, 128], strides = [1, 1]} : vector<128x128xbf16> to vector<64x128xbf16>
    %cst_33 = arith.constant dense<0.000000e+00> : vector<10x128xf32>
    %99 = tpu.matmul %97, %98, %cst_33 {dimension_numbers = #tpu.dot_dimension_numbers<[1], [0], [0], [1], [0, 0, 1, 1], [], []>} : vector<10x64xbf16>, vector<64x128xbf16>, vector<10x128xf32> -> vector<10x128xf32>
    %100 = arith.addf %73, %99 : vector<10x128xf32>
    %101 = arith.addf %1, %100 : vector<10x128xf32>
    %c0_34 = arith.constant 0 : index
    %c0_35 = arith.constant 0 : index
    %102 = vector.load %arg6[%c0_34, %c0_35] : memref<1x128xf32, #tpu.memory_space<vmem>>, vector<1x128xf32>
    %103 = vector.broadcast %102 : vector<1x128xf32> to vector<10x128xf32>
    %104 = arith.addf %101, %103 : vector<10x128xf32>
    %cst_36 = arith.constant dense<0.000000e+00> : vector<10xf32>
    %105 = vector.multi_reduction <add>, %104, %cst_36 [1] : vector<10x128xf32> to vector<10xf32>
    %106 = vector.shape_cast %105 : vector<10xf32> to vector<10x1xf32>
    %cst_37 = arith.constant 1.280000e+02 : f32
    %107 = vector.broadcast %cst_37 : f32 to vector<10x1xf32>
    %108 = arith.divf %106, %107 : vector<10x1xf32>
    %109 = vector.broadcast %108 : vector<10x1xf32> to vector<10x128xf32>
    %110 = arith.subf %104, %109 : vector<10x128xf32>
    %111 = arith.mulf %110, %110 : vector<10x128xf32>
    %cst_38 = arith.constant dense<0.000000e+00> : vector<10xf32>
    %112 = vector.multi_reduction <add>, %111, %cst_38 [1] : vector<10x128xf32> to vector<10xf32>
    %113 = vector.shape_cast %112 : vector<10xf32> to vector<10x1xf32>
    %cst_39 = arith.constant 1.280000e+02 : f32
    %114 = vector.broadcast %cst_39 : f32 to vector<10x1xf32>
    %115 = arith.divf %113, %114 : vector<10x1xf32>
    %116 = vector.broadcast %108 : vector<10x1xf32> to vector<10x128xf32>
    %117 = arith.subf %104, %116 : vector<10x128xf32>
    %cst_40 = arith.constant 9.99999974E-6 : f32
    %118 = vector.broadcast %cst_40 : f32 to vector<10x1xf32>
    %119 = arith.addf %115, %118 : vector<10x1xf32>
    %120 = math.rsqrt %119 : vector<10x1xf32>
    %121 = vector.broadcast %120 : vector<10x1xf32> to vector<10x128xf32>
    %122 = arith.mulf %117, %121 : vector<10x128xf32>
    %c0_41 = arith.constant 0 : index
    %c0_42 = arith.constant 0 : index
    %123 = vector.load %arg7[%c0_41, %c0_42] : memref<1x128xf32, #tpu.memory_space<vmem>>, vector<1x128xf32>
    %124 = vector.broadcast %123 : vector<1x128xf32> to vector<10x128xf32>
    %125 = arith.mulf %122, %124 : vector<10x128xf32>
    %c0_43 = arith.constant 0 : index
    %c0_44 = arith.constant 0 : index
    %126 = vector.load %arg8[%c0_43, %c0_44] : memref<1x128xf32, #tpu.memory_space<vmem>>, vector<1x128xf32>
    %127 = vector.broadcast %126 : vector<1x128xf32> to vector<10x128xf32>
    %128 = arith.addf %125, %127 : vector<10x128xf32>
    %129 = arith.truncf %128 : vector<10x128xf32> to vector<10x128xbf16>
    %c0_45 = arith.constant 0 : index
    %c0_46 = arith.constant 0 : index
    %130 = vector.load %arg9[%c0_45, %c0_46] : memref<128x512xbf16, #tpu.memory_space<vmem>>, vector<128x512xbf16>
    %cst_47 = arith.constant dense<0.000000e+00> : vector<10x512xf32>
    %131 = tpu.matmul %129, %130, %cst_47 {dimension_numbers = #tpu.dot_dimension_numbers<[1], [0], [0], [1], [0, 0, 1, 1], [], []>} : vector<10x128xbf16>, vector<128x512xbf16>, vector<10x512xf32> -> vector<10x512xf32>
    %c0_48 = arith.constant 0 : index
    %c0_49 = arith.constant 0 : index
    %132 = vector.load %arg10[%c0_48, %c0_49] : memref<1x512xf32, #tpu.memory_space<vmem>>, vector<1x512xf32>
    %133 = vector.broadcast %132 : vector<1x512xf32> to vector<10x512xf32>
    %134 = arith.addf %131, %133 : vector<10x512xf32>
    %cst_50 = arith.constant 1.702000e+00 : f32
    %135 = vector.broadcast %cst_50 : f32 to vector<10x512xf32>
    %136 = arith.mulf %135, %134 : vector<10x512xf32>
    %137 = arith.negf %136 : vector<10x512xf32>
    %138 = math.exp %137 : vector<10x512xf32>
    %cst_51 = arith.constant 1.000000e+00 : f32
    %139 = vector.broadcast %cst_51 : f32 to vector<10x512xf32>
    %140 = arith.addf %139, %138 : vector<10x512xf32>
    %141 = arith.divf %139, %140 : vector<10x512xf32>
    %142 = arith.mulf %134, %141 : vector<10x512xf32>
    %143 = arith.truncf %142 : vector<10x512xf32> to vector<10x512xbf16>
    %c0_52 = arith.constant 0 : index
    %c0_53 = arith.constant 0 : index
    %144 = vector.load %arg11[%c0_52, %c0_53] : memref<512x128xbf16, #tpu.memory_space<vmem>>, vector<512x128xbf16>
    %cst_54 = arith.constant dense<0.000000e+00> : vector<10x128xf32>
    %145 = tpu.matmul %143, %144, %cst_54 {dimension_numbers = #tpu.dot_dimension_numbers<[1], [0], [0], [1], [0, 0, 1, 1], [], []>} : vector<10x512xbf16>, vector<512x128xbf16>, vector<10x128xf32> -> vector<10x128xf32>
    %146 = arith.addf %104, %145 : vector<10x128xf32>
    %c0_55 = arith.constant 0 : index
    %c0_56 = arith.constant 0 : index
    %147 = vector.load %arg12[%c0_55, %c0_56] : memref<1x128xf32, #tpu.memory_space<vmem>>, vector<1x128xf32>
    %148 = vector.broadcast %147 : vector<1x128xf32> to vector<10x128xf32>
    %149 = arith.addf %146, %148 : vector<10x128xf32>
    %150 = arith.truncf %149 : vector<10x128xf32> to vector<10x128xbf16>
    %c0_57 = arith.constant 0 : index
    %c0_58 = arith.constant 0 : index
    %151 = vector.load %arg13[%c0_57, %c0_58] : memref<10x128xbf16, #tpu.memory_space<vmem>>, vector<10x128xbf16>
    tpu.vector_store %arg13[%c0_57, %c0_58], %150 {strides = array<i32>} : memref<10x128xbf16, #tpu.memory_space<vmem>>, vector<10x128xbf16>,
    return
  }
}

module attributes {stable_mosaic.version = 11 : i64} {
  func.func @_mit_tail_kernel(%arg0: memref<2x5x128xbf16, #tpu.memory_space<vmem>>, %arg1: memref<2x5x128xbf16, #tpu.memory_space<vmem>>, %arg2: memref<128x128xbf16, #tpu.memory_space<vmem>>, %arg3: memref<1x128xf32, #tpu.memory_space<vmem>>, %arg4: memref<128x128xbf16, #tpu.memory_space<vmem>>, %arg5: memref<1x128xf32, #tpu.memory_space<vmem>>, %arg6: memref<128x128xbf16, #tpu.memory_space<vmem>>, %arg7: memref<1x128xf32, #tpu.memory_space<vmem>>, %arg8: memref<128x128xbf16, #tpu.memory_space<vmem>>, %arg9: memref<1x128xf32, #tpu.memory_space<vmem>>, %arg10: memref<2x128xf32, #tpu.memory_space<vmem>>, %arg11: memref<2x128xf32, #tpu.memory_space<vmem>>, %arg12: memref<2x128xf32, #tpu.memory_space<vmem>>) attributes {dimension_semantics = [], scalar_prefetch = 0 : i64, scratch_operands = 0 : i64, tpu.core_type = #tpu.core_type<tc>} {
    %c0 = arith.constant 0 : index
    %c0_0 = arith.constant 0 : index
    %c0_1 = arith.constant 0 : index
    %0 = vector.load %arg0[%c0, %c0_0, %c0_1] : memref<2x5x128xbf16, #tpu.memory_space<vmem>>, vector<2x5x128xbf16>
    %1 = arith.extf %0 : vector<2x5x128xbf16> to vector<2x5x128xf32>
    %c0_2 = arith.constant 0 : index
    %c0_3 = arith.constant 0 : index
    %c0_4 = arith.constant 0 : index
    %2 = vector.load %arg1[%c0_2, %c0_3, %c0_4] : memref<2x5x128xbf16, #tpu.memory_space<vmem>>, vector<2x5x128xbf16>
    %3 = arith.extf %2 : vector<2x5x128xbf16> to vector<2x5x128xf32>
    %4 = arith.addf %1, %3 : vector<2x5x128xf32>
    %cst = arith.constant dense<0.000000e+00> : vector<2x128xf32>
    %5 = vector.multi_reduction <add>, %4, %cst [1] : vector<2x5x128xf32> to vector<2x128xf32>
    %cst_5 = arith.constant 5.000000e+00 : f32
    %6 = vector.broadcast %cst_5 : f32 to vector<2x128xf32>
    %7 = arith.divf %5, %6 : vector<2x128xf32>
    %c0_6 = arith.constant 0 : index
    %c0_7 = arith.constant 0 : index
    %8 = vector.load %arg10[%c0_6, %c0_7] : memref<2x128xf32, #tpu.memory_space<vmem>>, vector<2x128xf32>
    tpu.vector_store %arg10[%c0_6, %c0_7], %7 {strides = array<i32>} : memref<2x128xf32, #tpu.memory_space<vmem>>, vector<2x128xf32>,
    %9 = arith.truncf %7 : vector<2x128xf32> to vector<2x128xbf16>
    %c0_8 = arith.constant 0 : index
    %c0_9 = arith.constant 0 : index
    %10 = vector.load %arg2[%c0_8, %c0_9] : memref<128x128xbf16, #tpu.memory_space<vmem>>, vector<128x128xbf16>
    %cst_10 = arith.constant dense<0.000000e+00> : vector<2x128xf32>
    %11 = tpu.matmul %9, %10, %cst_10 {dimension_numbers = #tpu.dot_dimension_numbers<[1], [0], [0], [1], [0, 0, 1, 1], [], []>} : vector<2x128xbf16>, vector<128x128xbf16>, vector<2x128xf32> -> vector<2x128xf32>
    %c0_11 = arith.constant 0 : index
    %c0_12 = arith.constant 0 : index
    %12 = vector.load %arg3[%c0_11, %c0_12] : memref<1x128xf32, #tpu.memory_space<vmem>>, vector<1x128xf32>
    %13 = vector.broadcast %12 : vector<1x128xf32> to vector<2x128xf32>
    %14 = arith.addf %11, %13 : vector<2x128xf32>
    %15 = arith.mulf %14, %14 : vector<2x128xf32>
    %cst_13 = arith.constant dense<0.000000e+00> : vector<2xf32>
    %16 = vector.multi_reduction <add>, %15, %cst_13 [1] : vector<2x128xf32> to vector<2xf32>
    %17 = vector.shape_cast %16 : vector<2xf32> to vector<2x1xf32>
    %cst_14 = arith.constant 9.99999996E-13 : f32
    %18 = vector.broadcast %cst_14 : f32 to vector<2x1xf32>
    %19 = arith.addf %17, %18 : vector<2x1xf32>
    %20 = math.rsqrt %19 : vector<2x1xf32>
    %21 = vector.broadcast %20 : vector<2x1xf32> to vector<2x128xf32>
    %22 = arith.mulf %14, %21 : vector<2x128xf32>
    %cst_15 = arith.constant 1.702000e+00 : f32
    %23 = vector.broadcast %cst_15 : f32 to vector<2x128xf32>
    %24 = arith.mulf %23, %22 : vector<2x128xf32>
    %25 = arith.negf %24 : vector<2x128xf32>
    %26 = math.exp %25 : vector<2x128xf32>
    %cst_16 = arith.constant 1.000000e+00 : f32
    %27 = vector.broadcast %cst_16 : f32 to vector<2x128xf32>
    %28 = arith.addf %27, %26 : vector<2x128xf32>
    %29 = arith.divf %27, %28 : vector<2x128xf32>
    %30 = arith.mulf %22, %29 : vector<2x128xf32>
    %31 = arith.truncf %30 : vector<2x128xf32> to vector<2x128xbf16>
    %c0_17 = arith.constant 0 : index
    %c0_18 = arith.constant 0 : index
    %32 = vector.load %arg6[%c0_17, %c0_18] : memref<128x128xbf16, #tpu.memory_space<vmem>>, vector<128x128xbf16>
    %cst_19 = arith.constant dense<0.000000e+00> : vector<2x128xf32>
    %33 = tpu.matmul %31, %32, %cst_19 {dimension_numbers = #tpu.dot_dimension_numbers<[1], [0], [0], [1], [0, 0, 1, 1], [], []>} : vector<2x128xbf16>, vector<128x128xbf16>, vector<2x128xf32> -> vector<2x128xf32>
    %c0_20 = arith.constant 0 : index
    %c0_21 = arith.constant 0 : index
    %34 = vector.load %arg7[%c0_20, %c0_21] : memref<1x128xf32, #tpu.memory_space<vmem>>, vector<1x128xf32>
    %35 = vector.broadcast %34 : vector<1x128xf32> to vector<2x128xf32>
    %36 = arith.addf %33, %35 : vector<2x128xf32>
    %c0_22 = arith.constant 0 : index
    %c0_23 = arith.constant 0 : index
    %37 = vector.load %arg11[%c0_22, %c0_23] : memref<2x128xf32, #tpu.memory_space<vmem>>, vector<2x128xf32>
    tpu.vector_store %arg11[%c0_22, %c0_23], %36 {strides = array<i32>} : memref<2x128xf32, #tpu.memory_space<vmem>>, vector<2x128xf32>,
    %c0_24 = arith.constant 0 : index
    %c0_25 = arith.constant 0 : index
    %38 = vector.load %arg4[%c0_24, %c0_25] : memref<128x128xbf16, #tpu.memory_space<vmem>>, vector<128x128xbf16>
    %cst_26 = arith.constant dense<0.000000e+00> : vector<2x128xf32>
    %39 = tpu.matmul %9, %38, %cst_26 {dimension_numbers = #tpu.dot_dimension_numbers<[1], [0], [0], [1], [0, 0, 1, 1], [], []>} : vector<2x128xbf16>, vector<128x128xbf16>, vector<2x128xf32> -> vector<2x128xf32>
    %c0_27 = arith.constant 0 : index
    %c0_28 = arith.constant 0 : index
    %40 = vector.load %arg5[%c0_27, %c0_28] : memref<1x128xf32, #tpu.memory_space<vmem>>, vector<1x128xf32>
    %41 = vector.broadcast %40 : vector<1x128xf32> to vector<2x128xf32>
    %42 = arith.addf %39, %41 : vector<2x128xf32>
    %43 = arith.mulf %42, %42 : vector<2x128xf32>
    %cst_29 = arith.constant dense<0.000000e+00> : vector<2xf32>
    %44 = vector.multi_reduction <add>, %43, %cst_29 [1] : vector<2x128xf32> to vector<2xf32>
    %45 = vector.shape_cast %44 : vector<2xf32> to vector<2x1xf32>
    %cst_30 = arith.constant 9.99999996E-13 : f32
    %46 = vector.broadcast %cst_30 : f32 to vector<2x1xf32>
    %47 = arith.addf %45, %46 : vector<2x1xf32>
    %48 = math.rsqrt %47 : vector<2x1xf32>
    %49 = vector.broadcast %48 : vector<2x1xf32> to vector<2x128xf32>
    %50 = arith.mulf %42, %49 : vector<2x128xf32>
    %cst_31 = arith.constant 1.702000e+00 : f32
    %51 = vector.broadcast %cst_31 : f32 to vector<2x128xf32>
    %52 = arith.mulf %51, %50 : vector<2x128xf32>
    %53 = arith.negf %52 : vector<2x128xf32>
    %54 = math.exp %53 : vector<2x128xf32>
    %cst_32 = arith.constant 1.000000e+00 : f32
    %55 = vector.broadcast %cst_32 : f32 to vector<2x128xf32>
    %56 = arith.addf %55, %54 : vector<2x128xf32>
    %57 = arith.divf %55, %56 : vector<2x128xf32>
    %58 = arith.mulf %50, %57 : vector<2x128xf32>
    %59 = arith.truncf %58 : vector<2x128xf32> to vector<2x128xbf16>
    %c0_33 = arith.constant 0 : index
    %c0_34 = arith.constant 0 : index
    %60 = vector.load %arg8[%c0_33, %c0_34] : memref<128x128xbf16, #tpu.memory_space<vmem>>, vector<128x128xbf16>
    %cst_35 = arith.constant dense<0.000000e+00> : vector<2x128xf32>
    %61 = tpu.matmul %59, %60, %cst_35 {dimension_numbers = #tpu.dot_dimension_numbers<[1], [0], [0], [1], [0, 0, 1, 1], [], []>} : vector<2x128xbf16>, vector<128x128xbf16>, vector<2x128xf32> -> vector<2x128xf32>
    %c0_36 = arith.constant 0 : index
    %c0_37 = arith.constant 0 : index
    %62 = vector.load %arg9[%c0_36, %c0_37] : memref<1x128xf32, #tpu.memory_space<vmem>>, vector<1x128xf32>
    %63 = vector.broadcast %62 : vector<1x128xf32> to vector<2x128xf32>
    %64 = arith.addf %61, %63 : vector<2x128xf32>
    %c0_38 = arith.constant 0 : index
    %c0_39 = arith.constant 0 : index
    %65 = vector.load %arg12[%c0_38, %c0_39] : memref<2x128xf32, #tpu.memory_space<vmem>>, vector<2x128xf32>
    tpu.vector_store %arg12[%c0_38, %c0_39], %64 {strides = array<i32>} : memref<2x128xf32, #tpu.memory_space<vmem>>, vector<2x128xf32>,
    return
  }
}

</mosaic_0001>

<bundles_post_ra>
// kernel: dino_v2_a_forward.6
= control target key start
LH: loop header
LB: loop body
LE: loop exit
PB: predicated region body
PF: predicated region fallthrough
CT: control target
= control target key end

     0   :  { %vm131_vm0 = vcmask 523264   ;;  %s389_s1 = inlined_call_operand.vmem [shape: bf16[192,128], index: 1, kind: input, shape index: {}]   ;;  %s390_s0 = inlined_call_operand.vmem [shape: f32[40,192], index: 0, kind: input, shape index: {}]   ;;  %s391_s2 = inlined_call_operand.vmem [shape: f32[1,128], index: 2, kind: input, shape index: {}]   ;;  %s392_s3 = inlined_call_operand.vmem [shape: bf16[40,128], index: 3, kind: output, shape index: {}]  }
   0x1   :  { %v259_v0 = vld [vmem:[%s389_s1 + $0x38] sm:$0xff]  ;;  %v258_v2 = vld [vmem:[%s389_s1 + $0x30] sm:$0xff]  ;;  %v257_v4 = vld [vmem:[%s389_s1 + $0x28] sm:$0xff] }
   0x2   :  { %v263_v1 = vld [vmem:[%s389_s1 + $0x58] sm:$0xff]  ;;  %275 = vmatpush.bf16.msra.mxu2 %v259_v0  ;;  %141 = vmatpush.bf16.msra.mxu0 %v259_v0  ;;  %v262_v3 = vld [vmem:[%s389_s1 + $0x50] sm:$0xff]  ;;  %v261_v5 = vld [vmem:[%s389_s1 + $0x48] sm:$0xff] }
   0x3   :  { %283 = vmatpush.bf16.msra.mxu3 %v263_v1  ;;  %168 = vmatpush.bf16.msra.mxu1 %v263_v1  ;;  %v256_v6 = vld [vmem:[%s389_s1 + $0x20] sm:$0xff]  ;;  %v20_v8 = vld [vmem:[%s390_s0 + $0x28] sm:$0xff]  ;;  %v22_v9 = vld [vmem:[%s390_s0 + $0x38] sm:$0xff] }
   0x4   :  { %v260_v7 = vld [vmem:[%s389_s1 + $0x40] sm:$0xff]  ;;  %v16_v10 = vld [vmem:[%s390_s0 + $0x8] sm:$0xff]  ;;  %v18_v11 = vld [vmem:[%s390_s0 + $0x18] sm:$0xff]  ;;  %v28_v13 = vpack.c.bf16 %v22_v9, %v20_v8 }
   0x5   :  { %v255_v12 = vld [vmem:[%s389_s1 + $0x18] sm:$0xff]  ;;  %v26_v14 = vpack.c.bf16 %v18_v11, %v16_v10  ;;  %v254_v15 = vld [vmem:[%s389_s1 + $0x10] sm:$0xff]  ;;  %v253_v16 = vld [vmem:[%s389_s1 + $0x8] sm:$0xff] }
   0x6   :  { %276 = vmatpush.bf16.msra.mxu2 %v258_v2  ;;  %142 = vmatpush.bf16.msra.mxu0 %v258_v2  ;;  %v252_v17 = vld [vmem:[%s389_s1] sm:$0xff]  ;;  %v21_v19 = vld [vmem:[%s390_s0 + $0x30] sm:$0xff]  ;;  %v24_v22 = vld [vmem:[%s390_s0 + $0x48] sm:$0xff] }
   0x7   :  { %284 = vmatpush.bf16.msra.mxu3 %v262_v3  ;;  %169 = vmatpush.bf16.msra.mxu1 %v262_v3  ;;  %v19_v18 = vld [vmem:[%s390_s0 + $0x20] sm:$0xff]  ;;  %v17_v21 = vld [vmem:[%s390_s0 + $0x10] sm:$0xff]  ;;  %v30_v25 = vpack.c.bf16 %v24_v22, %v24_v22 }
   0x8   :  { %v15_v20 = vld [vmem:[%s390_s0] sm:$0xff]  ;;  %v27_v23 = vpack.c.bf16 %v21_v19, %v19_v18 }
   0x9   :  { %v25_v24 = vpack.c.bf16 %v17_v21, %v15_v20  ;;  %v23_v26 = vld [vmem:[%s390_s0 + $0x40] sm:$0xff] }
   0xa   :  { %277 = vmatpush.bf16.msra.mxu2 %v257_v4  ;;  %143 = vmatpush.bf16.msra.mxu0 %v257_v4  ;;  %v29_v27 = vpack.c.bf16 %v23_v26, %v23_v26  ;;  %v287_v32 = vld [vmem:[%s391_s2] ss:$0 sm:$0xff] }
   0xb   :  { %285 = vmatpush.bf16.msra.mxu3 %v261_v5  ;;  %170 = vmatpush.bf16.msra.mxu1 %v261_v5 }
   0xe   :  { %278 = vmatpush.bf16.msra.mxu2 %v256_v6  ;;  %144 = vmatpush.bf16.msra.mxu0 %v256_v6 }
   0xf   :  { %286 = vmatpush.bf16.msra.mxu3 %v260_v7  ;;  %171 = vmatpush.bf16.msra.mxu1 %v260_v7 }
  0x12   :  { %279 = vmatpush.bf16.msra.mxu2 %v255_v12  ;;  %145 = vmatpush.bf16.msra.mxu0 %v255_v12 }
  0x13   :  { %250 = vmatmul.msk.bf16.vlgmr.msra.gmra.mxu3 %vm131_vm0, %v28_v13  ;;  %249 = vmatmul.msk.bf16.vlgmr.msra.gmra.mxu1 %vm131_vm0, %v26_v14 }
  0x16   :  { %280 = vmatpush.bf16.msra.mxu2 %v254_v15  ;;  %146 = vmatpush.bf16.msra.mxu0 %v254_v15 }
  0x1a   :  { %281 = vmatpush.bf16.msra.mxu2 %v253_v16  ;;  %147 = vmatpush.bf16.msra.mxu0 %v253_v16 }
  0x1e   :  { %282 = vmatpush.bf16.msra.mxu2 %v252_v17  ;;  %148 = vmatpush.bf16.msra.mxu0 %v252_v17 }
  0x21   :  { %154 = vmatmul.bf16.vlgmr.msra.gmra.mxu2 %v27_v23  ;;  %149 = vmatmul.bf16.vlgmr.msra.gmra.mxu0 %v25_v24 }
  0x23   :  { %251 = vmatmul.msk.bf16.gmra.mxu3 %vm131_vm0, %v30_v25 }
  0x31   :  { %159 = vmatmul.bf16.gmra.mxu2 %v29_v27 }
  0x90   :  { %v173_v29 = vpop.f32.mrf.mxu1 }
  0x96   :  { %v178_v28 = vpop.f32.mrf.mxu3 }
  0x98   :  { %v175_v35 = vpop.f32.mrf.mxu1 }
  0x9e   :  { %v180_v30 = vpop.f32.mrf.mxu3  ;;  %v150_v31 = vpop.f32.mrf.mxu0 }
  0x9f   :  { %v151_v33 = vadd.f32 %v287_v32, %v150_v31 }
  0xa1   :  { %v174_v38 = vadd.f32 %v173_v29, %v151_v33 }
  0xa4   :  { %v155_v34 = vpop.f32.mrf.mxu2 }
  0xa5   :  { %v156_v41 = vadd.f32 %v287_v32, %v155_v34 }
  0xa6   :  { %v183_v36 = vpop.f32.mrf.mxu3  ;;  %v152_v37 = vpop.f32.mrf.mxu0 }
  0xa7   :  { %v153_v39 = vadd.f32 %v287_v32, %v152_v37  ;;  %v179_v46 = vadd.f32 %v178_v28, %v156_v41 }
  0xa9   :  { %v176_v40 = vadd.f32 %v175_v35, %v153_v39 }
  0xab   :  { %v267_v42 = vpack.c.bf16 %v176_v40, %v174_v38 }
  0xac   :  { %v157_v43 = vpop.f32.mrf.mxu2 }
  0xad   :  { %v158_v44 = vadd.f32 %v287_v32, %v157_v43  ;;  %268 = vst [vmem:[%s392_s3] sm:$0xff] %v267_v42  }
  0xae   :  { %v185_v45 = vpop.f32.mrf.mxu3 }
  0xaf   :  { %v181_v47 = vadd.f32 %v180_v30, %v158_v44 }
  0xb1   :  { %v272_v48 = vpack.c.bf16 %v181_v47, %v179_v46 }
  0xb3   :  { %274 = vst [vmem:[%s392_s3 + $0x8] sm:$0xff] %v272_v48  }
  0xb4   :  { %v160_v49 = vpop.f32.mrf.mxu2 }
  0xb5   :  { %v161_v50 = vadd.f32 %v287_v32, %v160_v49 }
  0xb7   :  { %v184_v51 = vadd.f32 %v183_v36, %v161_v50 }
  0xb9   :  { %v191_v52 = vpack.c.bf16 %v184_v51, %v184_v51 }
  0xbb   :  { %196 = vst [vmem:[%s392_s3 + $0x10] sm:$0xf] %v191_v52 }
  0xbc   :  { %v162_v53 = vpop.f32.mrf.mxu2 }

// kernel: dino_v2_a_forward.7
= control target key start
LH: loop header
LB: loop body
LE: loop exit
PB: predicated region body
PF: predicated region fallthrough
CT: control target
= control target key end

     0   :  { %vm120_vm0 = vcmask 1041408   ;;  %v2985_v12 = vmov 128.0   ;;  %s2986_s24 = smov 64   ;;  %s4257_s0 = inlined_call_operand.vmem [shape: bf16[50,128], index: 0, kind: input, shape index: {}, may-alias: {0,13}]   ;;  %s4258_s1 = inlined_call_operand.vmem [shape: f32[1,128], index: 1, kind: input, shape index: {}]   ;;  %s4259_s2 = inlined_call_operand.vmem [shape: f32[1,128], index: 2, kind: input, shape index: {}]   ;;  %s4260_s3 = inlined_call_operand.vmem [shape: bf16[128,384], index: 3, kind: input, shape index: {}]   ;;  %s4261_s4 = inlined_call_operand.vmem [shape: f32[1,384], index: 4, kind: input, shape index: {}]   ;;  %s4262_s5 = inlined_call_operand.vmem [shape: bf16[128,128], index: 5, kind: input, shape index: {}]   ;;  %s4263_s6 = inlined_call_operand.vmem [shape: f32[1,128], index: 6, kind: input, shape index: {}]   ;;  %s4264_s7 = inlined_call_operand.vmem [shape: f32[1,128], index: 7, kind: input, shape index: {}]   ;;  %s4265_s8 = inlined_call_operand.vmem [shape: f32[1,128], index: 8, kind: input, shape index: {}]   ;;  %s4266_s9 = inlined_call_operand.vmem [shape: bf16[128,512], index: 9, kind: input, shape index: {}]   ;;  %s4267_s11 = inlined_call_operand.vmem [shape: bf16[512,128], index: 11, kind: input, shape index: {}]   ;;  %s4268_s10 = inlined_call_operand.vmem [shape: f32[1,512], index: 10, kind: input, shape index: {}]   ;;  %s4269_s12 = inlined_call_operand.vmem [shape: f32[1,128], index: 12, kind: input, shape index: {}]   ;;  %s4270_s13 = inlined_call_operand.vmem [shape: bf16[50,128], index: 13, kind: output, shape index: {}, may-alias: {0,13}]  }
   0x1   :  { %v2820_v0 = vld [vmem:[%s4257_s0 + $0x10] sm:$0xff]   ;;  %v2793_v1 = vld [vmem:[%s4257_s0] sm:$0xff]   ;;  %v2819_v2 = vld [vmem:[%s4257_s0 + $0x8] sm:$0xff]   ;;  %2843 = vrcp.f32 %v2985_v12 }
   0x2   :  { %v3066_v3 = vunpack.c.l.bf16 %v2820_v0  ;;  %v3068_v4 = vunpack.c.l.bf16 %v2793_v1  ;;  %v3070_v5 = vunpack.c.l.bf16 %v2819_v2  ;;  %v3075_v6 = vunpack.c.h.bf16 %v2793_v1  ;;  %v51_v9 = vld [vmem:[%s4257_s0 + $0x18] sm:$0x1]  ;;  %v2374_v48 = vld [vmem:[%s4260_s3 + $0xa8] sm:$0xf]  ;;  %v2718_v49 = vld [vmem:[%s4260_s3 + $0xb0] sm:$0xf0] }
   0x3   :  { %v3077_v7 = vunpack.c.h.bf16 %v2820_v0  ;;  %v3079_v8 = vunpack.c.h.bf16 %v2819_v2  ;;  %v3087_v10 = vunpack.c.l.bf16 %v51_v9  ;;  %v2717_v50 = vld [vmem:[%s4260_s3 + $0xac] sm:$0xf]  ;;  %v2375_v51 = vor.u32 %v2718_v49, %v2374_v48  ;;  %v2376_v52 = vld [vmem:[%s4260_s3 + $0xb4] sm:$0xf0]  ;;  %v2382_v53 = vld [vmem:[%s4260_s3 + $0xb0] sm:$0xf] }
   0x4   :  { %116 = vadd.xlane.f32.xlu2 %v3066_v3  ;;  %108 = vadd.xlane.f32.xlu0 %v3068_v4  ;;  %v2719_v54 = vld [vmem:[%s4260_s3 + $0xb8] sm:$0xf0]  ;;  %v2379_v55 = vor.u32 %v2717_v50, %v2376_v52  ;;  %v2362_v57 = vld [vmem:[%s4260_s3 + $0x90] sm:$0xf]  ;;  %v2714_v59 = vld [vmem:[%s4260_s3 + $0x94] sm:$0xf] }
   0x5   :  { %112 = vadd.xlane.f32.xlu1 %v3070_v5  ;;  %v121_v11 = vsel %vm120_vm0, %v3087_v10, 0.0  ;;  %v2383_v56 = vor.u32 %v2719_v54, %v2382_v53  ;;  %452 = vmatpush.bf16.msra.mxu0 %v2375_v51  ;;  %v2715_v58 = vld [vmem:[%s4260_s3 + $0x98] sm:$0xf0]  ;;  %v2364_v61 = vld [vmem:[%s4260_s3 + $0x9c] sm:$0xf0] }
   0x6   :  { %480 = vmatpush.bf16.msra.mxu1 %v2379_v55  ;;  %v2363_v60 = vor.u32 %v2715_v58, %v2362_v57  ;;  %v2370_v62 = vld [vmem:[%s4260_s3 + $0x98] sm:$0xf]  ;;  %v2716_v63 = vld [vmem:[%s4260_s3 + $0xa0] sm:$0xf0]  ;;  %v2367_v0 = vor.u32 %v2714_v59, %v2364_v61  ;;  %v2316_v48 = vld [vmem:[%s4260_s3 + $0x3c] sm:$0xf0] }
   0x7   :  { %v2844_v13 = vpop.eup %2843  ;;  %508 = vmatpush.bf16.msra.mxu2 %v2383_v56  ;;  %v2371_v1 = vor.u32 %v2716_v63, %v2370_v62  ;;  %v2350_v2 = vld [vmem:[%s4260_s3 + $0x78] sm:$0xf]  ;;  %v2712_v9 = vld [vmem:[%s4260_s3 + $0x80] sm:$0xf0]  ;;  %v2699_v55 = vld [vmem:[%s4260_s3 + $0x1c] sm:$0xf] }
   0x8   :  { %v125_v14 = vmul.f32 128.0, %v2844_v13  ;;  %vm129_vm1 = vweird.f32 %v2844_v13  ;;  %v2351_v12 = vor.u32 %v2712_v9, %v2350_v2  ;;  %v2322_v49 = vld [vmem:[%s4260_s3 + $0x38] sm:$0xf]  ;;  %v2704_v50 = vld [vmem:[%s4260_s3 + $0x40] sm:$0xf0] }
   0x9   :  { %453 = vmatpush.bf16.msra.mxu0 %v2363_v60  ;;  %v2323_v52 = vor.u32 %v2704_v50, %v2322_v49  ;;  %v2302_v53 = vld [vmem:[%s4260_s3 + $0x18] sm:$0xf]  ;;  %v2700_v54 = vld [vmem:[%s4260_s3 + $0x20] sm:$0xf0]  ;;  %v2304_v57 = vld [vmem:[%s4260_s3 + $0x24] sm:$0xf0] }
   0xa   :  { %v126_v15 = vsub.f32 1.0, %v125_v14  ;;  %481 = vmatpush.bf16.msra.mxu1 %v2367_v0  ;;  %v2358_v14 = vld [vmem:[%s4260_s3 + $0x80] sm:$0xf]  ;;  %v2303_v56 = vor.u32 %v2700_v54, %v2302_v53  ;;  %v2701_v59 = vld [vmem:[%s4260_s3 + $0x28] sm:$0xf0]  ;;  %v2307_v61 = vor.u32 %v2699_v55, %v2304_v57 }
   0xb   :  { %509 = vmatpush.bf16.msra.mxu2 %v2371_v1  ;;  %v2310_v58 = vld [vmem:[%s4260_s3 + $0x20] sm:$0xf]  ;;  %v2697_v1 = vld [vmem:[%s4260_s3 + $0x8] sm:$0xf0]  ;;  %v2696_v2 = vld [vmem:[%s4260_s3 + $0x4] sm:$0xf] }
   0xc   :  { %110 = vadd.xlane.f32.xlu0 %v3075_v6  ;;  %118 = vadd.xlane.f32.xlu2 %v3077_v7  ;;  %v127_v16 = vmul.f32 %v2844_v13, %v126_v15  ;;  %v2713_v15 = vld [vmem:[%s4260_s3 + $0x88] sm:$0xf0]  ;;  %v2311_v62 = vor.u32 %v2701_v59, %v2310_v58  ;;  %v2290_v0 = vld [vmem:[%s4260_s3] sm:$0xf] }
   0xd   :  { %114 = vadd.xlane.f32.xlu1 %v3079_v8  ;;  %454 = vmatpush.bf16.msra.mxu0 %v2351_v12  ;;  %v2292_v12 = vld [vmem:[%s4260_s3 + $0xc] sm:$0xf0]  ;;  %v3304_v57 = vld [vmem:[%s4258_s1] ss:$0 sm:$0xff] }
   0xe   :  { %v128_v17 = vadd.f32 %v2844_v13, %v127_v16 }
  0x10   :  { %v3091_v18 = vsel %vm129_vm1, %v2844_v13, %v128_v17  ;;  %v2352_v13 = vld [vmem:[%s4260_s3 + $0x84] sm:$0xf0]  ;;  %v2359_v17 = vor.u32 %v2713_v15, %v2358_v14  ;;  %v2698_v15 = vld [vmem:[%s4260_s3 + $0x10] sm:$0xf0] }
  0x11   :  { %v2298_v14 = vld [vmem:[%s4260_s3 + $0x8] sm:$0xf] }
  0x12   :  { %510 = vmatpush.bf16.msra.mxu2 %v2359_v17 }
  0x14   :  { %122 = vadd.xlane.f32.xlu2 %v121_v11  ;;  %v2711_v11 = vld [vmem:[%s4260_s3 + $0x7c] sm:$0xf] }
  0x15   :  { %v2355_v16 = vor.u32 %v2711_v11, %v2352_v13  ;;  %v2291_v11 = vor.u32 %v2697_v1, %v2290_v0  ;;  %v2295_v13 = vor.u32 %v2696_v2, %v2292_v12 }
  0x17   :  { %482 = vmatpush.bf16.msra.mxu1 %v2355_v16  ;;  %v2299_v16 = vor.u32 %v2698_v15, %v2298_v14 }
  0x77   :  { %v117_v19 = vpop.xlane.xlu2 %116  ;;  %v109_v20 = vpop.xlane.xlu0 %108 }
  0x78   :  { %v135_v21 = vmul.f32 %v3091_v18, %v117_v19  ;;  %v131_v22 = vmul.f32 %v3091_v18, %v109_v20  ;;  %v113_v23 = vpop.xlane.xlu1 %112  ;;  %v2338_v19 = vld [vmem:[%s4260_s3 + $0x60] sm:$0xf]  ;;  %v2709_v20 = vld [vmem:[%s4260_s3 + $0x68] sm:$0xf0] }
  0x79   :  { %v133_v26 = vmul.f32 %v3091_v18, %v113_v23  ;;  %v2340_v23 = vld [vmem:[%s4260_s3 + $0x6c] sm:$0xf0] }
  0x7a   :  { %v3096_v24 = vsub.f32 %v3066_v3, %v135_v21  ;;  %v3099_v25 = vsub.f32 %v3068_v4, %v131_v22  ;;  %v2708_v21 = vld [vmem:[%s4260_s3 + $0x64] sm:$0xf]  ;;  %v2339_v22 = vor.u32 %v2709_v20, %v2338_v19 }
  0x7b   :  { %v3107_v29 = vsub.f32 %v3070_v5, %v133_v26  ;;  %v2346_v26 = vld [vmem:[%s4260_s3 + $0x68] sm:$0xf] }
  0x7c   :  { %v149_v27 = vmul.f32 %v3096_v24, %v3096_v24  ;;  %v145_v28 = vmul.f32 %v3099_v25, %v3099_v25  ;;  %455 = vmatpush.bf16.msra.mxu0 %v2339_v22 }
  0x7d   :  { %v147_v36 = vmul.f32 %v3107_v29, %v3107_v29 }
  0x7e   :  { %160 = vadd.xlane.f32.xlu2 %v149_v27  ;;  %152 = vadd.xlane.f32.xlu0 %v145_v28  ;;  %v2710_v27 = vld [vmem:[%s4260_s3 + $0x70] sm:$0xf0]  ;;  %v2343_v28 = vor.u32 %v2708_v21, %v2340_v23 }
  0x7f   :  { %v111_v30 = vpop.xlane.xlu0 %110  ;;  %v119_v31 = vpop.xlane.xlu2 %118 }
  0x80   :  { %v132_v32 = vmul.f32 %v3091_v18, %v111_v30  ;;  %v115_v33 = vpop.xlane.xlu1 %114  ;;  %v136_v35 = vmul.f32 %v3091_v18, %v119_v31  ;;  %v2347_v30 = vor.u32 %v2710_v27, %v2346_v26  ;;  %483 = vmatpush.bf16.msra.mxu1 %v2343_v28  ;;  %v2326_v31 = vld [vmem:[%s4260_s3 + $0x48] sm:$0xf] }
  0x81   :  { %v134_v37 = vmul.f32 %v3091_v18, %v115_v33  ;;  %v2705_v33 = vld [vmem:[%s4260_s3 + $0x4c] sm:$0xf] }
  0x82   :  { %v3111_v34 = vsub.f32 %v3075_v6, %v132_v32  ;;  %v3120_v39 = vsub.f32 %v3077_v7, %v136_v35  ;;  %511 = vmatpush.bf16.msra.mxu2 %v2347_v30  ;;  %v2706_v32 = vld [vmem:[%s4260_s3 + $0x50] sm:$0xf0] }
  0x83   :  { %v3123_v40 = vsub.f32 %v3079_v8, %v134_v37  ;;  %v2327_v35 = vor.u32 %v2706_v32, %v2326_v31  ;;  %v2334_v37 = vld [vmem:[%s4260_s3 + $0x50] sm:$0xf] }
  0x84   :  { %v146_v38 = vmul.f32 %v3111_v34, %v3111_v34  ;;  %v150_v43 = vmul.f32 %v3120_v39, %v3120_v39 }
  0x85   :  { %v148_v44 = vmul.f32 %v3123_v40, %v3123_v40  ;;  %456 = vmatpush.bf16.msra.mxu0 %v2327_v35 }
  0x86   :  { %156 = vadd.xlane.f32.xlu0 %v147_v36  ;;  %154 = vadd.xlane.f32.xlu1 %v146_v38  ;;  %v2328_v36 = vld [vmem:[%s4260_s3 + $0x54] sm:$0xf0]  ;;  %v2707_v38 = vld [vmem:[%s4260_s3 + $0x58] sm:$0xf0] }
  0x87   :  { %v123_v41 = vpop.xlane.xlu2 %122 }
  0x88   :  { %v137_v42 = vmul.f32 %v3091_v18, %v123_v41  ;;  %v2331_v41 = vor.u32 %v2705_v33, %v2328_v36 }
  0x8a   :  { %v3131_v45 = vsub.f32 %v3087_v10, %v137_v42  ;;  %v2335_v42 = vor.u32 %v2707_v38, %v2334_v37  ;;  %484 = vmatpush.bf16.msra.mxu1 %v2331_v41 }
  0x8c   :  { %v151_v46 = vmul.f32 %v3131_v45, %v3131_v45  ;;  %512 = vmatpush.bf16.msra.mxu2 %v2335_v42 }
  0x8e   :  { %162 = vadd.xlane.f32.xlu0 %v150_v43  ;;  %158 = vadd.xlane.f32.xlu1 %v148_v44  ;;  %v164_v47 = vsel %vm120_vm0, %v151_v46, 0.0  ;;  %v2314_v43 = vld [vmem:[%s4260_s3 + $0x30] sm:$0xf]  ;;  %v2703_v44 = vld [vmem:[%s4260_s3 + $0x38] sm:$0xf0] }
  0x8f   :  { %v2702_v46 = vld [vmem:[%s4260_s3 + $0x34] sm:$0xf] }
  0x90   :  { %v2319_v51 = vor.u32 %v2702_v46, %v2316_v48  ;;  %513 = vmatpush.bf16.msra.mxu2 %v2323_v52 }
  0x92   :  { %485 = vmatpush.bf16.msra.mxu1 %v2319_v51 }
  0x94   :  { %514 = vmatpush.bf16.msra.mxu2 %v2311_v62 }
  0x96   :  { %165 = vadd.xlane.f32.xlu1 %v164_v47  ;;  %v2315_v47 = vor.u32 %v2703_v44, %v2314_v43  ;;  %486 = vmatpush.bf16.msra.mxu1 %v2307_v61 }
  0x98   :  { %457 = vmatpush.bf16.msra.mxu0 %v2315_v47  ;;  %515 = vmatpush.bf16.msra.mxu2 %v2299_v16 }
  0x9a   :  { %487 = vmatpush.bf16.msra.mxu1 %v2295_v13 }
  0x9c   :  { %458 = vmatpush.bf16.msra.mxu0 %v2303_v56 }
  0xa0   :  { %459 = vmatpush.bf16.msra.mxu0 %v2291_v11 }
  0xf1   :  { %v153_v60 = vpop.xlane.xlu0 %152  ;;  %v161_v28 = vpop.xlane.xlu2 %160 }
  0xf2   :  { %v167_v63 = vmul.f32 %v153_v60, %v3091_v18  ;;  %v171_v37 = vmul.f32 %v161_v28, %v3091_v18 }
  0xf4   :  { %v174_v9 = vadd.f32 1e-05, %v167_v63  ;;  %v3295_v49 = vadd.f32 1e-05, %v171_v37 }
  0xf6   :  { %2845 = vrsqrt.f32 %v174_v9  ;;  %vm187_vm3 = vweird.f32 %v174_v9  ;;  %vm227_vm1 = vweird.f32 %v3295_v49 }
  0xf9   :  { %v155_v17 = vpop.xlane.xlu1 %154  ;;  %v157_v19 = vpop.xlane.xlu0 %156 }
  0xfa   :  { %v168_v20 = vmul.f32 %v155_v17, %v3091_v18  ;;  %v169_v21 = vmul.f32 %v157_v19, %v3091_v18 }
  0xfc   :  { %v175_v22 = vadd.f32 1e-05, %v168_v20  ;;  %v3283_v23 = vadd.f32 1e-05, %v169_v21  ;;  %v2846_v26 = vpop.eup %2845 }
  0xfd   :  { %v182_v27 = vmul.f32 %v2846_v26, %v174_v9  ;;  %vm188_vm2 = vweird.f32 %v2846_v26 }
  0xfe   :  { %2847 = vrsqrt.f32 %v175_v22  ;;  %vm189_vm4 = vmor %vm187_vm3, %vm188_vm2  ;;  %vm197_vm6 = vweird.f32 %v175_v22  ;;  %vm207_vm10 = vweird.f32 %v3283_v23 }
  0xff   :  { %2849 = vrsqrt.f32 %v3283_v23  ;;  %v183_v30 = vmul.f32 %v2846_v26, %v182_v27 }
 0x101   :  { %v159_v31 = vpop.xlane.xlu1 %158  ;;  %v163_v32 = vpop.xlane.xlu0 %162  ;;  %v184_v33 = vmul.f32 0.5, %v183_v30 }
 0x102   :  { %v170_v35 = vmul.f32 %v159_v31, %v3091_v18  ;;  %v172_v36 = vmul.f32 %v163_v32, %v3091_v18 }
 0x103   :  { %v185_v41 = vsub.f32 1.5, %v184_v33 }
 0x104   :  { %v2848_v38 = vpop.eup %2847  ;;  %v177_v42 = vadd.f32 1e-05, %v170_v35  ;;  %v3293_v48 = vadd.f32 1e-05, %v172_v36 }
 0x105   :  { %v3289_v43 = vpop.eup %2849  ;;  %v192_v44 = vmul.f32 %v2848_v38, %v175_v22  ;;  %v186_v46 = vmul.f32 %v2846_v26, %v185_v41  ;;  %vm198_vm5 = vweird.f32 %v2848_v38 }
 0x106   :  { %v202_v47 = vmul.f32 %v3289_v43, %v3283_v23  ;;  %2851 = vrsqrt.f32 %v177_v42  ;;  %vm199_vm7 = vmor %vm197_vm6, %vm198_vm5  ;;  %vm217_vm8 = vweird.f32 %v177_v42  ;;  %vm208_vm11 = vweird.f32 %v3289_v43 }
 0x107   :  { %v193_v50 = vmul.f32 %v2848_v38, %v192_v44  ;;  %v190_v51 = vsel %vm189_vm4, %v2846_v26, %v186_v46  ;;  %2853 = vrsqrt.f32 %v3293_v48  ;;  %vm209_vm13 = vmor %vm207_vm10, %vm208_vm11  ;;  %vm237_vm14 = vweird.f32 %v3293_v48 }
 0x108   :  { %v203_v53 = vmul.f32 %v3289_v43, %v202_v47  ;;  %2855 = vrsqrt.f32 %v3295_v49  ;;  %v251_v56 = vmul.f32 %v190_v51, %v3099_v25  ;;  %v3311_v25 = vld [vmem:[%s4259_s2] ss:$0 sm:$0xff]  ;;  %vm631_vm11 = vcmask 408576  }
 0x109   :  { %v194_v52 = vmul.f32 0.5, %v193_v50  ;;  %v166_v63 = vpop.xlane.xlu1 %165 }
 0x10a   :  { %v204_v59 = vmul.f32 0.5, %v203_v53  ;;  %v262_v2 = vmul.f32 %v3304_v57, %v251_v56  ;;  %v173_v13 = vmul.f32 %v166_v63, %v3091_v18 }
 0x10b   :  { %v195_v54 = vsub.f32 1.5, %v194_v52 }
 0x10c   :  { %v2852_v55 = vpop.eup %2851  ;;  %v205_v11 = vsub.f32 1.5, %v204_v59  ;;  %v273_v17 = vadd.f32 %v3311_v25, %v262_v2  ;;  %v180_v22 = vadd.f32 1e-05, %v173_v13 }
 0x10d   :  { %v196_v58 = vmul.f32 %v2848_v38, %v195_v54  ;;  %v212_v60 = vmul.f32 %v2852_v55, %v177_v42  ;;  %v2854_v0 = vpop.eup %2853  ;;  %vm218_vm9 = vweird.f32 %v2852_v55 }
 0x10e   :  { %v2856_v9 = vpop.eup %2855  ;;  %v232_v16 = vmul.f32 %v2854_v0, %v3293_v48  ;;  %v206_v20 = vmul.f32 %v3289_v43, %v205_v11  ;;  %vm219_vm12 = vmor %vm217_vm8, %vm218_vm9  ;;  %2857 = vrsqrt.f32 %v180_v22  ;;  %vm238_vm15 = vweird.f32 %v2854_v0 }
 0x10f   :  { %v200_v61 = vsel %vm199_vm7, %v2848_v38, %v196_v58  ;;  %v213_v62 = vmul.f32 %v2852_v55, %v212_v60  ;;  %vm228_vm2 = vweird.f32 %v2856_v9  ;;  %vm239_vm3 = vmor %vm237_vm14, %vm238_vm15  ;;  %vm247_vm5 = vweird.f32 %v180_v22 }
 0x110   :  { %v252_v1 = vmul.f32 %v200_v61, %v3111_v34  ;;  %v222_v34 = vmul.f32 %v2856_v9, %v3295_v49  ;;  %v233_v28 = vmul.f32 %v2854_v0, %v232_v16  ;;  %v210_v31 = vsel %vm209_vm13, %v3289_v43, %v206_v20  ;;  %vm229_vm4 = vmor %vm227_vm1, %vm228_vm2 }
 0x111   :  { %v214_v12 = vmul.f32 0.5, %v213_v62  ;;  %v253_v23 = vmul.f32 %v210_v31, %v3107_v29  ;;  %vm571_vm8 = vcmask 523264   ;;  %vm726_vm9 = vcmask 1040384  }
 0x112   :  { %v263_v14 = vmul.f32 %v3304_v57, %v252_v1  ;;  %v223_v30 = vmul.f32 %v2856_v9, %v222_v34  ;;  %v234_v33 = vmul.f32 0.5, %v233_v28 }
 0x113   :  { %v215_v15 = vsub.f32 1.5, %v214_v12  ;;  %v264_v41 = vmul.f32 %v3304_v57, %v253_v23 }
 0x114   :  { %v274_v19 = vadd.f32 %v3311_v25, %v263_v14  ;;  %v224_v35 = vmul.f32 0.5, %v223_v30  ;;  %v235_v37 = vsub.f32 1.5, %v234_v33  ;;  %v2858_v38 = vpop.eup %2857 }
 0x115   :  { %v216_v21 = vmul.f32 %v2852_v55, %v215_v15  ;;  %v242_v44 = vmul.f32 %v2858_v38, %v180_v22  ;;  %v275_v29 = vadd.f32 %v3311_v25, %v264_v41  ;;  %vm248_vm6 = vweird.f32 %v2858_v38 }
 0x116   :  { %v280_v26 = vpack.c.bf16 %v274_v19, %v273_v17  ;;  %v225_v42 = vsub.f32 1.5, %v224_v35  ;;  %vm249_vm7 = vmor %vm247_vm5, %vm248_vm6 }
 0x117   :  { %v220_v27 = vsel %vm219_vm12, %v2852_v55, %v216_v21  ;;  %v243_v51 = vmul.f32 %v2858_v38, %v242_v44 }
 0x118   :  { %460 = vmatmul.bf16.vlgmr.msra.gmra.mxu0 %v280_v26  ;;  %488 = vmatmul.bf16.vlgmr.msra.gmra.mxu1 %v280_v26  ;;  %v254_v32 = vmul.f32 %v220_v27, %v3123_v40  ;;  %v236_v40 = vmul.f32 %v2854_v0, %v235_v37  ;;  %v226_v46 = vmul.f32 %v2856_v9, %v225_v42 }
 0x119   :  { %516 = vmatmul.bf16.vlgmr.msra.gmra.mxu2 %v280_v26  ;;  %v244_v53 = vmul.f32 0.5, %v243_v51 }
 0x11a   :  { %v265_v36 = vmul.f32 %v3304_v57, %v254_v32  ;;  %v240_v50 = vsel %vm239_vm3, %v2854_v0, %v236_v40  ;;  %v230_v52 = vsel %vm229_vm4, %v2856_v9, %v226_v46  ;;  %vm650_vm3 = vcmask 402432  }
 0x11b   :  { %v256_v48 = vmul.f32 %v240_v50, %v3120_v39  ;;  %v255_v49 = vmul.f32 %v230_v52, %v3096_v24  ;;  %v245_v55 = vsub.f32 1.5, %v244_v53 }
 0x11c   :  { %v276_v43 = vadd.f32 %v3311_v25, %v265_v36 }
 0x11d   :  { %v267_v54 = vmul.f32 %v3304_v57, %v256_v48  ;;  %v266_v56 = vmul.f32 %v3304_v57, %v255_v49  ;;  %v246_v59 = vmul.f32 %v2858_v38, %v245_v55 }
 0x11e   :  { %v281_v47 = vpack.c.bf16 %v276_v43, %v275_v29 }
 0x11f   :  { %v278_v58 = vadd.f32 %v3311_v25, %v267_v54  ;;  %v277_v60 = vadd.f32 %v3311_v25, %v266_v56  ;;  %v250_v62 = vsel %vm249_vm7, %v2858_v38, %v246_v59 }
 0x120   :  { %v257_v24 = vmul.f32 %v250_v62, %v3131_v45  ;;  %v316_v45 = vld [vmem:[%s4261_s4] sm:$0x7] }
 0x121   :  { %v282_v61 = vpack.c.bf16 %v278_v58, %v277_v60  ;;  %v318_v27 = vperm.slane %v316_v45, 0  ;;  %v320_v49 = vperm.slane %v316_v45, 2 }
 0x122   :  { %v268_v39 = vmul.f32 %v3304_v57, %v257_v24  ;;  %v319_v57 = vperm.slane %v316_v45, 1 }
 0x124   :  { %v279_v63 = vadd.f32 %v3311_v25, %v268_v39 }
 0x126   :  { %v283_v0 = vpack.c.bf16 %v279_v63, %v279_v63 }
 0x128   :  { %465 = vmatmul.bf16.gmra.mxu0 %v281_v47  ;;  %493 = vmatmul.bf16.gmra.mxu1 %v281_v47 }
 0x129   :  { %521 = vmatmul.bf16.gmra.mxu2 %v281_v47 }
 0x138   :  { %470 = vmatmul.bf16.gmra.mxu0 %v282_v61  ;;  %498 = vmatmul.bf16.gmra.mxu1 %v282_v61 }
 0x139   :  { %526 = vmatmul.bf16.gmra.mxu2 %v282_v61 }
 0x148   :  { %475 = vmatmul.bf16.gmra.mxu0 %v283_v0  ;;  %503 = vmatmul.bf16.gmra.mxu1 %v283_v0 }
 0x149   :  { %531 = vmatmul.bf16.gmra.mxu2 %v283_v0 }
 0x195   :  { %v461_v1 = vpop.f32.mrf.mxu0  ;;  %v489_v2 = vpop.f32.mrf.mxu1 }
 0x196   :  { %v462_v42 = vadd.f32 %v461_v1, %v318_v27  ;;  %v490_v61 = vadd.f32 %v489_v2, %v319_v57 }
 0x198   :  { %v552_v47 = vmul.f32 0.125, %v462_v42 }
 0x19c   :  { %v3340_v9 = vpop.f32.mrf.mxu2 }
 0x19d   :  { %v463_v11 = vpop.f32.mrf.mxu0  ;;  %v491_v12 = vpop.f32.mrf.mxu1 }
 0x19e   :  { %v464_v36 = vadd.f32 %v463_v11, %v318_v27  ;;  %v492_v55 = vadd.f32 %v491_v12, %v319_v57 }
 0x1a0   :  { %v553_v40 = vmul.f32 0.125, %v464_v36  ;;  %v563_v39 = vpack.c.bf16 %v492_v55, %v490_v61 }
 0x1a2   :  { %v559_v52 = vpack.c.bf16 %v553_v40, %v552_v47 }
 0x1a4   :  { %v3342_v13 = vpop.f32.mrf.mxu2 }
 0x1a5   :  { %v3344_v14 = vpop.f32.mrf.mxu0  ;;  %v494_v15 = vpop.f32.mrf.mxu1 }
 0x1a6   :  { %v495_v17 = vadd.f32 %v494_v15, %v319_v57  ;;  %v467_v15 = vadd.f32 %v3344_v14, %v318_v27  ;;  %v520_v14 = vadd.f32 %v3342_v13, %v320_v49 }
 0x1ac   :  { %v3349_v25 = vpop.f32.mrf.mxu2 }
 0x1ad   :  { %v468_v16 = vpop.f32.mrf.mxu0  ;;  %v496_v34 = vpop.f32.mrf.mxu1 }
 0x1ae   :  { %v497_v19 = vadd.f32 %v496_v34, %v319_v57  ;;  %v469_v63 = vadd.f32 %v468_v16, %v318_v27  ;;  %v523_v34 = vadd.f32 %v3349_v25, %v320_v49 }
 0x1b0   :  { %v3351_v20 = vpack.c.bf16 %v497_v19, %v495_v17  ;;  %v555_v16 = vmul.f32 0.125, %v469_v63  ;;  %v554_v17 = vmul.f32 0.125, %v467_v15 }
 0x1b2   :  { %780 = vrot.lane.b32.xlu1 %v3351_v20, %s2986_s24  ;;  %v588_v25 = vsel %vm571_vm8, %v3351_v20, 0 }
 0x1b4   :  { %v524_v21 = vpop.f32.mrf.mxu2 }
 0x1b5   :  { %v471_v22 = vpop.f32.mrf.mxu0  ;;  %v499_v26 = vpop.f32.mrf.mxu1  ;;  %v525_v45 = vadd.f32 %v524_v21, %v320_v49 }
 0x1b6   :  { %v472_v28 = vadd.f32 %v471_v22, %v318_v27  ;;  %v500_v33 = vadd.f32 %v499_v26, %v319_v57  ;;  %v560_v22 = vpack.c.bf16 %v555_v16, %v554_v17  ;;  %v518_v26 = vadd.f32 %v3340_v9, %v320_v49 }
 0x1b7   :  { %v3374_v19 = vpack.c.bf16 %v525_v45, %v523_v34  ;;  %v585_v9 = vsel %vm571_vm8, %v563_v39, 0 }
 0x1b8   :  { %v556_v37 = vmul.f32 0.125, %v472_v28  ;;  %v3383_v21 = vpack.c.bf16 %v520_v14, %v518_v26 }
 0x1bc   :  { %v527_v30 = vpop.f32.mrf.mxu2 }
 0x1bd   :  { %v473_v31 = vpop.f32.mrf.mxu0  ;;  %v501_v32 = vpop.f32.mrf.mxu1  ;;  %v528_v11 = vadd.f32 %v527_v30, %v320_v49 }
 0x1be   :  { %v474_v23 = vadd.f32 %v473_v31, %v318_v27  ;;  %v502_v35 = vadd.f32 %v501_v32, %v319_v57 }
 0x1c0   :  { %v557_v38 = vmul.f32 0.125, %v474_v23  ;;  %v565_v41 = vpack.c.bf16 %v502_v35, %v500_v33 }
 0x1c2   :  { %782 = vrot.lane.b32.xlu0 %v565_v41, %s2986_s24  ;;  %v3356_v43 = vpack.c.bf16 %v557_v38, %v556_v37  ;;  %v591_v12 = vsel %vm571_vm8, %v565_v41, 0  ;;  %v59_v38 = vlaneseq }
 0x1c4   :  { %v529_v44 = vpop.f32.mrf.mxu2  ;;  %770 = vrot.lane.b32.xlu1 %v3356_v43, %s2986_s24  ;;  %v60_v41 = vshrl.u32 %v59_v38, 7  ;;  %v75_v42 = vand.u32 127, %v59_v38 }
 0x1c5   :  { %v476_v29 = vpop.f32.mrf.mxu0  ;;  %v504_v46 = vpop.f32.mrf.mxu1  ;;  %v530_v24 = vadd.f32 %v529_v44, %v320_v49 }
 0x1c6   :  { %v505_v50 = vadd.f32 %v504_v46, %v319_v57  ;;  %v477_v48 = vadd.f32 %v476_v29, %v318_v27  ;;  %v67_v40 = vcvt.s32.f32 %v60_v41  ;;  %v76_v44 = vcvt.s32.f32 %v75_v42 }
 0x1c7   :  { %v3368_v2 = vpack.c.bf16 %v530_v24, %v528_v11  ;;  %v61_v47 = vadd.s32 8, %v60_v41  ;;  %v63_v63 = vadd.s32 24, %v60_v41  ;;  %v64_v34 = vadd.s32 32, %v60_v41 }
 0x1c8   :  { %v566_v51 = vpack.c.bf16 %v505_v50, %v505_v50  ;;  %v558_v56 = vmul.f32 0.125, %v477_v48  ;;  %v77_v29 = vadd.f32 0.5, %v67_v40  ;;  %v98_v46 = vadd.f32 0.5, %v76_v44 }
 0x1c9   :  { %v70_v11 = vcvt.s32.f32 %v63_v63 }
 0x1ca   :  { %784 = vrot.lane.b32.xlu2 %v566_v51, %s2986_s24  ;;  %766 = vrot.lane.b32.xlu0 %v559_v52, %s2986_s24  ;;  %v594_v53 = vsel %vm571_vm8, %v566_v51, 0  ;;  %v562_v0 = vpack.c.bf16 %v558_v56, %v558_v56  ;;  %v84_v50 = vmul.f32 0.2, %v77_v29  ;;  %v99_v51 = vmul.f32 0.2, %v98_v46 }
 0x1cb   :  { %600 = vmatpush.bf16.xpose.msra.mxu3 %v594_v53  ;;  %v80_v16 = vadd.f32 0.5, %v70_v11 }
 0x1cc   :  { %v532_v54 = vpop.f32.mrf.mxu2  ;;  %v91_v48 = vfloor.f32 %v84_v50  ;;  %v100_v53 = vfloor.f32 %v99_v51 }
 0x1cd   :  { %v533_v58 = vadd.f32 %v532_v54, %v320_v49  ;;  %v478_v59 = vpop.f32.mrf.mxu0  ;;  %v506_v60 = vpop.f32.mrf.mxu1  ;;  %v62_v54 = vadd.s32 16, %v60_v41  ;;  %v87_v14 = vmul.f32 0.2, %v80_v16 }
 0x1ce   :  { %vm3401_vm10 = vcmp.eq.f32.partialorder %v91_v48, %v100_v53 }
 0x1cf   :  { %v570_v62 = vpack.c.bf16 %v533_v58, %v533_v58  ;;  %v69_v59 = vcvt.s32.f32 %v62_v54 }
 0x1d1   :  { %v728_v1 = vsel %vm726_vm9, %v570_v62, 0 }
 0x1d2   :  { %734 = vmatpush.bf16.msrb.mxu0 %v728_v1  ;;  %2823 = vmatpush.bf16.msrb.mxu2 %v728_v1 }
 0x1d3   :  { %778 = vrot.lane.b32.xlu2 %v563_v39, %s2986_s24  ;;  %772 = vrot.lane.b32.xlu0 %v562_v0, %s2986_s24  ;;  %v79_v39 = vadd.f32 0.5, %v69_v59 }
 0x1d4   :  { %v534_v57 = vpop.f32.mrf.mxu2  ;;  %601 = vmatpush.bf16.xpose.msra.mxu3 %v591_v12 }
 0x1d5   :  { %v86_v1 = vmul.f32 0.2, %v79_v39 }
 0x1d6   :  { %735 = vmatpush.bf16.msrb.mxu0 %v3368_v2  ;;  %2824 = vmatpush.bf16.msrb.mxu2 %v3368_v2 }
 0x1d7   :  { %v93_v57 = vfloor.f32 %v86_v1 }
 0x1d9   :  { %vm3422_vm13 = vcmp.eq.f32.partialorder %v93_v57, %v100_v53 }
 0x1da   :  { %736 = vmatpush.bf16.msrb.mxu0 %v3374_v19  ;;  %2825 = vmatpush.bf16.msrb.mxu2 %v3374_v19 }
 0x1db   :  { %768 = vrot.lane.b32.xlu2 %v560_v22, %s2986_s24  ;;  %936 = vrot.lane.b32.xlu0 %v570_v62, %s2986_s24 }
 0x1dc   :  { %602 = vmatpush.bf16.xpose.msra.mxu3 %v588_v25 }
 0x1de   :  { %737 = vmatpush.bf16.msrb.mxu0 %v3383_v21  ;;  %2826 = vmatpush.bf16.msrb.mxu2 %v3383_v21 }
 0x1e4   :  { %603 = vmatpush.bf16.xpose.msra.mxu3 %v585_v9 }
 0x1eb   :  { %2384 = vmatmul.msk.bf16.vlgmr.msra.gmra.mxu3 %vm571_vm8, %v559_v52  ;;  %v68_v52 = vcvt.s32.f32 %v61_v47 }
 0x1ed   :  { %v78_v49 = vadd.f32 0.5, %v68_v52 }
 0x1ef   :  { %v85_v58 = vmul.f32 0.2, %v78_v49 }
 0x1f1   :  { %v92_v24 = vfloor.f32 %v85_v58 }
 0x1f3   :  { %vm3412_vm12 = vcmp.eq.f32.partialorder %v92_v24, %v100_v53 }
 0x1fb   :  { %2385 = vmatmul.msk.bf16.gmra.mxu3 %vm571_vm8, %v560_v22  ;;  %v71_v22 = vcvt.s32.f32 %v64_v34 }
 0x20b   :  { %2386 = vmatmul.msk.bf16.gmra.mxu3 %vm571_vm8, %v3356_v43 }
 0x21b   :  { %2387 = vmatmul.msk.bf16.gmra.mxu3 %vm571_vm8, %v562_v0 }
 0x224   :  { %v785_v13 = vpop.permute.xlu2 %784  ;;  %v781_v30 = vpop.permute.xlu1 %780 }
 0x225   :  { %v808_v20 = vsel %vm571_vm8, %v785_v13, 0  ;;  %v802_v32 = vsel %vm571_vm8, %v781_v30, 0  ;;  %v94_v13 = vfloor.f32 %v87_v14 }
 0x226   :  { %814 = vmatpush.bf16.xpose.msrb.mxu1 %v808_v20  ;;  %2827 = vmatpush.bf16.xpose.msrb.mxu3 %v808_v20  ;;  %v81_v20 = vadd.f32 0.5, %v71_v22 }
 0x227   :  { %vm3432_vm14 = vcmp.eq.f32.partialorder %v94_v13, %v100_v53 }
 0x228   :  { %v88_v30 = vmul.f32 0.2, %v81_v20 }
 0x22d   :  { %v779_v33 = vpop.permute.xlu2 %778 }
 0x22e   :  { %v799_v35 = vsel %vm571_vm8, %v779_v33, 0 }
 0x234   :  { %v783_v27 = vpop.permute.xlu0 %782 }
 0x235   :  { %v805_v28 = vsel %vm571_vm8, %v783_v27, 0  ;;  %v769_v43 = vpop.permute.xlu2 %768  ;;  %v65_v27 = vadd.s32 40, %v60_v41 }
 0x236   :  { %815 = vmatpush.bf16.xpose.msrb.mxu1 %v805_v28  ;;  %2828 = vmatpush.bf16.xpose.msrb.mxu3 %v805_v28  ;;  %v771_v55 = vpop.permute.xlu1 %770 }
 0x23c   :  { %v767_v31 = vpop.permute.xlu0 %766 }
 0x23e   :  { %816 = vmatpush.bf16.xpose.msrb.mxu1 %v802_v32  ;;  %2829 = vmatpush.bf16.xpose.msrb.mxu3 %v802_v32 }
 0x245   :  { %v773_v23 = vpop.permute.xlu0 %772 }
 0x246   :  { %817 = vmatpush.bf16.xpose.msrb.mxu1 %v799_v35  ;;  %2830 = vmatpush.bf16.xpose.msrb.mxu3 %v799_v35  ;;  %v95_v35 = vfloor.f32 %v88_v30 }
 0x248   :  { %vm3442_vm15 = vcmp.eq.f32.partialorder %v95_v35, %v100_v53 }
 0x24d   :  { %v937_v36 = vpop.permute.xlu0 %936  ;;  %2392 = vmatmul.msk.bf16.vlgmr.msrb.gmra.mxu1 %vm571_vm8, %v767_v31  ;;  %2395 = vmatmul.msk.bf16.vlgmr.msrb.gmra.mxu3 %vm571_vm8, %v773_v23  ;;  %v72_v31 = vcvt.s32.f32 %v65_v27 }
 0x24e   :  { %v954_v37 = vsel %vm726_vm9, %v937_v36, 0 }
 0x24f   :  { %960 = vmatpush.bf16.msra.mxu2 %v954_v37  ;;  %v82_v36 = vadd.f32 0.5, %v72_v31  ;;  %v66_v37 = vadd.s32 48, %v60_v41 }
 0x251   :  { %v89_v42 = vmul.f32 0.2, %v82_v36 }
 0x253   :  { %v96_v46 = vfloor.f32 %v89_v42 }
 0x255   :  { %vm3452_vm1 = vcmp.eq.f32.partialorder %v96_v46, %v100_v53 }
 0x25d   :  { %2393 = vmatmul.msk.bf16.gmra.mxu1 %vm571_vm8, %v769_v43  ;;  %v73_v43 = vcvt.s32.f32 %v66_v37 }
 0x25f   :  { %v83_v47 = vadd.f32 0.5, %v73_v43 }
 0x261   :  { %v90_v50 = vmul.f32 0.2, %v83_v47 }
 0x263   :  { %v97_v49 = vfloor.f32 %v90_v50 }
 0x265   :  { %vm107_vm2 = vcmp.eq.f32.partialorder %v97_v49, %v100_v53 }
 0x26d   :  { %2394 = vmatmul.msk.bf16.gmra.mxu1 %vm571_vm8, %v771_v55 }
 0x26e   :  { %v605_v60 = vpop.f32.mrf.mxu3 }
 0x26f   :  { %v3408_v61 = vsel %vm3401_vm10, %v605_v60, -1e+30 }
 0x270   :  { %v632_v62 = vsel %vm631_vm11, %v3408_v61, -inf }
 0x271   :  { %633 = vmax.xlane.f32.xlu2 %v632_v62 }
 0x276   :  { %v607_v15 = vpop.f32.mrf.mxu3 }
 0x277   :  { %v3418_v12 = vsel %vm3412_vm12, %v607_v15, -1e+30 }
 0x278   :  { %v635_v45 = vsel %vm631_vm11, %v3418_v12, -inf }
 0x279   :  { %636 = vmax.xlane.f32.xlu1 %v635_v45 }
 0x27e   :  { %v610_v26 = vpop.f32.mrf.mxu3 }
 0x27f   :  { %v3428_v25 = vsel %vm3422_vm13, %v610_v26, -1e+30 }
 0x280   :  { %v638_v9 = vsel %vm631_vm11, %v3428_v25, -inf }
 0x281   :  { %639 = vmax.xlane.f32.xlu1 %v638_v9 }
 0x286   :  { %v612_v32 = vpop.f32.mrf.mxu3 }
 0x287   :  { %v3438_v33 = vsel %vm3432_vm14, %v612_v32, -1e+30 }
 0x288   :  { %v641_v23 = vsel %vm631_vm11, %v3438_v33, -inf }
 0x289   :  { %642 = vmax.xlane.f32.xlu0 %v641_v23 }
 0x28e   :  { %v615_v40 = vpop.f32.mrf.mxu3 }
 0x28f   :  { %v3448_v44 = vsel %vm3442_vm15, %v615_v40, -1e+30 }
 0x290   :  { %v644_v29 = vsel %vm631_vm11, %v3448_v44, -inf }
 0x291   :  { %645 = vmax.xlane.f32.xlu2 %v644_v29 }
 0x296   :  { %v617_v51 = vpop.f32.mrf.mxu3 }
 0x297   :  { %v3458_v52 = vsel %vm3452_vm1, %v617_v51, -1e+30 }
 0x298   :  { %v647_v48 = vsel %vm631_vm11, %v3458_v52, -inf }
 0x299   :  { %648 = vmax.xlane.f32.xlu1 %v647_v48 }
 0x29e   :  { %v620_v54 = vpop.f32.mrf.mxu3 }
 0x29f   :  { %v630_v55 = vsel %vm107_vm2, %v620_v54, -1e+30 }
 0x2a0   :  { %v651_v58 = vsel %vm650_vm3, %v630_v55, -inf }
 0x2a1   :  { %652 = vmax.xlane.f32.xlu2 %v651_v58 }
 0x2a6   :  { %v622_v59 = vpop.f32.mrf.mxu3 }
 0x2ca   :  { %v819_v60 = vpop.f32.mrf.mxu1 }
 0x2cb   :  { %v838_v62 = vsel %vm3401_vm10, %v819_v60, -1e+30 }
 0x2cc   :  { %v845_v24 = vsel %vm631_vm11, %v838_v62, -inf }
 0x2cd   :  { %846 = vmax.xlane.f32.xlu1 %v845_v24 }
 0x2d0   :  { %v834_v39 = vpop.f32.mrf.mxu3 }
 0x2d1   :  { %v3466_v63 = vsel %vm107_vm2, %v834_v39, -1e+30 }
 0x2d2   :  { %v821_v1 = vpop.f32.mrf.mxu1 }
 0x2d3   :  { %v839_v53 = vsel %vm3412_vm12, %v821_v1, -1e+30 }
 0x2d4   :  { %v848_v11 = vsel %vm631_vm11, %v839_v53, -inf }
 0x2d5   :  { %849 = vmax.xlane.f32.xlu0 %v848_v11 }
 0x2d8   :  { %v836_v15 = vpop.f32.mrf.mxu3 }
 0x2da   :  { %v824_v45 = vpop.f32.mrf.mxu1 }
 0x2db   :  { %v3473_v57 = vsel %vm3422_vm13, %v824_v45, -1e+30 }
 0x2dc   :  { %v851_v56 = vsel %vm631_vm11, %v3473_v57, -inf }
 0x2dd   :  { %852 = vmax.xlane.f32.xlu0 %v851_v56 }
 0x2e2   :  { %v826_v16 = vpop.f32.mrf.mxu1 }
 0x2e3   :  { %v841_v34 = vsel %vm3432_vm14, %v826_v16, -1e+30 }
 0x2e4   :  { %v854_v0 = vsel %vm631_vm11, %v841_v34, -inf  ;;  %v634_v20 = vpop.xlane.xlu2 %633 }
 0x2e5   :  { %855 = vmax.xlane.f32.xlu2 %v854_v0  ;;  %v654_v51 = vsub.f32 %v3408_v61, %v634_v20 }
 0x2ea   :  { %v829_v14 = vpop.f32.mrf.mxu1 }
 0x2eb   :  { %v3482_v22 = vsel %vm3442_vm15, %v829_v14, -1e+30 }
 0x2ec   :  { %v857_v17 = vsel %vm631_vm11, %v3482_v22, -inf  ;;  %v637_v35 = vpop.xlane.xlu1 %636 }
 0x2ed   :  { %858 = vmax.xlane.f32.xlu2 %v857_v17 }
 0x2f2   :  { %v831_v26 = vpop.f32.mrf.mxu1 }
 0x2f3   :  { %v843_v9 = vsel %vm3452_vm1, %v831_v26, -1e+30 }
 0x2f4   :  { %v860_v13 = vsel %vm631_vm11, %v843_v9, -inf  ;;  %v640_v36 = vpop.xlane.xlu1 %639 }
 0x2f5   :  { %861 = vmax.xlane.f32.xlu1 %v860_v13  ;;  %v656_v60 = vsub.f32 %v3428_v25, %v640_v36 }
 0x2fc   :  { %v643_v38 = vpop.xlane.xlu0 %642 }
 0x2fd   :  { %v657_v13 = vsub.f32 %v3438_v33, %v643_v38 }
 0x304   :  { %v3489_v27 = vpop.xlane.xlu2 %645 }
 0x30c   :  { %v3497_v37 = vpop.xlane.xlu1 %648 }
 0x314   :  { %v653_v28 = vpop.xlane.xlu2 %652 }
 0x315   :  { %v660_v30 = vsub.f32 %v630_v55, %v653_v28 }
 0x317   :  { %v673_v31 = vmul.f32 1.442695, %v660_v30 }
 0x319   :  { %2859 = vpow2.f32 %v673_v31  ;;  %v658_v31 = vsub.f32 %v3448_v44, %v3489_v27 }
 0x31b   :  { %v669_v36 = vmul.f32 1.442695, %v658_v31 }
 0x31f   :  { %v3491_v32 = vpop.eup %2859 }
 0x320   :  { %v693_v23 = vsel %vm650_vm3, %v3491_v32, 0.0 }
 0x321   :  { %694 = vadd.xlane.f32.xlu0 %v693_v23 }
 0x335   :  { %930 = vrot.lane.b32.xlu0 %v3383_v21, %s2986_s24  ;;  %v661_v21 = vmul.f32 1.442695, %v654_v51 }
 0x340   :  { %v847_v42 = vpop.xlane.xlu1 %846 }
 0x341   :  { %v866_v43 = vsub.f32 %v838_v62, %v847_v42  ;;  %v665_v62 = vmul.f32 1.442695, %v656_v60 }
 0x343   :  { %v873_v40 = vmul.f32 1.442695, %v866_v43 }
 0x345   :  { %2861 = vpow2.f32 %v873_v40 }
 0x348   :  { %v850_v29 = vpop.xlane.xlu0 %849 }
 0x349   :  { %v867_v46 = vsub.f32 %v839_v53, %v850_v29 }
 0x34b   :  { %v3499_v47 = vpop.eup %2861  ;;  %v875_v41 = vmul.f32 1.442695, %v867_v46 }
 0x34c   :  { %v887_v50 = vsel %vm631_vm11, %v3499_v47, 0.0 }
 0x34d   :  { %2863 = vpow2.f32 %v875_v41  ;;  %888 = vadd.xlane.f32.xlu2 %v887_v50 }
 0x34e   :  { %2865 = vpow2.f32 %v661_v21 }
 0x353   :  { %v3504_v48 = vpop.eup %2863 }
 0x354   :  { %v890_v49 = vsel %vm631_vm11, %v3504_v48, 0.0  ;;  %v3508_v58 = vpop.eup %2865 }
 0x355   :  { %891 = vadd.xlane.f32.xlu1 %v890_v49  ;;  %v675_v61 = vsel %vm631_vm11, %v3508_v58, 0.0 }
 0x358   :  { %v856_v54 = vpop.xlane.xlu2 %855 }
 0x359   :  { %v869_v55 = vsub.f32 %v841_v34, %v856_v54  ;;  %v853_v34 = vpop.xlane.xlu0 %852 }
 0x35a   :  { %v868_v0 = vsub.f32 %v3473_v57, %v853_v34  ;;  %v659_v57 = vsub.f32 %v3458_v52, %v3497_v37 }
 0x35b   :  { %v879_v59 = vmul.f32 1.442695, %v869_v55 }
 0x35c   :  { %v671_v23 = vmul.f32 1.442695, %v659_v57 }
 0x35d   :  { %2867 = vpow2.f32 %v879_v59 }
 0x35e   :  { %2869 = vpow2.f32 %v665_v62 }
 0x35f   :  { %676 = vadd.xlane.f32.xlu0 %v675_v61 }
 0x360   :  { %v859_v14 = vpop.xlane.xlu2 %858 }
 0x361   :  { %v870_v26 = vsub.f32 %v3482_v22, %v859_v14  ;;  %v863_v22 = vsel %vm650_vm3, %v3466_v63, -inf }
 0x363   :  { %v3513_v24 = vpop.eup %2867  ;;  %v881_v20 = vmul.f32 1.442695, %v870_v26 }
 0x364   :  { %v896_v39 = vsel %vm631_vm11, %v3513_v24, 0.0  ;;  %v3519_v11 = vpop.eup %2869 }
 0x365   :  { %934 = vrot.lane.b32.xlu2 %v3368_v2, %s2986_s24  ;;  %v681_v15 = vsel %vm631_vm11, %v3519_v11, 0.0  ;;  %v655_v2 = vsub.f32 %v3418_v12, %v637_v35  ;;  %v667_v12 = vmul.f32 1.442695, %v657_v13 }
 0x367   :  { %897 = vadd.xlane.f32.xlu0 %v896_v39  ;;  %v663_v16 = vmul.f32 1.442695, %v655_v2 }
 0x368   :  { %v862_v1 = vpop.xlane.xlu1 %861 }
 0x369   :  { %v871_v53 = vsub.f32 %v843_v9, %v862_v1 }
 0x36b   :  { %v883_v25 = vmul.f32 1.442695, %v871_v53 }
 0x36d   :  { %2871 = vpow2.f32 %v883_v25 }
 0x36e   :  { %932 = vrot.lane.b32.xlu1 %v3374_v19, %s2986_s24  ;;  %2873 = vpow2.f32 %v663_v16  ;;  %v877_v19 = vmul.f32 1.442695, %v868_v0  ;;  %v2727_v0 = vld [vmem:[%s4262_s5 + $0x38] sm:$0xff] }
 0x36f   :  { %682 = vadd.xlane.f32.xlu0 %v681_v15  ;;  %1028 = vmatpush.bf16.msra.mxu3 %v2727_v0 }
 0x370   :  { %2875 = vpow2.f32 %v877_v19 }
 0x371   :  { %2877 = vpow2.f32 %v881_v20 }
 0x373   :  { %v3525_v45 = vpop.eup %2871 }
 0x374   :  { %v902_v56 = vsel %vm631_vm11, %v3525_v45, 0.0  ;;  %v3531_v17 = vpop.eup %2873 }
 0x375   :  { %v678_v9 = vsel %vm631_vm11, %v3531_v17, 0.0 }
 0x376   :  { %v3537_v28 = vpop.eup %2875 }
 0x377   :  { %903 = vadd.xlane.f32.xlu0 %v902_v56  ;;  %v893_v33 = vsel %vm631_vm11, %v3537_v28, 0.0  ;;  %v3547_v35 = vpop.eup %2877 }
 0x378   :  { %v899_v42 = vsel %vm631_vm11, %v3547_v35, 0.0 }
 0x38e   :  { %679 = vadd.xlane.f32.xlu2 %v678_v9 }
 0x394   :  { %v695_v30 = vpop.xlane.xlu0 %694 }
 0x395   :  { %2879 = vrcp.f32 %v695_v30 }
 0x396   :  { %2881 = vpow2.f32 %v667_v12  ;;  %864 = vmax.xlane.f32.xlu2 %v863_v22 }
 0x397   :  { %2883 = vpow2.f32 %v671_v23 }
 0x398   :  { %894 = vadd.xlane.f32.xlu1 %v893_v33  ;;  %2885 = vpow2.f32 %v669_v36 }
 0x39b   :  { %v2880_v52 = vpop.eup %2879 }
 0x39c   :  { %v3549_v37 = vpop.eup %2881  ;;  %v709_v38 = vmul.f32 %v2880_v52, %v3491_v32 }
 0x39d   :  { %v684_v27 = vsel %vm631_vm11, %v3549_v37, 0.0  ;;  %v3557_v43 = vpop.eup %2883 }
 0x39e   :  { %900 = vadd.xlane.f32.xlu2 %v899_v42  ;;  %v713_v44 = vpack.c.bf16 %v709_v38, %v709_v38  ;;  %v3559_v40 = vpop.eup %2885  ;;  %v690_v29 = vsel %vm631_vm11, %v3557_v43, 0.0 }
 0x39f   :  { %v687_v32 = vsel %vm631_vm11, %v3559_v40, 0.0 }
 0x3a0   :  { %2391 = vmatmul.msk.bf16.vlgmr.msrb.gmra.mxu2 %vm631_vm11, %v713_v44  ;;  %685 = vadd.xlane.f32.xlu1 %v684_v27 }
 0x3a6   :  { %691 = vadd.xlane.f32.xlu2 %v690_v29 }
 0x3a7   :  { %v931_v55 = vpop.permute.xlu0 %930 }
 0x3a8   :  { %688 = vadd.xlane.f32.xlu1 %v687_v32 }
 0x3c0   :  { %v889_v46 = vpop.xlane.xlu2 %888 }
 0x3c8   :  { %v935_v41 = vpop.permute.xlu2 %934  ;;  %v892_v50 = vpop.xlane.xlu1 %891 }
 0x3c9   :  { %961 = vmatpush.bf16.msra.mxu2 %v935_v41  ;;  %2887 = vrcp.f32 %v892_v50  ;;  %v2722_v41 = vld [vmem:[%s4262_s5 + $0x10] sm:$0xff] }
 0x3ca   :  { %2889 = vrcp.f32 %v889_v46 }
 0x3cf   :  { %v2888_v51 = vpop.eup %2887 }
 0x3d0   :  { %v2890_v49 = vpop.eup %2889  ;;  %v916_v54 = vmul.f32 %v2888_v51, %v3504_v48  ;;  %v2721_v51 = vld [vmem:[%s4262_s5 + $0x8] sm:$0xff] }
 0x3d1   :  { %v915_v59 = vmul.f32 %v2890_v49, %v3499_v47 }
 0x3d2   :  { %v677_v61 = vpop.xlane.xlu0 %676 }
 0x3d3   :  { %v922_v60 = vpack.c.bf16 %v916_v54, %v915_v59  ;;  %2891 = vrcp.f32 %v677_v61 }
 0x3d9   :  { %v2892_v1 = vpop.eup %2891 }
 0x3da   :  { %v898_v39 = vpop.xlane.xlu0 %897  ;;  %v703_v25 = vmul.f32 %v2892_v1, %v3508_v58 }
 0x3e0   :  { %v933_v21 = vpop.permute.xlu1 %932 }
 0x3e1   :  { %962 = vmatpush.bf16.msra.mxu2 %v933_v21  ;;  %v2720_v21 = vld [vmem:[%s4262_s5] sm:$0xff] }
 0x3e2   :  { %v683_v34 = vpop.xlane.xlu0 %682 }
 0x3e5   :  { %963 = vmatpush.bf16.msra.mxu2 %v931_v55 }
 0x3e8   :  { %2396 = vmatmul.msk.bf16.vlgmr.msra.gmra.mxu2 %vm631_vm11, %v922_v60 }
 0x3ea   :  { %v904_v12 = vpop.xlane.xlu0 %903 }
 0x401   :  { %v680_v62 = vpop.xlane.xlu2 %679 }
 0x402   :  { %2893 = vrcp.f32 %v680_v62 }
 0x403   :  { %2895 = vrcp.f32 %v898_v39 }
 0x408   :  { %v2894_v53 = vpop.eup %2893 }
 0x409   :  { %v704_v15 = vmul.f32 %v2894_v53, %v3531_v17  ;;  %v865_v56 = vpop.xlane.xlu2 %864  ;;  %v2896_v14 = vpop.eup %2895 }
 0x40a   :  { %v872_v48 = vsub.f32 %v3466_v63, %v865_v56  ;;  %v918_v63 = vmul.f32 %v2896_v14, %v3513_v24 }
 0x40b   :  { %v895_v47 = vpop.xlane.xlu1 %894  ;;  %v710_v2 = vpack.c.bf16 %v704_v15, %v703_v25 }
 0x40c   :  { %v885_v16 = vmul.f32 1.442695, %v872_v48  ;;  %2897 = vrcp.f32 %v895_v47 }
 0x40d   :  { %2388 = vmatmul.msk.bf16.vlgmr.msrb.gmra.mxu0 %vm631_vm11, %v710_v2 }
 0x40e   :  { %2899 = vpow2.f32 %v885_v16 }
 0x40f   :  { %2901 = vrcp.f32 %v683_v34 }
 0x411   :  { %v901_v9 = vpop.xlane.xlu2 %900 }
 0x412   :  { %v2898_v58 = vpop.eup %2897 }
 0x413   :  { %v686_v17 = vpop.xlane.xlu1 %685  ;;  %v917_v19 = vmul.f32 %v2898_v58, %v3537_v28 }
 0x414   :  { %v2900_v26 = vpop.eup %2899  ;;  %2903 = vrcp.f32 %v686_v17 }
 0x415   :  { %v905_v13 = vsel %vm650_vm3, %v2900_v26, 0.0  ;;  %v923_v20 = vpack.c.bf16 %v918_v63, %v917_v19  ;;  %v2902_v57 = vpop.eup %2901  ;;  %2905 = vrcp.f32 %v901_v9  ;;  %v2839_v9 = vld [vmem:[%s4263_s6] ss:$0 sm:$0xff] }
 0x416   :  { %906 = vadd.xlane.f32.xlu0 %v905_v13  ;;  %2907 = vrcp.f32 %v904_v12  ;;  %v705_v22 = vmul.f32 %v2902_v57, %v3519_v11 }
 0x417   :  { %2397 = vmatmul.msk.bf16.gmra.mxu2 %vm631_vm11, %v923_v20 }
 0x419   :  { %v692_v23 = vpop.xlane.xlu2 %691 }
 0x41a   :  { %v2904_v30 = vpop.eup %2903 }
 0x41b   :  { %v706_v28 = vmul.f32 %v2904_v30, %v3549_v37  ;;  %v689_v31 = vpop.xlane.xlu1 %688  ;;  %v2906_v33 = vpop.eup %2905 }
 0x41c   :  { %v2908_v36 = vpop.eup %2907  ;;  %2909 = vrcp.f32 %v689_v31  ;;  %v919_v52 = vmul.f32 %v2906_v33, %v3547_v35  ;;  %v2726_v35 = vld [vmem:[%s4262_s5 + $0x30] sm:$0xff] }
 0x41d   :  { %v711_v24 = vpack.c.bf16 %v706_v28, %v705_v22  ;;  %2911 = vrcp.f32 %v692_v23  ;;  %v920_v42 = vmul.f32 %v2908_v36, %v3525_v45  ;;  %1029 = vmatpush.bf16.msra.mxu3 %v2726_v35  ;;  %v2725_v45 = vld [vmem:[%s4262_s5 + $0x28] sm:$0xff] }
 0x41f   :  { %2389 = vmatmul.msk.bf16.gmra.mxu0 %vm631_vm11, %v711_v24  ;;  %v924_v44 = vpack.c.bf16 %v920_v42, %v919_v52 }
 0x421   :  { %1030 = vmatpush.bf16.msra.mxu3 %v2725_v45 }
 0x422   :  { %v2910_v27 = vpop.eup %2909 }
 0x423   :  { %v754_v38 = vpop.f32.mrf.mxu2  ;;  %v2912_v11 = vpop.eup %2911  ;;  %v707_v37 = vmul.f32 %v2910_v27, %v3559_v40  ;;  %v2724_v40 = vld [vmem:[%s4262_s5 + $0x20] sm:$0xff] }
 0x424   :  { %v708_v32 = vmul.f32 %v2912_v11, %v3557_v43  ;;  %v2723_v43 = vld [vmem:[%s4262_s5 + $0x18] sm:$0xff]  ;;  %v761_v17 = vpack.c.bf16 %v754_v38, %v754_v38 }
 0x425   :  { %1031 = vmatpush.bf16.msra.mxu3 %v2724_v40  ;;  %1092 = vmatpush.bf16.msra.mxu0 %v2723_v43 }
 0x426   :  { %v712_v46 = vpack.c.bf16 %v708_v32, %v707_v37  ;;  %2831 = vmatpush.bf16.msra.mxu1 %v2723_v43 }
 0x427   :  { %2398 = vmatmul.msk.bf16.gmra.mxu2 %vm631_vm11, %v924_v44 }
 0x429   :  { %1093 = vmatpush.bf16.msra.mxu0 %v2722_v41 }
 0x42a   :  { %2832 = vmatpush.bf16.msra.mxu1 %v2722_v41 }
 0x42b   :  { %v756_v29 = vpop.f32.mrf.mxu2 }
 0x42d   :  { %1094 = vmatpush.bf16.msra.mxu0 %v2721_v51 }
 0x42e   :  { %2833 = vmatpush.bf16.msra.mxu1 %v2721_v51 }
 0x42f   :  { %2390 = vmatmul.msk.bf16.gmra.mxu0 %vm631_vm11, %v712_v46 }
 0x431   :  { %1095 = vmatpush.bf16.msra.mxu0 %v2720_v21 }
 0x432   :  { %2834 = vmatpush.bf16.msra.mxu1 %v2720_v21 }
 0x46b   :  { %v965_v50 = vpop.f32.mrf.mxu2 }
 0x473   :  { %v967_v49 = vpop.f32.mrf.mxu2 }
 0x474   :  { %v984_v54 = vpack.c.bf16 %v967_v49, %v965_v50 }
 0x476   :  { %2416 = vmatmul.msk.bf16.vlgmr.msra.gmra.mxu3 %vm571_vm8, %v984_v54 }
 0x489   :  { %v907_v55 = vpop.xlane.xlu0 %906 }
 0x48a   :  { %2913 = vrcp.f32 %v907_v55  ;;  %v739_v59 = vpop.f32.mrf.mxu0 }
 0x490   :  { %v2914_v60 = vpop.eup %2913 }
 0x491   :  { %v921_v61 = vmul.f32 %v2914_v60, %v2900_v26 }
 0x492   :  { %v741_v62 = vpop.f32.mrf.mxu0 }
 0x493   :  { %v758_v39 = vpack.c.bf16 %v741_v62, %v739_v59  ;;  %v925_v1 = vpack.c.bf16 %v921_v61, %v921_v61 }
 0x495   :  { %2399 = vmatmul.msk.bf16.gmra.mxu2 %vm631_vm11, %v925_v1  ;;  %2436 = vmatmul.msk.bf16.vlgmr.msra.gmra.mxu0 %vm571_vm8, %v758_v39 }
 0x49a   :  { %v970_v53 = vpop.f32.mrf.mxu2 }
 0x49c   :  { %v744_v25 = vpop.f32.mrf.mxu0 }
 0x4a2   :  { %v972_v15 = vpop.f32.mrf.mxu2 }
 0x4a3   :  { %v985_v56 = vpack.c.bf16 %v972_v15, %v970_v53 }
 0x4a4   :  { %v746_v48 = vpop.f32.mrf.mxu0 }
 0x4a5   :  { %v759_v47 = vpack.c.bf16 %v746_v48, %v744_v25  ;;  %2417 = vmatmul.msk.bf16.gmra.mxu3 %vm571_vm8, %v985_v56 }
 0x4a7   :  { %2437 = vmatmul.msk.bf16.gmra.mxu0 %vm571_vm8, %v759_v47 }
 0x4aa   :  { %v975_v2 = vpop.f32.mrf.mxu2 }
 0x4ac   :  { %v749_v16 = vpop.f32.mrf.mxu0 }
 0x4b2   :  { %v977_v34 = vpop.f32.mrf.mxu2 }
 0x4b3   :  { %v986_v0 = vpack.c.bf16 %v977_v34, %v975_v2 }
 0x4b4   :  { %v751_v14 = vpop.f32.mrf.mxu0 }
 0x4b5   :  { %v760_v58 = vpack.c.bf16 %v751_v14, %v749_v16  ;;  %2418 = vmatmul.msk.bf16.gmra.mxu3 %vm571_vm8, %v986_v0 }
 0x4b7   :  { %2438 = vmatmul.msk.bf16.vlgmr.msra.gmra.mxu1 %vm571_vm8, %v760_v58 }
 0x4c7   :  { %2439 = vmatmul.msk.bf16.gmra.mxu1 %vm571_vm8, %v761_v17 }
 0x4f9   :  { %v1033_v19 = vpop.f32.mrf.mxu3 }
 0x501   :  { %v1035_v30 = vpop.f32.mrf.mxu3 }
 0x512   :  { %v1097_v63 = vpop.f32.mrf.mxu0 }
 0x513   :  { %v1098_v26 = vadd.f32 %v1097_v63, %v1033_v19 }
 0x515   :  { %v1116_v13 = vadd.f32 %v3068_v4, %v1098_v26 }
 0x517   :  { %v3621_v20 = vadd.f32 %v2839_v9, %v1116_v13  ;;  %v2758_v13 = vld [vmem:[%s4266_s9 + $0xec] sm:$0xf0] }
 0x518   :  { %v980_v12 = vpop.f32.mrf.mxu2 }
 0x519   :  { %v987_v57 = vpack.c.bf16 %v980_v12, %v980_v12  ;;  %1134 = vadd.xlane.f32.xlu1 %v3621_v20  ;;  %v2756_v12 = vld [vmem:[%s4266_s9 + $0xe4] sm:$0xf] }
 0x51a   :  { %v1099_v22 = vpop.f32.mrf.mxu0 }
 0x51b   :  { %v1100_v28 = vadd.f32 %v1099_v22, %v1035_v30  ;;  %2419 = vmatmul.msk.bf16.gmra.mxu3 %vm571_vm8, %v987_v57  ;;  %v2556_v30 = vld [vmem:[%s4266_s9 + $0xf0] sm:$0xf0]  ;;  %v2562_v22 = vld [vmem:[%s4266_s9 + $0xe8] sm:$0xf] }
 0x51d   :  { %v1117_v31 = vadd.f32 %v3075_v6, %v1100_v28  ;;  %v2759_v28 = vld [vmem:[%s4266_s9 + $0xf4] sm:$0xf0] }
 0x51f   :  { %v3626_v24 = vadd.f32 %v2839_v9, %v1117_v31  ;;  %v2559_v31 = vor.u32 %v2756_v12, %v2556_v30  ;;  %v2492_v12 = vld [vmem:[%s4266_s9 + $0x70] sm:$0xf0]  ;;  %v2743_v30 = vld [vmem:[%s4266_s9 + $0x74] sm:$0xf0] }
 0x520   :  { %v982_v33 = vpop.f32.mrf.mxu2 }
 0x521   :  { %1136 = vadd.xlane.f32.xlu2 %v3626_v24  ;;  %v2563_v33 = vor.u32 %v2759_v28, %v2562_v22  ;;  %1532 = vmatpush.bf16.msrb.mxu2 %v2559_v31  ;;  %v2741_v31 = vld [vmem:[%s4266_s9 + $0x6c] sm:$0xf] }
 0x523   :  { %1560 = vmatpush.bf16.msrb.mxu3 %v2563_v33  ;;  %v2500_v33 = vld [vmem:[%s4266_s9 + $0x78] sm:$0xf0] }
 0x524   :  { %v1102_v23 = vpop.f32.mrf.mxu0 }
 0x528   :  { %v1038_v4 = vpop.f32.mrf.mxu3 }
 0x529   :  { %v1103_v36 = vadd.f32 %v1102_v23, %v1038_v4  ;;  %v2757_v23 = vld [vmem:[%s4266_s9 + $0xec] sm:$0xf]  ;;  %v2564_v4 = vld [vmem:[%s4266_s9 + $0xf8] sm:$0xf0] }
 0x52b   :  { %v1118_v52 = vadd.f32 %v3070_v5, %v1103_v36  ;;  %v2567_v36 = vor.u32 %v2757_v23, %v2564_v4  ;;  %v2503_v23 = vor.u32 %v2741_v31, %v2500_v33  ;;  %v2474_v4 = vld [vmem:[%s4266_s9 + $0x40] sm:$0xf] }
 0x52c   :  { %v1104_v42 = vpop.f32.mrf.mxu0 }
 0x52d   :  { %v3630_v38 = vadd.f32 %v2839_v9, %v1118_v52  ;;  %v2538_v52 = vld [vmem:[%s4266_s9 + $0xc0] sm:$0xf]  ;;  %1588 = vmatpush.bf16.msrb.mxu0 %v2567_v36  ;;  %v2738_v36 = vld [vmem:[%s4266_s9 + $0x4c] sm:$0xf0] }
 0x52f   :  { %1138 = vadd.xlane.f32.xlu0 %v3630_v38 }
 0x530   :  { %v1040_v44 = vpop.f32.mrf.mxu3 }
 0x531   :  { %v1105_v27 = vadd.f32 %v1104_v42, %v1040_v44  ;;  %v2754_v42 = vld [vmem:[%s4266_s9 + $0xcc] sm:$0xf0]  ;;  %v2752_v44 = vld [vmem:[%s4266_s9 + $0xc4] sm:$0xf] }
 0x533   :  { %v1119_v11 = vadd.f32 %v3079_v8, %v1105_v27  ;;  %v2539_v27 = vor.u32 %v2754_v42, %v2538_v52  ;;  %v2736_v52 = vld [vmem:[%s4266_s9 + $0x44] sm:$0xf]  ;;  %v2475_v42 = vor.u32 %v2738_v36, %v2474_v4 }
 0x534   :  { %v1107_v6 = vpop.f32.mrf.mxu1 }
 0x535   :  { %v3634_v37 = vadd.f32 %v2839_v9, %v1119_v11  ;;  %v2540_v11 = vld [vmem:[%s4266_s9 + $0xd0] sm:$0xf0] }
 0x537   :  { %1140 = vadd.xlane.f32.xlu1 %v3634_v37 }
 0x538   :  { %v1043_v29 = vpop.f32.mrf.mxu3 }
 0x539   :  { %v1108_v32 = vadd.f32 %v1107_v6, %v1043_v29  ;;  %v2546_v6 = vld [vmem:[%s4266_s9 + $0xc8] sm:$0xf]  ;;  %v2755_v29 = vld [vmem:[%s4266_s9 + $0xd4] sm:$0xf0] }
 0x53b   :  { %v1120_v46 = vadd.f32 %v3066_v3, %v1108_v32  ;;  %v2543_v32 = vor.u32 %v2752_v44, %v2540_v11  ;;  %v2476_v44 = vld [vmem:[%s4266_s9 + $0x50] sm:$0xf0]  ;;  %v2739_v11 = vld [vmem:[%s4266_s9 + $0x54] sm:$0xf0] }
 0x53c   :  { %v1109_v35 = vpop.f32.mrf.mxu1 }
 0x53d   :  { %v3638_v5 = vadd.f32 %v2839_v9, %v1120_v46  ;;  %v2547_v46 = vor.u32 %v2755_v29, %v2546_v6  ;;  %1533 = vmatpush.bf16.msrb.mxu2 %v2543_v32  ;;  %v2479_v6 = vor.u32 %v2736_v52, %v2476_v44  ;;  %v2737_v32 = vld [vmem:[%s4266_s9 + $0x4c] sm:$0xf] }
 0x53f   :  { %1142 = vadd.xlane.f32.xlu2 %v3638_v5  ;;  %1561 = vmatpush.bf16.msrb.mxu3 %v2547_v46  ;;  %v2484_v46 = vld [vmem:[%s4266_s9 + $0x58] sm:$0xf0] }
 0x540   :  { %v1045_v45 = vpop.f32.mrf.mxu3 }
 0x541   :  { %v1110_v40 = vadd.f32 %v1109_v35, %v1045_v45  ;;  %v2753_v35 = vld [vmem:[%s4266_s9 + $0xcc] sm:$0xf]  ;;  %v2548_v45 = vld [vmem:[%s4266_s9 + $0xd8] sm:$0xf0] }
 0x543   :  { %v1121_v43 = vadd.f32 %v3077_v7, %v1110_v40  ;;  %v2551_v40 = vor.u32 %v2753_v35, %v2548_v45  ;;  %v2487_v35 = vor.u32 %v2737_v32, %v2484_v46  ;;  %v2458_v45 = vld [vmem:[%s4266_s9 + $0x20] sm:$0xf] }
 0x544   :  { %v1112_v41 = vpop.f32.mrf.mxu1 }
 0x545   :  { %v3642_v8 = vadd.f32 %v2839_v9, %v1121_v43  ;;  %v2522_v43 = vld [vmem:[%s4266_s9 + $0xa0] sm:$0xf]  ;;  %1589 = vmatpush.bf16.msrb.mxu0 %v2551_v40  ;;  %v2734_v40 = vld [vmem:[%s4266_s9 + $0x2c] sm:$0xf0] }
 0x547   :  { %1144 = vadd.xlane.f32.xlu0 %v3642_v8 }
 0x54c   :  { %v1114_v50 = vpop.f32.mrf.mxu1 }
 0x54d   :  { %v2748_v50 = vld [vmem:[%s4266_s9 + $0xa4] sm:$0xf] }
 0x58c   :  { %v1135_v51 = vpop.xlane.xlu1 %1134 }
 0x58d   :  { %v1149_v21 = vmul.f32 %v1135_v51, %v3091_v18 }
 0x58f   :  { %v3647_v3 = vsub.f32 %v3621_v20, %v1149_v21  ;;  %v2524_v21 = vld [vmem:[%s4266_s9 + $0xb0] sm:$0xf0] }
 0x591   :  { %v1163_v49 = vmul.f32 %v3647_v3, %v3647_v3 }
 0x593   :  { %1170 = vadd.xlane.f32.xlu1 %v1163_v49  ;;  %v2530_v49 = vld [vmem:[%s4266_s9 + $0xa8] sm:$0xf] }
 0x594   :  { %v1137_v54 = vpop.xlane.xlu2 %1136 }
 0x595   :  { %v1150_v55 = vmul.f32 %v1137_v54, %v3091_v18  ;;  %v2751_v54 = vld [vmem:[%s4266_s9 + $0xb4] sm:$0xf0] }
 0x597   :  { %v3653_v7 = vsub.f32 %v3626_v24, %v1150_v55  ;;  %v2527_v55 = vor.u32 %v2748_v50, %v2524_v21  ;;  %v2460_v50 = vld [vmem:[%s4266_s9 + $0x30] sm:$0xf0]  ;;  %v2735_v21 = vld [vmem:[%s4266_s9 + $0x34] sm:$0xf0] }
 0x599   :  { %v1164_v59 = vmul.f32 %v3653_v7, %v3653_v7  ;;  %1534 = vmatpush.bf16.msrb.mxu2 %v2527_v55 }
 0x59b   :  { %1172 = vadd.xlane.f32.xlu2 %v1164_v59  ;;  %v2531_v59 = vor.u32 %v2751_v54, %v2530_v49 }
 0x59d   :  { %1562 = vmatpush.bf16.msrb.mxu3 %v2531_v59  ;;  %v2733_v59 = vld [vmem:[%s4266_s9 + $0x2c] sm:$0xf] }
 0x59e   :  { %v1048_v60 = vpop.f32.mrf.mxu3 }
 0x59f   :  { %v1113_v61 = vadd.f32 %v1112_v41, %v1048_v60  ;;  %v2750_v41 = vld [vmem:[%s4266_s9 + $0xac] sm:$0xf0]  ;;  %v2749_v60 = vld [vmem:[%s4266_s9 + $0xac] sm:$0xf] }
 0x5a0   :  { %v2523_v51 = vor.u32 %v2750_v41, %v2522_v43  ;;  %v2732_v43 = vld [vmem:[%s4266_s9 + $0x24] sm:$0xf]  ;;  %v2459_v41 = vor.u32 %v2734_v40, %v2458_v45  ;;  %v3892_v40 = vld [vmem:[%s4264_s7] ss:$0 sm:$0xff] }
 0x5a1   :  { %v1122_v62 = vadd.f32 %v1113_v61, %v3087_v10  ;;  %v2532_v61 = vld [vmem:[%s4266_s9 + $0xb8] sm:$0xf0]  ;;  %v2463_v54 = vor.u32 %v2732_v43, %v2460_v50 }
 0x5a2   :  { %v1139_v39 = vpop.xlane.xlu0 %1138 }
 0x5a3   :  { %v3658_v1 = vadd.f32 %v2839_v9, %v1122_v62  ;;  %v1151_v53 = vmul.f32 %v1139_v39, %v3091_v18  ;;  %v2554_v9 = vld [vmem:[%s4266_s9 + $0xe0] sm:$0xf]  ;;  %v2535_v62 = vor.u32 %v2749_v60, %v2532_v61  ;;  %v2468_v60 = vld [vmem:[%s4266_s9 + $0x38] sm:$0xf0] }
 0x5a4   :  { %v2555_v57 = vor.u32 %v2758_v13, %v2554_v9  ;;  %v2506_v39 = vld [vmem:[%s4266_s9 + $0x80] sm:$0xf]  ;;  %v2740_v9 = vld [vmem:[%s4266_s9 + $0x64] sm:$0xf] }
 0x5a5   :  { %v3662_v25 = vsub.f32 %v3630_v38, %v1151_v53  ;;  %v1146_v15 = vsel %vm120_vm0, %v3658_v1, 0.0  ;;  %v2746_v53 = vld [vmem:[%s4266_s9 + $0x8c] sm:$0xf0]  ;;  %1590 = vmatpush.bf16.msrb.mxu0 %v2535_v62  ;;  %v2495_v22 = vor.u32 %v2740_v9, %v2492_v12  ;;  %v2471_v62 = vor.u32 %v2733_v59, %v2468_v60 }
 0x5a6   :  { %1147 = vadd.xlane.f32.xlu0 %v1146_v15  ;;  %v1050_v56 = vpop.f32.mrf.mxu3  ;;  %1504 = vmatpush.bf16.msrb.mxu1 %v2555_v57  ;;  %v2744_v15 = vld [vmem:[%s4266_s9 + $0x84] sm:$0xf]  ;;  %v2498_v57 = vld [vmem:[%s4266_s9 + $0x68] sm:$0xf] }
 0x5a7   :  { %v1165_v48 = vmul.f32 %v3662_v25, %v3662_v25  ;;  %v2507_v56 = vor.u32 %v2746_v53, %v2506_v39  ;;  %v2499_v28 = vor.u32 %v2743_v30, %v2498_v57  ;;  %v2442_v39 = vld [vmem:[%s4266_s9] sm:$0xf]  ;;  %v2730_v53 = vld [vmem:[%s4266_s9 + $0xc] sm:$0xf0] }
 0x5a9   :  { %1174 = vadd.xlane.f32.xlu1 %v1165_v48  ;;  %v2508_v48 = vld [vmem:[%s4266_s9 + $0x90] sm:$0xf0] }
 0x5aa   :  { %v1141_v47 = vpop.xlane.xlu1 %1140  ;;  %1505 = vmatpush.bf16.msrb.mxu1 %v2539_v27  ;;  %v2482_v27 = vld [vmem:[%s4266_s9 + $0x48] sm:$0xf] }
 0x5ab   :  { %v1152_v10 = vmul.f32 %v1141_v47, %v3091_v18  ;;  %v2514_v47 = vld [vmem:[%s4266_s9 + $0x88] sm:$0xf]  ;;  %v2483_v29 = vor.u32 %v2739_v11, %v2482_v27 }
 0x5ad   :  { %v3670_v2 = vsub.f32 %v3634_v37, %v1152_v10  ;;  %v2747_v10 = vld [vmem:[%s4266_s9 + $0x94] sm:$0xf0] }
 0x5ae   :  { %1506 = vmatpush.bf16.msrb.mxu1 %v2523_v51  ;;  %v2466_v51 = vld [vmem:[%s4266_s9 + $0x28] sm:$0xf] }
 0x5af   :  { %v1166_v16 = vmul.f32 %v3670_v2, %v3670_v2  ;;  %v2467_v55 = vor.u32 %v2735_v21, %v2466_v51 }
 0x5b1   :  { %1176 = vadd.xlane.f32.xlu2 %v1166_v16  ;;  %v2511_v16 = vor.u32 %v2744_v15, %v2508_v48  ;;  %v2728_v15 = vld [vmem:[%s4266_s9 + $0x4] sm:$0xf]  ;;  %v2443_v48 = vor.u32 %v2730_v53, %v2442_v39 }
 0x5b2   :  { %v1143_v34 = vpop.xlane.xlu2 %1142  ;;  %1507 = vmatpush.bf16.msrb.mxu1 %v2507_v56 }
 0x5b3   :  { %v1153_v0 = vmul.f32 %v1143_v34, %v3091_v18  ;;  %v2515_v34 = vor.u32 %v2747_v10, %v2514_v47  ;;  %1535 = vmatpush.bf16.msrb.mxu2 %v2511_v16  ;;  %v2444_v47 = vld [vmem:[%s4266_s9 + $0x10] sm:$0xf0]  ;;  %v2450_v10 = vld [vmem:[%s4266_s9 + $0x8] sm:$0xf] }
 0x5b4   :  { %v2447_v16 = vor.u32 %v2728_v15, %v2444_v47 }
 0x5b5   :  { %v3676_v14 = vsub.f32 %v3638_v5, %v1153_v0  ;;  %v2745_v0 = vld [vmem:[%s4266_s9 + $0x8c] sm:$0xf]  ;;  %1563 = vmatpush.bf16.msrb.mxu3 %v2515_v34  ;;  %v2731_v34 = vld [vmem:[%s4266_s9 + $0x14] sm:$0xf0] }
 0x5b7   :  { %v1167_v58 = vmul.f32 %v3676_v14, %v3676_v14  ;;  %1536 = vmatpush.bf16.msrb.mxu2 %v2495_v22 }
 0x5b9   :  { %1178 = vadd.xlane.f32.xlu0 %v1167_v58  ;;  %v2516_v58 = vld [vmem:[%s4266_s9 + $0x98] sm:$0xf0]  ;;  %1564 = vmatpush.bf16.msrb.mxu3 %v2499_v28 }
 0x5ba   :  { %v1145_v17 = vpop.xlane.xlu0 %1144 }
 0x5bb   :  { %v1154_v19 = vmul.f32 %v1145_v17, %v3091_v18  ;;  %v2519_v17 = vor.u32 %v2745_v0, %v2516_v58  ;;  %1537 = vmatpush.bf16.msrb.mxu2 %v2479_v6  ;;  %v2729_v0 = vld [vmem:[%s4266_s9 + $0xc] sm:$0xf]  ;;  %v2452_v58 = vld [vmem:[%s4266_s9 + $0x18] sm:$0xf0] }
 0x5bd   :  { %v3682_v63 = vsub.f32 %v3642_v8, %v1154_v19  ;;  %v2490_v19 = vld [vmem:[%s4266_s9 + $0x60] sm:$0xf]  ;;  %1591 = vmatpush.bf16.msrb.mxu0 %v2519_v17  ;;  %1565 = vmatpush.bf16.msrb.mxu3 %v2483_v29  ;;  %v2451_v17 = vor.u32 %v2731_v34, %v2450_v10 }
 0x5bf   :  { %v1168_v26 = vmul.f32 %v3682_v63, %v3682_v63  ;;  %1538 = vmatpush.bf16.msrb.mxu2 %v2463_v54 }
 0x5c1   :  { %1180 = vadd.xlane.f32.xlu1 %v1168_v26  ;;  %v2742_v26 = vld [vmem:[%s4266_s9 + $0x6c] sm:$0xf0]  ;;  %1592 = vmatpush.bf16.msrb.mxu0 %v2503_v23 }
 0x5c2   :  { %v2491_v13 = vor.u32 %v2742_v26, %v2490_v19  ;;  %1566 = vmatpush.bf16.msrb.mxu3 %v2467_v55  ;;  %v2455_v19 = vor.u32 %v2729_v0, %v2452_v58 }
 0x5c3   :  { %1539 = vmatpush.bf16.msrb.mxu2 %v2447_v16 }
 0x5c4   :  { %1508 = vmatpush.bf16.msrb.mxu1 %v2491_v13 }
 0x5c5   :  { %1593 = vmatpush.bf16.msrb.mxu0 %v2487_v35 }
 0x5c6   :  { %1567 = vmatpush.bf16.msrb.mxu3 %v2451_v17 }
 0x5c8   :  { %1509 = vmatpush.bf16.msrb.mxu1 %v2475_v42 }
 0x5c9   :  { %1594 = vmatpush.bf16.msrb.mxu0 %v2471_v62 }
 0x5cc   :  { %1510 = vmatpush.bf16.msrb.mxu1 %v2459_v41 }
 0x5cd   :  { %1595 = vmatpush.bf16.msrb.mxu0 %v2455_v19 }
 0x5d0   :  { %1511 = vmatpush.bf16.msrb.mxu1 %v2443_v48 }
 0x606   :  { %v1171_v49 = vpop.xlane.xlu1 %1170 }
 0x607   :  { %v1185_v61 = vmul.f32 %v1171_v49, %v3091_v18 }
 0x609   :  { %v1192_v56 = vadd.f32 1e-05, %v1185_v61 }
 0x60b   :  { %2915 = vrsqrt.f32 %v1192_v56  ;;  %vm1205_vm5 = vweird.f32 %v1192_v56 }
 0x60e   :  { %v1173_v26 = vpop.xlane.xlu2 %1172 }
 0x60f   :  { %v1186_v9 = vmul.f32 %v1173_v26, %v3091_v18 }
 0x611   :  { %v2916_v13 = vpop.eup %2915  ;;  %v1193_v12 = vadd.f32 1e-05, %v1186_v9 }
 0x612   :  { %v1200_v57 = vmul.f32 %v2916_v13, %v1192_v56  ;;  %vm1206_vm4 = vweird.f32 %v2916_v13 }
 0x613   :  { %2917 = vrsqrt.f32 %v1193_v12  ;;  %vm1207_vm6 = vmor %vm1205_vm5, %vm1206_vm4  ;;  %vm1215_vm8 = vweird.f32 %v1193_v12 }
 0x614   :  { %v1201_v30 = vmul.f32 %v2916_v13, %v1200_v57 }
 0x616   :  { %v1202_v22 = vmul.f32 0.5, %v1201_v30 }
 0x618   :  { %v1203_v28 = vsub.f32 1.5, %v1202_v22 }
 0x619   :  { %v2918_v31 = vpop.eup %2917  ;;  %v1148_v33 = vpop.xlane.xlu0 %1147 }
 0x61a   :  { %v1204_v23 = vmul.f32 %v2916_v13, %v1203_v28  ;;  %v1210_v4 = vmul.f32 %v2918_v31, %v1193_v12  ;;  %v1155_v36 = vmul.f32 %v1148_v33, %v3091_v18  ;;  %vm1216_vm7 = vweird.f32 %v2918_v31 }
 0x61b   :  { %vm1217_vm9 = vmor %vm1215_vm8, %vm1216_vm7 }
 0x61c   :  { %v1211_v52 = vmul.f32 %v2918_v31, %v1210_v4  ;;  %v3882_v42 = vsub.f32 %v3658_v1, %v1155_v36  ;;  %v1175_v44 = vpop.xlane.xlu1 %1174  ;;  %v1208_v11 = vsel %vm1207_vm6, %v2916_v13, %v1204_v23 }
 0x61d   :  { %v1187_v27 = vmul.f32 %v1175_v44, %v3091_v18  ;;  %v1269_v45 = vmul.f32 %v1208_v11, %v3647_v3  ;;  %v3900_v3 = vld [vmem:[%s4265_s8] ss:$0 sm:$0xff] }
 0x61e   :  { %v1212_v6 = vmul.f32 0.5, %v1211_v52  ;;  %v1169_v29 = vmul.f32 %v3882_v42, %v3882_v42 }
 0x61f   :  { %v1194_v32 = vadd.f32 1e-05, %v1187_v27  ;;  %v1280_v49 = vmul.f32 %v3892_v40, %v1269_v45 }
 0x620   :  { %v1213_v46 = vsub.f32 1.5, %v1212_v6  ;;  %v1182_v35 = vsel %vm120_vm0, %v1169_v29, 0.0 }
 0x621   :  { %2919 = vrsqrt.f32 %v1194_v32  ;;  %1183 = vadd.xlane.f32.xlu2 %v1182_v35  ;;  %v1291_v61 = vadd.f32 %v3900_v3, %v1280_v49  ;;  %vm1225_vm10 = vweird.f32 %v1194_v32 }
 0x622   :  { %v1214_v43 = vmul.f32 %v2918_v31, %v1213_v46 }
 0x624   :  { %v1218_v41 = vsel %vm1217_vm9, %v2918_v31, %v1214_v43  ;;  %v1177_v50 = vpop.xlane.xlu2 %1176 }
 0x625   :  { %v1270_v51 = vmul.f32 %v1218_v41, %v3653_v7  ;;  %v1188_v21 = vmul.f32 %v1177_v50, %v3091_v18 }
 0x627   :  { %v2920_v54 = vpop.eup %2919  ;;  %v1195_v55 = vadd.f32 1e-05, %v1188_v21  ;;  %v1281_v59 = vmul.f32 %v3892_v40, %v1270_v51 }
 0x628   :  { %v1220_v60 = vmul.f32 %v2920_v54, %v1194_v32  ;;  %vm1226_vm0 = vweird.f32 %v2920_v54 }
 0x629   :  { %2921 = vrsqrt.f32 %v1195_v55  ;;  %v1292_v62 = vadd.f32 %v3900_v3, %v1281_v59  ;;  %vm1227_vm11 = vmor %vm1225_vm10, %vm1226_vm0  ;;  %vm1235_vm13 = vweird.f32 %v1195_v55  ;;  %v2766_v59 = vld [vmem:[%s4267_s11 + $0x30] sm:$0xff] }
 0x62a   :  { %v1221_v7 = vmul.f32 %v2920_v54, %v1220_v60  ;;  %v2790_v60 = vld [vmem:[%s4267_s11 + $0xf0] sm:$0xff] }
 0x62b   :  { %v1298_v39 = vpack.c.bf16 %v1292_v62, %v1291_v61  ;;  %v2775_v62 = vld [vmem:[%s4267_s11 + $0x78] sm:$0xff] }
 0x62c   :  { %v1222_v53 = vmul.f32 0.5, %v1221_v7  ;;  %v1179_v15 = vpop.xlane.xlu0 %1178  ;;  %v2783_v7 = vld [vmem:[%s4267_s11 + $0xb8] sm:$0xff]  ;;  %2168 = vmatpush.bf16.msra.mxu2 %v2775_v62 }
 0x62d   :  { %v1189_v56 = vmul.f32 %v1179_v15, %v3091_v18  ;;  %1512 = vmatmul.bf16.vlgmr.msrb.gmra.mxu1 %v1298_v39  ;;  %1540 = vmatmul.bf16.vlgmr.msrb.gmra.mxu2 %v1298_v39  ;;  %v2789_v15 = vld [vmem:[%s4267_s11 + $0xe8] sm:$0xff] }
 0x62e   :  { %v1223_v48 = vsub.f32 1.5, %v1222_v53  ;;  %1568 = vmatmul.bf16.vlgmr.msrb.gmra.mxu3 %v1298_v39  ;;  %1596 = vmatmul.bf16.vlgmr.msrb.gmra.mxu0 %v1298_v39  ;;  %v2765_v53 = vld [vmem:[%s4267_s11 + $0x28] sm:$0xff] }
 0x62f   :  { %v2922_v47 = vpop.eup %2921  ;;  %v1196_v10 = vadd.f32 1e-05, %v1189_v56  ;;  %2196 = vmatpush.bf16.msra.mxu3 %v2783_v7 }
 0x630   :  { %v1224_v16 = vmul.f32 %v2920_v54, %v1223_v48  ;;  %v1230_v34 = vmul.f32 %v2922_v47, %v1195_v55  ;;  %vm1236_vm12 = vweird.f32 %v2922_v47  ;;  %v2774_v48 = vld [vmem:[%s4267_s11 + $0x70] sm:$0xff] }
 0x631   :  { %2923 = vrsqrt.f32 %v1196_v10  ;;  %vm1237_vm14 = vmor %vm1235_vm13, %vm1236_vm12  ;;  %vm1245_vm1 = vweird.f32 %v1196_v10  ;;  %2169 = vmatpush.bf16.msra.mxu2 %v2774_v48  ;;  %v2768_v48 = vld [vmem:[%s4267_s11 + $0x40] sm:$0xff] }
 0x632   :  { %v1231_v0 = vmul.f32 %v2922_v47, %v1230_v34  ;;  %v1228_v58 = vsel %vm1227_vm11, %v2920_v54, %v1224_v16  ;;  %v2773_v16 = vld [vmem:[%s4267_s11 + $0x68] sm:$0xff] }
 0x633   :  { %v1271_v12 = vmul.f32 %v1228_v58, %v3662_v25  ;;  %v2781_v34 = vld [vmem:[%s4267_s11 + $0xa8] sm:$0xff]  ;;  %v2787_v58 = vld [vmem:[%s4267_s11 + $0xd8] sm:$0xff] }
 0x634   :  { %v1232_v17 = vmul.f32 0.5, %v1231_v0  ;;  %v1181_v19 = vpop.xlane.xlu1 %1180  ;;  %v2763_v0 = vld [vmem:[%s4267_s11 + $0x18] sm:$0xff] }
 0x635   :  { %v1190_v26 = vmul.f32 %v1181_v19, %v3091_v18  ;;  %v1282_v23 = vmul.f32 %v3892_v40, %v1271_v12  ;;  %2170 = vmatpush.bf16.msra.mxu2 %v2773_v16  ;;  %v2762_v12 = vld [vmem:[%s4267_s11 + $0x10] sm:$0xff] }
 0x636   :  { %v1233_v9 = vsub.f32 1.5, %v1232_v17 }
 0x637   :  { %v2924_v13 = vpop.eup %2923  ;;  %v1197_v57 = vadd.f32 1e-05, %v1190_v26  ;;  %v1293_v27 = vadd.f32 %v3900_v3, %v1282_v23  ;;  %v2772_v26 = vld [vmem:[%s4267_s11 + $0x60] sm:$0xff]  ;;  %v2761_v23 = vld [vmem:[%s4267_s11 + $0x8] sm:$0xff] }
 0x638   :  { %v1234_v30 = vmul.f32 %v2922_v47, %v1233_v9  ;;  %v1240_v22 = vmul.f32 %v2924_v13, %v1196_v10  ;;  %vm1246_vm15 = vweird.f32 %v2924_v13  ;;  %v2788_v10 = vld [vmem:[%s4267_s11 + $0xe0] sm:$0xff] }
 0x639   :  { %2925 = vrsqrt.f32 %v1197_v57  ;;  %vm1247_vm2 = vmor %vm1245_vm1, %vm1246_vm15  ;;  %vm1255_vm4 = vweird.f32 %v1197_v57  ;;  %v2780_v9 = vld [vmem:[%s4267_s11 + $0xa0] sm:$0xff]  ;;  %2171 = vmatpush.bf16.msra.mxu2 %v2772_v26 }
 0x63a   :  { %v1238_v28 = vsel %vm1237_vm14, %v2922_v47, %v1234_v30  ;;  %v1241_v31 = vmul.f32 %v2924_v13, %v1240_v22  ;;  %v2764_v47 = vld [vmem:[%s4267_s11 + $0x20] sm:$0xff] }
 0x63b   :  { %v1272_v33 = vmul.f32 %v1238_v28, %v3670_v2  ;;  %v1334_v22 = vld [vmem:[%s4268_s10] sm:$0xf]  ;;  %v2771_v28 = vld [vmem:[%s4267_s11 + $0x58] sm:$0xff] }
 0x63c   :  { %v1242_v4 = vmul.f32 0.5, %v1241_v31  ;;  %v2779_v31 = vld [vmem:[%s4267_s11 + $0x98] sm:$0xff] }
 0x63d   :  { %v1283_v36 = vmul.f32 %v3892_v40, %v1272_v33  ;;  %2172 = vmatpush.bf16.msra.mxu2 %v2771_v28 }
 0x63e   :  { %v1243_v52 = vsub.f32 1.5, %v1242_v4  ;;  %v2785_v4 = vld [vmem:[%s4267_s11 + $0xc8] sm:$0xff] }
 0x63f   :  { %v2926_v44 = vpop.eup %2925  ;;  %v1294_v25 = vadd.f32 %v3900_v3, %v1283_v36  ;;  %v3995_v36 = vperm.slane %v1334_v22, 0 }
 0x640   :  { %v1244_v11 = vmul.f32 %v2924_v13, %v1243_v52  ;;  %v1250_v6 = vmul.f32 %v2926_v44, %v1197_v57  ;;  %vm1256_vm3 = vweird.f32 %v2926_v44  ;;  %v2786_v57 = vld [vmem:[%s4267_s11 + $0xd0] sm:$0xff] }
 0x641   :  { %v1299_v29 = vpack.c.bf16 %v1294_v25, %v1293_v27  ;;  %vm1257_vm5 = vmor %vm1255_vm4, %vm1256_vm3 }
 0x642   :  { %v1251_v32 = vmul.f32 %v2926_v44, %v1250_v6  ;;  %v1248_v2 = vsel %vm1247_vm2, %v2924_v13, %v1244_v11 }
 0x643   :  { %1517 = vmatmul.bf16.gmra.mxu1 %v1299_v29  ;;  %1545 = vmatmul.bf16.gmra.mxu2 %v1299_v29  ;;  %v1273_v45 = vmul.f32 %v1248_v2, %v3676_v14  ;;  %v2767_v14 = vld [vmem:[%s4267_s11 + $0x38] sm:$0xff]  ;;  %v2778_v2 = vld [vmem:[%s4267_s11 + $0x90] sm:$0xff] }
 0x644   :  { %v1252_v46 = vmul.f32 0.5, %v1251_v32  ;;  %1573 = vmatmul.bf16.gmra.mxu3 %v1299_v29  ;;  %1601 = vmatmul.bf16.gmra.mxu0 %v1299_v29  ;;  %v2770_v32 = vld [vmem:[%s4267_s11 + $0x50] sm:$0xff] }
 0x645   :  { %v1284_v51 = vmul.f32 %v3892_v40, %v1273_v45  ;;  %2140 = vmatpush.bf16.msra.mxu1 %v2767_v14  ;;  %v4014_v45 = vperm.slane %v1334_v22, 1  ;;  %2173 = vmatpush.bf16.msra.mxu2 %v2770_v32 }
 0x646   :  { %v1253_v35 = vsub.f32 1.5, %v1252_v46 }
 0x647   :  { %v1295_v49 = vadd.f32 %v3900_v3, %v1284_v51  ;;  %v4025_v51 = vperm.slane %v1334_v22, 2 }
 0x648   :  { %v1254_v43 = vmul.f32 %v2926_v44, %v1253_v35 }
 0x649   :  { %2141 = vmatpush.bf16.msra.mxu1 %v2766_v59 }
 0x64a   :  { %v1258_v41 = vsel %vm1257_vm5, %v2926_v44, %v1254_v43  ;;  %v3997_v44 = vperm.slane %v1334_v22, 3  ;;  %v2760_v43 = vld [vmem:[%s4267_s11] sm:$0xff] }
 0x64b   :  { %v1274_v50 = vmul.f32 %v1258_v41, %v3682_v63  ;;  %v2791_v63 = vld [vmem:[%s4267_s11 + $0xf8] sm:$0xff]  ;;  %v2784_v41 = vld [vmem:[%s4267_s11 + $0xc0] sm:$0xff] }
 0x64c   :  { %2224 = vmatpush.bf16.msra.mxu0 %v2791_v63 }
 0x64d   :  { %v1285_v21 = vmul.f32 %v3892_v40, %v1274_v50  ;;  %2142 = vmatpush.bf16.msra.mxu1 %v2765_v53 }
 0x64f   :  { %v1296_v54 = vadd.f32 %v3900_v3, %v1285_v21 }
 0x650   :  { %2225 = vmatpush.bf16.msra.mxu0 %v2790_v60 }
 0x651   :  { %v1300_v55 = vpack.c.bf16 %v1296_v54, %v1295_v49  ;;  %2143 = vmatpush.bf16.msra.mxu1 %v2764_v47  ;;  %v2777_v54 = vld [vmem:[%s4267_s11 + $0x88] sm:$0xff] }
 0x653   :  { %1522 = vmatmul.bf16.gmra.mxu1 %v1300_v55  ;;  %1550 = vmatmul.bf16.gmra.mxu2 %v1300_v55 }
 0x654   :  { %1578 = vmatmul.bf16.gmra.mxu3 %v1300_v55  ;;  %1606 = vmatmul.bf16.gmra.mxu0 %v1300_v55 }
 0x655   :  { %2226 = vmatpush.bf16.msra.mxu0 %v2789_v15  ;;  %2144 = vmatpush.bf16.msra.mxu1 %v2763_v0 }
 0x659   :  { %2227 = vmatpush.bf16.msra.mxu0 %v2788_v10  ;;  %2145 = vmatpush.bf16.msra.mxu1 %v2762_v12 }
 0x65d   :  { %2228 = vmatpush.bf16.msra.mxu0 %v2787_v58  ;;  %2146 = vmatpush.bf16.msra.mxu1 %v2761_v23 }
 0x661   :  { %2229 = vmatpush.bf16.msra.mxu0 %v2786_v57  ;;  %2147 = vmatpush.bf16.msra.mxu1 %v2760_v43 }
 0x665   :  { %2230 = vmatpush.bf16.msra.mxu0 %v2785_v4 }
 0x669   :  { %2231 = vmatpush.bf16.msra.mxu0 %v2784_v41 }
 0x694   :  { %v1184_v61 = vpop.xlane.xlu2 %1183 }
 0x695   :  { %v1191_v39 = vmul.f32 %v1184_v61, %v3091_v18  ;;  %v2782_v18 = vld [vmem:[%s4267_s11 + $0xb0] sm:$0xff] }
 0x696   :  { %2197 = vmatpush.bf16.msra.mxu3 %v2782_v18  ;;  %v2776_v18 = vld [vmem:[%s4267_s11 + $0x80] sm:$0xff] }
 0x697   :  { %v1198_v56 = vadd.f32 1e-05, %v1191_v39 }
 0x699   :  { %2927 = vrsqrt.f32 %v1198_v56  ;;  %vm1265_vm7 = vweird.f32 %v1198_v56 }
 0x69a   :  { %2198 = vmatpush.bf16.msra.mxu3 %v2781_v34 }
 0x69e   :  { %2199 = vmatpush.bf16.msra.mxu3 %v2780_v9 }
 0x69f   :  { %v2928_v17 = vpop.eup %2927 }
 0x6a0   :  { %v1260_v19 = vmul.f32 %v2928_v17, %v1198_v56  ;;  %vm1266_vm6 = vweird.f32 %v2928_v17 }
 0x6a1   :  { %vm1267_vm8 = vmor %vm1265_vm7, %vm1266_vm6 }
 0x6a2   :  { %v1261_v13 = vmul.f32 %v2928_v17, %v1260_v19  ;;  %2200 = vmatpush.bf16.msra.mxu3 %v2779_v31 }
 0x6a4   :  { %v1262_v30 = vmul.f32 0.5, %v1261_v13 }
 0x6a6   :  { %v1263_v33 = vsub.f32 1.5, %v1262_v30  ;;  %2201 = vmatpush.bf16.msra.mxu3 %v2778_v2 }
 0x6a8   :  { %v1264_v52 = vmul.f32 %v2928_v17, %v1263_v33 }
 0x6aa   :  { %v1268_v27 = vsel %vm1267_vm8, %v2928_v17, %v1264_v52  ;;  %v1513_v25 = vpop.f32.mrf.mxu1  ;;  %2202 = vmatpush.bf16.msra.mxu3 %v2777_v54 }
 0x6ab   :  { %v1275_v11 = vmul.f32 %v1268_v27, %v3882_v42  ;;  %v4001_v6 = vadd.f32 %v1513_v25, %v3995_v36  ;;  %v1597_v29 = vpop.f32.mrf.mxu0 }
 0x6ac   :  { %v4010_v46 = vadd.f32 %v1597_v29, %v3997_v44 }
 0x6ad   :  { %v1616_v35 = vmul.f32 %v4001_v6, %v4001_v6  ;;  %v1286_v42 = vmul.f32 %v3892_v40, %v1275_v11  ;;  %v2769_v40 = vld [vmem:[%s4267_s11 + $0x48] sm:$0xff] }
 0x6ae   :  { %v1619_v50 = vmul.f32 %v4010_v46, %v4010_v46  ;;  %2174 = vmatpush.bf16.msra.mxu2 %v2769_v40  ;;  %2203 = vmatpush.bf16.msra.mxu3 %v2776_v18 }
 0x6af   :  { %v1644_v21 = vmul.f32 %v1616_v35, %v4001_v6  ;;  %v1297_v49 = vadd.f32 %v3900_v3, %v1286_v42 }
 0x6b0   :  { %v1647_v55 = vmul.f32 %v1619_v50, %v4010_v46  ;;  %v1541_v14 = vpop.f32.mrf.mxu2 }
 0x6b1   :  { %v1672_v63 = vmul.f32 0.044715, %v1644_v21  ;;  %v4037_v59 = vadd.f32 %v1541_v14, %v4014_v45  ;;  %v1569_v60 = vpop.f32.mrf.mxu3  ;;  %v1301_v61 = vpack.c.bf16 %v1297_v49, %v1297_v49 }
 0x6b2   :  { %v1675_v3 = vmul.f32 0.044715, %v1647_v55  ;;  %v4040_v62 = vadd.f32 %v1569_v60, %v4025_v51  ;;  %v1515_v7 = vpop.f32.mrf.mxu1  ;;  %2175 = vmatpush.bf16.msra.mxu2 %v2768_v48 }
 0x6b3   :  { %v1700_v39 = vadd.f32 %v1672_v63, %v4001_v6  ;;  %v1617_v53 = vmul.f32 %v4037_v59, %v4037_v59  ;;  %v4046_v15 = vadd.f32 %v1515_v7, %v3995_v36  ;;  %v1599_v56 = vpop.f32.mrf.mxu0  ;;  %1527 = vmatmul.bf16.gmra.mxu1 %v1301_v61  ;;  %1555 = vmatmul.bf16.gmra.mxu2 %v1301_v61 }
 0x6b4   :  { %v1703_v47 = vadd.f32 %v1675_v3, %v4010_v46  ;;  %v1618_v10 = vmul.f32 %v4040_v62, %v4040_v62  ;;  %v4058_v16 = vadd.f32 %v1599_v56, %v3997_v44  ;;  %1583 = vmatmul.bf16.gmra.mxu3 %v1301_v61  ;;  %1611 = vmatmul.bf16.gmra.mxu0 %v1301_v61 }
 0x6b5   :  { %v1728_v34 = vmul.f32 0.7978846, %v1700_v39  ;;  %v1645_v0 = vmul.f32 %v1617_v53, %v4037_v59  ;;  %v1620_v58 = vmul.f32 %v4046_v15, %v4046_v15 }
 0x6b6   :  { %v1731_v17 = vmul.f32 0.7978846, %v1703_v47  ;;  %v1646_v19 = vmul.f32 %v1618_v10, %v4040_v62  ;;  %v1623_v26 = vmul.f32 %v4058_v16, %v4058_v16 }
 0x6b7   :  { %2929 = vtanh.f32 %v1728_v34  ;;  %v1673_v9 = vmul.f32 0.044715, %v1645_v0  ;;  %v1648_v13 = vmul.f32 %v1620_v58, %v4046_v15 }
 0x6b8   :  { %2931 = vtanh.f32 %v1731_v17  ;;  %v1674_v12 = vmul.f32 0.044715, %v1646_v19  ;;  %v1651_v57 = vmul.f32 %v1623_v26, %v4058_v16  ;;  %v1543_v30 = vpop.f32.mrf.mxu2 }
 0x6b9   :  { %v1701_v22 = vadd.f32 %v1673_v9, %v4037_v59  ;;  %v1676_v28 = vmul.f32 0.044715, %v1648_v13  ;;  %v4070_v31 = vadd.f32 %v1543_v30, %v4014_v45  ;;  %v1571_v33 = vpop.f32.mrf.mxu3 }
 0x6ba   :  { %v1702_v23 = vadd.f32 %v1674_v12, %v4040_v62  ;;  %v1679_v4 = vmul.f32 0.044715, %v1651_v57  ;;  %v4074_v52 = vadd.f32 %v1571_v33, %v4025_v51 }
 0x6bb   :  { %v1729_v27 = vmul.f32 0.7978846, %v1701_v22  ;;  %v1704_v25 = vadd.f32 %v1676_v28, %v4046_v15  ;;  %v1621_v11 = vmul.f32 %v4070_v31, %v4070_v31 }
 0x6bc   :  { %v1730_v29 = vmul.f32 0.7978846, %v1702_v23  ;;  %v1707_v32 = vadd.f32 %v1679_v4, %v4058_v16  ;;  %v1622_v2 = vmul.f32 %v4074_v52, %v4074_v52 }
 0x6bd   :  { %v2930_v35 = vpop.eup %2929  ;;  %2933 = vtanh.f32 %v1729_v27  ;;  %v1732_v42 = vmul.f32 0.7978846, %v1704_v25  ;;  %v1649_v43 = vmul.f32 %v1621_v11, %v4070_v31 }
 0x6be   :  { %v2932_v41 = vpop.eup %2931  ;;  %v1784_v50 = vadd.f32 1.0, %v2930_v35  ;;  %2935 = vtanh.f32 %v1730_v29  ;;  %v1735_v21 = vmul.f32 0.7978846, %v1707_v32  ;;  %v1650_v49 = vmul.f32 %v1622_v2, %v4074_v52 }
 0x6bf   :  { %v1787_v40 = vadd.f32 1.0, %v2932_v41  ;;  %2937 = vtanh.f32 %v1732_v42  ;;  %v1677_v54 = vmul.f32 0.044715, %v1649_v43 }
 0x6c0   :  { %v1812_v55 = vmul.f32 0.5, %v1784_v50  ;;  %2939 = vtanh.f32 %v1735_v21  ;;  %v1678_v14 = vmul.f32 0.044715, %v1650_v49  ;;  %v1518_v63 = vpop.f32.mrf.mxu1 }
 0x6c1   :  { %v1815_v60 = vmul.f32 0.5, %v1787_v40  ;;  %v1705_v61 = vadd.f32 %v1677_v54, %v4070_v31  ;;  %v4086_v3 = vadd.f32 %v1518_v63, %v3995_v36  ;;  %v1602_v7 = vpop.f32.mrf.mxu0 }
 0x6c2   :  { %v1706_v39 = vadd.f32 %v1678_v14, %v4074_v52  ;;  %v4090_v53 = vadd.f32 %v1602_v7, %v3997_v44  ;;  %v1840_v10 = vmul.f32 %v1812_v55, %v4001_v6 }
 0x6c3   :  { %v2934_v56 = vpop.eup %2933  ;;  %v1733_v48 = vmul.f32 0.7978846, %v1705_v61  ;;  %v1624_v18 = vmul.f32 %v4086_v3, %v4086_v3  ;;  %v1843_v19 = vmul.f32 %v1815_v60, %v4010_v46 }
 0x6c4   :  { %v2936_v47 = vpop.eup %2935  ;;  %v1785_v34 = vadd.f32 1.0, %v2934_v56  ;;  %v1734_v0 = vmul.f32 0.7978846, %v1706_v39  ;;  %v1627_v58 = vmul.f32 %v4090_v53, %v4090_v53 }
 0x6c5   :  { %v2938_v17 = vpop.eup %2937  ;;  %v1786_v26 = vadd.f32 1.0, %v2936_v47  ;;  %2941 = vtanh.f32 %v1733_v48  ;;  %v1652_v9 = vmul.f32 %v1624_v18, %v4086_v3 }
 0x6c6   :  { %v2940_v13 = vpop.eup %2939  ;;  %v1813_v12 = vmul.f32 0.5, %v1785_v34  ;;  %v1788_v57 = vadd.f32 1.0, %v2938_v17  ;;  %2943 = vtanh.f32 %v1734_v0  ;;  %v1655_v30 = vmul.f32 %v1627_v58, %v4090_v53  ;;  %v1546_v22 = vpop.f32.mrf.mxu2 }
 0x6c7   :  { %v1814_v6 = vmul.f32 0.5, %v1786_v26  ;;  %v1791_v28 = vadd.f32 1.0, %v2940_v13  ;;  %v1680_v33 = vmul.f32 0.044715, %v1652_v9  ;;  %v4101_v23 = vadd.f32 %v1546_v22, %v4014_v45  ;;  %v1574_v4 = vpop.f32.mrf.mxu3 }
 0x6c8   :  { %v4104_v46 = vmul.f32 %v1813_v12, %v4037_v59  ;;  %v1816_v27 = vmul.f32 0.5, %v1788_v57  ;;  %v1683_v25 = vmul.f32 0.044715, %v1655_v30  ;;  %v4107_v11 = vadd.f32 %v1574_v4, %v4025_v51  ;;  %v1520_v29 = vpop.f32.mrf.mxu1 }
 0x6c9   :  { %v4110_v32 = vmul.f32 %v1814_v6, %v4040_v62  ;;  %v1819_v2 = vmul.f32 0.5, %v1791_v28  ;;  %v1708_v35 = vadd.f32 %v1680_v33, %v4086_v3  ;;  %v1625_v42 = vmul.f32 %v4101_v23, %v4101_v23  ;;  %v1604_v43 = vpop.f32.mrf.mxu0 }
 0x6ca   :  { %v1844_v41 = vmul.f32 %v1816_v27, %v4046_v15  ;;  %v1711_v59 = vadd.f32 %v1683_v25, %v4090_v53  ;;  %v1626_v50 = vmul.f32 %v4107_v11, %v4107_v11  ;;  %v4120_v21 = vadd.f32 %v1520_v29, %v3995_v36 }
 0x6cb   :  { %v2942_v49 = vpop.eup %2941  ;;  %v1847_v62 = vmul.f32 %v1819_v2, %v4058_v16  ;;  %v1736_v40 = vmul.f32 0.7978846, %v1708_v35  ;;  %v1653_v54 = vmul.f32 %v1625_v42, %v4101_v23  ;;  %v4125_v55 = vadd.f32 %v1604_v43, %v3997_v44 }
 0x6cc   :  { %v2944_v14 = vpop.eup %2943  ;;  %v1868_v63 = vpack.c.bf16 %v1844_v41, %v1840_v10  ;;  %v1789_v15 = vadd.f32 1.0, %v2942_v49  ;;  %v1739_v60 = vmul.f32 0.7978846, %v1711_v59  ;;  %v1654_v61 = vmul.f32 %v1626_v50, %v4107_v11 }
 0x6cd   :  { %v1871_v7 = vpack.c.bf16 %v1847_v62, %v1843_v19  ;;  %v1790_v39 = vadd.f32 1.0, %v2944_v14  ;;  %2945 = vtanh.f32 %v1736_v40  ;;  %v1681_v56 = vmul.f32 0.044715, %v1653_v54 }
 0x6ce   :  { %v1817_v48 = vmul.f32 0.5, %v1789_v15  ;;  %2947 = vtanh.f32 %v1739_v60  ;;  %v1682_v18 = vmul.f32 0.044715, %v1654_v61  ;;  %v1628_v16 = vmul.f32 %v4120_v21, %v4120_v21  ;;  %v1548_v47 = vpop.f32.mrf.mxu2  ;;  %2148 = vmatmul.bf16.vlgmr.msra.gmra.mxu1 %v1868_v63 }
 0x6cf   :  { %v1818_v34 = vmul.f32 0.5, %v1790_v39  ;;  %v1709_v0 = vadd.f32 %v1681_v56, %v4101_v23  ;;  %v1631_v10 = vmul.f32 %v4125_v55, %v4125_v55  ;;  %v4134_v58 = vadd.f32 %v1548_v47, %v4014_v45  ;;  %v1576_v17 = vpop.f32.mrf.mxu3  ;;  %2232 = vmatmul.bf16.vlgmr.msra.gmra.mxu0 %v1871_v7 }
 0x6d0   :  { %v1845_v19 = vmul.f32 %v1817_v48, %v4070_v31  ;;  %v1710_v26 = vadd.f32 %v1682_v18, %v4107_v11  ;;  %v1656_v9 = vmul.f32 %v1628_v16, %v4120_v21  ;;  %v4140_v13 = vadd.f32 %v1576_v17, %v4025_v51  ;;  %v1523_v12 = vpop.f32.mrf.mxu1 }
 0x6d1   :  { %v1846_v57 = vmul.f32 %v1818_v34, %v4074_v52  ;;  %v1737_v30 = vmul.f32 0.7978846, %v1709_v0  ;;  %v1659_v22 = vmul.f32 %v1631_v10, %v4125_v55  ;;  %v1629_v6 = vmul.f32 %v4134_v58, %v4134_v58  ;;  %v1607_v28 = vpop.f32.mrf.mxu0 }
 0x6d2   :  { %v1869_v33 = vpack.c.bf16 %v1845_v19, %v4104_v46  ;;  %v1738_v31 = vmul.f32 0.7978846, %v1710_v26  ;;  %v1684_v4 = vmul.f32 0.044715, %v1656_v9  ;;  %v1630_v27 = vmul.f32 %v4140_v13, %v4140_v13 }
 0x6d3   :  { %v2946_v25 = vpop.eup %2945  ;;  %v1870_v29 = vpack.c.bf16 %v1846_v57, %v4110_v32  ;;  %v1687_v2 = vmul.f32 0.044715, %v1659_v22  ;;  %v1657_v52 = vmul.f32 %v1629_v6, %v4134_v58  ;;  %2949 = vtanh.f32 %v1737_v30 }
 0x6d4   :  { %v2948_v35 = vpop.eup %2947  ;;  %v1712_v42 = vadd.f32 %v1684_v4, %v4120_v21  ;;  %v1658_v43 = vmul.f32 %v1630_v27, %v4140_v13  ;;  %v4154_v41 = vadd.f32 %v1523_v12, %v3995_v36  ;;  %2176 = vmatmul.bf16.vlgmr.msra.gmra.mxu2 %v1869_v33  ;;  %2951 = vtanh.f32 %v1738_v31 }
 0x6d5   :  { %v1715_v46 = vadd.f32 %v1687_v2, %v4125_v55  ;;  %v1685_v59 = vmul.f32 0.044715, %v1657_v52  ;;  %v4158_v50 = vadd.f32 %v1607_v28, %v3997_v44  ;;  %2204 = vmatmul.bf16.vlgmr.msra.gmra.mxu3 %v1870_v29  ;;  %v1792_v54 = vadd.f32 1.0, %v2946_v25 }
 0x6d6   :  { %v1740_v32 = vmul.f32 0.7978846, %v1712_v42  ;;  %v1686_v49 = vmul.f32 0.044715, %v1658_v43  ;;  %v1632_v62 = vmul.f32 %v4154_v41, %v4154_v41  ;;  %v1551_v40 = vpop.f32.mrf.mxu2  ;;  %v1795_v18 = vadd.f32 1.0, %v2948_v35 }
 0x6d7   :  { %v1743_v14 = vmul.f32 0.7978846, %v1715_v46  ;;  %v1713_v63 = vadd.f32 %v1685_v59, %v4134_v58  ;;  %v1635_v15 = vmul.f32 %v4158_v50, %v4158_v50  ;;  %v4166_v60 = vadd.f32 %v1551_v40, %v4014_v45  ;;  %v1579_v61 = vpop.f32.mrf.mxu3 }
 0x6d8   :  { %v1714_v7 = vadd.f32 %v1686_v49, %v4140_v13  ;;  %v1660_v39 = vmul.f32 %v1632_v62, %v4154_v41  ;;  %v4171_v56 = vadd.f32 %v1579_v61, %v4025_v51  ;;  %v1525_v48 = vpop.f32.mrf.mxu1  ;;  %2953 = vtanh.f32 %v1740_v32 }
 0x6d9   :  { %v1741_v16 = vmul.f32 0.7978846, %v1713_v63  ;;  %v1663_v47 = vmul.f32 %v1635_v15, %v4158_v50  ;;  %v1633_v34 = vmul.f32 %v4166_v60, %v4166_v60  ;;  %v1609_v0 = vpop.f32.mrf.mxu0  ;;  %v2950_v10 = vpop.eup %2949  ;;  %v4179_v9 = vadd.f32 %v1525_v48, %v3995_v36 }
 0x6da   :  { %v1742_v17 = vmul.f32 0.7978846, %v1714_v7  ;;  %v1688_v19 = vmul.f32 0.044715, %v1660_v39  ;;  %v1634_v26 = vmul.f32 %v4171_v56, %v4171_v56  ;;  %v4181_v12 = vpop.eup %2951  ;;  %2955 = vtanh.f32 %v1743_v14 }
 0x6db   :  { %v1691_v57 = vmul.f32 0.044715, %v1663_v47  ;;  %v1661_v30 = vmul.f32 %v1633_v34, %v4166_v60  ;;  %v4185_v22 = vadd.f32 %v1609_v0, %v3997_v44  ;;  %2957 = vtanh.f32 %v1741_v16 }
 0x6dc   :  { %v1716_v6 = vadd.f32 %v1688_v19, %v4154_v41  ;;  %v1662_v28 = vmul.f32 %v1634_v26, %v4171_v56  ;;  %v1636_v33 = vmul.f32 %v4179_v9, %v4179_v9  ;;  %2959 = vtanh.f32 %v1742_v17 }
 0x6dd   :  { %v1719_v31 = vadd.f32 %v1691_v57, %v4158_v50  ;;  %v1689_v4 = vmul.f32 0.044715, %v1661_v30  ;;  %v1639_v27 = vmul.f32 %v4185_v22, %v4185_v22  ;;  %v1820_v35 = vmul.f32 0.5, %v1792_v54 }
 0x6de   :  { %v1744_v25 = vmul.f32 0.7978846, %v1716_v6  ;;  %v1690_v29 = vmul.f32 0.044715, %v1662_v28  ;;  %v1664_v2 = vmul.f32 %v1636_v33, %v4179_v9  ;;  %v1553_v52 = vpop.f32.mrf.mxu2  ;;  %v2954_v42 = vpop.eup %2953  ;;  %v1823_v63 = vmul.f32 0.5, %v1795_v18 }
 0x6df   :  { %v1747_v43 = vmul.f32 0.7978846, %v1719_v31  ;;  %v1717_v46 = vadd.f32 %v1689_v4, %v4166_v60  ;;  %v1667_v59 = vmul.f32 %v1639_v27, %v4185_v22  ;;  %v4198_v32 = vadd.f32 %v1553_v52, %v4014_v45  ;;  %v1581_v49 = vpop.f32.mrf.mxu3 }
 0x6e0   :  { %v1718_v62 = vadd.f32 %v1690_v29, %v4171_v56  ;;  %v1692_v40 = vmul.f32 0.044715, %v1664_v2  ;;  %v4202_v14 = vadd.f32 %v1581_v49, %v4025_v51  ;;  %v2956_v15 = vpop.eup %2955  ;;  %2961 = vtanh.f32 %v1744_v25 }
 0x6e1   :  { %v1745_v54 = vmul.f32 0.7978846, %v1717_v46  ;;  %v1695_v61 = vmul.f32 0.044715, %v1667_v59  ;;  %v1637_v7 = vmul.f32 %v4198_v32, %v4198_v32  ;;  %v2958_v39 = vpop.eup %2957  ;;  %2963 = vtanh.f32 %v1747_v43 }
 0x6e2   :  { %v1720_v48 = vadd.f32 %v1692_v40, %v4179_v9  ;;  %v1638_v16 = vmul.f32 %v4202_v14, %v4202_v14  ;;  %v1796_v47 = vadd.f32 1.0, %v2954_v42  ;;  %v2960_v34 = vpop.eup %2959  ;;  %v1746_v0 = vmul.f32 0.7978846, %v1718_v62 }
 0x6e3   :  { %2965 = vtanh.f32 %v1745_v54  ;;  %v1723_v18 = vadd.f32 %v1695_v61, %v4185_v22  ;;  %v1665_v17 = vmul.f32 %v1637_v7, %v4198_v32  ;;  %v1848_v30 = vmul.f32 %v1820_v35, %v4086_v3 }
 0x6e4   :  { %v1748_v19 = vmul.f32 0.7978846, %v1720_v48  ;;  %v1666_v26 = vmul.f32 %v1638_v16, %v4202_v14  ;;  %v1824_v57 = vmul.f32 0.5, %v1796_v47  ;;  %v1799_v33 = vadd.f32 1.0, %v2956_v15 }
 0x6e5   :  { %v1751_v6 = vmul.f32 0.7978846, %v1723_v18  ;;  %v1693_v28 = vmul.f32 0.044715, %v1665_v17  ;;  %v1851_v31 = vmul.f32 %v1823_v63, %v4090_v53  ;;  %v1793_v25 = vadd.f32 1.0, %v2950_v10 }
 0x6e6   :  { %2967 = vtanh.f32 %v1748_v19  ;;  %v1694_v4 = vmul.f32 0.044715, %v1666_v26  ;;  %v1852_v27 = vmul.f32 %v1824_v57, %v4120_v21  ;;  %v2962_v29 = vpop.eup %2961  ;;  %v1827_v52 = vmul.f32 0.5, %v1799_v33 }
 0x6e7   :  { %2969 = vtanh.f32 %v1751_v6  ;;  %v1721_v2 = vadd.f32 %v1693_v28, %v4198_v32  ;;  %v1797_v42 = vadd.f32 1.0, %v2958_v39  ;;  %v2964_v43 = vpop.eup %2963  ;;  %v1821_v35 = vmul.f32 0.5, %v1793_v25 }
 0x6e8   :  { %v1722_v46 = vadd.f32 %v1694_v4, %v4202_v14  ;;  %v1872_v3 = vpack.c.bf16 %v1852_v27, %v1848_v30  ;;  %v1794_v59 = vadd.f32 1.0, %v4181_v12  ;;  %v1855_v62 = vmul.f32 %v1827_v52, %v4125_v55 }
 0x6e9   :  { %v2966_v49 = vpop.eup %2965  ;;  %v1749_v53 = vmul.f32 0.7978846, %v1721_v2  ;;  %v1825_v40 = vmul.f32 0.5, %v1797_v42  ;;  %v1798_v21 = vadd.f32 1.0, %v2960_v34  ;;  %2971 = vtanh.f32 %v1746_v0 }
 0x6ea   :  { %v1750_v10 = vmul.f32 0.7978846, %v1722_v46  ;;  %2153 = vmatmul.bf16.gmra.mxu1 %v1872_v3  ;;  %v1849_v63 = vmul.f32 %v1821_v35, %v4101_v23  ;;  %v1822_v15 = vmul.f32 0.5, %v1794_v59  ;;  %v1875_v54 = vpack.c.bf16 %v1855_v62, %v1851_v31 }
 0x6eb   :  { %2973 = vtanh.f32 %v1749_v53  ;;  %v1853_v61 = vmul.f32 %v1825_v40, %v4134_v58  ;;  %v1826_v7 = vmul.f32 0.5, %v1798_v21  ;;  %v1800_v12 = vadd.f32 1.0, %v2962_v29 }
 0x6ec   :  { %v2968_v39 = vpop.eup %2967  ;;  %2975 = vtanh.f32 %v1750_v10  ;;  %2237 = vmatmul.bf16.gmra.mxu0 %v1875_v54  ;;  %v1850_v55 = vmul.f32 %v1822_v15, %v4107_v11  ;;  %v1803_v17 = vadd.f32 1.0, %v2964_v43  ;;  %v1801_v30 = vadd.f32 1.0, %v2966_v49 }
 0x6ed   :  { %v2970_v48 = vpop.eup %2969  ;;  %v1873_v16 = vpack.c.bf16 %v1853_v61, %v1849_v63  ;;  %v1854_v47 = vmul.f32 %v1826_v7, %v4140_v13  ;;  %v1804_v34 = vadd.f32 1.0, %v2968_v39  ;;  %v1828_v26 = vmul.f32 0.5, %v1800_v12 }
 0x6ee   :  { %v1807_v0 = vadd.f32 1.0, %v2970_v48  ;;  %v1831_v31 = vmul.f32 0.5, %v1803_v17  ;;  %v1829_v29 = vmul.f32 0.5, %v1801_v30 }
 0x6ef   :  { %2181 = vmatmul.bf16.gmra.mxu2 %v1873_v16  ;;  %v1874_v23 = vpack.c.bf16 %v1854_v47, %v1850_v55  ;;  %v1832_v18 = vmul.f32 0.5, %v1804_v34  ;;  %v2972_v19 = vpop.eup %2971  ;;  %v1856_v13 = vmul.f32 %v1828_v26, %v4154_v41 }
 0x6f0   :  { %v1835_v57 = vmul.f32 0.5, %v1807_v0  ;;  %v1802_v11 = vadd.f32 1.0, %v2972_v19  ;;  %v1859_v42 = vmul.f32 %v1831_v31, %v4158_v50 }
 0x6f1   :  { %v2974_v58 = vpop.eup %2973  ;;  %2209 = vmatmul.bf16.gmra.mxu3 %v1874_v23  ;;  %v1860_v28 = vmul.f32 %v1832_v18, %v4179_v9  ;;  %v1857_v9 = vmul.f32 %v1829_v29, %v4166_v60 }
 0x6f2   :  { %v2976_v6 = vpop.eup %2975  ;;  %v1805_v33 = vadd.f32 1.0, %v2974_v58  ;;  %v1863_v25 = vmul.f32 %v1835_v57, %v4185_v22  ;;  %v1830_v46 = vmul.f32 0.5, %v1802_v11 }
 0x6f3   :  { %v1806_v4 = vadd.f32 1.0, %v2976_v6  ;;  %v1876_v52 = vpack.c.bf16 %v1860_v28, %v1856_v13 }
 0x6f4   :  { %v1833_v27 = vmul.f32 0.5, %v1805_v33  ;;  %v1879_v3 = vpack.c.bf16 %v1863_v25, %v1859_v42  ;;  %v1858_v41 = vmul.f32 %v1830_v46, %v4171_v56 }
 0x6f5   :  { %v1834_v2 = vmul.f32 0.5, %v1806_v4 }
 0x6f6   :  { %v1861_v43 = vmul.f32 %v1833_v27, %v4198_v32 }
 0x6f7   :  { %v1862_v35 = vmul.f32 %v1834_v2, %v4202_v14 }
 0x6f8   :  { %v1877_v59 = vpack.c.bf16 %v1861_v43, %v1857_v9 }
 0x6f9   :  { %v1878_v49 = vpack.c.bf16 %v1862_v35, %v1858_v41 }
 0x6fa   :  { %2158 = vmatmul.bf16.gmra.mxu1 %v1876_v52 }
 0x6fc   :  { %2242 = vmatmul.bf16.gmra.mxu0 %v1879_v3 }
 0x6ff   :  { %2186 = vmatmul.bf16.gmra.mxu2 %v1877_v59 }
 0x701   :  { %2214 = vmatmul.bf16.gmra.mxu3 %v1878_v49 }
 0x730   :  { %v1528_v22 = vpop.f32.mrf.mxu1 }
 0x731   :  { %v1529_v53 = vadd.f32 %v1528_v22, %v3995_v36  ;;  %v1612_v50 = vpop.f32.mrf.mxu0 }
 0x732   :  { %v1613_v32 = vadd.f32 %v1612_v50, %v3997_v44 }
 0x733   :  { %v1640_v62 = vmul.f32 %v1529_v53, %v1529_v53 }
 0x734   :  { %v1643_v40 = vmul.f32 %v1613_v32, %v1613_v32 }
 0x735   :  { %v1668_v21 = vmul.f32 %v1640_v62, %v1529_v53 }
 0x736   :  { %v1671_v60 = vmul.f32 %v1643_v40, %v1613_v32  ;;  %v1556_v10 = vpop.f32.mrf.mxu2 }
 0x737   :  { %v1696_v14 = vmul.f32 0.044715, %v1668_v21  ;;  %v1557_v63 = vadd.f32 %v1556_v10, %v4014_v45  ;;  %v1584_v15 = vpop.f32.mrf.mxu3 }
 0x738   :  { %v1699_v56 = vmul.f32 0.044715, %v1671_v60  ;;  %v1585_v54 = vadd.f32 %v1584_v15, %v4025_v51  ;;  %v1530_v61 = vpop.f32.mrf.mxu1 }
 0x739   :  { %v1724_v7 = vadd.f32 %v1696_v14, %v1529_v53  ;;  %v1641_v39 = vmul.f32 %v1557_v63, %v1557_v63  ;;  %v1614_v12 = vpop.f32.mrf.mxu0  ;;  %v2842_v14 = vld [vmem:[%s4269_s12] ss:$0 sm:$0xff] }
 0x73a   :  { %v1727_v36 = vadd.f32 %v1699_v56, %v1613_v32  ;;  %v1642_v48 = vmul.f32 %v1585_v54, %v1585_v54 }
 0x73b   :  { %v1752_v16 = vmul.f32 0.7978846, %v1724_v7  ;;  %v1669_v44 = vmul.f32 %v1641_v39, %v1557_v63 }
 0x73c   :  { %v1755_v55 = vmul.f32 0.7978846, %v1727_v36  ;;  %v1670_v47 = vmul.f32 %v1642_v48, %v1585_v54 }
 0x73d   :  { %v1697_v34 = vmul.f32 0.044715, %v1669_v44  ;;  %2977 = vtanh.f32 %v1752_v16 }
 0x73e   :  { %v1698_v0 = vmul.f32 0.044715, %v1670_v47  ;;  %v1558_v23 = vpop.f32.mrf.mxu2  ;;  %2979 = vtanh.f32 %v1755_v55 }
 0x73f   :  { %v1725_v45 = vadd.f32 %v1697_v34, %v1557_v63  ;;  %v1586_v18 = vpop.f32.mrf.mxu3 }
 0x740   :  { %v1726_v17 = vadd.f32 %v1698_v0, %v1585_v54 }
 0x741   :  { %v1753_v19 = vmul.f32 0.7978846, %v1725_v45 }
 0x742   :  { %v1754_v51 = vmul.f32 0.7978846, %v1726_v17 }
 0x743   :  { %v2978_v26 = vpop.eup %2977  ;;  %2981 = vtanh.f32 %v1753_v19 }
 0x744   :  { %v2980_v58 = vpop.eup %2979  ;;  %v1808_v57 = vadd.f32 1.0, %v2978_v26  ;;  %2983 = vtanh.f32 %v1754_v51 }
 0x745   :  { %v1811_v30 = vadd.f32 1.0, %v2980_v58 }
 0x746   :  { %v1836_v6 = vmul.f32 0.5, %v1808_v57 }
 0x747   :  { %v1839_v28 = vmul.f32 0.5, %v1811_v30 }
 0x748   :  { %v1864_v33 = vmul.f32 %v1836_v6, %v1529_v53 }
 0x749   :  { %v2982_v31 = vpop.eup %2981  ;;  %v1867_v11 = vmul.f32 %v1839_v28, %v1613_v32 }
 0x74a   :  { %v2984_v4 = vpop.eup %2983  ;;  %v1880_v13 = vpack.c.bf16 %v1864_v33, %v1864_v33  ;;  %v1809_v27 = vadd.f32 1.0, %v2982_v31 }
 0x74b   :  { %v1883_v25 = vpack.c.bf16 %v1867_v11, %v1867_v11  ;;  %v1810_v29 = vadd.f32 1.0, %v2984_v4  ;;  %v2149_v9 = vpop.f32.mrf.mxu1 }
 0x74c   :  { %2163 = vmatmul.bf16.gmra.mxu1 %v1880_v13  ;;  %v1837_v2 = vmul.f32 0.5, %v1809_v27  ;;  %v2233_v49 = vpop.f32.mrf.mxu0 }
 0x74d   :  { %2247 = vmatmul.bf16.gmra.mxu0 %v1883_v25  ;;  %v1838_v52 = vmul.f32 0.5, %v1810_v29 }
 0x74e   :  { %v1865_v42 = vmul.f32 %v1837_v2, %v1557_v63 }
 0x74f   :  { %v1866_v43 = vmul.f32 %v1838_v52, %v1585_v54 }
 0x750   :  { %v1881_v46 = vpack.c.bf16 %v1865_v42, %v1865_v42 }
 0x751   :  { %v1882_v3 = vpack.c.bf16 %v1866_v43, %v1866_v43 }
 0x752   :  { %2191 = vmatmul.bf16.gmra.mxu2 %v1881_v46 }
 0x753   :  { %2219 = vmatmul.bf16.gmra.mxu3 %v1882_v3  ;;  %v2151_v53 = vpop.f32.mrf.mxu1 }
 0x754   :  { %v2235_v60 = vpop.f32.mrf.mxu0 }
 0x757   :  { %v2177_v35 = vpop.f32.mrf.mxu2 }
 0x758   :  { %v2178_v59 = vadd.f32 %v2177_v35, %v2149_v9  ;;  %v2205_v41 = vpop.f32.mrf.mxu3 }
 0x75a   :  { %v2206_v22 = vadd.f32 %v2205_v41, %v2178_v59 }
 0x75c   :  { %v2234_v32 = vadd.f32 %v2233_v49, %v2206_v22 }
 0x75e   :  { %v2252_v10 = vadd.f32 %v2234_v32, %v3621_v20 }
 0x75f   :  { %v2179_v50 = vpop.f32.mrf.mxu2 }
 0x760   :  { %v2180_v62 = vadd.f32 %v2179_v50, %v2151_v53  ;;  %v2207_v40 = vpop.f32.mrf.mxu3  ;;  %v2263_v56 = vadd.f32 %v2842_v14, %v2252_v10 }
 0x762   :  { %v2208_v21 = vadd.f32 %v2207_v40, %v2180_v62 }
 0x764   :  { %v2236_v63 = vadd.f32 %v2235_v60, %v2208_v21 }
 0x766   :  { %v2253_v15 = vadd.f32 %v2236_v63, %v3626_v24 }
 0x767   :  { %v2154_v7 = vpop.f32.mrf.mxu1 }
 0x768   :  { %v2264_v54 = vadd.f32 %v2842_v14, %v2253_v15 }
 0x769   :  { %v2238_v39 = vpop.f32.mrf.mxu0 }
 0x76a   :  { %v2807_v61 = vpack.c.bf16 %v2264_v54, %v2263_v56 }
 0x76c   :  { %2808 = vst [vmem:[%s4270_s13] sm:$0xff] %v2807_v61  }
 0x76f   :  { %v2156_v20 = vpop.f32.mrf.mxu1 }
 0x771   :  { %v2240_v44 = vpop.f32.mrf.mxu0 }
 0x772   :  { %v2182_v12 = vpop.f32.mrf.mxu2 }
 0x773   :  { %v2183_v36 = vadd.f32 %v2182_v12, %v2154_v7 }
 0x774   :  { %v2210_v48 = vpop.f32.mrf.mxu3 }
 0x775   :  { %v2211_v16 = vadd.f32 %v2210_v48, %v2183_v36 }
 0x777   :  { %v2239_v47 = vadd.f32 %v2238_v39, %v2211_v16  ;;  %v2159_v18 = vpop.f32.mrf.mxu1 }
 0x779   :  { %v2254_v23 = vadd.f32 %v2239_v47, %v3630_v38  ;;  %v2243_v57 = vpop.f32.mrf.mxu0 }
 0x77a   :  { %v2184_v55 = vpop.f32.mrf.mxu2 }
 0x77b   :  { %v2185_v34 = vadd.f32 %v2184_v55, %v2156_v20  ;;  %v2265_v51 = vadd.f32 %v2842_v14, %v2254_v23 }
 0x77c   :  { %v2212_v0 = vpop.f32.mrf.mxu3 }
 0x77d   :  { %v2213_v24 = vadd.f32 %v2212_v0, %v2185_v34 }
 0x77f   :  { %v2241_v45 = vadd.f32 %v2240_v44, %v2213_v24  ;;  %v2161_v33 = vpop.f32.mrf.mxu1 }
 0x781   :  { %v2255_v17 = vadd.f32 %v2241_v45, %v3634_v37  ;;  %v2245_v27 = vpop.f32.mrf.mxu0 }
 0x782   :  { %v2187_v19 = vpop.f32.mrf.mxu2 }
 0x783   :  { %v2266_v26 = vadd.f32 %v2842_v14, %v2255_v17  ;;  %v2188_v58 = vadd.f32 %v2187_v19, %v2159_v18 }
 0x784   :  { %v2215_v30 = vpop.f32.mrf.mxu3 }
 0x785   :  { %v2812_v6 = vpack.c.bf16 %v2266_v26, %v2265_v51  ;;  %v2216_v28 = vadd.f32 %v2215_v30, %v2188_v58 }
 0x787   :  { %2821 = vst [vmem:[%s4270_s13 + $0x8] sm:$0xff] %v2812_v6   ;;  %v2244_v11 = vadd.f32 %v2243_v57, %v2216_v28 }
 0x789   :  { %v2256_v37 = vadd.f32 %v2244_v11, %v3638_v5 }
 0x78a   :  { %v2189_v31 = vpop.f32.mrf.mxu2 }
 0x78b   :  { %v2190_v38 = vadd.f32 %v2189_v31, %v2161_v33  ;;  %v2267_v2 = vadd.f32 %v2842_v14, %v2256_v37 }
 0x78c   :  { %v2217_v4 = vpop.f32.mrf.mxu3 }
 0x78d   :  { %v2218_v13 = vadd.f32 %v2217_v4, %v2190_v38 }
 0x78f   :  { %v2246_v25 = vadd.f32 %v2245_v27, %v2218_v13 }
 0x791   :  { %v2257_v29 = vadd.f32 %v2246_v25, %v3642_v8 }
 0x793   :  { %v2268_v52 = vadd.f32 %v2842_v14, %v2257_v29 }
 0x795   :  { %v2817_v42 = vpack.c.bf16 %v2268_v52, %v2267_v2 }
 0x797   :  { %2822 = vst [vmem:[%s4270_s13 + $0x10] sm:$0xff] %v2817_v42  }
 0x7c9   :  { %v2164_v43 = vpop.f32.mrf.mxu1 }
 0x7ca   :  { %v2248_v46 = vpop.f32.mrf.mxu0 }
 0x7d1   :  { %v2166_v3 = vpop.f32.mrf.mxu1 }
 0x7d2   :  { %v2250_v9 = vpop.f32.mrf.mxu0 }
 0x7d5   :  { %v2192_v35 = vpop.f32.mrf.mxu2 }
 0x7d6   :  { %v2193_v59 = vadd.f32 %v2192_v35, %v2164_v43  ;;  %v2220_v41 = vpop.f32.mrf.mxu3 }
 0x7d8   :  { %v2221_v49 = vadd.f32 %v2220_v41, %v2193_v59 }
 0x7da   :  { %v2249_v22 = vadd.f32 %v2248_v46, %v2221_v49 }
 0x7dc   :  { %v2258_v5 = vadd.f32 %v2249_v22, %v3658_v1 }
 0x7dd   :  { %v2194_v53 = vpop.f32.mrf.mxu2 }
 0x7de   :  { %v2269_v8 = vadd.f32 %v2842_v14, %v2258_v5  ;;  %v2222_v50 = vpop.f32.mrf.mxu3 }
 0x7e0   :  { %v2276_v32 = vpack.c.bf16 %v2269_v8, %v2269_v8 }
 0x7e2   :  { %2283 = vst [vmem:[%s4270_s13 + $0x18] sm:$0x1] %v2276_v32 }

// kernel: dino_v2_a_forward.9
= control target key start
LH: loop header
LB: loop body
LE: loop exit
PB: predicated region body
PF: predicated region fallthrough
CT: control target
= control target key end

     0   :  { %18 = vsyncpa [#allocation3], 0  ;;  %s3032_s0 = inlined_call_operand.vmem [shape: bf16[10,128], index: 0, kind: input, shape index: {}, may-alias: {0,13}]   ;;  %s3033_s1 = inlined_call_operand.hbm [shape: f32[1,128], index: 1, kind: input, shape index: {}]   ;;  %s3034_s2 = inlined_call_operand.hbm [shape: f32[1,128], index: 2, kind: input, shape index: {}]   ;;  %s3035_s3 = inlined_call_operand.vmem [shape: bf16[128,384], index: 3, kind: input, shape index: {}]   ;;  %s3036_s4 = inlined_call_operand.vmem [shape: f32[1,384], index: 4, kind: input, shape index: {}]   ;;  %s3037_s5 = inlined_call_operand.vmem [shape: bf16[128,128], index: 5, kind: input, shape index: {}]   ;;  %s3038_s6 = inlined_call_operand.hbm [shape: f32[1,128], index: 6, kind: input, shape index: {}]   ;;  %s3039_s7 = inlined_call_operand.hbm [shape: f32[1,128], index: 7, kind: input, shape index: {}]   ;;  %s3040_s8 = inlined_call_operand.hbm [shape: f32[1,128], index: 8, kind: input, shape index: {}]   ;;  %s3041_s9 = inlined_call_operand.vmem [shape: bf16[128,512], index: 9, kind: input, shape index: {}]   ;;  %s3042_s10 = inlined_call_operand.vmem [shape: f32[1,512], index: 10, kind: input, shape index: {}]   ;;  %s3043_s11 = inlined_call_operand.vmem [shape: bf16[512,128], index: 11, kind: input, shape index: {}]   ;;  %s3044_s12 = inlined_call_operand.hbm [shape: f32[1,128], index: 12, kind: input, shape index: {}]   ;;  %s3045_s13 = inlined_call_operand.vmem [shape: bf16[10,128], index: 13, kind: output, shape index: {}, may-alias: {0,13}]  }
   0x1   :  { %19 = vsyncpa [#allocation5], 0 }
   0x2   :  { %20 = vsyncpa [#allocation8], 0  ;;  %s40_s27 = sshll.u32 %s3034_s2, 4  ;;  %s41_s27 = int_to_ptr.hbm [resolvable:$true] %s40_s27 }
   0x3   :  { %21 = vsyncpa [#allocation11], 0  ;;  %s2214_s28 = smov [#allocation4]   ;;  %s68_s15 = sshll.u32 %s3039_s7, 4  ;;  %s69_s15 = int_to_ptr.hbm [resolvable:$true] %s68_s15 }
   0x4   :  { %s42_s29 = sshll.u32 %s2214_s28, 4  ;;  %s2215_s16 = smov [#allocation7]   ;;  %s43_s29 = int_to_ptr.vmem [resolvable:$true] %s42_s29 }
   0x5   :  { %45 = dma.hbm_to_vmem [thread:$0]  %s41_s27, 16, %s43_s29, [#allocation5]  }
   0x6   :  { %s70_s17 = sshll.u32 %s2215_s16, 4  ;;  %s29_s20 = sshll.u32 %s3033_s1, 4  ;;  %s71_s17 = int_to_ptr.vmem [resolvable:$true] %s70_s17  ;;  %s30_s20 = int_to_ptr.hbm [resolvable:$true] %s29_s20 }
   0x7   :  { %73 = dma.hbm_to_vmem [thread:$0]  %s69_s15, 16, %s71_s17, [#allocation8]  }
   0x8   :  { %s57_s22 = sshll.u32 %s3038_s6, 4  ;;  %s2216_s23 = smov [#allocation2]   ;;  %s58_s22 = int_to_ptr.hbm [resolvable:$true] %s57_s22 }
   0x9   :  { %s31_s24 = sshll.u32 %s2216_s23, 4  ;;  %s2217_s7 = smov [#allocation6]   ;;  %s32_s24 = int_to_ptr.vmem [resolvable:$true] %s31_s24 }
   0xa   :  { %34 = dma.hbm_to_vmem [thread:$0]  %s30_s20, 16, %s32_s24, [#allocation3]  }
   0xb   :  { %s59_s25 = sshll.u32 %s2217_s7, 4  ;;  %s79_s28 = sshll.u32 %s3040_s8, 4  ;;  %s60_s25 = int_to_ptr.vmem [resolvable:$true] %s59_s25  ;;  %s80_s28 = int_to_ptr.hbm [resolvable:$true] %s79_s28 }
   0xc   :  { %62 = dma.hbm_to_vmem [thread:$0]  %s58_s22, 16, %s60_s25, [#allocation5]  }
   0xd   :  { %s96_s30 = sshll.u32 %s3044_s12, 4  ;;  %s2218_s14 = smov [#allocation9]   ;;  %s97_s30 = int_to_ptr.hbm [resolvable:$true] %s96_s30 }
   0xe   :  { %s81_s6 = sshll.u32 %s2218_s14, 4  ;;  %s2219_s15 = smov [#allocation10]   ;;  %s82_s6 = int_to_ptr.vmem [resolvable:$true] %s81_s6 }
   0xf   :  { %84 = dma.hbm_to_vmem [thread:$0]  %s80_s28, 16, %s82_s6, [#allocation8]  }
  0x10   :  { %s98_s16 = sshll.u32 %s2219_s15, 4  ;;  %s99_s16 = int_to_ptr.vmem [resolvable:$true] %s98_s16 }
  0x11   :  { %101 = dma.hbm_to_vmem [thread:$0]  %s97_s30, 16, %s99_s16, [#allocation11]  }
  0x12   :  { %2206 = dma.done.wait [#allocation3], 16  }
  0x13   :  { %2207 = vsyncadd [#allocation3], 4294967280 }
  0x14   :  { %2208 = dma.done.wait [#allocation5], 32  }
  0x15   :  { %2209 = vsyncadd [#allocation5], 4294967264 }
  0x16   :  { %2210 = dma.done.wait [#allocation8], 32  }
  0x17   :  { %2211 = vsyncadd [#allocation8], 4294967264 }
  0x18   :  { %2212 = dma.done.wait [#allocation11], 16  }
  0x19   :  { %2213 = vsyncadd [#allocation11], 4294967280  ;;  %v128_v0 = vld [vmem:[%s3032_s0 + $0x4] sm:$0x1]  ;;  %vm152_vm0 = vcmask 1041408   ;;  %v2220_v5 = vmov 128.0  }
  0x1a   :  { %v2313_v1 = vunpack.c.l.bf16 %v128_v0  ;;  %v127_v3 = vld [vmem:[%s3032_s0] sm:$0xf]  ;;  %2004 = vrcp.f32 %v2220_v5  ;;  %v1582_v21 = vld [vmem:[%s3035_s3 + $0xa8] sm:$0xf]  ;;  %v1916_v22 = vld [vmem:[%s3035_s3 + $0xb0] sm:$0xf0] }
  0x1b   :  { %v2320_v4 = vunpack.c.l.bf16 %v127_v3  ;;  %v1915_v23 = vld [vmem:[%s3035_s3 + $0xac] sm:$0xf]  ;;  %v1583_v24 = vor.u32 %v1916_v22, %v1582_v21  ;;  %v1584_v25 = vld [vmem:[%s3035_s3 + $0xb4] sm:$0xf0]  ;;  %v1590_v26 = vld [vmem:[%s3035_s3 + $0xb0] sm:$0xf] }
  0x1c   :  { %v153_v2 = vsel %vm152_vm0, %v2313_v1, 0.0  ;;  %v1917_v27 = vld [vmem:[%s3035_s3 + $0xb8] sm:$0xf0]  ;;  %v1587_v28 = vor.u32 %v1915_v23, %v1584_v25  ;;  %v1570_v30 = vld [vmem:[%s3035_s3 + $0x90] sm:$0xf]  ;;  %vm444_vm8 = vcmask 523264  }
  0x1d   :  { %154 = vadd.xlane.f32.xlu0 %v153_v2  ;;  %v1591_v29 = vor.u32 %v1917_v27, %v1590_v26  ;;  %381 = vmatpush.bf16.msra.mxu0 %v1583_v24  ;;  %v1913_v31 = vld [vmem:[%s3035_s3 + $0x98] sm:$0xf0]  ;;  %v1912_v32 = vld [vmem:[%s3035_s3 + $0x94] sm:$0xf]  ;;  %v1572_v34 = vld [vmem:[%s3035_s3 + $0x9c] sm:$0xf0] }
  0x1e   :  { %395 = vmatpush.bf16.msra.mxu1 %v1587_v28  ;;  %v1571_v33 = vor.u32 %v1913_v31, %v1570_v30  ;;  %v1578_v35 = vld [vmem:[%s3035_s3 + $0x98] sm:$0xf]  ;;  %v1914_v36 = vld [vmem:[%s3035_s3 + $0xa0] sm:$0xf0]  ;;  %v1575_v37 = vor.u32 %v1912_v32, %v1572_v34  ;;  %v1909_v41 = vld [vmem:[%s3035_s3 + $0x7c] sm:$0xf] }
  0x1f   :  { %409 = vmatpush.bf16.msra.mxu2 %v1591_v29  ;;  %v1579_v38 = vor.u32 %v1914_v36, %v1578_v35  ;;  %v1558_v39 = vld [vmem:[%s3035_s3 + $0x78] sm:$0xf]  ;;  %v1910_v40 = vld [vmem:[%s3035_s3 + $0x80] sm:$0xf0]  ;;  %v1560_v43 = vld [vmem:[%s3035_s3 + $0x84] sm:$0xf0] }
  0x20   :  { %v2005_v6 = vpop.eup %2004  ;;  %v1559_v42 = vor.u32 %v1910_v40, %v1558_v39  ;;  %v1566_v44 = vld [vmem:[%s3035_s3 + $0x80] sm:$0xf]  ;;  %v1911_v45 = vld [vmem:[%s3035_s3 + $0x88] sm:$0xf0]  ;;  %v1563_v46 = vor.u32 %v1909_v41, %v1560_v43  ;;  %v1906_v50 = vld [vmem:[%s3035_s3 + $0x64] sm:$0xf] }
  0x21   :  { %v157_v7 = vmul.f32 128.0, %v2005_v6  ;;  %vm161_vm1 = vweird.f32 %v2005_v6  ;;  %382 = vmatpush.bf16.msra.mxu0 %v1571_v33  ;;  %v1567_v47 = vor.u32 %v1911_v45, %v1566_v44  ;;  %v1546_v48 = vld [vmem:[%s3035_s3 + $0x60] sm:$0xf]  ;;  %v1907_v49 = vld [vmem:[%s3035_s3 + $0x68] sm:$0xf0]  ;;  %vm495_vm9 = vcmask 1044480  }
  0x22   :  { %396 = vmatpush.bf16.msra.mxu1 %v1575_v37  ;;  %v1547_v51 = vor.u32 %v1907_v49, %v1546_v48  ;;  %v1548_v52 = vld [vmem:[%s3035_s3 + $0x6c] sm:$0xf0]  ;;  %v1554_v53 = vld [vmem:[%s3035_s3 + $0x68] sm:$0xf]  ;;  %v1908_v54 = vld [vmem:[%s3035_s3 + $0x70] sm:$0xf0] }
  0x23   :  { %v158_v8 = vsub.f32 1.0, %v157_v7  ;;  %410 = vmatpush.bf16.msra.mxu2 %v1579_v38  ;;  %v1551_v55 = vor.u32 %v1906_v50, %v1548_v52  ;;  %v1555_v56 = vor.u32 %v1908_v54, %v1554_v53  ;;  %v1534_v57 = vld [vmem:[%s3035_s3 + $0x48] sm:$0xf]  ;;  %v1904_v58 = vld [vmem:[%s3035_s3 + $0x50] sm:$0xf0]  ;;  %vm467_vm11 = vcmask 80896  }
  0x24   :  { %v1903_v59 = vld [vmem:[%s3035_s3 + $0x4c] sm:$0xf]  ;;  %v1535_v60 = vor.u32 %v1904_v58, %v1534_v57  ;;  %v1536_v61 = vld [vmem:[%s3035_s3 + $0x54] sm:$0xf0]  ;;  %v1542_v62 = vld [vmem:[%s3035_s3 + $0x50] sm:$0xf] }
  0x25   :  { %150 = vadd.xlane.f32.xlu0 %v2320_v4  ;;  %v159_v9 = vmul.f32 %v2005_v6, %v158_v8  ;;  %383 = vmatpush.bf16.msra.mxu0 %v1559_v42  ;;  %v1905_v63 = vld [vmem:[%s3035_s3 + $0x58] sm:$0xf0]  ;;  %v1539_v0 = vor.u32 %v1903_v59, %v1536_v61  ;;  %v1522_v3 = vld [vmem:[%s3035_s3 + $0x30] sm:$0xf]  ;;  %v1524_v8 = vld [vmem:[%s3035_s3 + $0x3c] sm:$0xf0] }
  0x26   :  { %397 = vmatpush.bf16.msra.mxu1 %v1563_v46  ;;  %v1543_v2 = vor.u32 %v1905_v63, %v1542_v62  ;;  %v1901_v5 = vld [vmem:[%s3035_s3 + $0x38] sm:$0xf0]  ;;  %v1518_v21 = vld [vmem:[%s3035_s3 + $0x20] sm:$0xf]  ;;  %v1899_v22 = vld [vmem:[%s3035_s3 + $0x28] sm:$0xf0] }
  0x27   :  { %v160_v11 = vadd.f32 %v2005_v6, %v159_v9  ;;  %411 = vmatpush.bf16.msra.mxu2 %v1567_v47  ;;  %v1523_v7 = vor.u32 %v1901_v5, %v1522_v3  ;;  %v1530_v9 = vld [vmem:[%s3035_s3 + $0x38] sm:$0xf]  ;;  %v1519_v24 = vor.u32 %v1899_v22, %v1518_v21  ;;  %v1498_v25 = vld [vmem:[%s3035_s3] sm:$0xf]  ;;  %v1895_v26 = vld [vmem:[%s3035_s3 + $0x8] sm:$0xf0] }
  0x28   :  { %v1894_v27 = vld [vmem:[%s3035_s3 + $0x4] sm:$0xf]  ;;  %v1499_v29 = vor.u32 %v1895_v26, %v1498_v25  ;;  %v1500_v30 = vld [vmem:[%s3035_s3 + $0xc] sm:$0xf0]  ;;  %v1506_v31 = vld [vmem:[%s3035_s3 + $0x8] sm:$0xf]  ;;  %v131_v25 = vlaneseq }
  0x29   :  { %v2323_v12 = vsel %vm161_vm1, %v2005_v6, %v160_v11  ;;  %384 = vmatpush.bf16.msra.mxu0 %v1547_v51  ;;  %v1900_v6 = vld [vmem:[%s3035_s3 + $0x34] sm:$0xf]  ;;  %v1503_v34 = vor.u32 %v1894_v27, %v1500_v30  ;;  %v1998_v53 = vld [vmem:[#allocation2] ss:$0 sm:$0xff]  ;;  %v1999_v58 = vld [vmem:[#allocation4] ss:$0 sm:$0xff] }
  0x2a   :  { %398 = vmatpush.bf16.msra.mxu1 %v1551_v55  ;;  %v1527_v11 = vor.u32 %v1900_v6, %v1524_v8  ;;  %v1896_v32 = vld [vmem:[%s3035_s3 + $0x10] sm:$0xf0]  ;;  %v132_v26 = vshrl.u32 %v131_v25, 7  ;;  %v137_v27 = vand.u32 127, %v131_v25  ;;  %vm471_vm13 = vcmask 74752  }
  0x2b   :  { %412 = vmatpush.bf16.msra.mxu2 %v1555_v56  ;;  %v1507_v35 = vor.u32 %v1896_v32, %v1506_v31 }
  0x2c   :  { %v133_v32 = vadd.s32 8, %v132_v26 }
  0x2d   :  { %385 = vmatpush.bf16.msra.mxu0 %v1535_v60 }
  0x2e   :  { %399 = vmatpush.bf16.msra.mxu1 %v1539_v0 }
  0x2f   :  { %413 = vmatpush.bf16.msra.mxu2 %v1543_v2 }
  0x31   :  { %386 = vmatpush.bf16.msra.mxu0 %v1523_v7 }
  0x32   :  { %400 = vmatpush.bf16.msra.mxu1 %v1527_v11 }
  0x90   :  { %v155_v10 = vpop.xlane.xlu0 %154 }
  0x91   :  { %v164_v15 = vmul.f32 %v2323_v12, %v155_v10  ;;  %v1902_v10 = vld [vmem:[%s3035_s3 + $0x40] sm:$0xf0] }
  0x93   :  { %v2333_v18 = vsub.f32 %v2313_v1, %v164_v15  ;;  %v1898_v15 = vld [vmem:[%s3035_s3 + $0x20] sm:$0xf0] }
  0x95   :  { %v168_v19 = vmul.f32 %v2333_v18, %v2333_v18 }
  0x97   :  { %v171_v20 = vsel %vm152_vm0, %v168_v19, 0.0 }
  0x98   :  { %v151_v13 = vpop.xlane.xlu0 %150 }
  0x99   :  { %v163_v14 = vmul.f32 %v2323_v12, %v151_v13  ;;  %v1531_v13 = vor.u32 %v1902_v10, %v1530_v9 }
  0x9b   :  { %v2328_v16 = vsub.f32 %v2320_v4, %v163_v14  ;;  %414 = vmatpush.bf16.msra.mxu2 %v1531_v13  ;;  %v1510_v14 = vld [vmem:[%s3035_s3 + $0x18] sm:$0xf] }
  0x9c   :  { %v1511_v19 = vor.u32 %v1898_v15, %v1510_v14 }
  0x9d   :  { %v167_v17 = vmul.f32 %v2328_v16, %v2328_v16 }
  0x9e   :  { %387 = vmatpush.bf16.msra.mxu0 %v1511_v19 }
  0x9f   :  { %169 = vadd.xlane.f32.xlu1 %v167_v17  ;;  %v1897_v17 = vld [vmem:[%s3035_s3 + $0x1c] sm:$0xf]  ;;  %415 = vmatpush.bf16.msra.mxu2 %v1519_v24 }
  0xa2   :  { %388 = vmatpush.bf16.msra.mxu0 %v1499_v29  ;;  %v138_v29 = vcvt.s32.f32 %v137_v27 }
  0xa3   :  { %416 = vmatpush.bf16.msra.mxu2 %v1507_v35  ;;  %v135_v35 = vcvt.s32.f32 %v133_v32 }
  0xa4   :  { %v145_v31 = vadd.f32 0.5, %v138_v29 }
  0xa7   :  { %172 = vadd.xlane.f32.xlu1 %v171_v20  ;;  %v1512_v20 = vld [vmem:[%s3035_s3 + $0x24] sm:$0xf0] }
  0xa8   :  { %v1515_v23 = vor.u32 %v1897_v17, %v1512_v20 }
  0xaa   :  { %401 = vmatpush.bf16.msra.mxu1 %v1515_v23 }
  0xae   :  { %402 = vmatpush.bf16.msra.mxu1 %v1503_v34  ;;  %v146_v34 = vmul.f32 0.2, %v145_v31 }
 0x112   :  { %v170_v28 = vpop.xlane.xlu1 %169 }
 0x113   :  { %v174_v33 = vmul.f32 %v170_v28, %v2323_v12  ;;  %v134_v28 = vcvt.s32.f32 %v132_v26 }
 0x115   :  { %v176_v36 = vadd.f32 1e-05, %v174_v33  ;;  %v139_v30 = vadd.f32 0.5, %v134_v28 }
 0x117   :  { %2006 = vrsqrt.f32 %v176_v36  ;;  %vm184_vm3 = vweird.f32 %v176_v36  ;;  %v141_v33 = vmul.f32 0.2, %v139_v30 }
 0x11a   :  { %v173_v37 = vpop.xlane.xlu1 %172 }
 0x11b   :  { %v175_v38 = vmul.f32 %v173_v37, %v2323_v12  ;;  %v147_v37 = vfloor.f32 %v146_v34  ;;  %v1924_v34 = vld [vmem:[%s3037_s5 + $0x30] sm:$0xff] }
 0x11d   :  { %v2007_v39 = vpop.eup %2006  ;;  %v177_v40 = vadd.f32 1e-05, %v175_v38  ;;  %v140_v38 = vadd.f32 0.5, %v135_v35 }
 0x11e   :  { %v179_v41 = vmul.f32 %v2007_v39, %v176_v36  ;;  %vm185_vm2 = vweird.f32 %v2007_v39  ;;  %v143_v36 = vfloor.f32 %v141_v33  ;;  %v1925_v33 = vld [vmem:[%s3037_s5 + $0x38] sm:$0xff] }
 0x11f   :  { %2008 = vrsqrt.f32 %v177_v40  ;;  %vm186_vm4 = vmor %vm184_vm3, %vm185_vm2  ;;  %vm194_vm6 = vweird.f32 %v177_v40  ;;  %620 = vmatpush.bf16.msrb.mxu1 %v1925_v33  ;;  %v1714_v33 = vld [vmem:[%s3041_s9 + $0xb0] sm:$0xf0] }
 0x120   :  { %v180_v42 = vmul.f32 %v2007_v39, %v179_v41  ;;  %vm2492_vm10 = vcmp.eq.f32.partialorder %v143_v36, %v147_v37 }
 0x122   :  { %v181_v43 = vmul.f32 0.5, %v180_v42 }
 0x123   :  { %621 = vmatpush.bf16.msrb.mxu1 %v1924_v34  ;;  %v1720_v34 = vld [vmem:[%s3041_s9 + $0xa8] sm:$0xf] }
 0x124   :  { %v182_v44 = vsub.f32 1.5, %v181_v43 }
 0x125   :  { %v2009_v45 = vpop.eup %2008 }
 0x126   :  { %v183_v46 = vmul.f32 %v2007_v39, %v182_v44  ;;  %v189_v47 = vmul.f32 %v2009_v45, %v177_v40  ;;  %vm195_vm5 = vweird.f32 %v2009_v45  ;;  %v142_v40 = vmul.f32 0.2, %v140_v38 }
 0x127   :  { %vm196_vm7 = vmor %vm194_vm6, %vm195_vm5 }
 0x128   :  { %v190_v48 = vmul.f32 %v2009_v45, %v189_v47  ;;  %v187_v49 = vsel %vm186_vm4, %v2007_v39, %v183_v46  ;;  %v144_v44 = vfloor.f32 %v142_v40 }
 0x129   :  { %v198_v52 = vmul.f32 %v187_v49, %v2328_v16  ;;  %v245_v16 = vld [vmem:[%s3036_s4] sm:$0x7]  ;;  %s2221_s4 = smov 64  }
 0x12a   :  { %v191_v50 = vmul.f32 0.5, %v190_v48  ;;  %v248_v2 = vperm.slane %v245_v16, 1  ;;  %v247_v8 = vperm.slane %v245_v16, 0  ;;  %v249_v10 = vperm.slane %v245_v16, 2 }
 0x12b   :  { %v204_v57 = vmul.f32 %v1998_v53, %v198_v52  ;;  %vm2499_vm12 = vcmp.eq.f32.partialorder %v144_v44, %v147_v37 }
 0x12c   :  { %v192_v51 = vsub.f32 1.5, %v191_v50 }
 0x12d   :  { %v210_v60 = vadd.f32 %v1999_v58, %v204_v57 }
 0x12e   :  { %v193_v54 = vmul.f32 %v2009_v45, %v192_v51 }
 0x130   :  { %v197_v55 = vsel %vm196_vm7, %v2009_v45, %v193_v54 }
 0x131   :  { %v199_v56 = vmul.f32 %v197_v55, %v2333_v18 }
 0x133   :  { %v205_v59 = vmul.f32 %v1998_v53, %v199_v56 }
 0x135   :  { %v211_v61 = vadd.f32 %v1999_v58, %v205_v59 }
 0x137   :  { %v212_v62 = vpack.c.bf16 %v211_v61, %v210_v60 }
 0x139   :  { %389 = vmatmul.bf16.vlgmr.msra.gmra.mxu0 %v212_v62  ;;  %403 = vmatmul.bf16.vlgmr.msra.gmra.mxu1 %v212_v62 }
 0x13a   :  { %417 = vmatmul.bf16.vlgmr.msra.gmra.mxu2 %v212_v62  ;;  %v1921_v62 = vld [vmem:[%s3037_s5 + $0x18] sm:$0xff] }
 0x13b   :  { %661 = vmatpush.bf16.msrb.mxu2 %v1921_v62 }
 0x1b6   :  { %v390_v63 = vpop.f32.mrf.mxu0  ;;  %v404_v0 = vpop.f32.mrf.mxu1 }
 0x1b7   :  { %v405_v6 = vadd.f32 %v404_v0, %v248_v2  ;;  %v391_v14 = vadd.f32 %v390_v63, %v247_v8 }
 0x1b9   :  { %v439_v21 = vmul.f32 0.125, %v391_v14 }
 0x1bd   :  { %v418_v3 = vpop.f32.mrf.mxu2 }
 0x1be   :  { %v406_v5 = vpop.f32.mrf.mxu1  ;;  %v392_v18 = vpop.f32.mrf.mxu0  ;;  %v419_v17 = vadd.f32 %v418_v3, %v249_v10 }
 0x1bf   :  { %v407_v7 = vadd.f32 %v406_v5, %v248_v2  ;;  %v393_v11 = vadd.f32 %v392_v18, %v247_v8  ;;  %v1920_v8 = vld [vmem:[%s3037_s5 + $0x10] sm:$0xff] }
 0x1c0   :  { %662 = vmatpush.bf16.msrb.mxu2 %v1920_v8  ;;  %v1957_v8 = vld [vmem:[%s3041_s9 + $0xf4] sm:$0xf0] }
 0x1c1   :  { %v442_v9 = vpack.c.bf16 %v407_v7, %v405_v6  ;;  %v440_v19 = vmul.f32 0.125, %v393_v11 }
 0x1c3   :  { %v449_v13 = vsel %vm444_vm8, %v442_v9, 0  ;;  %v441_v23 = vpack.c.bf16 %v440_v19, %v439_v21 }
 0x1c4   :  { %458 = vmatpush.bf16.xpose.msra.mxu3 %v449_v13 }
 0x1c5   :  { %v420_v15 = vpop.f32.mrf.mxu2 }
 0x1c6   :  { %v421_v20 = vadd.f32 %v420_v15, %v249_v10  ;;  %v1918_v10 = vld [vmem:[%s3037_s5] sm:$0xff] }
 0x1c8   :  { %v443_v22 = vpack.c.bf16 %v421_v20, %v419_v17 }
 0x1ca   :  { %v497_v24 = vsel %vm495_vm9, %v443_v22, 0 }
 0x1cb   :  { %1592 = vmatmul.msk.bf16.vlgmr.msra.gmra.mxu3 %vm444_vm8, %v441_v23 }
 0x1cc   :  { %506 = vmatpush.bf16.msrb.mxu3 %v497_v24 }
 0x24e   :  { %v460_v41 = vpop.f32.mrf.mxu3 }
 0x24f   :  { %v465_v42 = vsel %vm2492_vm10, %v460_v41, -1e+30 }
 0x250   :  { %v468_v43 = vsel %vm467_vm11, %v465_v42, -inf }
 0x251   :  { %469 = vmax.xlane.f32.xlu2 %v468_v43  ;;  %v1922_v43 = vld [vmem:[%s3037_s5 + $0x20] sm:$0xff] }
 0x256   :  { %v462_v46 = vpop.f32.mrf.mxu3 }
 0x257   :  { %v466_v47 = vsel %vm2499_vm12, %v462_v46, -1e+30 }
 0x258   :  { %v472_v48 = vsel %vm471_vm13, %v466_v47, -inf }
 0x259   :  { %473 = vmax.xlane.f32.xlu2 %v472_v48 }
 0x271   :  { %518 = vrot.lane.b32.xlu2 %v442_v9, %s2221_s4  ;;  %v1919_v9 = vld [vmem:[%s3037_s5 + $0x8] sm:$0xff] }
 0x272   :  { %663 = vmatpush.bf16.msrb.mxu2 %v1919_v9 }
 0x276   :  { %664 = vmatpush.bf16.msrb.mxu2 %v1918_v10 }
 0x2c4   :  { %v470_v49 = vpop.xlane.xlu2 %469 }
 0x2c5   :  { %v475_v50 = vsub.f32 %v465_v42, %v470_v49  ;;  %v1923_v42 = vld [vmem:[%s3037_s5 + $0x28] sm:$0xff] }
 0x2c6   :  { %622 = vmatpush.bf16.msrb.mxu1 %v1923_v42  ;;  %v1944_v42 = vld [vmem:[%s3041_s9 + $0x8c] sm:$0xf0] }
 0x2c7   :  { %v477_v51 = vmul.f32 1.442695, %v475_v50  ;;  %v2000_v50 = vld [vmem:[#allocation6] ss:$0 sm:$0xff] }
 0x2c9   :  { %2010 = vpow2.f32 %v477_v51 }
 0x2ca   :  { %623 = vmatpush.bf16.msrb.mxu1 %v1922_v43  ;;  %v1942_v43 = vld [vmem:[%s3041_s9 + $0x84] sm:$0xf] }
 0x2cc   :  { %v474_v52 = vpop.xlane.xlu2 %473 }
 0x2cd   :  { %v476_v53 = vsub.f32 %v466_v47, %v474_v52 }
 0x2cf   :  { %v2011_v54 = vpop.eup %2010  ;;  %v479_v55 = vmul.f32 1.442695, %v476_v53 }
 0x2d0   :  { %v481_v56 = vsel %vm467_vm11, %v2011_v54, 0.0 }
 0x2d1   :  { %2012 = vpow2.f32 %v479_v55  ;;  %482 = vadd.xlane.f32.xlu0 %v481_v56 }
 0x2d4   :  { %v519_v57 = vpop.permute.xlu2 %518 }
 0x2d5   :  { %v524_v58 = vsel %vm444_vm8, %v519_v57, 0 }
 0x2d6   :  { %533 = vmatpush.bf16.xpose.msra.mxu3 %v524_v58 }
 0x2d7   :  { %v2013_v59 = vpop.eup %2012 }
 0x2d8   :  { %v484_v60 = vsel %vm471_vm13, %v2013_v59, 0.0 }
 0x2d9   :  { %485 = vadd.xlane.f32.xlu1 %v484_v60 }
 0x2e5   :  { %515 = vrot.lane.b32.xlu0 %v441_v23, %s2221_s4 }
 0x2ed   :  { %566 = vrot.lane.b32.xlu0 %v443_v22, %s2221_s4 }
 0x344   :  { %v483_v61 = vpop.xlane.xlu0 %482 }
 0x345   :  { %2014 = vrcp.f32 %v483_v61 }
 0x34b   :  { %v2015_v0 = vpop.eup %2014 }
 0x34c   :  { %v486_v63 = vpop.xlane.xlu1 %485  ;;  %v489_v2 = vmul.f32 %v2015_v0, %v2011_v54 }
 0x34d   :  { %2016 = vrcp.f32 %v486_v63 }
 0x353   :  { %v2017_v16 = vpop.eup %2016 }
 0x354   :  { %v490_v3 = vmul.f32 %v2017_v16, %v2013_v59 }
 0x356   :  { %v491_v5 = vpack.c.bf16 %v490_v3, %v489_v2  ;;  %v1744_v2 = vld [vmem:[%s3041_s9 + $0xe0] sm:$0xf]  ;;  %v1956_v3 = vld [vmem:[%s3041_s9 + $0xec] sm:$0xf0] }
 0x357   :  { %v516_v6 = vpop.permute.xlu0 %515 }
 0x358   :  { %1593 = vmatmul.msk.bf16.vlgmr.msrb.gmra.mxu3 %vm467_vm11, %v491_v5  ;;  %v1954_v5 = vld [vmem:[%s3041_s9 + $0xe4] sm:$0xf] }
 0x35f   :  { %v567_v18 = vpop.permute.xlu0 %566 }
 0x360   :  { %v572_v7 = vsel %vm495_vm9, %v567_v18, 0  ;;  %v1746_v18 = vld [vmem:[%s3041_s9 + $0xf0] sm:$0xf0] }
 0x361   :  { %581 = vmatpush.bf16.msrb.mxu0 %v572_v7  ;;  %v1752_v7 = vld [vmem:[%s3041_s9 + $0xe8] sm:$0xf]  ;;  %v1749_v9 = vor.u32 %v1954_v5, %v1746_v18  ;;  %v1936_v5 = vld [vmem:[%s3041_s9 + $0x4c] sm:$0xf0] }
 0x362   :  { %v1753_v10 = vor.u32 %v1957_v8, %v1752_v7  ;;  %v1666_v7 = vld [vmem:[%s3041_s9 + $0x50] sm:$0xf0]  ;;  %v1672_v8 = vld [vmem:[%s3041_s9 + $0x48] sm:$0xf] }
 0x364   :  { %964 = vmatpush.bf16.msra.mxu1 %v1753_v10 }
 0x365   :  { %950 = vmatpush.bf16.msra.mxu0 %v1749_v9  ;;  %v1937_v9 = vld [vmem:[%s3041_s9 + $0x54] sm:$0xf0] }
 0x368   :  { %1594 = vmatmul.msk.bf16.vlgmr.msra.gmra.mxu3 %vm444_vm8, %v516_v6  ;;  %v1745_v6 = vor.u32 %v1956_v3, %v1744_v2  ;;  %v1664_v3 = vld [vmem:[%s3041_s9 + $0x40] sm:$0xf] }
 0x369   :  { %v1665_v18 = vor.u32 %v1936_v5, %v1664_v3  ;;  %v2002_v3 = vld [vmem:[#allocation9] ss:$0 sm:$0xff] }
 0x36a   :  { %936 = vmatpush.bf16.msrb.mxu3 %v1745_v6  ;;  %v1934_v6 = vld [vmem:[%s3041_s9 + $0x44] sm:$0xf] }
 0x36b   :  { %v1669_v10 = vor.u32 %v1934_v6, %v1666_v7 }
 0x3db   :  { %v508_v11 = vpop.f32.mrf.mxu3 }
 0x3e3   :  { %v510_v13 = vpop.f32.mrf.mxu3 }
 0x3e4   :  { %v513_v14 = vpack.c.bf16 %v510_v13, %v508_v11  ;;  %v1955_v11 = vld [vmem:[%s3041_s9 + $0xec] sm:$0xf]  ;;  %v1754_v13 = vld [vmem:[%s3041_s9 + $0xf8] sm:$0xf0] }
 0x3e6   :  { %1629 = vmatmul.msk.bf16.vlgmr.msrb.gmra.mxu2 %vm444_vm8, %v513_v14  ;;  %v1757_v14 = vor.u32 %v1955_v11, %v1754_v13  ;;  %v1673_v11 = vor.u32 %v1937_v9, %v1672_v8  ;;  %v1935_v13 = vld [vmem:[%s3041_s9 + $0x4c] sm:$0xf] }
 0x3e8   :  { %978 = vmatpush.bf16.msra.mxu2 %v1757_v14  ;;  %v1674_v14 = vld [vmem:[%s3041_s9 + $0x58] sm:$0xf0] }
 0x3eb   :  { %v535_v15 = vpop.f32.mrf.mxu3 }
 0x3ec   :  { %v540_v17 = vsel %vm2492_vm10, %v535_v15, -1e+30  ;;  %v1728_v15 = vld [vmem:[%s3041_s9 + $0xc0] sm:$0xf] }
 0x3ed   :  { %v542_v19 = vsel %vm467_vm11, %v540_v17, -inf }
 0x3ee   :  { %543 = vmax.xlane.f32.xlu1 %v542_v19  ;;  %v1950_v19 = vld [vmem:[%s3041_s9 + $0xc4] sm:$0xf] }
 0x3f3   :  { %v537_v20 = vpop.f32.mrf.mxu3 }
 0x3f4   :  { %v541_v21 = vsel %vm2499_vm12, %v537_v20, -1e+30 }
 0x3f5   :  { %v545_v22 = vsel %vm471_vm13, %v541_v21, -inf }
 0x3f6   :  { %546 = vmax.xlane.f32.xlu1 %v545_v22  ;;  %v1736_v22 = vld [vmem:[%s3041_s9 + $0xc8] sm:$0xf] }
 0x461   :  { %v544_v23 = vpop.xlane.xlu1 %543 }
 0x462   :  { %v548_v24 = vsub.f32 %v540_v17, %v544_v23  ;;  %v1952_v17 = vld [vmem:[%s3041_s9 + $0xcc] sm:$0xf0]  ;;  %v1953_v23 = vld [vmem:[%s3041_s9 + $0xd4] sm:$0xf0] }
 0x463   :  { %v1729_v20 = vor.u32 %v1952_v17, %v1728_v15  ;;  %v1677_v15 = vor.u32 %v1935_v13, %v1674_v14  ;;  %v1648_v17 = vld [vmem:[%s3041_s9 + $0x20] sm:$0xf] }
 0x464   :  { %v550_v25 = vmul.f32 1.442695, %v548_v24 }
 0x465   :  { %937 = vmatpush.bf16.msrb.mxu3 %v1729_v20  ;;  %v1930_v20 = vld [vmem:[%s3041_s9 + $0x24] sm:$0xf] }
 0x466   :  { %2018 = vpow2.f32 %v550_v25  ;;  %v1737_v25 = vor.u32 %v1953_v23, %v1736_v22  ;;  %v1650_v23 = vld [vmem:[%s3041_s9 + $0x30] sm:$0xf0] }
 0x468   :  { %965 = vmatpush.bf16.msra.mxu1 %v1737_v25  ;;  %v1933_v25 = vld [vmem:[%s3041_s9 + $0x34] sm:$0xf0] }
 0x469   :  { %v547_v26 = vpop.xlane.xlu1 %546  ;;  %v666_v47 = vpop.f32.mrf.mxu2 }
 0x46a   :  { %v549_v27 = vsub.f32 %v541_v21, %v547_v26  ;;  %v1730_v21 = vld [vmem:[%s3041_s9 + $0xd0] sm:$0xf0]  ;;  %v1951_v26 = vld [vmem:[%s3041_s9 + $0xcc] sm:$0xf] }
 0x46b   :  { %v1733_v24 = vor.u32 %v1950_v19, %v1730_v21  ;;  %v1932_v19 = vld [vmem:[%s3041_s9 + $0x2c] sm:$0xf0] }
 0x46c   :  { %v2019_v28 = vpop.eup %2018  ;;  %v552_v29 = vmul.f32 1.442695, %v549_v27  ;;  %v1738_v27 = vld [vmem:[%s3041_s9 + $0xd8] sm:$0xf0]  ;;  %v1649_v22 = vor.u32 %v1932_v19, %v1648_v17 }
 0x46d   :  { %v554_v30 = vsel %vm467_vm11, %v2019_v28, 0.0  ;;  %951 = vmatpush.bf16.msra.mxu0 %v1733_v24  ;;  %v1656_v24 = vld [vmem:[%s3041_s9 + $0x28] sm:$0xf] }
 0x46e   :  { %2020 = vpow2.f32 %v552_v29  ;;  %555 = vadd.xlane.f32.xlu1 %v554_v30  ;;  %v1712_v29 = vld [vmem:[%s3041_s9 + $0xa0] sm:$0xf]  ;;  %v1948_v30 = vld [vmem:[%s3041_s9 + $0xac] sm:$0xf0] }
 0x471   :  { %v668_v53 = vpop.f32.mrf.mxu2 }
 0x474   :  { %v2021_v31 = vpop.eup %2020 }
 0x475   :  { %v557_v32 = vsel %vm471_vm13, %v2021_v31, 0.0 }
 0x476   :  { %558 = vadd.xlane.f32.xlu2 %v557_v32  ;;  %v1713_v32 = vor.u32 %v1948_v30, %v1712_v29  ;;  %v1931_v29 = vld [vmem:[%s3041_s9 + $0x2c] sm:$0xf]  ;;  %v1658_v30 = vld [vmem:[%s3041_s9 + $0x38] sm:$0xf0] }
 0x478   :  { %938 = vmatpush.bf16.msrb.mxu3 %v1713_v32  ;;  %v1661_v32 = vor.u32 %v1931_v29, %v1658_v30 }
 0x4e1   :  { %v556_v35 = vpop.xlane.xlu1 %555 }
 0x4e2   :  { %2022 = vrcp.f32 %v556_v35  ;;  %v1949_v35 = vld [vmem:[%s3041_s9 + $0xb4] sm:$0xf0] }
 0x4e8   :  { %v2023_v37 = vpop.eup %2022 }
 0x4e9   :  { %v559_v36 = vpop.xlane.xlu2 %558  ;;  %v562_v39 = vmul.f32 %v2023_v37, %v2019_v28  ;;  %v1741_v28 = vor.u32 %v1951_v26, %v1738_v27  ;;  %v1721_v37 = vor.u32 %v1949_v35, %v1720_v34  ;;  %v1653_v27 = vor.u32 %v1930_v20, %v1650_v23  ;;  %v1926_v34 = vld [vmem:[%s3041_s9 + $0x4] sm:$0xf]  ;;  %v1634_v35 = vld [vmem:[%s3041_s9 + $0x10] sm:$0xf0] }
 0x4ea   :  { %2024 = vrcp.f32 %v559_v36  ;;  %v1972_v20 = vld [vmem:[%s3043_s11 + $0x70] sm:$0xff] }
 0x4eb   :  { %979 = vmatpush.bf16.msra.mxu2 %v1741_v28  ;;  %966 = vmatpush.bf16.msra.mxu1 %v1721_v37  ;;  %v1657_v28 = vor.u32 %v1933_v25, %v1656_v24  ;;  %v1965_v25 = vld [vmem:[%s3043_s11 + $0x38] sm:$0xff] }
 0x4f0   :  { %v2025_v38 = vpop.eup %2024 }
 0x4f1   :  { %v563_v40 = vmul.f32 %v2025_v38, %v2021_v31  ;;  %v1946_v31 = vld [vmem:[%s3041_s9 + $0xa4] sm:$0xf]  ;;  %v1947_v38 = vld [vmem:[%s3041_s9 + $0xac] sm:$0xf] }
 0x4f2   :  { %v1717_v36 = vor.u32 %v1946_v31, %v1714_v33  ;;  %v1632_v31 = vld [vmem:[%s3041_s9] sm:$0xf]  ;;  %v1928_v33 = vld [vmem:[%s3041_s9 + $0xc] sm:$0xf0] }
 0x4f3   :  { %v564_v41 = vpack.c.bf16 %v563_v40, %v562_v39  ;;  %v1722_v39 = vld [vmem:[%s3041_s9 + $0xb8] sm:$0xf0]  ;;  %v1633_v37 = vor.u32 %v1928_v33, %v1632_v31  ;;  %v1971_v31 = vld [vmem:[%s3043_s11 + $0x68] sm:$0xff] }
 0x4f4   :  { %v1725_v40 = vor.u32 %v1947_v38, %v1722_v39  ;;  %952 = vmatpush.bf16.msra.mxu0 %v1717_v36  ;;  %v1637_v38 = vor.u32 %v1926_v34, %v1634_v35  ;;  %v1640_v39 = vld [vmem:[%s3041_s9 + $0x8] sm:$0xf] }
 0x4f5   :  { %1595 = vmatmul.msk.bf16.vlgmr.msrb.gmra.mxu0 %vm467_vm11, %v564_v41  ;;  %v1696_v41 = vld [vmem:[%s3041_s9 + $0x80] sm:$0xf] }
 0x4f6   :  { %980 = vmatpush.bf16.msra.mxu2 %v1725_v40  ;;  %v1929_v40 = vld [vmem:[%s3041_s9 + $0x14] sm:$0xf0] }
 0x572   :  { %v583_v44 = vpop.f32.mrf.mxu0 }
 0x57a   :  { %v585_v45 = vpop.f32.mrf.mxu0 }
 0x57b   :  { %v588_v46 = vpack.c.bf16 %v585_v45, %v583_v44  ;;  %v1697_v44 = vor.u32 %v1944_v42, %v1696_v41  ;;  %v1698_v45 = vld [vmem:[%s3041_s9 + $0x90] sm:$0xf0]  ;;  %v1641_v41 = vor.u32 %v1929_v40, %v1640_v39  ;;  %v1927_v42 = vld [vmem:[%s3041_s9 + $0xc] sm:$0xf] }
 0x57c   :  { %v1988_v39 = vld [vmem:[%s3043_s11 + $0xf0] sm:$0xff] }
 0x57d   :  { %1612 = vmatmul.msk.bf16.vlgmr.msrb.gmra.mxu1 %vm444_vm8, %v588_v46  ;;  %v1704_v46 = vld [vmem:[%s3041_s9 + $0x88] sm:$0xf]  ;;  %939 = vmatpush.bf16.msrb.mxu3 %v1697_v44 }
 0x5fa   :  { %v625_v48 = vpop.f32.mrf.mxu1 }
 0x5fb   :  { %v667_v49 = vadd.f32 %v666_v47, %v625_v48  ;;  %v1945_v47 = vld [vmem:[%s3041_s9 + $0x94] sm:$0xf0]  ;;  %v1701_v48 = vor.u32 %v1942_v43, %v1698_v45  ;;  %v1642_v43 = vld [vmem:[%s3041_s9 + $0x18] sm:$0xf0] }
 0x5fc   :  { %v1645_v44 = vor.u32 %v1927_v42, %v1642_v43 }
 0x5fd   :  { %v671_v51 = vadd.f32 %v667_v49, %v2320_v4  ;;  %v1705_v49 = vor.u32 %v1945_v47, %v1704_v46  ;;  %953 = vmatpush.bf16.msra.mxu0 %v1701_v48 }
 0x5ff   :  { %v2548_v52 = vadd.f32 %v2000_v50, %v671_v51  ;;  %v1706_v51 = vld [vmem:[%s3041_s9 + $0x98] sm:$0xf0]  ;;  %967 = vmatpush.bf16.msra.mxu1 %v1705_v49 }
 0x601   :  { %679 = vadd.xlane.f32.xlu0 %v2548_v52 }
 0x602   :  { %v627_v54 = vpop.f32.mrf.mxu1 }
 0x603   :  { %v669_v55 = vadd.f32 %v668_v53, %v627_v54  ;;  %v1680_v54 = vld [vmem:[%s3041_s9 + $0x60] sm:$0xf] }
 0x605   :  { %v672_v56 = vadd.f32 %v669_v55, %v2313_v1  ;;  %v1940_v55 = vld [vmem:[%s3041_s9 + $0x6c] sm:$0xf0] }
 0x607   :  { %v2552_v57 = vadd.f32 %v2000_v50, %v672_v56  ;;  %v1943_v50 = vld [vmem:[%s3041_s9 + $0x8c] sm:$0xf]  ;;  %v1938_v56 = vld [vmem:[%s3041_s9 + $0x64] sm:$0xf] }
 0x608   :  { %v1709_v53 = vor.u32 %v1943_v50, %v1706_v51 }
 0x609   :  { %v681_v58 = vsel %vm152_vm0, %v2552_v57, 0.0 }
 0x60a   :  { %682 = vadd.xlane.f32.xlu1 %v681_v58  ;;  %981 = vmatpush.bf16.msra.mxu2 %v1709_v53  ;;  %v1681_v58 = vor.u32 %v1940_v55, %v1680_v54 }
 0x60c   :  { %940 = vmatpush.bf16.msrb.mxu3 %v1681_v58 }
 0x610   :  { %941 = vmatpush.bf16.msrb.mxu3 %v1665_v18 }
 0x614   :  { %942 = vmatpush.bf16.msrb.mxu3 %v1649_v22 }
 0x618   :  { %943 = vmatpush.bf16.msrb.mxu3 %v1633_v37 }
 0x61c   :  { %1420 = vmatpush.bf16.msra.mxu3 %v1965_v25 }
 0x674   :  { %v680_v59 = vpop.xlane.xlu0 %679 }
 0x675   :  { %v684_v60 = vmul.f32 %v680_v59, %v2323_v12  ;;  %v1682_v59 = vld [vmem:[%s3041_s9 + $0x70] sm:$0xf0] }
 0x677   :  { %v2558_v4 = vsub.f32 %v2548_v52, %v684_v60  ;;  %v1688_v60 = vld [vmem:[%s3041_s9 + $0x68] sm:$0xf] }
 0x679   :  { %v688_v61 = vmul.f32 %v2558_v4, %v2558_v4 }
 0x67b   :  { %690 = vadd.xlane.f32.xlu1 %v688_v61  ;;  %v1941_v61 = vld [vmem:[%s3041_s9 + $0x74] sm:$0xf0] }
 0x67d   :  { %v683_v62 = vpop.xlane.xlu1 %682 }
 0x67e   :  { %v685_v63 = vmul.f32 %v683_v62, %v2323_v12  ;;  %v1685_v62 = vor.u32 %v1938_v56, %v1682_v59 }
 0x680   :  { %v2564_v1 = vsub.f32 %v2552_v57, %v685_v63  ;;  %v1689_v63 = vor.u32 %v1941_v61, %v1688_v60  ;;  %954 = vmatpush.bf16.msra.mxu0 %v1685_v62 }
 0x682   :  { %v689_v0 = vmul.f32 %v2564_v1, %v2564_v1  ;;  %968 = vmatpush.bf16.msra.mxu1 %v1689_v63 }
 0x684   :  { %v692_v16 = vsel %vm152_vm0, %v689_v0, 0.0  ;;  %v1939_v0 = vld [vmem:[%s3041_s9 + $0x6c] sm:$0xf]  ;;  %955 = vmatpush.bf16.msra.mxu0 %v1669_v10  ;;  %v1981_v10 = vld [vmem:[%s3043_s11 + $0xb8] sm:$0xff] }
 0x685   :  { %693 = vadd.xlane.f32.xlu1 %v692_v16  ;;  %v1690_v16 = vld [vmem:[%s3041_s9 + $0x78] sm:$0xf0] }
 0x686   :  { %v1693_v2 = vor.u32 %v1939_v0, %v1690_v16  ;;  %969 = vmatpush.bf16.msra.mxu1 %v1673_v11 }
 0x688   :  { %982 = vmatpush.bf16.msra.mxu2 %v1693_v2  ;;  %956 = vmatpush.bf16.msra.mxu0 %v1653_v27 }
 0x68a   :  { %970 = vmatpush.bf16.msra.mxu1 %v1657_v28 }
 0x68c   :  { %983 = vmatpush.bf16.msra.mxu2 %v1677_v15  ;;  %957 = vmatpush.bf16.msra.mxu0 %v1637_v38  ;;  %v1964_v38 = vld [vmem:[%s3043_s11 + $0x30] sm:$0xff] }
 0x68d   :  { %1421 = vmatpush.bf16.msra.mxu3 %v1964_v38  ;;  %v1959_v38 = vld [vmem:[%s3043_s11 + $0x8] sm:$0xff] }
 0x68e   :  { %971 = vmatpush.bf16.msra.mxu1 %v1641_v41 }
 0x690   :  { %984 = vmatpush.bf16.msra.mxu2 %v1661_v32  ;;  %v1979_v32 = vld [vmem:[%s3043_s11 + $0xa8] sm:$0xff] }
 0x692   :  { %1448 = vmatpush.bf16.msrb.mxu1 %v1981_v10  ;;  %v1967_v10 = vld [vmem:[%s3043_s11 + $0x48] sm:$0xff] }
 0x694   :  { %985 = vmatpush.bf16.msra.mxu2 %v1645_v44  ;;  %v1970_v44 = vld [vmem:[%s3043_s11 + $0x60] sm:$0xff] }
 0x6ee   :  { %v691_v21 = vpop.xlane.xlu1 %690 }
 0x6ef   :  { %v695_v26 = vmul.f32 %v691_v21, %v2323_v12  ;;  %v1980_v21 = vld [vmem:[%s3043_s11 + $0xb0] sm:$0xff] }
 0x6f0   :  { %1449 = vmatpush.bf16.msrb.mxu1 %v1980_v21 }
 0x6f1   :  { %v697_v36 = vadd.f32 1e-05, %v695_v26  ;;  %v1989_v26 = vld [vmem:[%s3043_s11 + $0xf8] sm:$0xff] }
 0x6f2   :  { %1462 = vmatpush.bf16.msrb.mxu2 %v1989_v26  ;;  %v1984_v26 = vld [vmem:[%s3043_s11 + $0xd0] sm:$0xff] }
 0x6f3   :  { %2026 = vrsqrt.f32 %v697_v36  ;;  %vm705_vm15 = vweird.f32 %v697_v36 }
 0x6f4   :  { %1450 = vmatpush.bf16.msrb.mxu1 %v1979_v32 }
 0x6f6   :  { %1463 = vmatpush.bf16.msrb.mxu2 %v1988_v39  ;;  %v1983_v39 = vld [vmem:[%s3043_s11 + $0xc8] sm:$0xff] }
 0x6f8   :  { %v694_v45 = vpop.xlane.xlu1 %693 }
 0x6f9   :  { %v2027_v46 = vpop.eup %2026  ;;  %v696_v47 = vmul.f32 %v694_v45, %v2323_v12  ;;  %v2001_v12 = vld [vmem:[#allocation7] ss:$0 sm:$0xff] }
 0x6fa   :  { %v700_v48 = vmul.f32 %v2027_v46, %v697_v36  ;;  %vm706_vm14 = vweird.f32 %v2027_v46  ;;  %v1978_v45 = vld [vmem:[%s3043_s11 + $0xa0] sm:$0xff] }
 0x6fb   :  { %v698_v49 = vadd.f32 1e-05, %v696_v47  ;;  %vm707_vm0 = vmor %vm705_vm15, %vm706_vm14  ;;  %1451 = vmatpush.bf16.msrb.mxu1 %v1978_v45 }
 0x6fc   :  { %v701_v50 = vmul.f32 %v2027_v46, %v700_v48 }
 0x6fd   :  { %2028 = vrsqrt.f32 %v698_v49  ;;  %vm715_vm2 = vweird.f32 %v698_v49 }
 0x6fe   :  { %v702_v51 = vmul.f32 0.5, %v701_v50  ;;  %v1987_v50 = vld [vmem:[%s3043_s11 + $0xe8] sm:$0xff] }
 0x6ff   :  { %1464 = vmatpush.bf16.msrb.mxu2 %v1987_v50  ;;  %v1982_v50 = vld [vmem:[%s3043_s11 + $0xc0] sm:$0xff] }
 0x700   :  { %v703_v53 = vsub.f32 1.5, %v702_v51 }
 0x702   :  { %v704_v55 = vmul.f32 %v2027_v46, %v703_v53 }
 0x703   :  { %v2029_v54 = vpop.eup %2028 }
 0x704   :  { %v710_v56 = vmul.f32 %v2029_v54, %v698_v49  ;;  %v708_v59 = vsel %vm707_vm0, %v2027_v46, %v704_v55  ;;  %vm716_vm1 = vweird.f32 %v2029_v54  ;;  %v1963_v49 = vld [vmem:[%s3043_s11 + $0x28] sm:$0xff] }
 0x705   :  { %v719_v62 = vmul.f32 %v708_v59, %v2558_v4  ;;  %vm717_vm3 = vmor %vm715_vm2, %vm716_vm1  ;;  %v2768_v4 = vld [vmem:[%s3042_s10] sm:$0xf]  ;;  %1422 = vmatpush.bf16.msra.mxu3 %v1963_v49 }
 0x706   :  { %v711_v58 = vmul.f32 %v2029_v54, %v710_v56  ;;  %v769_v8 = vperm.slane %v2768_v4, 1  ;;  %v770_v9 = vperm.slane %v2768_v4, 2  ;;  %v768_v19 = vperm.slane %v2768_v4, 0  ;;  %v1958_v49 = vld [vmem:[%s3043_s11] sm:$0xff] }
 0x707   :  { %v725_v2 = vmul.f32 %v2001_v12, %v719_v62  ;;  %v771_v23 = vperm.slane %v2768_v4, 3  ;;  %v1962_v62 = vld [vmem:[%s3043_s11 + $0x20] sm:$0xff] }
 0x708   :  { %v712_v60 = vmul.f32 0.5, %v711_v58 }
 0x709   :  { %v731_v6 = vadd.f32 %v2002_v3, %v725_v2  ;;  %1423 = vmatpush.bf16.msra.mxu3 %v1962_v62  ;;  %v1976_v2 = vld [vmem:[%s3043_s11 + $0x90] sm:$0xff] }
 0x70a   :  { %v713_v61 = vsub.f32 1.5, %v712_v60  ;;  %v1969_v60 = vld [vmem:[%s3043_s11 + $0x58] sm:$0xff] }
 0x70c   :  { %v714_v63 = vmul.f32 %v2029_v54, %v713_v61  ;;  %v1977_v61 = vld [vmem:[%s3043_s11 + $0x98] sm:$0xff] }
 0x70d   :  { %1452 = vmatpush.bf16.msrb.mxu1 %v1977_v61 }
 0x70e   :  { %v718_v0 = vsel %vm717_vm3, %v2029_v54, %v714_v63 }
 0x70f   :  { %v720_v16 = vmul.f32 %v718_v0, %v2564_v1  ;;  %v1973_v1 = vld [vmem:[%s3043_s11 + $0x78] sm:$0xff] }
 0x710   :  { %1434 = vmatpush.bf16.msrb.mxu0 %v1973_v1 }
 0x711   :  { %v726_v5 = vmul.f32 %v2001_v12, %v720_v16  ;;  %v1986_v12 = vld [vmem:[%s3043_s11 + $0xe0] sm:$0xff]  ;;  %v1968_v16 = vld [vmem:[%s3043_s11 + $0x50] sm:$0xff]  ;;  %1453 = vmatpush.bf16.msrb.mxu1 %v1976_v2 }
 0x712   :  { %1465 = vmatpush.bf16.msrb.mxu2 %v1986_v12 }
 0x713   :  { %v732_v18 = vadd.f32 %v2002_v3, %v726_v5 }
 0x714   :  { %1435 = vmatpush.bf16.msrb.mxu0 %v1972_v20 }
 0x715   :  { %v733_v7 = vpack.c.bf16 %v732_v18, %v731_v6  ;;  %v1961_v6 = vld [vmem:[%s3043_s11 + $0x18] sm:$0xff] }
 0x716   :  { %v1985_v18 = vld [vmem:[%s3043_s11 + $0xd8] sm:$0xff]  ;;  %1424 = vmatpush.bf16.msra.mxu3 %v1961_v6 }
 0x717   :  { %944 = vmatmul.bf16.vlgmr.msrb.gmra.mxu3 %v733_v7  ;;  %958 = vmatmul.bf16.vlgmr.msra.gmra.mxu0 %v733_v7 }
 0x718   :  { %972 = vmatmul.bf16.vlgmr.msra.gmra.mxu1 %v733_v7  ;;  %986 = vmatmul.bf16.vlgmr.msra.gmra.mxu2 %v733_v7 }
 0x719   :  { %1436 = vmatpush.bf16.msrb.mxu0 %v1971_v31  ;;  %1466 = vmatpush.bf16.msrb.mxu2 %v1985_v18  ;;  %v1974_v31 = vld [vmem:[%s3043_s11 + $0x80] sm:$0xff] }
 0x71d   :  { %1437 = vmatpush.bf16.msrb.mxu0 %v1970_v44  ;;  %1467 = vmatpush.bf16.msrb.mxu2 %v1984_v26 }
 0x721   :  { %1438 = vmatpush.bf16.msrb.mxu0 %v1969_v60  ;;  %1468 = vmatpush.bf16.msrb.mxu2 %v1983_v39 }
 0x725   :  { %1439 = vmatpush.bf16.msrb.mxu0 %v1968_v16  ;;  %1469 = vmatpush.bf16.msrb.mxu2 %v1982_v50 }
 0x729   :  { %1440 = vmatpush.bf16.msrb.mxu0 %v1967_v10 }
 0x794   :  { %v959_v11 = vpop.f32.mrf.mxu0 }
 0x795   :  { %v2778_v13 = vadd.f32 %v959_v11, %v769_v8  ;;  %v973_v14 = vpop.f32.mrf.mxu1  ;;  %v1975_v11 = vld [vmem:[%s3043_s11 + $0x88] sm:$0xff] }
 0x796   :  { %v2780_v15 = vadd.f32 %v973_v14, %v770_v9  ;;  %1454 = vmatpush.bf16.msrb.mxu1 %v1975_v11 }
 0x797   :  { %v1759_v17 = vmul.f32 -1.702, %v2778_v13 }
 0x798   :  { %v1760_v22 = vmul.f32 -1.702, %v2780_v15 }
 0x799   :  { %v1010_v24 = vmul.f32 1.442695, %v1759_v17 }
 0x79a   :  { %v1012_v27 = vmul.f32 1.442695, %v1760_v22  ;;  %v945_v28 = vpop.f32.mrf.mxu3  ;;  %1455 = vmatpush.bf16.msrb.mxu1 %v1974_v31 }
 0x79b   :  { %2030 = vpow2.f32 %v1010_v24  ;;  %v2798_v29 = vadd.f32 %v945_v28, %v768_v19  ;;  %v987_v30 = vpop.f32.mrf.mxu2  ;;  %v1960_v24 = vld [vmem:[%s3043_s11 + $0x10] sm:$0xff] }
 0x79c   :  { %2032 = vpow2.f32 %v1012_v27  ;;  %v2808_v33 = vadd.f32 %v987_v30, %v771_v23  ;;  %v961_v34 = vpop.f32.mrf.mxu0  ;;  %1425 = vmatpush.bf16.msra.mxu3 %v1960_v24  ;;  %v1966_v30 = vld [vmem:[%s3043_s11 + $0x40] sm:$0xff] }
 0x79d   :  { %v1758_v35 = vmul.f32 -1.702, %v2798_v29  ;;  %v2811_v36 = vadd.f32 %v961_v34, %v769_v8  ;;  %v975_v37 = vpop.f32.mrf.mxu1  ;;  %1441 = vmatpush.bf16.msrb.mxu0 %v1966_v30 }
 0x79e   :  { %v1761_v40 = vmul.f32 -1.702, %v2808_v33  ;;  %v2820_v41 = vadd.f32 %v975_v37, %v770_v9 }
 0x79f   :  { %v1008_v42 = vmul.f32 1.442695, %v1758_v35  ;;  %v1763_v43 = vmul.f32 -1.702, %v2811_v36 }
 0x7a0   :  { %v1764_v46 = vmul.f32 -1.702, %v2820_v41  ;;  %v1014_v58 = vmul.f32 1.442695, %v1761_v40  ;;  %1426 = vmatpush.bf16.msra.mxu3 %v1959_v38 }
 0x7a1   :  { %v2031_v47 = vpop.eup %2030  ;;  %2034 = vpow2.f32 %v1008_v42  ;;  %v1018_v48 = vmul.f32 1.442695, %v1763_v43 }
 0x7a2   :  { %v2033_v51 = vpop.eup %2032  ;;  %v2836_v53 = vadd.f32 1.0, %v2031_v47  ;;  %v1020_v54 = vmul.f32 1.442695, %v1764_v46  ;;  %v947_v55 = vpop.f32.mrf.mxu3 }
 0x7a3   :  { %v2838_v56 = vadd.f32 1.0, %v2033_v51  ;;  %2036 = vpow2.f32 %v1018_v48  ;;  %v2840_v59 = vadd.f32 %v947_v55, %v768_v19  ;;  %v989_v22 = vpop.f32.mrf.mxu2 }
 0x7a4   :  { %2038 = vrcp.f32 %v2836_v53  ;;  %v2910_v35 = vadd.f32 %v989_v22, %v771_v23  ;;  %v1056_v37 = vand.u32 2147483647, %v2836_v53  ;;  %v1058_v40 = vand.u32 2147483648, %v2836_v53  ;;  %1427 = vmatpush.bf16.msra.mxu3 %v1958_v49 }
 0x7a5   :  { %2040 = vrcp.f32 %v2838_v56  ;;  %v1762_v63 = vmul.f32 -1.702, %v2840_v59  ;;  %v1071_v4 = vand.u32 2147483647, %v2838_v56  ;;  %v1073_v45 = vand.u32 2147483648, %v2838_v56 }
 0x7a6   :  { %2042 = vpow2.f32 %v1020_v54  ;;  %v1765_v46 = vmul.f32 -1.702, %v2910_v35  ;;  %vm1052_vm5 = vweird.f32 %v2836_v53  ;;  %vm2931_vm6 = vcmp.eq.f32.partialorder %v1056_v37, 8.507059e+37 }
 0x7a7   :  { %v2035_v0 = vpop.eup %2034  ;;  %2044 = vpow2.f32 %v1014_v58  ;;  %v1016_v8 = vmul.f32 1.442695, %v1762_v63  ;;  %vm1067_vm7 = vweird.f32 %v2838_v56  ;;  %vm2949_vm10 = vcmp.eq.f32.partialorder %v1071_v4, 8.507059e+37 }
 0x7a8   :  { %v2863_v3 = vadd.f32 1.0, %v2035_v0  ;;  %v1074_v63 = vor.u32 1.1754944e-38, %v1073_v45  ;;  %v1022_v2 = vmul.f32 1.442695, %v1765_v46 }
 0x7a9   :  { %v2037_v5 = vpop.eup %2036 }
 0x7aa   :  { %v2871_v7 = vpop.eup %2038  ;;  %2046 = vrcp.f32 %v2863_v3  ;;  %v2886_v21 = vadd.f32 1.0, %v2037_v5 }
 0x7ab   :  { %v2874_v9 = vpop.eup %2040  ;;  %v1048_v1 = vmul.f32 %v2871_v7, %v2836_v53  ;;  %2048 = vpow2.f32 %v1016_v8  ;;  %vm1053_vm4 = vweird.f32 %v2871_v7  ;;  %v1059_v53 = vor.u32 1.1754944e-38, %v1058_v40 }
 0x7ac   :  { %v2043_v14 = vpop.eup %2042  ;;  %v1063_v17 = vmul.f32 %v2874_v9, %v2838_v56  ;;  %2050 = vrcp.f32 %v2886_v21  ;;  %vm2944_vm8 = vmor %vm1052_vm5, %vm1053_vm4  ;;  %vm1068_vm9 = vweird.f32 %v2874_v9  ;;  %vm1112_vm11 = vweird.f32 %v2886_v21 }
 0x7ad   :  { %v2045_v19 = vpop.eup %2044  ;;  %v1049_v20 = vsub.f32 1.0, %v1048_v1  ;;  %v2891_v25 = vadd.f32 1.0, %v2043_v14  ;;  %v1116_v5 = vand.u32 2147483647, %v2886_v21  ;;  %v1118_v6 = vand.u32 2147483648, %v2886_v21  ;;  %vm2973_vm12 = vmor %vm1067_vm7, %vm1068_vm9 }
 0x7ae   :  { %v1064_v28 = vsub.f32 1.0, %v1063_v17  ;;  %v2906_v34 = vadd.f32 1.0, %v2045_v19  ;;  %vm1037_vm5 = vweird.f32 %v2863_v3  ;;  %v1043_v40 = vand.u32 2147483648, %v2863_v3 }
 0x7af   :  { %v1050_v27 = vmul.f32 %v2871_v7, %v1049_v20  ;;  %2052 = vrcp.f32 %v2891_v25  ;;  %v1131_v17 = vand.u32 2147483647, %v2891_v25  ;;  %v1133_v19 = vand.u32 2147483648, %v2891_v25 }
 0x7b0   :  { %v2904_v32 = vpop.eup %2046  ;;  %v1065_v42 = vmul.f32 %v2874_v9, %v1064_v28  ;;  %2054 = vrcp.f32 %v2906_v34  ;;  %vm1117_vm1 = vcmp.eq.f32.partialorder %v1116_v5, 8.507059e+37  ;;  %vm1127_vm2 = vweird.f32 %v2891_v25 }
 0x7b1   :  { %v1051_v23 = vadd.f32 %v2871_v7, %v1050_v27  ;;  %v1033_v43 = vmul.f32 %v2904_v32, %v2863_v3  ;;  %v2049_v44 = vpop.eup %2048  ;;  %vm1038_vm15 = vweird.f32 %v2904_v32  ;;  %v1134_v38 = vor.u32 1.1754944e-38, %v1133_v19 }
 0x7b2   :  { %v2051_v47 = vpop.eup %2050  ;;  %v1066_v61 = vadd.f32 %v2874_v9, %v1065_v42  ;;  %v2958_v12 = vadd.f32 1.0, %v2049_v44  ;;  %vm1132_vm4 = vcmp.eq.f32.partialorder %v1131_v17, 8.507059e+37  ;;  %v1044_v51 = vor.u32 1.1754944e-38, %v1043_v40 }
 0x7b3   :  { %v1108_v55 = vmul.f32 %v2051_v47, %v2886_v21  ;;  %v1055_v60 = vsel %vm2944_vm8, %v2871_v7, %v1051_v23  ;;  %v1034_v62 = vsub.f32 1.0, %v1033_v43  ;;  %vm1113_vm13 = vweird.f32 %v2051_v47 }
 0x7b4   :  { %2056 = vrcp.f32 %v2958_v12  ;;  %v1060_v7 = vsel %vm2931_vm6, %v1059_v53, %v1055_v60  ;;  %v1070_v11 = vsel %vm2973_vm12, %v2874_v9, %v1066_v61  ;;  %vm1114_vm0 = vmor %vm1112_vm11, %vm1113_vm13  ;;  %v1119_v9 = vor.u32 1.1754944e-38, %v1118_v6 }
 0x7b5   :  { %v2053_v58 = vpop.eup %2052  ;;  %v1109_v0 = vsub.f32 1.0, %v1108_v55  ;;  %v1035_v14 = vmul.f32 %v2904_v32, %v1034_v62  ;;  %2058 = vpow2.f32 %v1022_v2  ;;  %v1153_v24 = vmul.f32 %v1060_v7, %v2778_v13  ;;  %vm3002_vm6 = vmor %vm1037_vm5, %vm1038_vm15 }
 0x7b6   :  { %v1123_v16 = vmul.f32 %v2053_v58, %v2891_v25  ;;  %v2965_v18 = vpop.eup %2054  ;;  %vm1128_vm14 = vweird.f32 %v2053_v58  ;;  %v1075_v30 = vsel %vm2949_vm10, %v1074_v63, %v1070_v11  ;;  %v1041_v25 = vand.u32 2147483647, %v2863_v3 }
 0x7b7   :  { %v1110_v1 = vmul.f32 %v2051_v47, %v1109_v0  ;;  %v1078_v56 = vmul.f32 %v2965_v18, %v2906_v34  ;;  %v1036_v31 = vadd.f32 %v2904_v32, %v1035_v14  ;;  %vm1129_vm3 = vmor %vm1127_vm2, %vm1128_vm14  ;;  %v1154_v42 = vmul.f32 %v1075_v30, %v2780_v15 }
 0x7b8   :  { %v1124_v10 = vsub.f32 1.0, %v1123_v16  ;;  %v1103_v3 = vand.u32 2147483648, %v2958_v12  ;;  %v1101_v50 = vand.u32 2147483647, %v2958_v12  ;;  %vm1042_vm8 = vcmp.eq.f32.partialorder %v1041_v25, 8.507059e+37 }
 0x7b9   :  { %v1111_v20 = vadd.f32 %v2051_v47, %v1110_v1  ;;  %v1040_v46 = vsel %vm3002_vm6, %v2904_v32, %v1036_v31  ;;  %vm1097_vm9 = vweird.f32 %v2958_v12  ;;  %vm1083_vm12 = vweird.f32 %v2965_v18  ;;  %v2003_v31 = vld [vmem:[#allocation10] ss:$0 sm:$0xff] }
 0x7ba   :  { %v1125_v22 = vmul.f32 %v2053_v58, %v1124_v10  ;;  %v2057_v28 = vpop.eup %2056  ;;  %v1104_v32 = vor.u32 1.1754944e-38, %v1103_v3  ;;  %vm1102_vm11 = vcmp.eq.f32.partialorder %v1101_v50, 8.507059e+37  ;;  %v1088_v16 = vand.u32 2147483648, %v2906_v34 }
 0x7bb   :  { %v1115_v26 = vsel %vm1114_vm0, %v2051_v47, %v1111_v20  ;;  %v1093_v13 = vmul.f32 %v2057_v28, %v2958_v12  ;;  %v2059_v23 = vpop.eup %2058  ;;  %v1079_v47 = vsub.f32 1.0, %v1078_v56  ;;  %vm1098_vm7 = vweird.f32 %v2057_v28 }
 0x7bc   :  { %v1126_v27 = vadd.f32 %v2053_v58, %v1125_v22  ;;  %v1120_v37 = vsel %vm1117_vm1, %v1119_v9, %v1115_v26  ;;  %v1031_v48 = vadd.f32 1.0, %v2059_v23  ;;  %vm1099_vm10 = vmor %vm1097_vm9, %vm1098_vm7  ;;  %vm1082_vm13 = vweird.f32 %v2906_v34 }
 0x7bd   :  { %v1157_v21 = vmul.f32 %v1120_v37, %v2811_v36  ;;  %v1094_v45 = vsub.f32 1.0, %v1093_v13  ;;  %v1080_v54 = vmul.f32 %v2965_v18, %v1079_v47  ;;  %v1086_v2 = vand.u32 2147483647, %v2906_v34  ;;  %vm1084_vm14 = vmor %vm1082_vm13, %vm1083_vm12 }
 0x7be   :  { %v1130_v39 = vsel %vm1129_vm3, %v2053_v58, %v1126_v27  ;;  %2060 = vrcp.f32 %v1031_v48  ;;  %v1148_v6 = vand.u32 2147483648, %v1031_v48  ;;  %v1146_v7 = vand.u32 2147483647, %v1031_v48 }
 0x7bf   :  { %v1135_v4 = vsel %vm1132_vm4, %v1134_v38, %v1130_v39  ;;  %v1161_v36 = vpack.c.bf16 %v1157_v21, %v1153_v24  ;;  %v1095_v15 = vmul.f32 %v2057_v28, %v1094_v45  ;;  %v1081_v63 = vadd.f32 %v2965_v18, %v1080_v54 }
 0x7c0   :  { %v1158_v44 = vmul.f32 %v1135_v4, %v2820_v41  ;;  %v1045_v41 = vsel %vm1042_vm8, %v1044_v51, %v1040_v46  ;;  %v1089_v8 = vor.u32 1.1754944e-38, %v1088_v16  ;;  %vm1087_vm0 = vcmp.eq.f32.partialorder %v1086_v2, 8.507059e+37 }
 0x7c1   :  { %1442 = vmatmul.bf16.vlgmr.msrb.gmra.mxu0 %v1161_v36  ;;  %v1096_v53 = vadd.f32 %v2057_v28, %v1095_v15  ;;  %v1152_v60 = vmul.f32 %v1045_v41, %v2798_v29  ;;  %v1085_v29 = vsel %vm1084_vm14, %v2965_v18, %v1081_v63  ;;  %vm1142_vm1 = vweird.f32 %v1031_v48 }
 0x7c2   :  { %v1162_v49 = vpack.c.bf16 %v1158_v44, %v1154_v42  ;;  %v1090_v10 = vsel %vm1087_vm0, %v1089_v8, %v1085_v29  ;;  %v1149_v11 = vor.u32 1.1754944e-38, %v1148_v6  ;;  %vm1147_vm3 = vcmp.eq.f32.partialorder %v1146_v7, 8.507059e+37 }
 0x7c3   :  { %v1100_v55 = vsel %vm1099_vm10, %v2057_v28, %v1096_v53  ;;  %v1155_v34 = vmul.f32 %v1090_v10, %v2808_v33 }
 0x7c4   :  { %1456 = vmatmul.bf16.vlgmr.msrb.gmra.mxu1 %v1162_v49  ;;  %v1105_v58 = vsel %vm1102_vm11, %v1104_v32, %v1100_v55  ;;  %v2061_v62 = vpop.eup %2060 }
 0x7c5   :  { %v1156_v61 = vmul.f32 %v1105_v58, %v2840_v59  ;;  %v1138_v12 = vmul.f32 %v2061_v62, %v1031_v48  ;;  %vm1143_vm15 = vweird.f32 %v2061_v62 }
 0x7c6   :  { %vm1144_vm2 = vmor %vm1142_vm1, %vm1143_vm15 }
 0x7c7   :  { %v1160_v0 = vpack.c.bf16 %v1156_v61, %v1152_v60  ;;  %v1139_v5 = vsub.f32 1.0, %v1138_v12 }
 0x7c9   :  { %1428 = vmatmul.bf16.vlgmr.msra.gmra.mxu3 %v1160_v0  ;;  %v1140_v59 = vmul.f32 %v2061_v62, %v1139_v5 }
 0x7cb   :  { %v1141_v1 = vadd.f32 %v2061_v62, %v1140_v59 }
 0x7cd   :  { %v1145_v14 = vsel %vm1144_vm2, %v2061_v62, %v1141_v1 }
 0x7ce   :  { %v1150_v17 = vsel %vm1147_vm3, %v1149_v11, %v1145_v14 }
 0x7cf   :  { %v1159_v19 = vmul.f32 %v1150_v17, %v2910_v35 }
 0x7d1   :  { %v1163_v20 = vpack.c.bf16 %v1159_v19, %v1155_v34 }
 0x7d3   :  { %1470 = vmatmul.bf16.vlgmr.msrb.gmra.mxu2 %v1163_v20 }
 0x83e   :  { %v1443_v22 = vpop.f32.mrf.mxu0 }
 0x841   :  { %v1457_v9 = vpop.f32.mrf.mxu1 }
 0x846   :  { %v1445_v27 = vpop.f32.mrf.mxu0 }
 0x849   :  { %v1459_v21 = vpop.f32.mrf.mxu1 }
 0x84c   :  { %v1429_v18 = vpop.f32.mrf.mxu3 }
 0x84d   :  { %v1444_v56 = vadd.f32 %v1443_v22, %v1429_v18 }
 0x84f   :  { %v1458_v24 = vadd.f32 %v1457_v9, %v1444_v56 }
 0x854   :  { %v1431_v26 = vpop.f32.mrf.mxu3 }
 0x855   :  { %v1446_v37 = vadd.f32 %v1445_v27, %v1431_v26 }
 0x856   :  { %v1471_v28 = vpop.f32.mrf.mxu2 }
 0x857   :  { %v1472_v30 = vadd.f32 %v1471_v28, %v1458_v24  ;;  %v1460_v33 = vadd.f32 %v1459_v21, %v1446_v37 }
 0x859   :  { %v1476_v38 = vadd.f32 %v1472_v30, %v2548_v52 }
 0x85b   :  { %v1482_v39 = vadd.f32 %v2003_v31, %v1476_v38 }
 0x85d   :  { %v1484_v13 = vpack.c.bf16 %v1482_v39, %v1482_v39 }
 0x85e   :  { %v1473_v35 = vpop.f32.mrf.mxu2 }
 0x85f   :  { %1486 = vst [vmem:[%s3045_s13] sm:$0xf] %v1484_v13  ;;  %v1474_v25 = vadd.f32 %v1473_v35, %v1460_v33 }
 0x861   :  { %v1477_v40 = vadd.f32 %v1474_v25, %v2552_v57 }
 0x863   :  { %v1483_v4 = vadd.f32 %v2003_v31, %v1477_v40 }
 0x865   :  { %v1485_v23 = vpack.c.bf16 %v1483_v4, %v1483_v4 }
 0x867   :  { %1487 = vst [vmem:[%s3045_s13 + $0x4] sm:$0x1] %v1485_v23 }
 0x868   :  { %1492 = vsyncpa [#allocation3], 1 }
 0x869   :  { %1493 = vsyncpa [#allocation5], 1 }
 0x86a   :  { %1494 = vsyncpa [#allocation8], 1 }
 0x86b   :  { %1495 = vsyncpa [#allocation11], 1 }

// kernel: dino_v2_a_forward.10
= control target key start
LH: loop header
LB: loop body
LE: loop exit
PB: predicated region body
PF: predicated region fallthrough
CT: control target
= control target key end

     0   :  { %vm70_vm0 = vcmask 1041408   ;;  %v1970_v5 = vmov 128.0   ;;  %vm362_vm8 = vcmask 523264   ;;  %vm413_vm9 = vcmask 1044480   ;;  %s2782_s0 = inlined_call_operand.vmem [shape: bf16[10,128], index: 0, kind: input, shape index: {}, may-alias: {0,13}]   ;;  %s2783_s1 = inlined_call_operand.vmem [shape: f32[1,128], index: 1, kind: input, shape index: {}]   ;;  %s2784_s2 = inlined_call_operand.vmem [shape: f32[1,128], index: 2, kind: input, shape index: {}]   ;;  %s2785_s3 = inlined_call_operand.vmem [shape: bf16[128,384], index: 3, kind: input, shape index: {}]   ;;  %s2786_s4 = inlined_call_operand.vmem [shape: f32[1,384], index: 4, kind: input, shape index: {}]   ;;  %s2787_s5 = inlined_call_operand.vmem [shape: bf16[128,128], index: 5, kind: input, shape index: {}]   ;;  %s2788_s6 = inlined_call_operand.vmem [shape: f32[1,128], index: 6, kind: input, shape index: {}]   ;;  %s2789_s7 = inlined_call_operand.vmem [shape: f32[1,128], index: 7, kind: input, shape index: {}]   ;;  %s2790_s8 = inlined_call_operand.vmem [shape: f32[1,128], index: 8, kind: input, shape index: {}]   ;;  %s2791_s9 = inlined_call_operand.vmem [shape: bf16[128,512], index: 9, kind: input, shape index: {}]   ;;  %s2792_s10 = inlined_call_operand.vmem [shape: f32[1,512], index: 10, kind: input, shape index: {}]   ;;  %s2793_s11 = inlined_call_operand.vmem [shape: bf16[512,128], index: 11, kind: input, shape index: {}]   ;;  %s2794_s12 = inlined_call_operand.vmem [shape: f32[1,128], index: 12, kind: input, shape index: {}]   ;;  %s2795_s13 = inlined_call_operand.vmem [shape: bf16[10,128], index: 13, kind: output, shape index: {}, may-alias: {0,13}]  }
   0x1   :  { %v46_v0 = vld [vmem:[%s2782_s0 + $0x4] sm:$0x1]  ;;  %v45_v3 = vld [vmem:[%s2782_s0] sm:$0xf]  ;;  %1912 = vrcp.f32 %v1970_v5  ;;  %v1496_v21 = vld [vmem:[%s2785_s3 + $0xa8] sm:$0xf] }
   0x2   :  { %v2045_v1 = vunpack.c.l.bf16 %v46_v0  ;;  %v2052_v4 = vunpack.c.l.bf16 %v45_v3  ;;  %v1830_v22 = vld [vmem:[%s2785_s3 + $0xb0] sm:$0xf0]  ;;  %v1829_v23 = vld [vmem:[%s2785_s3 + $0xac] sm:$0xf]  ;;  %v1498_v25 = vld [vmem:[%s2785_s3 + $0xb4] sm:$0xf0] }
   0x3   :  { %v1497_v24 = vor.u32 %v1830_v22, %v1496_v21  ;;  %v1504_v26 = vld [vmem:[%s2785_s3 + $0xb0] sm:$0xf]  ;;  %v1831_v27 = vld [vmem:[%s2785_s3 + $0xb8] sm:$0xf0]  ;;  %v1501_v28 = vor.u32 %v1829_v23, %v1498_v25  ;;  %v1826_v32 = vld [vmem:[%s2785_s3 + $0x94] sm:$0xf] }
   0x4   :  { %v71_v2 = vsel %vm70_vm0, %v2045_v1, 0.0  ;;  %v1505_v29 = vor.u32 %v1831_v27, %v1504_v26  ;;  %v1484_v30 = vld [vmem:[%s2785_s3 + $0x90] sm:$0xf]  ;;  %v1827_v31 = vld [vmem:[%s2785_s3 + $0x98] sm:$0xf0]  ;;  %vm385_vm11 = vcmask 80896  }
   0x5   :  { %72 = vadd.xlane.f32.xlu0 %v71_v2  ;;  %299 = vmatpush.bf16.msra.mxu0 %v1497_v24  ;;  %v1485_v33 = vor.u32 %v1827_v31, %v1484_v30  ;;  %v1486_v34 = vld [vmem:[%s2785_s3 + $0x9c] sm:$0xf0]  ;;  %v1492_v35 = vld [vmem:[%s2785_s3 + $0x98] sm:$0xf]  ;;  %v1828_v36 = vld [vmem:[%s2785_s3 + $0xa0] sm:$0xf0] }
   0x6   :  { %313 = vmatpush.bf16.msra.mxu1 %v1501_v28  ;;  %327 = vmatpush.bf16.msra.mxu2 %v1505_v29  ;;  %v1489_v37 = vor.u32 %v1826_v32, %v1486_v34  ;;  %v1493_v38 = vor.u32 %v1828_v36, %v1492_v35  ;;  %v1472_v39 = vld [vmem:[%s2785_s3 + $0x78] sm:$0xf]  ;;  %v1824_v40 = vld [vmem:[%s2785_s3 + $0x80] sm:$0xf0]  ;;  %v1823_v41 = vld [vmem:[%s2785_s3 + $0x7c] sm:$0xf] }
   0x7   :  { %v1913_v6 = vpop.eup %1912  ;;  %v1473_v42 = vor.u32 %v1824_v40, %v1472_v39  ;;  %v1474_v43 = vld [vmem:[%s2785_s3 + $0x84] sm:$0xf0]  ;;  %v1480_v44 = vld [vmem:[%s2785_s3 + $0x80] sm:$0xf]  ;;  %v1825_v45 = vld [vmem:[%s2785_s3 + $0x88] sm:$0xf0] }
   0x8   :  { %v75_v7 = vmul.f32 128.0, %v1913_v6  ;;  %vm79_vm1 = vweird.f32 %v1913_v6  ;;  %v1477_v46 = vor.u32 %v1823_v41, %v1474_v43  ;;  %v1481_v47 = vor.u32 %v1825_v45, %v1480_v44  ;;  %v1460_v48 = vld [vmem:[%s2785_s3 + $0x60] sm:$0xf]  ;;  %v1821_v49 = vld [vmem:[%s2785_s3 + $0x68] sm:$0xf0] }
   0x9   :  { %300 = vmatpush.bf16.msra.mxu0 %v1485_v33  ;;  %v1820_v50 = vld [vmem:[%s2785_s3 + $0x64] sm:$0xf]  ;;  %v1461_v51 = vor.u32 %v1821_v49, %v1460_v48  ;;  %v1462_v52 = vld [vmem:[%s2785_s3 + $0x6c] sm:$0xf0]  ;;  %v1468_v53 = vld [vmem:[%s2785_s3 + $0x68] sm:$0xf] }
   0xa   :  { %v76_v8 = vsub.f32 1.0, %v75_v7  ;;  %314 = vmatpush.bf16.msra.mxu1 %v1489_v37  ;;  %328 = vmatpush.bf16.msra.mxu2 %v1493_v38  ;;  %v1822_v54 = vld [vmem:[%s2785_s3 + $0x70] sm:$0xf0]  ;;  %v1465_v55 = vor.u32 %v1820_v50, %v1462_v52  ;;  %v1448_v57 = vld [vmem:[%s2785_s3 + $0x48] sm:$0xf]  ;;  %vm389_vm13 = vcmask 74752  }
   0xb   :  { %v1469_v56 = vor.u32 %v1822_v54, %v1468_v53  ;;  %v1818_v58 = vld [vmem:[%s2785_s3 + $0x50] sm:$0xf0]  ;;  %v1817_v59 = vld [vmem:[%s2785_s3 + $0x4c] sm:$0xf]  ;;  %v1450_v61 = vld [vmem:[%s2785_s3 + $0x54] sm:$0xf0] }
   0xc   :  { %v77_v9 = vmul.f32 %v1913_v6, %v76_v8  ;;  %v1449_v60 = vor.u32 %v1818_v58, %v1448_v57  ;;  %v1456_v62 = vld [vmem:[%s2785_s3 + $0x50] sm:$0xf]  ;;  %v1819_v63 = vld [vmem:[%s2785_s3 + $0x58] sm:$0xf0]  ;;  %v1453_v0 = vor.u32 %v1817_v59, %v1450_v61  ;;  %v1438_v8 = vld [vmem:[%s2785_s3 + $0x3c] sm:$0xf0] }
   0xd   :  { %68 = vadd.xlane.f32.xlu0 %v2052_v4  ;;  %301 = vmatpush.bf16.msra.mxu0 %v1473_v42  ;;  %v1457_v2 = vor.u32 %v1819_v63, %v1456_v62  ;;  %v1436_v3 = vld [vmem:[%s2785_s3 + $0x30] sm:$0xf]  ;;  %v1815_v5 = vld [vmem:[%s2785_s3 + $0x38] sm:$0xf0]  ;;  %v1432_v21 = vld [vmem:[%s2785_s3 + $0x20] sm:$0xf] }
   0xe   :  { %v78_v11 = vadd.f32 %v1913_v6, %v77_v9  ;;  %315 = vmatpush.bf16.msra.mxu1 %v1477_v46  ;;  %329 = vmatpush.bf16.msra.mxu2 %v1481_v47  ;;  %v1437_v7 = vor.u32 %v1815_v5, %v1436_v3  ;;  %v1444_v9 = vld [vmem:[%s2785_s3 + $0x38] sm:$0xf]  ;;  %v1813_v22 = vld [vmem:[%s2785_s3 + $0x28] sm:$0xf0]  ;;  %v1412_v25 = vld [vmem:[%s2785_s3] sm:$0xf] }
   0xf   :  { %v1433_v24 = vor.u32 %v1813_v22, %v1432_v21  ;;  %v1809_v26 = vld [vmem:[%s2785_s3 + $0x8] sm:$0xf0]  ;;  %v1808_v27 = vld [vmem:[%s2785_s3 + $0x4] sm:$0xf]  ;;  %v1414_v30 = vld [vmem:[%s2785_s3 + $0xc] sm:$0xf0] }
  0x10   :  { %v2055_v12 = vsel %vm79_vm1, %v1913_v6, %v78_v11  ;;  %v1814_v6 = vld [vmem:[%s2785_s3 + $0x34] sm:$0xf]  ;;  %v1413_v29 = vor.u32 %v1809_v26, %v1412_v25  ;;  %v1420_v31 = vld [vmem:[%s2785_s3 + $0x8] sm:$0xf]  ;;  %v1417_v34 = vor.u32 %v1808_v27, %v1414_v30  ;;  %v1906_v53 = vld [vmem:[%s2783_s1] ss:$0 sm:$0xff]  ;;  %v49_v25 = vlaneseq }
  0x11   :  { %302 = vmatpush.bf16.msra.mxu0 %v1461_v51  ;;  %v1441_v11 = vor.u32 %v1814_v6, %v1438_v8  ;;  %v1810_v32 = vld [vmem:[%s2785_s3 + $0x10] sm:$0xf0]  ;;  %v1907_v58 = vld [vmem:[%s2784_s2] ss:$0 sm:$0xff]  ;;  %s1971_s2 = smov 64  }
  0x12   :  { %316 = vmatpush.bf16.msra.mxu1 %v1465_v55  ;;  %330 = vmatpush.bf16.msra.mxu2 %v1469_v56  ;;  %v1421_v35 = vor.u32 %v1810_v32, %v1420_v31  ;;  %v50_v26 = vshrl.u32 %v49_v25, 7  ;;  %v55_v27 = vand.u32 127, %v49_v25 }
  0x14   :  { %v51_v32 = vadd.s32 8, %v50_v26 }
  0x15   :  { %303 = vmatpush.bf16.msra.mxu0 %v1449_v60 }
  0x16   :  { %317 = vmatpush.bf16.msra.mxu1 %v1453_v0  ;;  %331 = vmatpush.bf16.msra.mxu2 %v1457_v2  ;;  %v163_v0 = vld [vmem:[%s2786_s4] sm:$0x7] }
  0x17   :  { %v166_v2 = vperm.slane %v163_v0, 1  ;;  %v165_v8 = vperm.slane %v163_v0, 0 }
  0x19   :  { %304 = vmatpush.bf16.msra.mxu0 %v1437_v7 }
  0x1a   :  { %318 = vmatpush.bf16.msra.mxu1 %v1441_v11 }
  0x78   :  { %v73_v10 = vpop.xlane.xlu0 %72 }
  0x79   :  { %v82_v15 = vmul.f32 %v2055_v12, %v73_v10  ;;  %v1816_v10 = vld [vmem:[%s2785_s3 + $0x40] sm:$0xf0] }
  0x7b   :  { %v2065_v18 = vsub.f32 %v2045_v1, %v82_v15  ;;  %v1812_v15 = vld [vmem:[%s2785_s3 + $0x20] sm:$0xf0] }
  0x7d   :  { %v86_v19 = vmul.f32 %v2065_v18, %v2065_v18 }
  0x7f   :  { %v89_v20 = vsel %vm70_vm0, %v86_v19, 0.0 }
  0x80   :  { %v69_v13 = vpop.xlane.xlu0 %68 }
  0x81   :  { %v81_v14 = vmul.f32 %v2055_v12, %v69_v13  ;;  %v1445_v13 = vor.u32 %v1816_v10, %v1444_v9  ;;  %v167_v10 = vperm.slane %v163_v0, 2 }
  0x83   :  { %v2060_v16 = vsub.f32 %v2052_v4, %v81_v14  ;;  %332 = vmatpush.bf16.msra.mxu2 %v1445_v13  ;;  %v1424_v14 = vld [vmem:[%s2785_s3 + $0x18] sm:$0xf] }
  0x84   :  { %v1425_v19 = vor.u32 %v1812_v15, %v1424_v14 }
  0x85   :  { %v85_v17 = vmul.f32 %v2060_v16, %v2060_v16 }
  0x86   :  { %305 = vmatpush.bf16.msra.mxu0 %v1425_v19 }
  0x87   :  { %87 = vadd.xlane.f32.xlu1 %v85_v17  ;;  %v1811_v17 = vld [vmem:[%s2785_s3 + $0x1c] sm:$0xf]  ;;  %333 = vmatpush.bf16.msra.mxu2 %v1433_v24 }
  0x8a   :  { %306 = vmatpush.bf16.msra.mxu0 %v1413_v29  ;;  %v56_v29 = vcvt.s32.f32 %v55_v27 }
  0x8b   :  { %334 = vmatpush.bf16.msra.mxu2 %v1421_v35  ;;  %v53_v35 = vcvt.s32.f32 %v51_v32 }
  0x8c   :  { %v63_v31 = vadd.f32 0.5, %v56_v29 }
  0x8f   :  { %90 = vadd.xlane.f32.xlu1 %v89_v20  ;;  %v1426_v20 = vld [vmem:[%s2785_s3 + $0x24] sm:$0xf0] }
  0x90   :  { %v1429_v23 = vor.u32 %v1811_v17, %v1426_v20 }
  0x92   :  { %319 = vmatpush.bf16.msra.mxu1 %v1429_v23 }
  0x96   :  { %320 = vmatpush.bf16.msra.mxu1 %v1417_v34  ;;  %v64_v34 = vmul.f32 0.2, %v63_v31 }
  0xfa   :  { %v88_v28 = vpop.xlane.xlu1 %87 }
  0xfb   :  { %v92_v33 = vmul.f32 %v88_v28, %v2055_v12  ;;  %v52_v28 = vcvt.s32.f32 %v50_v26 }
  0xfd   :  { %v94_v36 = vadd.f32 1e-05, %v92_v33  ;;  %v57_v30 = vadd.f32 0.5, %v52_v28 }
  0xff   :  { %1914 = vrsqrt.f32 %v94_v36  ;;  %vm102_vm3 = vweird.f32 %v94_v36  ;;  %v59_v33 = vmul.f32 0.2, %v57_v30 }
 0x102   :  { %v91_v37 = vpop.xlane.xlu1 %90 }
 0x103   :  { %v93_v38 = vmul.f32 %v91_v37, %v2055_v12  ;;  %v65_v37 = vfloor.f32 %v64_v34  ;;  %v1838_v34 = vld [vmem:[%s2787_s5 + $0x30] sm:$0xff] }
 0x105   :  { %v1915_v39 = vpop.eup %1914  ;;  %v95_v40 = vadd.f32 1e-05, %v93_v38  ;;  %v58_v38 = vadd.f32 0.5, %v53_v35 }
 0x106   :  { %v97_v41 = vmul.f32 %v1915_v39, %v94_v36  ;;  %vm103_vm2 = vweird.f32 %v1915_v39  ;;  %v61_v36 = vfloor.f32 %v59_v33  ;;  %v1839_v33 = vld [vmem:[%s2787_s5 + $0x38] sm:$0xff] }
 0x107   :  { %1916 = vrsqrt.f32 %v95_v40  ;;  %vm104_vm4 = vmor %vm102_vm3, %vm103_vm2  ;;  %vm112_vm6 = vweird.f32 %v95_v40  ;;  %538 = vmatpush.bf16.msrb.mxu1 %v1839_v33  ;;  %v1628_v33 = vld [vmem:[%s2791_s9 + $0xb0] sm:$0xf0] }
 0x108   :  { %v98_v42 = vmul.f32 %v1915_v39, %v97_v41  ;;  %vm2230_vm10 = vcmp.eq.f32.partialorder %v61_v36, %v65_v37 }
 0x10a   :  { %v99_v43 = vmul.f32 0.5, %v98_v42 }
 0x10b   :  { %539 = vmatpush.bf16.msrb.mxu1 %v1838_v34  ;;  %v1634_v34 = vld [vmem:[%s2791_s9 + $0xa8] sm:$0xf] }
 0x10c   :  { %v100_v44 = vsub.f32 1.5, %v99_v43 }
 0x10d   :  { %v1917_v45 = vpop.eup %1916 }
 0x10e   :  { %v101_v46 = vmul.f32 %v1915_v39, %v100_v44  ;;  %v107_v47 = vmul.f32 %v1917_v45, %v95_v40  ;;  %vm113_vm5 = vweird.f32 %v1917_v45  ;;  %v60_v40 = vmul.f32 0.2, %v58_v38 }
 0x10f   :  { %vm114_vm7 = vmor %vm112_vm6, %vm113_vm5 }
 0x110   :  { %v108_v48 = vmul.f32 %v1917_v45, %v107_v47  ;;  %v105_v49 = vsel %vm104_vm4, %v1915_v39, %v101_v46  ;;  %v62_v44 = vfloor.f32 %v60_v40 }
 0x111   :  { %v116_v52 = vmul.f32 %v105_v49, %v2060_v16 }
 0x112   :  { %v109_v50 = vmul.f32 0.5, %v108_v48  ;;  %vm2237_vm12 = vcmp.eq.f32.partialorder %v62_v44, %v65_v37 }
 0x113   :  { %v122_v57 = vmul.f32 %v1906_v53, %v116_v52 }
 0x114   :  { %v110_v51 = vsub.f32 1.5, %v109_v50 }
 0x115   :  { %v128_v60 = vadd.f32 %v1907_v58, %v122_v57 }
 0x116   :  { %v111_v54 = vmul.f32 %v1917_v45, %v110_v51 }
 0x118   :  { %v115_v55 = vsel %vm114_vm7, %v1917_v45, %v111_v54 }
 0x119   :  { %v117_v56 = vmul.f32 %v115_v55, %v2065_v18 }
 0x11b   :  { %v123_v59 = vmul.f32 %v1906_v53, %v117_v56 }
 0x11d   :  { %v129_v61 = vadd.f32 %v1907_v58, %v123_v59 }
 0x11f   :  { %v130_v62 = vpack.c.bf16 %v129_v61, %v128_v60 }
 0x121   :  { %307 = vmatmul.bf16.vlgmr.msra.gmra.mxu0 %v130_v62  ;;  %321 = vmatmul.bf16.vlgmr.msra.gmra.mxu1 %v130_v62 }
 0x122   :  { %335 = vmatmul.bf16.vlgmr.msra.gmra.mxu2 %v130_v62  ;;  %v1835_v62 = vld [vmem:[%s2787_s5 + $0x18] sm:$0xff] }
 0x123   :  { %579 = vmatpush.bf16.msrb.mxu2 %v1835_v62 }
 0x19e   :  { %v308_v16 = vpop.f32.mrf.mxu0  ;;  %v322_v63 = vpop.f32.mrf.mxu1 }
 0x19f   :  { %v323_v5 = vadd.f32 %v322_v63, %v166_v2  ;;  %v309_v14 = vadd.f32 %v308_v16, %v165_v8 }
 0x1a1   :  { %v357_v21 = vmul.f32 0.125, %v309_v14 }
 0x1a5   :  { %v336_v18 = vpop.f32.mrf.mxu2 }
 0x1a6   :  { %v324_v3 = vpop.f32.mrf.mxu1  ;;  %v310_v6 = vpop.f32.mrf.mxu0  ;;  %v337_v17 = vadd.f32 %v336_v18, %v167_v10 }
 0x1a7   :  { %v325_v7 = vadd.f32 %v324_v3, %v166_v2  ;;  %v311_v11 = vadd.f32 %v310_v6, %v165_v8  ;;  %v1834_v8 = vld [vmem:[%s2787_s5 + $0x10] sm:$0xff] }
 0x1a8   :  { %580 = vmatpush.bf16.msrb.mxu2 %v1834_v8  ;;  %v1871_v8 = vld [vmem:[%s2791_s9 + $0xf4] sm:$0xf0] }
 0x1a9   :  { %v360_v9 = vpack.c.bf16 %v325_v7, %v323_v5  ;;  %v358_v19 = vmul.f32 0.125, %v311_v11 }
 0x1ab   :  { %v367_v13 = vsel %vm362_vm8, %v360_v9, 0  ;;  %v359_v23 = vpack.c.bf16 %v358_v19, %v357_v21 }
 0x1ac   :  { %376 = vmatpush.bf16.xpose.msra.mxu3 %v367_v13 }
 0x1ad   :  { %v338_v15 = vpop.f32.mrf.mxu2 }
 0x1ae   :  { %v339_v20 = vadd.f32 %v338_v15, %v167_v10  ;;  %v1832_v10 = vld [vmem:[%s2787_s5] sm:$0xff] }
 0x1b0   :  { %v361_v22 = vpack.c.bf16 %v339_v20, %v337_v17 }
 0x1b2   :  { %v415_v24 = vsel %vm413_vm9, %v361_v22, 0 }
 0x1b3   :  { %1506 = vmatmul.msk.bf16.vlgmr.msra.gmra.mxu3 %vm362_vm8, %v359_v23 }
 0x1b4   :  { %424 = vmatpush.bf16.msrb.mxu3 %v415_v24 }
 0x236   :  { %v378_v41 = vpop.f32.mrf.mxu3 }
 0x237   :  { %v383_v42 = vsel %vm2230_vm10, %v378_v41, -1e+30 }
 0x238   :  { %v386_v43 = vsel %vm385_vm11, %v383_v42, -inf }
 0x239   :  { %387 = vmax.xlane.f32.xlu2 %v386_v43  ;;  %v1836_v43 = vld [vmem:[%s2787_s5 + $0x20] sm:$0xff] }
 0x23e   :  { %v380_v46 = vpop.f32.mrf.mxu3 }
 0x23f   :  { %v384_v47 = vsel %vm2237_vm12, %v380_v46, -1e+30 }
 0x240   :  { %v390_v48 = vsel %vm389_vm13, %v384_v47, -inf }
 0x241   :  { %391 = vmax.xlane.f32.xlu2 %v390_v48 }
 0x259   :  { %436 = vrot.lane.b32.xlu2 %v360_v9, %s1971_s2  ;;  %v1833_v9 = vld [vmem:[%s2787_s5 + $0x8] sm:$0xff] }
 0x25a   :  { %581 = vmatpush.bf16.msrb.mxu2 %v1833_v9 }
 0x25e   :  { %582 = vmatpush.bf16.msrb.mxu2 %v1832_v10 }
 0x2ac   :  { %v388_v49 = vpop.xlane.xlu2 %387 }
 0x2ad   :  { %v393_v50 = vsub.f32 %v383_v42, %v388_v49  ;;  %v1837_v42 = vld [vmem:[%s2787_s5 + $0x28] sm:$0xff] }
 0x2ae   :  { %540 = vmatpush.bf16.msrb.mxu1 %v1837_v42  ;;  %v1858_v42 = vld [vmem:[%s2791_s9 + $0x8c] sm:$0xf0] }
 0x2af   :  { %v395_v51 = vmul.f32 1.442695, %v393_v50  ;;  %v1908_v50 = vld [vmem:[%s2788_s6] ss:$0 sm:$0xff] }
 0x2b1   :  { %1918 = vpow2.f32 %v395_v51 }
 0x2b2   :  { %541 = vmatpush.bf16.msrb.mxu1 %v1836_v43  ;;  %v1856_v43 = vld [vmem:[%s2791_s9 + $0x84] sm:$0xf] }
 0x2b4   :  { %v392_v52 = vpop.xlane.xlu2 %391 }
 0x2b5   :  { %v394_v53 = vsub.f32 %v384_v47, %v392_v52 }
 0x2b7   :  { %v1919_v54 = vpop.eup %1918  ;;  %v397_v55 = vmul.f32 1.442695, %v394_v53 }
 0x2b8   :  { %v399_v56 = vsel %vm385_vm11, %v1919_v54, 0.0 }
 0x2b9   :  { %1920 = vpow2.f32 %v397_v55  ;;  %400 = vadd.xlane.f32.xlu0 %v399_v56 }
 0x2bc   :  { %v437_v57 = vpop.permute.xlu2 %436 }
 0x2bd   :  { %v442_v58 = vsel %vm362_vm8, %v437_v57, 0 }
 0x2be   :  { %451 = vmatpush.bf16.xpose.msra.mxu3 %v442_v58 }
 0x2bf   :  { %v1921_v59 = vpop.eup %1920 }
 0x2c0   :  { %v402_v60 = vsel %vm389_vm13, %v1921_v59, 0.0 }
 0x2c1   :  { %403 = vadd.xlane.f32.xlu1 %v402_v60 }
 0x2cd   :  { %433 = vrot.lane.b32.xlu0 %v359_v23, %s1971_s2 }
 0x2d5   :  { %484 = vrot.lane.b32.xlu0 %v361_v22, %s1971_s2 }
 0x32c   :  { %v401_v61 = vpop.xlane.xlu0 %400 }
 0x32d   :  { %1922 = vrcp.f32 %v401_v61 }
 0x333   :  { %v1923_v63 = vpop.eup %1922 }
 0x334   :  { %v404_v16 = vpop.xlane.xlu1 %403  ;;  %v407_v2 = vmul.f32 %v1923_v63, %v1919_v54 }
 0x335   :  { %1924 = vrcp.f32 %v404_v16 }
 0x33b   :  { %v1925_v0 = vpop.eup %1924 }
 0x33c   :  { %v408_v18 = vmul.f32 %v1925_v0, %v1921_v59 }
 0x33e   :  { %v409_v3 = vpack.c.bf16 %v408_v18, %v407_v2  ;;  %v1658_v2 = vld [vmem:[%s2791_s9 + $0xe0] sm:$0xf]  ;;  %v1870_v18 = vld [vmem:[%s2791_s9 + $0xec] sm:$0xf0] }
 0x33f   :  { %v434_v5 = vpop.permute.xlu0 %433 }
 0x340   :  { %1507 = vmatmul.msk.bf16.vlgmr.msrb.gmra.mxu3 %vm385_vm11, %v409_v3  ;;  %v1868_v3 = vld [vmem:[%s2791_s9 + $0xe4] sm:$0xf] }
 0x347   :  { %v485_v6 = vpop.permute.xlu0 %484 }
 0x348   :  { %v490_v7 = vsel %vm413_vm9, %v485_v6, 0  ;;  %v1660_v6 = vld [vmem:[%s2791_s9 + $0xf0] sm:$0xf0] }
 0x349   :  { %499 = vmatpush.bf16.msrb.mxu0 %v490_v7  ;;  %v1666_v7 = vld [vmem:[%s2791_s9 + $0xe8] sm:$0xf]  ;;  %v1663_v9 = vor.u32 %v1868_v3, %v1660_v6  ;;  %v1850_v3 = vld [vmem:[%s2791_s9 + $0x4c] sm:$0xf0] }
 0x34a   :  { %v1667_v10 = vor.u32 %v1871_v8, %v1666_v7  ;;  %v1580_v7 = vld [vmem:[%s2791_s9 + $0x50] sm:$0xf0]  ;;  %v1586_v8 = vld [vmem:[%s2791_s9 + $0x48] sm:$0xf] }
 0x34c   :  { %882 = vmatpush.bf16.msra.mxu1 %v1667_v10 }
 0x34d   :  { %868 = vmatpush.bf16.msra.mxu0 %v1663_v9  ;;  %v1851_v9 = vld [vmem:[%s2791_s9 + $0x54] sm:$0xf0] }
 0x350   :  { %1508 = vmatmul.msk.bf16.vlgmr.msra.gmra.mxu3 %vm362_vm8, %v434_v5  ;;  %v1659_v5 = vor.u32 %v1870_v18, %v1658_v2  ;;  %v1578_v18 = vld [vmem:[%s2791_s9 + $0x40] sm:$0xf] }
 0x351   :  { %v1579_v6 = vor.u32 %v1850_v3, %v1578_v18  ;;  %v1910_v18 = vld [vmem:[%s2790_s8] ss:$0 sm:$0xff] }
 0x352   :  { %854 = vmatpush.bf16.msrb.mxu3 %v1659_v5  ;;  %v1848_v5 = vld [vmem:[%s2791_s9 + $0x44] sm:$0xf] }
 0x353   :  { %v1583_v10 = vor.u32 %v1848_v5, %v1580_v7 }
 0x3c3   :  { %v426_v11 = vpop.f32.mrf.mxu3 }
 0x3cb   :  { %v428_v13 = vpop.f32.mrf.mxu3 }
 0x3cc   :  { %v431_v14 = vpack.c.bf16 %v428_v13, %v426_v11  ;;  %v1869_v11 = vld [vmem:[%s2791_s9 + $0xec] sm:$0xf]  ;;  %v1668_v13 = vld [vmem:[%s2791_s9 + $0xf8] sm:$0xf0] }
 0x3ce   :  { %1543 = vmatmul.msk.bf16.vlgmr.msrb.gmra.mxu2 %vm362_vm8, %v431_v14  ;;  %v1671_v14 = vor.u32 %v1869_v11, %v1668_v13  ;;  %v1587_v11 = vor.u32 %v1851_v9, %v1586_v8  ;;  %v1849_v13 = vld [vmem:[%s2791_s9 + $0x4c] sm:$0xf]  ;;  %v1887_v9 = vld [vmem:[%s2793_s11 + $0x78] sm:$0xff] }
 0x3d0   :  { %896 = vmatpush.bf16.msra.mxu2 %v1671_v14  ;;  %v1588_v14 = vld [vmem:[%s2791_s9 + $0x58] sm:$0xf0] }
 0x3d3   :  { %v453_v15 = vpop.f32.mrf.mxu3 }
 0x3d4   :  { %v458_v17 = vsel %vm2230_vm10, %v453_v15, -1e+30  ;;  %v1642_v15 = vld [vmem:[%s2791_s9 + $0xc0] sm:$0xf] }
 0x3d5   :  { %v460_v19 = vsel %vm385_vm11, %v458_v17, -inf }
 0x3d6   :  { %461 = vmax.xlane.f32.xlu1 %v460_v19  ;;  %v1864_v19 = vld [vmem:[%s2791_s9 + $0xc4] sm:$0xf] }
 0x3db   :  { %v455_v20 = vpop.f32.mrf.mxu3 }
 0x3dc   :  { %v459_v21 = vsel %vm2237_vm12, %v455_v20, -1e+30 }
 0x3dd   :  { %v463_v22 = vsel %vm389_vm13, %v459_v21, -inf }
 0x3de   :  { %464 = vmax.xlane.f32.xlu1 %v463_v22  ;;  %v1650_v22 = vld [vmem:[%s2791_s9 + $0xc8] sm:$0xf] }
 0x449   :  { %v462_v23 = vpop.xlane.xlu1 %461 }
 0x44a   :  { %v466_v24 = vsub.f32 %v458_v17, %v462_v23  ;;  %v1866_v17 = vld [vmem:[%s2791_s9 + $0xcc] sm:$0xf0]  ;;  %v1867_v23 = vld [vmem:[%s2791_s9 + $0xd4] sm:$0xf0] }
 0x44b   :  { %v1643_v20 = vor.u32 %v1866_v17, %v1642_v15  ;;  %v1591_v15 = vor.u32 %v1849_v13, %v1588_v14  ;;  %v1562_v17 = vld [vmem:[%s2791_s9 + $0x20] sm:$0xf] }
 0x44c   :  { %v468_v25 = vmul.f32 1.442695, %v466_v24 }
 0x44d   :  { %855 = vmatpush.bf16.msrb.mxu3 %v1643_v20  ;;  %v1844_v20 = vld [vmem:[%s2791_s9 + $0x24] sm:$0xf] }
 0x44e   :  { %1926 = vpow2.f32 %v468_v25  ;;  %v1651_v25 = vor.u32 %v1867_v23, %v1650_v22  ;;  %v1564_v23 = vld [vmem:[%s2791_s9 + $0x30] sm:$0xf0] }
 0x450   :  { %883 = vmatpush.bf16.msra.mxu1 %v1651_v25  ;;  %v1847_v25 = vld [vmem:[%s2791_s9 + $0x34] sm:$0xf0] }
 0x451   :  { %v465_v26 = vpop.xlane.xlu1 %464  ;;  %v584_v47 = vpop.f32.mrf.mxu2 }
 0x452   :  { %v467_v27 = vsub.f32 %v459_v21, %v465_v26  ;;  %v1644_v21 = vld [vmem:[%s2791_s9 + $0xd0] sm:$0xf0]  ;;  %v1865_v26 = vld [vmem:[%s2791_s9 + $0xcc] sm:$0xf] }
 0x453   :  { %v1647_v24 = vor.u32 %v1864_v19, %v1644_v21  ;;  %v1846_v19 = vld [vmem:[%s2791_s9 + $0x2c] sm:$0xf0] }
 0x454   :  { %v1927_v28 = vpop.eup %1926  ;;  %v470_v29 = vmul.f32 1.442695, %v467_v27  ;;  %v1652_v27 = vld [vmem:[%s2791_s9 + $0xd8] sm:$0xf0]  ;;  %v1563_v22 = vor.u32 %v1846_v19, %v1562_v17 }
 0x455   :  { %v472_v30 = vsel %vm385_vm11, %v1927_v28, 0.0  ;;  %869 = vmatpush.bf16.msra.mxu0 %v1647_v24  ;;  %v1570_v24 = vld [vmem:[%s2791_s9 + $0x28] sm:$0xf] }
 0x456   :  { %1928 = vpow2.f32 %v470_v29  ;;  %473 = vadd.xlane.f32.xlu1 %v472_v30  ;;  %v1626_v29 = vld [vmem:[%s2791_s9 + $0xa0] sm:$0xf]  ;;  %v1862_v30 = vld [vmem:[%s2791_s9 + $0xac] sm:$0xf0] }
 0x459   :  { %v586_v53 = vpop.f32.mrf.mxu2 }
 0x45c   :  { %v1929_v31 = vpop.eup %1928 }
 0x45d   :  { %v475_v32 = vsel %vm389_vm13, %v1929_v31, 0.0 }
 0x45e   :  { %476 = vadd.xlane.f32.xlu2 %v475_v32  ;;  %v1627_v32 = vor.u32 %v1862_v30, %v1626_v29  ;;  %v1845_v29 = vld [vmem:[%s2791_s9 + $0x2c] sm:$0xf]  ;;  %v1572_v30 = vld [vmem:[%s2791_s9 + $0x38] sm:$0xf0] }
 0x460   :  { %856 = vmatpush.bf16.msrb.mxu3 %v1627_v32  ;;  %v1575_v32 = vor.u32 %v1845_v29, %v1572_v30 }
 0x4c9   :  { %v474_v35 = vpop.xlane.xlu1 %473 }
 0x4ca   :  { %1930 = vrcp.f32 %v474_v35  ;;  %v1863_v35 = vld [vmem:[%s2791_s9 + $0xb4] sm:$0xf0] }
 0x4d0   :  { %v1931_v37 = vpop.eup %1930 }
 0x4d1   :  { %v477_v36 = vpop.xlane.xlu2 %476  ;;  %v480_v39 = vmul.f32 %v1931_v37, %v1927_v28  ;;  %v1655_v28 = vor.u32 %v1865_v26, %v1652_v27  ;;  %v1635_v37 = vor.u32 %v1863_v35, %v1634_v34  ;;  %v1567_v27 = vor.u32 %v1844_v20, %v1564_v23  ;;  %v1840_v34 = vld [vmem:[%s2791_s9 + $0x4] sm:$0xf]  ;;  %v1548_v35 = vld [vmem:[%s2791_s9 + $0x10] sm:$0xf0] }
 0x4d2   :  { %1932 = vrcp.f32 %v477_v36  ;;  %v1886_v20 = vld [vmem:[%s2793_s11 + $0x70] sm:$0xff] }
 0x4d3   :  { %897 = vmatpush.bf16.msra.mxu2 %v1655_v28  ;;  %884 = vmatpush.bf16.msra.mxu1 %v1635_v37  ;;  %v1571_v28 = vor.u32 %v1847_v25, %v1570_v24  ;;  %v1879_v25 = vld [vmem:[%s2793_s11 + $0x38] sm:$0xff] }
 0x4d8   :  { %v1933_v38 = vpop.eup %1932 }
 0x4d9   :  { %v481_v40 = vmul.f32 %v1933_v38, %v1929_v31  ;;  %v1860_v31 = vld [vmem:[%s2791_s9 + $0xa4] sm:$0xf]  ;;  %v1861_v38 = vld [vmem:[%s2791_s9 + $0xac] sm:$0xf] }
 0x4da   :  { %v1631_v36 = vor.u32 %v1860_v31, %v1628_v33  ;;  %v1546_v31 = vld [vmem:[%s2791_s9] sm:$0xf]  ;;  %v1842_v33 = vld [vmem:[%s2791_s9 + $0xc] sm:$0xf0] }
 0x4db   :  { %v482_v41 = vpack.c.bf16 %v481_v40, %v480_v39  ;;  %v1636_v39 = vld [vmem:[%s2791_s9 + $0xb8] sm:$0xf0]  ;;  %v1547_v37 = vor.u32 %v1842_v33, %v1546_v31  ;;  %v1885_v31 = vld [vmem:[%s2793_s11 + $0x68] sm:$0xff] }
 0x4dc   :  { %v1639_v40 = vor.u32 %v1861_v38, %v1636_v39  ;;  %870 = vmatpush.bf16.msra.mxu0 %v1631_v36  ;;  %v1551_v38 = vor.u32 %v1840_v34, %v1548_v35  ;;  %v1554_v39 = vld [vmem:[%s2791_s9 + $0x8] sm:$0xf] }
 0x4dd   :  { %1509 = vmatmul.msk.bf16.vlgmr.msrb.gmra.mxu0 %vm385_vm11, %v482_v41  ;;  %v1610_v41 = vld [vmem:[%s2791_s9 + $0x80] sm:$0xf] }
 0x4de   :  { %898 = vmatpush.bf16.msra.mxu2 %v1639_v40  ;;  %v1843_v40 = vld [vmem:[%s2791_s9 + $0x14] sm:$0xf0] }
 0x55a   :  { %v501_v44 = vpop.f32.mrf.mxu0 }
 0x562   :  { %v503_v45 = vpop.f32.mrf.mxu0 }
 0x563   :  { %v506_v46 = vpack.c.bf16 %v503_v45, %v501_v44  ;;  %v1611_v44 = vor.u32 %v1858_v42, %v1610_v41  ;;  %v1612_v45 = vld [vmem:[%s2791_s9 + $0x90] sm:$0xf0]  ;;  %v1555_v41 = vor.u32 %v1843_v40, %v1554_v39  ;;  %v1841_v42 = vld [vmem:[%s2791_s9 + $0xc] sm:$0xf] }
 0x564   :  { %v1902_v39 = vld [vmem:[%s2793_s11 + $0xf0] sm:$0xff] }
 0x565   :  { %1526 = vmatmul.msk.bf16.vlgmr.msrb.gmra.mxu1 %vm362_vm8, %v506_v46  ;;  %v1618_v46 = vld [vmem:[%s2791_s9 + $0x88] sm:$0xf]  ;;  %857 = vmatpush.bf16.msrb.mxu3 %v1611_v44 }
 0x5e2   :  { %v543_v48 = vpop.f32.mrf.mxu1 }
 0x5e3   :  { %v585_v49 = vadd.f32 %v584_v47, %v543_v48  ;;  %v1859_v47 = vld [vmem:[%s2791_s9 + $0x94] sm:$0xf0]  ;;  %v1615_v48 = vor.u32 %v1856_v43, %v1612_v45  ;;  %v1556_v43 = vld [vmem:[%s2791_s9 + $0x18] sm:$0xf0] }
 0x5e4   :  { %v1559_v44 = vor.u32 %v1841_v42, %v1556_v43 }
 0x5e5   :  { %v589_v51 = vadd.f32 %v585_v49, %v2052_v4  ;;  %v1619_v49 = vor.u32 %v1859_v47, %v1618_v46  ;;  %871 = vmatpush.bf16.msra.mxu0 %v1615_v48 }
 0x5e7   :  { %v2289_v52 = vadd.f32 %v1908_v50, %v589_v51  ;;  %v1620_v51 = vld [vmem:[%s2791_s9 + $0x98] sm:$0xf0]  ;;  %885 = vmatpush.bf16.msra.mxu1 %v1619_v49 }
 0x5e9   :  { %597 = vadd.xlane.f32.xlu0 %v2289_v52 }
 0x5ea   :  { %v545_v54 = vpop.f32.mrf.mxu1 }
 0x5eb   :  { %v587_v55 = vadd.f32 %v586_v53, %v545_v54  ;;  %v1594_v54 = vld [vmem:[%s2791_s9 + $0x60] sm:$0xf] }
 0x5ed   :  { %v590_v56 = vadd.f32 %v587_v55, %v2045_v1  ;;  %v1854_v55 = vld [vmem:[%s2791_s9 + $0x6c] sm:$0xf0] }
 0x5ef   :  { %v2293_v57 = vadd.f32 %v1908_v50, %v590_v56  ;;  %v1857_v50 = vld [vmem:[%s2791_s9 + $0x8c] sm:$0xf]  ;;  %v1852_v56 = vld [vmem:[%s2791_s9 + $0x64] sm:$0xf] }
 0x5f0   :  { %v1623_v53 = vor.u32 %v1857_v50, %v1620_v51 }
 0x5f1   :  { %v599_v58 = vsel %vm70_vm0, %v2293_v57, 0.0 }
 0x5f2   :  { %600 = vadd.xlane.f32.xlu1 %v599_v58  ;;  %899 = vmatpush.bf16.msra.mxu2 %v1623_v53  ;;  %v1595_v58 = vor.u32 %v1854_v55, %v1594_v54 }
 0x5f4   :  { %858 = vmatpush.bf16.msrb.mxu3 %v1595_v58 }
 0x5f8   :  { %859 = vmatpush.bf16.msrb.mxu3 %v1579_v6 }
 0x5fc   :  { %860 = vmatpush.bf16.msrb.mxu3 %v1563_v22 }
 0x600   :  { %861 = vmatpush.bf16.msrb.mxu3 %v1547_v37 }
 0x604   :  { %1338 = vmatpush.bf16.msra.mxu3 %v1879_v25 }
 0x65c   :  { %v598_v59 = vpop.xlane.xlu0 %597 }
 0x65d   :  { %v602_v60 = vmul.f32 %v598_v59, %v2055_v12  ;;  %v1596_v59 = vld [vmem:[%s2791_s9 + $0x70] sm:$0xf0] }
 0x65f   :  { %v2299_v4 = vsub.f32 %v2289_v52, %v602_v60  ;;  %v1602_v60 = vld [vmem:[%s2791_s9 + $0x68] sm:$0xf] }
 0x661   :  { %v606_v61 = vmul.f32 %v2299_v4, %v2299_v4 }
 0x663   :  { %608 = vadd.xlane.f32.xlu1 %v606_v61  ;;  %v1855_v61 = vld [vmem:[%s2791_s9 + $0x74] sm:$0xf0] }
 0x665   :  { %v601_v62 = vpop.xlane.xlu1 %600 }
 0x666   :  { %v603_v16 = vmul.f32 %v601_v62, %v2055_v12  ;;  %v1599_v62 = vor.u32 %v1852_v56, %v1596_v59 }
 0x668   :  { %v2305_v1 = vsub.f32 %v2293_v57, %v603_v16  ;;  %v1603_v16 = vor.u32 %v1855_v61, %v1602_v60  ;;  %872 = vmatpush.bf16.msra.mxu0 %v1599_v62 }
 0x66a   :  { %v607_v63 = vmul.f32 %v2305_v1, %v2305_v1  ;;  %886 = vmatpush.bf16.msra.mxu1 %v1603_v16 }
 0x66c   :  { %v610_v0 = vsel %vm70_vm0, %v607_v63, 0.0  ;;  %v1853_v63 = vld [vmem:[%s2791_s9 + $0x6c] sm:$0xf]  ;;  %873 = vmatpush.bf16.msra.mxu0 %v1583_v10  ;;  %v1895_v10 = vld [vmem:[%s2793_s11 + $0xb8] sm:$0xff] }
 0x66d   :  { %611 = vadd.xlane.f32.xlu1 %v610_v0  ;;  %v1604_v0 = vld [vmem:[%s2791_s9 + $0x78] sm:$0xf0] }
 0x66e   :  { %v1607_v2 = vor.u32 %v1853_v63, %v1604_v0  ;;  %887 = vmatpush.bf16.msra.mxu1 %v1587_v11 }
 0x670   :  { %900 = vmatpush.bf16.msra.mxu2 %v1607_v2  ;;  %874 = vmatpush.bf16.msra.mxu0 %v1567_v27 }
 0x672   :  { %888 = vmatpush.bf16.msra.mxu1 %v1571_v28 }
 0x674   :  { %901 = vmatpush.bf16.msra.mxu2 %v1591_v15  ;;  %875 = vmatpush.bf16.msra.mxu0 %v1551_v38  ;;  %v1878_v38 = vld [vmem:[%s2793_s11 + $0x30] sm:$0xff] }
 0x675   :  { %1339 = vmatpush.bf16.msra.mxu3 %v1878_v38  ;;  %v1873_v38 = vld [vmem:[%s2793_s11 + $0x8] sm:$0xff] }
 0x676   :  { %889 = vmatpush.bf16.msra.mxu1 %v1555_v41 }
 0x678   :  { %902 = vmatpush.bf16.msra.mxu2 %v1575_v32  ;;  %1352 = vmatpush.bf16.msrb.mxu0 %v1887_v9  ;;  %v1893_v32 = vld [vmem:[%s2793_s11 + $0xa8] sm:$0xff] }
 0x67a   :  { %1366 = vmatpush.bf16.msrb.mxu1 %v1895_v10  ;;  %v1881_v10 = vld [vmem:[%s2793_s11 + $0x48] sm:$0xff] }
 0x67c   :  { %903 = vmatpush.bf16.msra.mxu2 %v1559_v44  ;;  %1353 = vmatpush.bf16.msrb.mxu0 %v1886_v20  ;;  %v1884_v44 = vld [vmem:[%s2793_s11 + $0x60] sm:$0xff] }
 0x680   :  { %1354 = vmatpush.bf16.msrb.mxu0 %v1885_v31  ;;  %v1888_v31 = vld [vmem:[%s2793_s11 + $0x80] sm:$0xff] }
 0x684   :  { %1355 = vmatpush.bf16.msrb.mxu0 %v1884_v44 }
 0x6d6   :  { %v609_v21 = vpop.xlane.xlu1 %608 }
 0x6d7   :  { %v613_v26 = vmul.f32 %v609_v21, %v2055_v12  ;;  %v1894_v21 = vld [vmem:[%s2793_s11 + $0xb0] sm:$0xff] }
 0x6d8   :  { %1367 = vmatpush.bf16.msrb.mxu1 %v1894_v21 }
 0x6d9   :  { %v615_v36 = vadd.f32 1e-05, %v613_v26  ;;  %v1903_v26 = vld [vmem:[%s2793_s11 + $0xf8] sm:$0xff] }
 0x6da   :  { %1380 = vmatpush.bf16.msrb.mxu2 %v1903_v26  ;;  %v1898_v26 = vld [vmem:[%s2793_s11 + $0xd0] sm:$0xff] }
 0x6db   :  { %1934 = vrsqrt.f32 %v615_v36  ;;  %vm623_vm15 = vweird.f32 %v615_v36 }
 0x6dc   :  { %1368 = vmatpush.bf16.msrb.mxu1 %v1893_v32 }
 0x6de   :  { %1381 = vmatpush.bf16.msrb.mxu2 %v1902_v39  ;;  %v1897_v39 = vld [vmem:[%s2793_s11 + $0xc8] sm:$0xff] }
 0x6e0   :  { %v612_v45 = vpop.xlane.xlu1 %611 }
 0x6e1   :  { %v1935_v46 = vpop.eup %1934  ;;  %v614_v47 = vmul.f32 %v612_v45, %v2055_v12  ;;  %v1909_v12 = vld [vmem:[%s2789_s7] ss:$0 sm:$0xff] }
 0x6e2   :  { %v618_v48 = vmul.f32 %v1935_v46, %v615_v36  ;;  %vm624_vm14 = vweird.f32 %v1935_v46  ;;  %v1892_v45 = vld [vmem:[%s2793_s11 + $0xa0] sm:$0xff] }
 0x6e3   :  { %v616_v49 = vadd.f32 1e-05, %v614_v47  ;;  %vm625_vm0 = vmor %vm623_vm15, %vm624_vm14  ;;  %1369 = vmatpush.bf16.msrb.mxu1 %v1892_v45 }
 0x6e4   :  { %v619_v50 = vmul.f32 %v1935_v46, %v618_v48 }
 0x6e5   :  { %1936 = vrsqrt.f32 %v616_v49  ;;  %vm633_vm2 = vweird.f32 %v616_v49 }
 0x6e6   :  { %v620_v51 = vmul.f32 0.5, %v619_v50  ;;  %v1901_v50 = vld [vmem:[%s2793_s11 + $0xe8] sm:$0xff] }
 0x6e7   :  { %1382 = vmatpush.bf16.msrb.mxu2 %v1901_v50  ;;  %v1896_v50 = vld [vmem:[%s2793_s11 + $0xc0] sm:$0xff] }
 0x6e8   :  { %v621_v53 = vsub.f32 1.5, %v620_v51 }
 0x6ea   :  { %v622_v55 = vmul.f32 %v1935_v46, %v621_v53 }
 0x6eb   :  { %v1937_v54 = vpop.eup %1936 }
 0x6ec   :  { %v628_v56 = vmul.f32 %v1937_v54, %v616_v49  ;;  %v626_v59 = vsel %vm625_vm0, %v1935_v46, %v622_v55  ;;  %vm634_vm1 = vweird.f32 %v1937_v54  ;;  %v1877_v49 = vld [vmem:[%s2793_s11 + $0x28] sm:$0xff] }
 0x6ed   :  { %v637_v62 = vmul.f32 %v626_v59, %v2299_v4  ;;  %vm635_vm3 = vmor %vm633_vm2, %vm634_vm1  ;;  %v2515_v4 = vld [vmem:[%s2792_s10] sm:$0xf]  ;;  %1340 = vmatpush.bf16.msra.mxu3 %v1877_v49 }
 0x6ee   :  { %v629_v58 = vmul.f32 %v1937_v54, %v628_v56  ;;  %v688_v8 = vperm.slane %v2515_v4, 2  ;;  %v686_v19 = vperm.slane %v2515_v4, 0  ;;  %v689_v23 = vperm.slane %v2515_v4, 3  ;;  %v1872_v49 = vld [vmem:[%s2793_s11] sm:$0xff] }
 0x6ef   :  { %v643_v2 = vmul.f32 %v1909_v12, %v637_v62  ;;  %v1876_v62 = vld [vmem:[%s2793_s11 + $0x20] sm:$0xff] }
 0x6f0   :  { %v630_v60 = vmul.f32 0.5, %v629_v58 }
 0x6f1   :  { %v649_v5 = vadd.f32 %v1910_v18, %v643_v2  ;;  %1341 = vmatpush.bf16.msra.mxu3 %v1876_v62  ;;  %v1890_v2 = vld [vmem:[%s2793_s11 + $0x90] sm:$0xff] }
 0x6f2   :  { %v631_v61 = vsub.f32 1.5, %v630_v60  ;;  %v1883_v60 = vld [vmem:[%s2793_s11 + $0x58] sm:$0xff] }
 0x6f3   :  { %1356 = vmatpush.bf16.msrb.mxu0 %v1883_v60 }
 0x6f4   :  { %v632_v16 = vmul.f32 %v1937_v54, %v631_v61  ;;  %v1891_v61 = vld [vmem:[%s2793_s11 + $0x98] sm:$0xff] }
 0x6f5   :  { %1370 = vmatpush.bf16.msrb.mxu1 %v1891_v61 }
 0x6f6   :  { %v636_v63 = vsel %vm635_vm3, %v1937_v54, %v632_v16 }
 0x6f7   :  { %v638_v0 = vmul.f32 %v636_v63, %v2305_v1  ;;  %v687_v1 = vperm.slane %v2515_v4, 1 }
 0x6f9   :  { %v644_v3 = vmul.f32 %v1909_v12, %v638_v0  ;;  %v1900_v12 = vld [vmem:[%s2793_s11 + $0xe0] sm:$0xff]  ;;  %v1882_v0 = vld [vmem:[%s2793_s11 + $0x50] sm:$0xff]  ;;  %1371 = vmatpush.bf16.msrb.mxu1 %v1890_v2 }
 0x6fa   :  { %1383 = vmatpush.bf16.msrb.mxu2 %v1900_v12  ;;  %1357 = vmatpush.bf16.msrb.mxu0 %v1882_v0 }
 0x6fb   :  { %v650_v6 = vadd.f32 %v1910_v18, %v644_v3 }
 0x6fd   :  { %v651_v7 = vpack.c.bf16 %v650_v6, %v649_v5  ;;  %v1875_v5 = vld [vmem:[%s2793_s11 + $0x18] sm:$0xff] }
 0x6fe   :  { %v1899_v6 = vld [vmem:[%s2793_s11 + $0xd8] sm:$0xff]  ;;  %1342 = vmatpush.bf16.msra.mxu3 %v1875_v5  ;;  %1358 = vmatpush.bf16.msrb.mxu0 %v1881_v10 }
 0x6ff   :  { %862 = vmatmul.bf16.vlgmr.msrb.gmra.mxu3 %v651_v7  ;;  %876 = vmatmul.bf16.vlgmr.msra.gmra.mxu0 %v651_v7 }
 0x700   :  { %890 = vmatmul.bf16.vlgmr.msra.gmra.mxu1 %v651_v7  ;;  %904 = vmatmul.bf16.vlgmr.msra.gmra.mxu2 %v651_v7 }
 0x701   :  { %1384 = vmatpush.bf16.msrb.mxu2 %v1899_v6 }
 0x705   :  { %1385 = vmatpush.bf16.msrb.mxu2 %v1898_v26 }
 0x709   :  { %1386 = vmatpush.bf16.msrb.mxu2 %v1897_v39 }
 0x70d   :  { %1387 = vmatpush.bf16.msrb.mxu2 %v1896_v50 }
 0x77c   :  { %v877_v11 = vpop.f32.mrf.mxu0 }
 0x77d   :  { %v2525_v13 = vadd.f32 %v877_v11, %v687_v1  ;;  %v891_v14 = vpop.f32.mrf.mxu1  ;;  %v1889_v11 = vld [vmem:[%s2793_s11 + $0x88] sm:$0xff] }
 0x77e   :  { %v2527_v15 = vadd.f32 %v891_v14, %v688_v8  ;;  %1372 = vmatpush.bf16.msrb.mxu1 %v1889_v11 }
 0x77f   :  { %v1673_v17 = vmul.f32 -1.702, %v2525_v13 }
 0x780   :  { %v1674_v22 = vmul.f32 -1.702, %v2527_v15 }
 0x781   :  { %v928_v24 = vmul.f32 1.442695, %v1673_v17 }
 0x782   :  { %v930_v27 = vmul.f32 1.442695, %v1674_v22  ;;  %v863_v28 = vpop.f32.mrf.mxu3  ;;  %1373 = vmatpush.bf16.msrb.mxu1 %v1888_v31 }
 0x783   :  { %1938 = vpow2.f32 %v928_v24  ;;  %v2545_v29 = vadd.f32 %v863_v28, %v686_v19  ;;  %v905_v30 = vpop.f32.mrf.mxu2  ;;  %v1874_v24 = vld [vmem:[%s2793_s11 + $0x10] sm:$0xff] }
 0x784   :  { %1940 = vpow2.f32 %v930_v27  ;;  %v2555_v33 = vadd.f32 %v905_v30, %v689_v23  ;;  %v879_v34 = vpop.f32.mrf.mxu0  ;;  %1343 = vmatpush.bf16.msra.mxu3 %v1874_v24  ;;  %v1880_v30 = vld [vmem:[%s2793_s11 + $0x40] sm:$0xff] }
 0x785   :  { %v1672_v35 = vmul.f32 -1.702, %v2545_v29  ;;  %v2558_v36 = vadd.f32 %v879_v34, %v687_v1  ;;  %v893_v37 = vpop.f32.mrf.mxu1  ;;  %1359 = vmatpush.bf16.msrb.mxu0 %v1880_v30 }
 0x786   :  { %v1675_v40 = vmul.f32 -1.702, %v2555_v33  ;;  %v2567_v41 = vadd.f32 %v893_v37, %v688_v8 }
 0x787   :  { %v926_v42 = vmul.f32 1.442695, %v1672_v35  ;;  %v1677_v43 = vmul.f32 -1.702, %v2558_v36 }
 0x788   :  { %v1678_v46 = vmul.f32 -1.702, %v2567_v41  ;;  %v932_v58 = vmul.f32 1.442695, %v1675_v40  ;;  %1344 = vmatpush.bf16.msra.mxu3 %v1873_v38 }
 0x789   :  { %v1939_v47 = vpop.eup %1938  ;;  %1942 = vpow2.f32 %v926_v42  ;;  %v936_v48 = vmul.f32 1.442695, %v1677_v43 }
 0x78a   :  { %v1941_v51 = vpop.eup %1940  ;;  %v2583_v53 = vadd.f32 1.0, %v1939_v47  ;;  %v938_v54 = vmul.f32 1.442695, %v1678_v46  ;;  %v865_v55 = vpop.f32.mrf.mxu3 }
 0x78b   :  { %v2585_v56 = vadd.f32 1.0, %v1941_v51  ;;  %1944 = vpow2.f32 %v936_v48  ;;  %v2587_v59 = vadd.f32 %v865_v55, %v686_v19  ;;  %v907_v22 = vpop.f32.mrf.mxu2 }
 0x78c   :  { %1946 = vrcp.f32 %v2583_v53  ;;  %v2657_v35 = vadd.f32 %v907_v22, %v689_v23  ;;  %v974_v37 = vand.u32 2147483647, %v2583_v53  ;;  %v976_v40 = vand.u32 2147483648, %v2583_v53  ;;  %1345 = vmatpush.bf16.msra.mxu3 %v1872_v49 }
 0x78d   :  { %1948 = vrcp.f32 %v2585_v56  ;;  %v1676_v16 = vmul.f32 -1.702, %v2587_v59  ;;  %v989_v4 = vand.u32 2147483647, %v2585_v56  ;;  %v991_v45 = vand.u32 2147483648, %v2585_v56 }
 0x78e   :  { %1950 = vpow2.f32 %v938_v54  ;;  %v1679_v46 = vmul.f32 -1.702, %v2657_v35  ;;  %vm970_vm5 = vweird.f32 %v2583_v53  ;;  %vm2678_vm6 = vcmp.eq.f32.partialorder %v974_v37, 8.507059e+37 }
 0x78f   :  { %v1943_v63 = vpop.eup %1942  ;;  %1952 = vpow2.f32 %v932_v58  ;;  %v934_v1 = vmul.f32 1.442695, %v1676_v16  ;;  %vm985_vm7 = vweird.f32 %v2585_v56  ;;  %vm2696_vm10 = vcmp.eq.f32.partialorder %v989_v4, 8.507059e+37 }
 0x790   :  { %v2610_v18 = vadd.f32 1.0, %v1943_v63  ;;  %v992_v16 = vor.u32 1.1754944e-38, %v991_v45  ;;  %v940_v2 = vmul.f32 1.442695, %v1679_v46 }
 0x791   :  { %v1945_v3 = vpop.eup %1944 }
 0x792   :  { %v2618_v7 = vpop.eup %1946  ;;  %1954 = vrcp.f32 %v2610_v18  ;;  %v2633_v21 = vadd.f32 1.0, %v1945_v3 }
 0x793   :  { %v2621_v8 = vpop.eup %1948  ;;  %v966_v9 = vmul.f32 %v2618_v7, %v2583_v53  ;;  %1956 = vpow2.f32 %v934_v1  ;;  %vm971_vm4 = vweird.f32 %v2618_v7  ;;  %v977_v53 = vor.u32 1.1754944e-38, %v976_v40 }
 0x794   :  { %v1951_v14 = vpop.eup %1950  ;;  %v981_v17 = vmul.f32 %v2621_v8, %v2585_v56  ;;  %1958 = vrcp.f32 %v2633_v21  ;;  %vm2691_vm8 = vmor %vm970_vm5, %vm971_vm4  ;;  %vm986_vm9 = vweird.f32 %v2621_v8  ;;  %vm1030_vm11 = vweird.f32 %v2633_v21 }
 0x795   :  { %v1953_v19 = vpop.eup %1952  ;;  %v967_v20 = vsub.f32 1.0, %v966_v9  ;;  %v2638_v25 = vadd.f32 1.0, %v1951_v14  ;;  %v1034_v3 = vand.u32 2147483647, %v2633_v21  ;;  %v1036_v5 = vand.u32 2147483648, %v2633_v21  ;;  %vm2720_vm12 = vmor %vm985_vm7, %vm986_vm9 }
 0x796   :  { %v982_v28 = vsub.f32 1.0, %v981_v17  ;;  %v2653_v34 = vadd.f32 1.0, %v1953_v19  ;;  %vm955_vm5 = vweird.f32 %v2610_v18  ;;  %v961_v40 = vand.u32 2147483648, %v2610_v18 }
 0x797   :  { %v968_v27 = vmul.f32 %v2618_v7, %v967_v20  ;;  %1960 = vrcp.f32 %v2638_v25  ;;  %v1049_v17 = vand.u32 2147483647, %v2638_v25  ;;  %v1051_v19 = vand.u32 2147483648, %v2638_v25 }
 0x798   :  { %v2651_v32 = vpop.eup %1954  ;;  %v983_v42 = vmul.f32 %v2621_v8, %v982_v28  ;;  %1962 = vrcp.f32 %v2653_v34  ;;  %vm1035_vm1 = vcmp.eq.f32.partialorder %v1034_v3, 8.507059e+37  ;;  %vm1045_vm2 = vweird.f32 %v2638_v25 }
 0x799   :  { %v969_v23 = vadd.f32 %v2618_v7, %v968_v27  ;;  %v951_v43 = vmul.f32 %v2651_v32, %v2610_v18  ;;  %v1957_v44 = vpop.eup %1956  ;;  %vm956_vm15 = vweird.f32 %v2651_v32  ;;  %v1052_v38 = vor.u32 1.1754944e-38, %v1051_v19 }
 0x79a   :  { %v1959_v47 = vpop.eup %1958  ;;  %v984_v61 = vadd.f32 %v2621_v8, %v983_v42  ;;  %v2705_v12 = vadd.f32 1.0, %v1957_v44  ;;  %vm1050_vm4 = vcmp.eq.f32.partialorder %v1049_v17, 8.507059e+37  ;;  %v962_v51 = vor.u32 1.1754944e-38, %v961_v40 }
 0x79b   :  { %v1026_v55 = vmul.f32 %v1959_v47, %v2633_v21  ;;  %v973_v60 = vsel %vm2691_vm8, %v2618_v7, %v969_v23  ;;  %v952_v62 = vsub.f32 1.0, %v951_v43  ;;  %vm1031_vm13 = vweird.f32 %v1959_v47 }
 0x79c   :  { %1964 = vrcp.f32 %v2705_v12  ;;  %v978_v7 = vsel %vm2678_vm6, %v977_v53, %v973_v60  ;;  %v988_v11 = vsel %vm2720_vm12, %v2621_v8, %v984_v61  ;;  %vm1032_vm0 = vmor %vm1030_vm11, %vm1031_vm13  ;;  %v1037_v8 = vor.u32 1.1754944e-38, %v1036_v5 }
 0x79d   :  { %v1961_v58 = vpop.eup %1960  ;;  %v1027_v63 = vsub.f32 1.0, %v1026_v55  ;;  %v953_v14 = vmul.f32 %v2651_v32, %v952_v62  ;;  %1966 = vpow2.f32 %v940_v2  ;;  %v1071_v24 = vmul.f32 %v978_v7, %v2525_v13  ;;  %vm2749_vm6 = vmor %vm955_vm5, %vm956_vm15 }
 0x79e   :  { %v1041_v0 = vmul.f32 %v1961_v58, %v2638_v25  ;;  %v2712_v6 = vpop.eup %1962  ;;  %vm1046_vm14 = vweird.f32 %v1961_v58  ;;  %v993_v30 = vsel %vm2696_vm10, %v992_v16, %v988_v11  ;;  %v959_v25 = vand.u32 2147483647, %v2610_v18 }
 0x79f   :  { %v1028_v9 = vmul.f32 %v1959_v47, %v1027_v63  ;;  %v996_v56 = vmul.f32 %v2712_v6, %v2653_v34  ;;  %v954_v31 = vadd.f32 %v2651_v32, %v953_v14  ;;  %vm1047_vm3 = vmor %vm1045_vm2, %vm1046_vm14  ;;  %v1072_v42 = vmul.f32 %v993_v30, %v2527_v15 }
 0x7a0   :  { %v1042_v10 = vsub.f32 1.0, %v1041_v0  ;;  %v1021_v18 = vand.u32 2147483648, %v2705_v12  ;;  %v1019_v50 = vand.u32 2147483647, %v2705_v12  ;;  %vm960_vm8 = vcmp.eq.f32.partialorder %v959_v25, 8.507059e+37 }
 0x7a1   :  { %v1029_v20 = vadd.f32 %v1959_v47, %v1028_v9  ;;  %v958_v46 = vsel %vm2749_vm6, %v2651_v32, %v954_v31  ;;  %vm1015_vm9 = vweird.f32 %v2705_v12  ;;  %vm1001_vm12 = vweird.f32 %v2712_v6  ;;  %v1911_v31 = vld [vmem:[%s2794_s12] ss:$0 sm:$0xff] }
 0x7a2   :  { %v1043_v22 = vmul.f32 %v1961_v58, %v1042_v10  ;;  %v1965_v28 = vpop.eup %1964  ;;  %v1022_v32 = vor.u32 1.1754944e-38, %v1021_v18  ;;  %vm1020_vm11 = vcmp.eq.f32.partialorder %v1019_v50, 8.507059e+37  ;;  %v1006_v0 = vand.u32 2147483648, %v2653_v34 }
 0x7a3   :  { %v1033_v26 = vsel %vm1032_vm0, %v1959_v47, %v1029_v20  ;;  %v1011_v13 = vmul.f32 %v1965_v28, %v2705_v12  ;;  %v1967_v23 = vpop.eup %1966  ;;  %v997_v47 = vsub.f32 1.0, %v996_v56  ;;  %vm1016_vm7 = vweird.f32 %v1965_v28 }
 0x7a4   :  { %v1044_v27 = vadd.f32 %v1961_v58, %v1043_v22  ;;  %v1038_v37 = vsel %vm1035_vm1, %v1037_v8, %v1033_v26  ;;  %v949_v48 = vadd.f32 1.0, %v1967_v23  ;;  %vm1017_vm10 = vmor %vm1015_vm9, %vm1016_vm7  ;;  %vm1000_vm13 = vweird.f32 %v2653_v34 }
 0x7a5   :  { %v1075_v21 = vmul.f32 %v1038_v37, %v2558_v36  ;;  %v1012_v45 = vsub.f32 1.0, %v1011_v13  ;;  %v998_v54 = vmul.f32 %v2712_v6, %v997_v47  ;;  %v1004_v2 = vand.u32 2147483647, %v2653_v34  ;;  %vm1002_vm14 = vmor %vm1000_vm13, %vm1001_vm12 }
 0x7a6   :  { %v1048_v39 = vsel %vm1047_vm3, %v1961_v58, %v1044_v27  ;;  %1968 = vrcp.f32 %v949_v48  ;;  %v1066_v5 = vand.u32 2147483648, %v949_v48  ;;  %v1064_v7 = vand.u32 2147483647, %v949_v48 }
 0x7a7   :  { %v1053_v4 = vsel %vm1050_vm4, %v1052_v38, %v1048_v39  ;;  %v1079_v36 = vpack.c.bf16 %v1075_v21, %v1071_v24  ;;  %v1013_v15 = vmul.f32 %v1965_v28, %v1012_v45  ;;  %v999_v16 = vadd.f32 %v2712_v6, %v998_v54 }
 0x7a8   :  { %v1076_v44 = vmul.f32 %v1053_v4, %v2567_v41  ;;  %v963_v41 = vsel %vm960_vm8, %v962_v51, %v958_v46  ;;  %v1007_v1 = vor.u32 1.1754944e-38, %v1006_v0  ;;  %vm1005_vm0 = vcmp.eq.f32.partialorder %v1004_v2, 8.507059e+37 }
 0x7a9   :  { %1360 = vmatmul.bf16.vlgmr.msrb.gmra.mxu0 %v1079_v36  ;;  %v1014_v53 = vadd.f32 %v1965_v28, %v1013_v15  ;;  %v1070_v60 = vmul.f32 %v963_v41, %v2545_v29  ;;  %v1003_v29 = vsel %vm1002_vm14, %v2712_v6, %v999_v16  ;;  %vm1060_vm1 = vweird.f32 %v949_v48 }
 0x7aa   :  { %v1080_v49 = vpack.c.bf16 %v1076_v44, %v1072_v42  ;;  %v1008_v10 = vsel %vm1005_vm0, %v1007_v1, %v1003_v29  ;;  %v1067_v11 = vor.u32 1.1754944e-38, %v1066_v5  ;;  %vm1065_vm3 = vcmp.eq.f32.partialorder %v1064_v7, 8.507059e+37 }
 0x7ab   :  { %v1018_v55 = vsel %vm1017_vm10, %v1965_v28, %v1014_v53  ;;  %v1073_v34 = vmul.f32 %v1008_v10, %v2555_v33 }
 0x7ac   :  { %1374 = vmatmul.bf16.vlgmr.msrb.gmra.mxu1 %v1080_v49  ;;  %v1023_v58 = vsel %vm1020_vm11, %v1022_v32, %v1018_v55  ;;  %v1969_v62 = vpop.eup %1968 }
 0x7ad   :  { %v1074_v61 = vmul.f32 %v1023_v58, %v2587_v59  ;;  %v1056_v12 = vmul.f32 %v1969_v62, %v949_v48  ;;  %vm1061_vm15 = vweird.f32 %v1969_v62 }
 0x7ae   :  { %vm1062_vm2 = vmor %vm1060_vm1, %vm1061_vm15 }
 0x7af   :  { %v1078_v63 = vpack.c.bf16 %v1074_v61, %v1070_v60  ;;  %v1057_v3 = vsub.f32 1.0, %v1056_v12 }
 0x7b1   :  { %1346 = vmatmul.bf16.vlgmr.msra.gmra.mxu3 %v1078_v63  ;;  %v1058_v59 = vmul.f32 %v1969_v62, %v1057_v3 }
 0x7b3   :  { %v1059_v9 = vadd.f32 %v1969_v62, %v1058_v59 }
 0x7b5   :  { %v1063_v14 = vsel %vm1062_vm2, %v1969_v62, %v1059_v9 }
 0x7b6   :  { %v1068_v17 = vsel %vm1065_vm3, %v1067_v11, %v1063_v14 }
 0x7b7   :  { %v1077_v19 = vmul.f32 %v1068_v17, %v2657_v35 }
 0x7b9   :  { %v1081_v20 = vpack.c.bf16 %v1077_v19, %v1073_v34 }
 0x7bb   :  { %1388 = vmatmul.bf16.vlgmr.msrb.gmra.mxu2 %v1081_v20 }
 0x826   :  { %v1361_v22 = vpop.f32.mrf.mxu0 }
 0x829   :  { %v1375_v8 = vpop.f32.mrf.mxu1 }
 0x82e   :  { %v1363_v27 = vpop.f32.mrf.mxu0 }
 0x831   :  { %v1377_v38 = vpop.f32.mrf.mxu1 }
 0x834   :  { %v1347_v6 = vpop.f32.mrf.mxu3 }
 0x835   :  { %v1362_v56 = vadd.f32 %v1361_v22, %v1347_v6 }
 0x837   :  { %v1376_v24 = vadd.f32 %v1375_v8, %v1362_v56 }
 0x83c   :  { %v1349_v26 = vpop.f32.mrf.mxu3 }
 0x83d   :  { %v1364_v37 = vadd.f32 %v1363_v27, %v1349_v26 }
 0x83e   :  { %v1389_v28 = vpop.f32.mrf.mxu2 }
 0x83f   :  { %v1390_v30 = vadd.f32 %v1389_v28, %v1376_v24  ;;  %v1378_v21 = vadd.f32 %v1377_v38, %v1364_v37 }
 0x841   :  { %v1394_v33 = vadd.f32 %v1390_v30, %v2289_v52 }
 0x843   :  { %v1400_v35 = vadd.f32 %v1911_v31, %v1394_v33 }
 0x845   :  { %v1402_v39 = vpack.c.bf16 %v1400_v35, %v1400_v35 }
 0x846   :  { %v1391_v13 = vpop.f32.mrf.mxu2 }
 0x847   :  { %1404 = vst [vmem:[%s2795_s13] sm:$0xf] %v1402_v39  ;;  %v1392_v25 = vadd.f32 %v1391_v13, %v1378_v21 }
 0x849   :  { %v1395_v40 = vadd.f32 %v1392_v25, %v2293_v57 }
 0x84b   :  { %v1401_v4 = vadd.f32 %v1911_v31, %v1395_v40 }
 0x84d   :  { %v1403_v23 = vpack.c.bf16 %v1401_v4, %v1401_v4 }
 0x84f   :  { %1405 = vst [vmem:[%s2795_s13 + $0x4] sm:$0x1] %v1403_v23 }

// kernel: dino_v2_a_forward.8
= control target key start
LH: loop header
LB: loop body
LE: loop exit
PB: predicated region body
PF: predicated region fallthrough
CT: control target
= control target key end

     0   :  { %20 = vsyncpa [#allocation3], 0  ;;  %s3213_s21 = smov [#allocation2]   ;;  %s4580_s0 = inlined_call_operand.vmem [shape: bf16[50,128], index: 0, kind: input, shape index: {}, may-alias: {0,15}]   ;;  %s4581_s1 = inlined_call_operand.vmem [shape: f32[1,128], index: 1, kind: input, shape index: {}]   ;;  %s4582_s2 = inlined_call_operand.vmem [shape: f32[1,128], index: 2, kind: input, shape index: {}]   ;;  %s4583_s3 = inlined_call_operand.vmem [shape: bf16[128,384], index: 3, kind: input, shape index: {}]   ;;  %s4584_s4 = inlined_call_operand.vmem [shape: f32[1,384], index: 4, kind: input, shape index: {}]   ;;  %s4585_s5 = inlined_call_operand.vmem [shape: bf16[128,128], index: 5, kind: input, shape index: {}]   ;;  %s4586_s6 = inlined_call_operand.vmem [shape: f32[1,128], index: 6, kind: input, shape index: {}]   ;;  %s4587_s7 = inlined_call_operand.vmem [shape: f32[1,128], index: 7, kind: input, shape index: {}]   ;;  %s4588_s8 = inlined_call_operand.vmem [shape: f32[1,128], index: 8, kind: input, shape index: {}]   ;;  %s4589_s9 = inlined_call_operand.vmem [shape: bf16[128,512], index: 9, kind: input, shape index: {}]   ;;  %s4590_s10 = inlined_call_operand.vmem [shape: f32[1,512], index: 10, kind: input, shape index: {}]   ;;  %s4591_s11 = inlined_call_operand.vmem [shape: bf16[512,128], index: 11, kind: input, shape index: {}]   ;;  %s4592_s12 = inlined_call_operand.vmem [shape: f32[1,128], index: 12, kind: input, shape index: {}]   ;;  %s4593_s13 = inlined_call_operand.vmem [shape: f32[1,128], index: 13, kind: input, shape index: {}]   ;;  %s4594_s14 = inlined_call_operand.hbm [shape: f32[1,128], index: 14, kind: input, shape index: {}]   ;;  %s4595_s15 = inlined_call_operand.vmem [shape: bf16[50,128], index: 15, kind: output, shape index: {}, may-alias: {0,15}]  }
   0x1   :  { %s54_s20 = sshll.u32 %s4594_s14, 4  ;;  %s56_s22 = sshll.u32 %s3213_s21, 4  ;;  %s55_s20 = int_to_ptr.hbm [resolvable:$true] %s54_s20  ;;  %s57_s22 = int_to_ptr.vmem [resolvable:$true] %s56_s22 }
   0x2   :  { %59 = dma.hbm_to_vmem [thread:$0]  %s55_s20, 16, %s57_s22, [#allocation3]  }
   0x3   :  { %3211 = dma.done.wait [#allocation3], 16  }
   0x4   :  { %3212 = vsyncadd [#allocation3], 4294967280  ;;  %v3005_v0 = vld [vmem:[%s4580_s0 + $0x10] sm:$0xff]   ;;  %v2978_v1 = vld [vmem:[%s4580_s0] sm:$0xff]   ;;  %vm140_vm0 = vcmask 1041408   ;;  %v3214_v12 = vmov 128.0  }
   0x5   :  { %v3004_v2 = vld [vmem:[%s4580_s0 + $0x8] sm:$0xff]   ;;  %v3308_v3 = vunpack.c.l.bf16 %v3005_v0  ;;  %v3310_v4 = vunpack.c.l.bf16 %v2978_v1  ;;  %v3317_v6 = vunpack.c.h.bf16 %v2978_v1  ;;  %v3319_v7 = vunpack.c.h.bf16 %v3005_v0  ;;  %v71_v9 = vld [vmem:[%s4580_s0 + $0x18] sm:$0x1]  ;;  %v2903_v49 = vld [vmem:[%s4583_s3 + $0xb0] sm:$0xf0]  ;;  %s3215_s28 = smov 64  }
   0x6   :  { %v3312_v5 = vunpack.c.l.bf16 %v3004_v2  ;;  %v3321_v8 = vunpack.c.h.bf16 %v3004_v2  ;;  %v3329_v10 = vunpack.c.l.bf16 %v71_v9  ;;  %3031 = vrcp.f32 %v3214_v12  ;;  %v2559_v48 = vld [vmem:[%s4583_s3 + $0xa8] sm:$0xf]  ;;  %v2902_v50 = vld [vmem:[%s4583_s3 + $0xac] sm:$0xf]  ;;  %v2561_v52 = vld [vmem:[%s4583_s3 + $0xb4] sm:$0xf0] }
   0x7   :  { %136 = vadd.xlane.f32.xlu2 %v3308_v3  ;;  %128 = vadd.xlane.f32.xlu0 %v3310_v4  ;;  %v2560_v51 = vor.u32 %v2903_v49, %v2559_v48  ;;  %v2567_v53 = vld [vmem:[%s4583_s3 + $0xb0] sm:$0xf]  ;;  %v2904_v54 = vld [vmem:[%s4583_s3 + $0xb8] sm:$0xf0]  ;;  %v2564_v55 = vor.u32 %v2902_v50, %v2561_v52  ;;  %v2899_v59 = vld [vmem:[%s4583_s3 + $0x94] sm:$0xf] }
   0x8   :  { %132 = vadd.xlane.f32.xlu1 %v3312_v5  ;;  %v141_v11 = vsel %vm140_vm0, %v3329_v10, 0.0  ;;  %v2568_v56 = vor.u32 %v2904_v54, %v2567_v53  ;;  %v2547_v57 = vld [vmem:[%s4583_s3 + $0x90] sm:$0xf]  ;;  %v2900_v58 = vld [vmem:[%s4583_s3 + $0x98] sm:$0xf0] }
   0x9   :  { %472 = vmatpush.bf16.msra.mxu0 %v2560_v51  ;;  %500 = vmatpush.bf16.msra.mxu1 %v2564_v55  ;;  %v2548_v60 = vor.u32 %v2900_v58, %v2547_v57  ;;  %v2549_v61 = vld [vmem:[%s4583_s3 + $0x9c] sm:$0xf0]  ;;  %v2555_v62 = vld [vmem:[%s4583_s3 + $0x98] sm:$0xf]  ;;  %v2901_v63 = vld [vmem:[%s4583_s3 + $0xa0] sm:$0xf0] }
   0xa   :  { %528 = vmatpush.bf16.msra.mxu2 %v2568_v56  ;;  %v2552_v0 = vor.u32 %v2899_v59, %v2549_v61  ;;  %v2556_v1 = vor.u32 %v2901_v63, %v2555_v62  ;;  %v2535_v2 = vld [vmem:[%s4583_s3 + $0x78] sm:$0xf]  ;;  %v2897_v9 = vld [vmem:[%s4583_s3 + $0x80] sm:$0xf0]  ;;  %v2501_v48 = vld [vmem:[%s4583_s3 + $0x3c] sm:$0xf0] }
   0xb   :  { %v2536_v12 = vor.u32 %v2897_v9, %v2535_v2  ;;  %v2507_v49 = vld [vmem:[%s4583_s3 + $0x38] sm:$0xf]  ;;  %v2889_v50 = vld [vmem:[%s4583_s3 + $0x40] sm:$0xf0]  ;;  %v2884_v55 = vld [vmem:[%s4583_s3 + $0x1c] sm:$0xf] }
   0xc   :  { %v3032_v13 = vpop.eup %3031  ;;  %v2508_v52 = vor.u32 %v2889_v50, %v2507_v49  ;;  %v2487_v53 = vld [vmem:[%s4583_s3 + $0x18] sm:$0xf]  ;;  %v2885_v54 = vld [vmem:[%s4583_s3 + $0x20] sm:$0xf0]  ;;  %v2489_v57 = vld [vmem:[%s4583_s3 + $0x24] sm:$0xf0] }
   0xd   :  { %v145_v14 = vmul.f32 128.0, %v3032_v13  ;;  %vm149_vm1 = vweird.f32 %v3032_v13  ;;  %473 = vmatpush.bf16.msra.mxu0 %v2548_v60  ;;  %501 = vmatpush.bf16.msra.mxu1 %v2552_v0  ;;  %v2488_v56 = vor.u32 %v2885_v54, %v2487_v53  ;;  %v2495_v58 = vld [vmem:[%s4583_s3 + $0x20] sm:$0xf]  ;;  %v2886_v59 = vld [vmem:[%s4583_s3 + $0x28] sm:$0xf0]  ;;  %v2492_v61 = vor.u32 %v2884_v55, %v2489_v57 }
   0xe   :  { %529 = vmatpush.bf16.msra.mxu2 %v2556_v1  ;;  %v2496_v62 = vor.u32 %v2886_v59, %v2495_v58  ;;  %v2475_v0 = vld [vmem:[%s4583_s3] sm:$0xf]  ;;  %v2882_v1 = vld [vmem:[%s4583_s3 + $0x8] sm:$0xf0]  ;;  %v2881_v2 = vld [vmem:[%s4583_s3 + $0x4] sm:$0xf] }
   0xf   :  { %130 = vadd.xlane.f32.xlu0 %v3317_v6  ;;  %138 = vadd.xlane.f32.xlu2 %v3319_v7  ;;  %v146_v15 = vsub.f32 1.0, %v145_v14  ;;  %v2543_v14 = vld [vmem:[%s4583_s3 + $0x80] sm:$0xf] }
  0x10   :  { %134 = vadd.xlane.f32.xlu1 %v3321_v8  ;;  %v3546_v57 = vld [vmem:[%s4581_s1] ss:$0 sm:$0xff] }
  0x11   :  { %v147_v16 = vmul.f32 %v3032_v13, %v146_v15  ;;  %v2898_v15 = vld [vmem:[%s4583_s3 + $0x88] sm:$0xf0]  ;;  %474 = vmatpush.bf16.msra.mxu0 %v2536_v12  ;;  %v2477_v12 = vld [vmem:[%s4583_s3 + $0xc] sm:$0xf0] }
  0x13   :  { %v148_v17 = vadd.f32 %v3032_v13, %v147_v16 }
  0x15   :  { %v3333_v18 = vsel %vm149_vm1, %v3032_v13, %v148_v17  ;;  %v2537_v13 = vld [vmem:[%s4583_s3 + $0x84] sm:$0xf0]  ;;  %v2544_v17 = vor.u32 %v2898_v15, %v2543_v14  ;;  %v2883_v15 = vld [vmem:[%s4583_s3 + $0x10] sm:$0xf0] }
  0x16   :  { %v2483_v14 = vld [vmem:[%s4583_s3 + $0x8] sm:$0xf] }
  0x17   :  { %142 = vadd.xlane.f32.xlu2 %v141_v11  ;;  %v2896_v11 = vld [vmem:[%s4583_s3 + $0x7c] sm:$0xf]  ;;  %530 = vmatpush.bf16.msra.mxu2 %v2544_v17 }
  0x18   :  { %v2540_v16 = vor.u32 %v2896_v11, %v2537_v13  ;;  %v2476_v11 = vor.u32 %v2882_v1, %v2475_v0  ;;  %v2480_v13 = vor.u32 %v2881_v2, %v2477_v12 }
  0x1a   :  { %502 = vmatpush.bf16.msra.mxu1 %v2540_v16  ;;  %v2484_v16 = vor.u32 %v2883_v15, %v2483_v14 }
  0x7a   :  { %v137_v19 = vpop.xlane.xlu2 %136  ;;  %v129_v20 = vpop.xlane.xlu0 %128 }
  0x7b   :  { %v155_v21 = vmul.f32 %v3333_v18, %v137_v19  ;;  %v151_v22 = vmul.f32 %v3333_v18, %v129_v20  ;;  %v133_v23 = vpop.xlane.xlu1 %132  ;;  %v2523_v19 = vld [vmem:[%s4583_s3 + $0x60] sm:$0xf]  ;;  %v2894_v20 = vld [vmem:[%s4583_s3 + $0x68] sm:$0xf0] }
  0x7c   :  { %v153_v26 = vmul.f32 %v3333_v18, %v133_v23  ;;  %v2525_v23 = vld [vmem:[%s4583_s3 + $0x6c] sm:$0xf0] }
  0x7d   :  { %v3338_v24 = vsub.f32 %v3308_v3, %v155_v21  ;;  %v3341_v25 = vsub.f32 %v3310_v4, %v151_v22  ;;  %v2893_v21 = vld [vmem:[%s4583_s3 + $0x64] sm:$0xf]  ;;  %v2524_v22 = vor.u32 %v2894_v20, %v2523_v19 }
  0x7e   :  { %v3349_v29 = vsub.f32 %v3312_v5, %v153_v26  ;;  %v2531_v26 = vld [vmem:[%s4583_s3 + $0x68] sm:$0xf] }
  0x7f   :  { %v169_v27 = vmul.f32 %v3338_v24, %v3338_v24  ;;  %v165_v28 = vmul.f32 %v3341_v25, %v3341_v25  ;;  %475 = vmatpush.bf16.msra.mxu0 %v2524_v22 }
  0x80   :  { %v167_v36 = vmul.f32 %v3349_v29, %v3349_v29 }
  0x81   :  { %180 = vadd.xlane.f32.xlu2 %v169_v27  ;;  %172 = vadd.xlane.f32.xlu0 %v165_v28  ;;  %v2895_v27 = vld [vmem:[%s4583_s3 + $0x70] sm:$0xf0]  ;;  %v2528_v28 = vor.u32 %v2893_v21, %v2525_v23 }
  0x82   :  { %v131_v30 = vpop.xlane.xlu0 %130  ;;  %v139_v31 = vpop.xlane.xlu2 %138 }
  0x83   :  { %v152_v32 = vmul.f32 %v3333_v18, %v131_v30  ;;  %v135_v33 = vpop.xlane.xlu1 %134  ;;  %v156_v35 = vmul.f32 %v3333_v18, %v139_v31  ;;  %v2532_v30 = vor.u32 %v2895_v27, %v2531_v26  ;;  %503 = vmatpush.bf16.msra.mxu1 %v2528_v28  ;;  %v2511_v31 = vld [vmem:[%s4583_s3 + $0x48] sm:$0xf] }
  0x84   :  { %v154_v37 = vmul.f32 %v3333_v18, %v135_v33  ;;  %v2890_v33 = vld [vmem:[%s4583_s3 + $0x4c] sm:$0xf] }
  0x85   :  { %v3353_v34 = vsub.f32 %v3317_v6, %v152_v32  ;;  %v3362_v39 = vsub.f32 %v3319_v7, %v156_v35  ;;  %531 = vmatpush.bf16.msra.mxu2 %v2532_v30  ;;  %v2891_v32 = vld [vmem:[%s4583_s3 + $0x50] sm:$0xf0] }
  0x86   :  { %v3365_v40 = vsub.f32 %v3321_v8, %v154_v37  ;;  %v2512_v35 = vor.u32 %v2891_v32, %v2511_v31  ;;  %v2519_v37 = vld [vmem:[%s4583_s3 + $0x50] sm:$0xf] }
  0x87   :  { %v166_v38 = vmul.f32 %v3353_v34, %v3353_v34  ;;  %v170_v43 = vmul.f32 %v3362_v39, %v3362_v39 }
  0x88   :  { %v168_v44 = vmul.f32 %v3365_v40, %v3365_v40  ;;  %476 = vmatpush.bf16.msra.mxu0 %v2512_v35 }
  0x89   :  { %176 = vadd.xlane.f32.xlu0 %v167_v36  ;;  %174 = vadd.xlane.f32.xlu1 %v166_v38  ;;  %v2513_v36 = vld [vmem:[%s4583_s3 + $0x54] sm:$0xf0]  ;;  %v2892_v38 = vld [vmem:[%s4583_s3 + $0x58] sm:$0xf0] }
  0x8a   :  { %v143_v41 = vpop.xlane.xlu2 %142 }
  0x8b   :  { %v157_v42 = vmul.f32 %v3333_v18, %v143_v41  ;;  %v2516_v41 = vor.u32 %v2890_v33, %v2513_v36 }
  0x8d   :  { %v3373_v45 = vsub.f32 %v3329_v10, %v157_v42  ;;  %v2520_v42 = vor.u32 %v2892_v38, %v2519_v37  ;;  %504 = vmatpush.bf16.msra.mxu1 %v2516_v41 }
  0x8f   :  { %v171_v46 = vmul.f32 %v3373_v45, %v3373_v45  ;;  %532 = vmatpush.bf16.msra.mxu2 %v2520_v42 }
  0x91   :  { %182 = vadd.xlane.f32.xlu0 %v170_v43  ;;  %178 = vadd.xlane.f32.xlu1 %v168_v44  ;;  %v184_v47 = vsel %vm140_vm0, %v171_v46, 0.0  ;;  %v2499_v43 = vld [vmem:[%s4583_s3 + $0x30] sm:$0xf]  ;;  %v2888_v44 = vld [vmem:[%s4583_s3 + $0x38] sm:$0xf0] }
  0x92   :  { %v2887_v46 = vld [vmem:[%s4583_s3 + $0x34] sm:$0xf] }
  0x93   :  { %v2504_v51 = vor.u32 %v2887_v46, %v2501_v48  ;;  %533 = vmatpush.bf16.msra.mxu2 %v2508_v52 }
  0x95   :  { %505 = vmatpush.bf16.msra.mxu1 %v2504_v51 }
  0x97   :  { %534 = vmatpush.bf16.msra.mxu2 %v2496_v62 }
  0x99   :  { %185 = vadd.xlane.f32.xlu1 %v184_v47  ;;  %v2500_v47 = vor.u32 %v2888_v44, %v2499_v43  ;;  %506 = vmatpush.bf16.msra.mxu1 %v2492_v61 }
  0x9b   :  { %477 = vmatpush.bf16.msra.mxu0 %v2500_v47  ;;  %535 = vmatpush.bf16.msra.mxu2 %v2484_v16 }
  0x9d   :  { %507 = vmatpush.bf16.msra.mxu1 %v2480_v13 }
  0x9f   :  { %478 = vmatpush.bf16.msra.mxu0 %v2488_v56 }
  0xa3   :  { %479 = vmatpush.bf16.msra.mxu0 %v2476_v11 }
  0xf4   :  { %v173_v60 = vpop.xlane.xlu0 %172  ;;  %v181_v28 = vpop.xlane.xlu2 %180 }
  0xf5   :  { %v187_v63 = vmul.f32 %v173_v60, %v3333_v18  ;;  %v191_v37 = vmul.f32 %v181_v28, %v3333_v18 }
  0xf7   :  { %v194_v9 = vadd.f32 1e-05, %v187_v63  ;;  %v3537_v49 = vadd.f32 1e-05, %v191_v37 }
  0xf9   :  { %3033 = vrsqrt.f32 %v194_v9  ;;  %vm207_vm3 = vweird.f32 %v194_v9  ;;  %vm247_vm1 = vweird.f32 %v3537_v49 }
  0xfc   :  { %v175_v17 = vpop.xlane.xlu1 %174  ;;  %v177_v19 = vpop.xlane.xlu0 %176 }
  0xfd   :  { %v188_v20 = vmul.f32 %v175_v17, %v3333_v18  ;;  %v189_v21 = vmul.f32 %v177_v19, %v3333_v18 }
  0xff   :  { %v195_v22 = vadd.f32 1e-05, %v188_v20  ;;  %v3525_v23 = vadd.f32 1e-05, %v189_v21  ;;  %v3034_v26 = vpop.eup %3033 }
 0x100   :  { %v202_v27 = vmul.f32 %v3034_v26, %v194_v9  ;;  %vm208_vm2 = vweird.f32 %v3034_v26 }
 0x101   :  { %3035 = vrsqrt.f32 %v195_v22  ;;  %vm209_vm4 = vmor %vm207_vm3, %vm208_vm2  ;;  %vm217_vm6 = vweird.f32 %v195_v22  ;;  %vm227_vm10 = vweird.f32 %v3525_v23 }
 0x102   :  { %3037 = vrsqrt.f32 %v3525_v23  ;;  %v203_v30 = vmul.f32 %v3034_v26, %v202_v27 }
 0x104   :  { %v179_v31 = vpop.xlane.xlu1 %178  ;;  %v183_v32 = vpop.xlane.xlu0 %182  ;;  %v204_v33 = vmul.f32 0.5, %v203_v30 }
 0x105   :  { %v190_v35 = vmul.f32 %v179_v31, %v3333_v18  ;;  %v192_v36 = vmul.f32 %v183_v32, %v3333_v18 }
 0x106   :  { %v205_v41 = vsub.f32 1.5, %v204_v33 }
 0x107   :  { %v3036_v38 = vpop.eup %3035  ;;  %v197_v42 = vadd.f32 1e-05, %v190_v35  ;;  %v3535_v48 = vadd.f32 1e-05, %v192_v36 }
 0x108   :  { %v3531_v43 = vpop.eup %3037  ;;  %v212_v44 = vmul.f32 %v3036_v38, %v195_v22  ;;  %v206_v46 = vmul.f32 %v3034_v26, %v205_v41  ;;  %vm218_vm5 = vweird.f32 %v3036_v38 }
 0x109   :  { %v222_v47 = vmul.f32 %v3531_v43, %v3525_v23  ;;  %3039 = vrsqrt.f32 %v197_v42  ;;  %vm219_vm7 = vmor %vm217_vm6, %vm218_vm5  ;;  %vm237_vm8 = vweird.f32 %v197_v42  ;;  %vm228_vm11 = vweird.f32 %v3531_v43 }
 0x10a   :  { %v213_v50 = vmul.f32 %v3036_v38, %v212_v44  ;;  %v210_v51 = vsel %vm209_vm4, %v3034_v26, %v206_v46  ;;  %3041 = vrsqrt.f32 %v3535_v48  ;;  %vm229_vm13 = vmor %vm227_vm10, %vm228_vm11  ;;  %vm257_vm14 = vweird.f32 %v3535_v48 }
 0x10b   :  { %v223_v53 = vmul.f32 %v3531_v43, %v222_v47  ;;  %3043 = vrsqrt.f32 %v3537_v49  ;;  %v271_v56 = vmul.f32 %v210_v51, %v3341_v25  ;;  %v3553_v25 = vld [vmem:[%s4582_s2] ss:$0 sm:$0xff]  ;;  %vm651_vm11 = vcmask 408576  }
 0x10c   :  { %v214_v52 = vmul.f32 0.5, %v213_v50  ;;  %v186_v63 = vpop.xlane.xlu1 %185 }
 0x10d   :  { %v224_v59 = vmul.f32 0.5, %v223_v53  ;;  %v282_v2 = vmul.f32 %v3546_v57, %v271_v56  ;;  %v193_v13 = vmul.f32 %v186_v63, %v3333_v18 }
 0x10e   :  { %v215_v54 = vsub.f32 1.5, %v214_v52 }
 0x10f   :  { %v3040_v55 = vpop.eup %3039  ;;  %v225_v11 = vsub.f32 1.5, %v224_v59  ;;  %v293_v17 = vadd.f32 %v3553_v25, %v282_v2  ;;  %v200_v22 = vadd.f32 1e-05, %v193_v13 }
 0x110   :  { %v216_v58 = vmul.f32 %v3036_v38, %v215_v54  ;;  %v232_v60 = vmul.f32 %v3040_v55, %v197_v42  ;;  %v3042_v0 = vpop.eup %3041  ;;  %vm238_vm9 = vweird.f32 %v3040_v55 }
 0x111   :  { %v3044_v9 = vpop.eup %3043  ;;  %v252_v16 = vmul.f32 %v3042_v0, %v3535_v48  ;;  %v226_v20 = vmul.f32 %v3531_v43, %v225_v11  ;;  %vm239_vm12 = vmor %vm237_vm8, %vm238_vm9  ;;  %3045 = vrsqrt.f32 %v200_v22  ;;  %vm258_vm15 = vweird.f32 %v3042_v0 }
 0x112   :  { %v220_v61 = vsel %vm219_vm7, %v3036_v38, %v216_v58  ;;  %v233_v62 = vmul.f32 %v3040_v55, %v232_v60  ;;  %vm248_vm2 = vweird.f32 %v3044_v9  ;;  %vm259_vm3 = vmor %vm257_vm14, %vm258_vm15  ;;  %vm267_vm5 = vweird.f32 %v200_v22 }
 0x113   :  { %v272_v1 = vmul.f32 %v220_v61, %v3353_v34  ;;  %v242_v34 = vmul.f32 %v3044_v9, %v3537_v49  ;;  %v253_v28 = vmul.f32 %v3042_v0, %v252_v16  ;;  %v230_v31 = vsel %vm229_vm13, %v3531_v43, %v226_v20  ;;  %vm249_vm4 = vmor %vm247_vm1, %vm248_vm2 }
 0x114   :  { %v234_v12 = vmul.f32 0.5, %v233_v62  ;;  %v273_v23 = vmul.f32 %v230_v31, %v3349_v29  ;;  %vm591_vm8 = vcmask 523264   ;;  %vm746_vm9 = vcmask 1040384  }
 0x115   :  { %v283_v14 = vmul.f32 %v3546_v57, %v272_v1  ;;  %v243_v30 = vmul.f32 %v3044_v9, %v242_v34  ;;  %v254_v33 = vmul.f32 0.5, %v253_v28 }
 0x116   :  { %v235_v15 = vsub.f32 1.5, %v234_v12  ;;  %v284_v41 = vmul.f32 %v3546_v57, %v273_v23 }
 0x117   :  { %v294_v19 = vadd.f32 %v3553_v25, %v283_v14  ;;  %v244_v35 = vmul.f32 0.5, %v243_v30  ;;  %v255_v37 = vsub.f32 1.5, %v254_v33  ;;  %v3046_v38 = vpop.eup %3045 }
 0x118   :  { %v236_v21 = vmul.f32 %v3040_v55, %v235_v15  ;;  %v262_v44 = vmul.f32 %v3046_v38, %v200_v22  ;;  %v295_v29 = vadd.f32 %v3553_v25, %v284_v41  ;;  %vm268_vm6 = vweird.f32 %v3046_v38 }
 0x119   :  { %v300_v26 = vpack.c.bf16 %v294_v19, %v293_v17  ;;  %v245_v42 = vsub.f32 1.5, %v244_v35  ;;  %vm269_vm7 = vmor %vm267_vm5, %vm268_vm6 }
 0x11a   :  { %v240_v27 = vsel %vm239_vm12, %v3040_v55, %v236_v21  ;;  %v263_v51 = vmul.f32 %v3046_v38, %v262_v44 }
 0x11b   :  { %480 = vmatmul.bf16.vlgmr.msra.gmra.mxu0 %v300_v26  ;;  %508 = vmatmul.bf16.vlgmr.msra.gmra.mxu1 %v300_v26  ;;  %v274_v32 = vmul.f32 %v240_v27, %v3365_v40  ;;  %v256_v40 = vmul.f32 %v3042_v0, %v255_v37  ;;  %v246_v46 = vmul.f32 %v3044_v9, %v245_v42 }
 0x11c   :  { %536 = vmatmul.bf16.vlgmr.msra.gmra.mxu2 %v300_v26  ;;  %v264_v53 = vmul.f32 0.5, %v263_v51 }
 0x11d   :  { %v285_v36 = vmul.f32 %v3546_v57, %v274_v32  ;;  %v260_v50 = vsel %vm259_vm3, %v3042_v0, %v256_v40  ;;  %v250_v52 = vsel %vm249_vm4, %v3044_v9, %v246_v46  ;;  %vm670_vm3 = vcmask 402432  }
 0x11e   :  { %v276_v48 = vmul.f32 %v260_v50, %v3362_v39  ;;  %v275_v49 = vmul.f32 %v250_v52, %v3338_v24  ;;  %v265_v55 = vsub.f32 1.5, %v264_v53 }
 0x11f   :  { %v296_v43 = vadd.f32 %v3553_v25, %v285_v36 }
 0x120   :  { %v287_v54 = vmul.f32 %v3546_v57, %v276_v48  ;;  %v286_v56 = vmul.f32 %v3546_v57, %v275_v49  ;;  %v266_v59 = vmul.f32 %v3046_v38, %v265_v55 }
 0x121   :  { %v301_v47 = vpack.c.bf16 %v296_v43, %v295_v29 }
 0x122   :  { %v298_v58 = vadd.f32 %v3553_v25, %v287_v54  ;;  %v297_v60 = vadd.f32 %v3553_v25, %v286_v56  ;;  %v270_v62 = vsel %vm269_vm7, %v3046_v38, %v266_v59 }
 0x123   :  { %v277_v24 = vmul.f32 %v270_v62, %v3373_v45  ;;  %v336_v45 = vld [vmem:[%s4584_s4] sm:$0x7] }
 0x124   :  { %v302_v61 = vpack.c.bf16 %v298_v58, %v297_v60  ;;  %v338_v27 = vperm.slane %v336_v45, 0  ;;  %v340_v49 = vperm.slane %v336_v45, 2 }
 0x125   :  { %v288_v39 = vmul.f32 %v3546_v57, %v277_v24  ;;  %v339_v57 = vperm.slane %v336_v45, 1 }
 0x127   :  { %v299_v63 = vadd.f32 %v3553_v25, %v288_v39 }
 0x129   :  { %v303_v0 = vpack.c.bf16 %v299_v63, %v299_v63 }
 0x12b   :  { %485 = vmatmul.bf16.gmra.mxu0 %v301_v47  ;;  %513 = vmatmul.bf16.gmra.mxu1 %v301_v47 }
 0x12c   :  { %541 = vmatmul.bf16.gmra.mxu2 %v301_v47 }
 0x13b   :  { %490 = vmatmul.bf16.gmra.mxu0 %v302_v61  ;;  %518 = vmatmul.bf16.gmra.mxu1 %v302_v61 }
 0x13c   :  { %546 = vmatmul.bf16.gmra.mxu2 %v302_v61 }
 0x14b   :  { %495 = vmatmul.bf16.gmra.mxu0 %v303_v0  ;;  %523 = vmatmul.bf16.gmra.mxu1 %v303_v0 }
 0x14c   :  { %551 = vmatmul.bf16.gmra.mxu2 %v303_v0 }
 0x198   :  { %v481_v1 = vpop.f32.mrf.mxu0  ;;  %v509_v2 = vpop.f32.mrf.mxu1 }
 0x199   :  { %v482_v42 = vadd.f32 %v481_v1, %v338_v27  ;;  %v510_v61 = vadd.f32 %v509_v2, %v339_v57 }
 0x19b   :  { %v572_v47 = vmul.f32 0.125, %v482_v42 }
 0x19f   :  { %v3582_v9 = vpop.f32.mrf.mxu2 }
 0x1a0   :  { %v483_v11 = vpop.f32.mrf.mxu0  ;;  %v511_v12 = vpop.f32.mrf.mxu1 }
 0x1a1   :  { %v484_v36 = vadd.f32 %v483_v11, %v338_v27  ;;  %v512_v55 = vadd.f32 %v511_v12, %v339_v57 }
 0x1a3   :  { %v573_v40 = vmul.f32 0.125, %v484_v36  ;;  %v583_v39 = vpack.c.bf16 %v512_v55, %v510_v61 }
 0x1a5   :  { %v579_v52 = vpack.c.bf16 %v573_v40, %v572_v47 }
 0x1a7   :  { %v3584_v13 = vpop.f32.mrf.mxu2 }
 0x1a8   :  { %v3586_v14 = vpop.f32.mrf.mxu0  ;;  %v514_v15 = vpop.f32.mrf.mxu1 }
 0x1a9   :  { %v515_v17 = vadd.f32 %v514_v15, %v339_v57  ;;  %v487_v15 = vadd.f32 %v3586_v14, %v338_v27  ;;  %v540_v14 = vadd.f32 %v3584_v13, %v340_v49 }
 0x1af   :  { %v3591_v25 = vpop.f32.mrf.mxu2 }
 0x1b0   :  { %v488_v16 = vpop.f32.mrf.mxu0  ;;  %v516_v34 = vpop.f32.mrf.mxu1 }
 0x1b1   :  { %v517_v19 = vadd.f32 %v516_v34, %v339_v57  ;;  %v489_v63 = vadd.f32 %v488_v16, %v338_v27  ;;  %v543_v34 = vadd.f32 %v3591_v25, %v340_v49 }
 0x1b3   :  { %v3593_v20 = vpack.c.bf16 %v517_v19, %v515_v17  ;;  %v575_v16 = vmul.f32 0.125, %v489_v63  ;;  %v574_v17 = vmul.f32 0.125, %v487_v15 }
 0x1b5   :  { %800 = vrot.lane.b32.xlu1 %v3593_v20, %s3215_s28  ;;  %v608_v25 = vsel %vm591_vm8, %v3593_v20, 0 }
 0x1b7   :  { %v544_v21 = vpop.f32.mrf.mxu2 }
 0x1b8   :  { %v491_v22 = vpop.f32.mrf.mxu0  ;;  %v519_v26 = vpop.f32.mrf.mxu1  ;;  %v545_v45 = vadd.f32 %v544_v21, %v340_v49 }
 0x1b9   :  { %v492_v28 = vadd.f32 %v491_v22, %v338_v27  ;;  %v520_v33 = vadd.f32 %v519_v26, %v339_v57  ;;  %v580_v22 = vpack.c.bf16 %v575_v16, %v574_v17  ;;  %v538_v26 = vadd.f32 %v3582_v9, %v340_v49 }
 0x1ba   :  { %v3616_v19 = vpack.c.bf16 %v545_v45, %v543_v34  ;;  %v605_v9 = vsel %vm591_vm8, %v583_v39, 0 }
 0x1bb   :  { %v576_v37 = vmul.f32 0.125, %v492_v28  ;;  %v3625_v21 = vpack.c.bf16 %v540_v14, %v538_v26 }
 0x1bf   :  { %v547_v30 = vpop.f32.mrf.mxu2 }
 0x1c0   :  { %v493_v31 = vpop.f32.mrf.mxu0  ;;  %v521_v32 = vpop.f32.mrf.mxu1  ;;  %v548_v11 = vadd.f32 %v547_v30, %v340_v49 }
 0x1c1   :  { %v494_v23 = vadd.f32 %v493_v31, %v338_v27  ;;  %v522_v35 = vadd.f32 %v521_v32, %v339_v57 }
 0x1c3   :  { %v577_v38 = vmul.f32 0.125, %v494_v23  ;;  %v585_v41 = vpack.c.bf16 %v522_v35, %v520_v33 }
 0x1c5   :  { %802 = vrot.lane.b32.xlu0 %v585_v41, %s3215_s28  ;;  %v3598_v43 = vpack.c.bf16 %v577_v38, %v576_v37  ;;  %v611_v12 = vsel %vm591_vm8, %v585_v41, 0  ;;  %v79_v38 = vlaneseq }
 0x1c7   :  { %v549_v44 = vpop.f32.mrf.mxu2  ;;  %790 = vrot.lane.b32.xlu1 %v3598_v43, %s3215_s28  ;;  %v80_v41 = vshrl.u32 %v79_v38, 7  ;;  %v95_v42 = vand.u32 127, %v79_v38 }
 0x1c8   :  { %v496_v29 = vpop.f32.mrf.mxu0  ;;  %v524_v46 = vpop.f32.mrf.mxu1  ;;  %v550_v24 = vadd.f32 %v549_v44, %v340_v49 }
 0x1c9   :  { %v525_v50 = vadd.f32 %v524_v46, %v339_v57  ;;  %v497_v48 = vadd.f32 %v496_v29, %v338_v27  ;;  %v87_v40 = vcvt.s32.f32 %v80_v41  ;;  %v96_v44 = vcvt.s32.f32 %v95_v42 }
 0x1ca   :  { %v3610_v2 = vpack.c.bf16 %v550_v24, %v548_v11  ;;  %v81_v47 = vadd.s32 8, %v80_v41  ;;  %v83_v63 = vadd.s32 24, %v80_v41  ;;  %v84_v34 = vadd.s32 32, %v80_v41 }
 0x1cb   :  { %v586_v51 = vpack.c.bf16 %v525_v50, %v525_v50  ;;  %v578_v56 = vmul.f32 0.125, %v497_v48  ;;  %v97_v29 = vadd.f32 0.5, %v87_v40  ;;  %v118_v46 = vadd.f32 0.5, %v96_v44 }
 0x1cc   :  { %v90_v11 = vcvt.s32.f32 %v83_v63 }
 0x1cd   :  { %804 = vrot.lane.b32.xlu2 %v586_v51, %s3215_s28  ;;  %786 = vrot.lane.b32.xlu0 %v579_v52, %s3215_s28  ;;  %v614_v53 = vsel %vm591_vm8, %v586_v51, 0  ;;  %v582_v0 = vpack.c.bf16 %v578_v56, %v578_v56  ;;  %v104_v50 = vmul.f32 0.2, %v97_v29  ;;  %v119_v51 = vmul.f32 0.2, %v118_v46 }
 0x1ce   :  { %620 = vmatpush.bf16.xpose.msra.mxu3 %v614_v53  ;;  %v100_v16 = vadd.f32 0.5, %v90_v11 }
 0x1cf   :  { %v552_v54 = vpop.f32.mrf.mxu2  ;;  %v111_v48 = vfloor.f32 %v104_v50  ;;  %v120_v53 = vfloor.f32 %v119_v51 }
 0x1d0   :  { %v553_v58 = vadd.f32 %v552_v54, %v340_v49  ;;  %v498_v59 = vpop.f32.mrf.mxu0  ;;  %v526_v60 = vpop.f32.mrf.mxu1  ;;  %v82_v54 = vadd.s32 16, %v80_v41  ;;  %v107_v14 = vmul.f32 0.2, %v100_v16 }
 0x1d1   :  { %vm3643_vm10 = vcmp.eq.f32.partialorder %v111_v48, %v120_v53 }
 0x1d2   :  { %v590_v62 = vpack.c.bf16 %v553_v58, %v553_v58  ;;  %v89_v59 = vcvt.s32.f32 %v82_v54 }
 0x1d4   :  { %v748_v1 = vsel %vm746_vm9, %v590_v62, 0 }
 0x1d5   :  { %754 = vmatpush.bf16.msrb.mxu0 %v748_v1  ;;  %3008 = vmatpush.bf16.msrb.mxu2 %v748_v1 }
 0x1d6   :  { %798 = vrot.lane.b32.xlu2 %v583_v39, %s3215_s28  ;;  %792 = vrot.lane.b32.xlu0 %v582_v0, %s3215_s28  ;;  %v99_v39 = vadd.f32 0.5, %v89_v59 }
 0x1d7   :  { %v554_v57 = vpop.f32.mrf.mxu2  ;;  %621 = vmatpush.bf16.xpose.msra.mxu3 %v611_v12 }
 0x1d8   :  { %v106_v1 = vmul.f32 0.2, %v99_v39 }
 0x1d9   :  { %755 = vmatpush.bf16.msrb.mxu0 %v3610_v2  ;;  %3009 = vmatpush.bf16.msrb.mxu2 %v3610_v2 }
 0x1da   :  { %v113_v57 = vfloor.f32 %v106_v1 }
 0x1dc   :  { %vm3664_vm13 = vcmp.eq.f32.partialorder %v113_v57, %v120_v53 }
 0x1dd   :  { %756 = vmatpush.bf16.msrb.mxu0 %v3616_v19  ;;  %3010 = vmatpush.bf16.msrb.mxu2 %v3616_v19 }
 0x1de   :  { %788 = vrot.lane.b32.xlu2 %v580_v22, %s3215_s28  ;;  %956 = vrot.lane.b32.xlu0 %v590_v62, %s3215_s28 }
 0x1df   :  { %622 = vmatpush.bf16.xpose.msra.mxu3 %v608_v25 }
 0x1e1   :  { %757 = vmatpush.bf16.msrb.mxu0 %v3625_v21  ;;  %3011 = vmatpush.bf16.msrb.mxu2 %v3625_v21 }
 0x1e7   :  { %623 = vmatpush.bf16.xpose.msra.mxu3 %v605_v9 }
 0x1ee   :  { %2569 = vmatmul.msk.bf16.vlgmr.msra.gmra.mxu3 %vm591_vm8, %v579_v52  ;;  %v88_v52 = vcvt.s32.f32 %v81_v47 }
 0x1f0   :  { %v98_v49 = vadd.f32 0.5, %v88_v52 }
 0x1f2   :  { %v105_v58 = vmul.f32 0.2, %v98_v49 }
 0x1f4   :  { %v112_v24 = vfloor.f32 %v105_v58 }
 0x1f6   :  { %vm3654_vm12 = vcmp.eq.f32.partialorder %v112_v24, %v120_v53 }
 0x1fe   :  { %2570 = vmatmul.msk.bf16.gmra.mxu3 %vm591_vm8, %v580_v22  ;;  %v91_v22 = vcvt.s32.f32 %v84_v34 }
 0x20e   :  { %2571 = vmatmul.msk.bf16.gmra.mxu3 %vm591_vm8, %v3598_v43 }
 0x21e   :  { %2572 = vmatmul.msk.bf16.gmra.mxu3 %vm591_vm8, %v582_v0 }
 0x227   :  { %v805_v13 = vpop.permute.xlu2 %804  ;;  %v801_v30 = vpop.permute.xlu1 %800 }
 0x228   :  { %v828_v20 = vsel %vm591_vm8, %v805_v13, 0  ;;  %v822_v32 = vsel %vm591_vm8, %v801_v30, 0  ;;  %v114_v13 = vfloor.f32 %v107_v14 }
 0x229   :  { %834 = vmatpush.bf16.xpose.msrb.mxu1 %v828_v20  ;;  %3012 = vmatpush.bf16.xpose.msrb.mxu3 %v828_v20  ;;  %v101_v20 = vadd.f32 0.5, %v91_v22 }
 0x22a   :  { %vm3674_vm14 = vcmp.eq.f32.partialorder %v114_v13, %v120_v53 }
 0x22b   :  { %v108_v30 = vmul.f32 0.2, %v101_v20 }
 0x230   :  { %v799_v33 = vpop.permute.xlu2 %798 }
 0x231   :  { %v819_v35 = vsel %vm591_vm8, %v799_v33, 0 }
 0x237   :  { %v803_v27 = vpop.permute.xlu0 %802 }
 0x238   :  { %v825_v28 = vsel %vm591_vm8, %v803_v27, 0  ;;  %v789_v43 = vpop.permute.xlu2 %788  ;;  %v85_v27 = vadd.s32 40, %v80_v41 }
 0x239   :  { %835 = vmatpush.bf16.xpose.msrb.mxu1 %v825_v28  ;;  %3013 = vmatpush.bf16.xpose.msrb.mxu3 %v825_v28  ;;  %v791_v55 = vpop.permute.xlu1 %790 }
 0x23f   :  { %v787_v31 = vpop.permute.xlu0 %786 }
 0x241   :  { %836 = vmatpush.bf16.xpose.msrb.mxu1 %v822_v32  ;;  %3014 = vmatpush.bf16.xpose.msrb.mxu3 %v822_v32 }
 0x248   :  { %v793_v23 = vpop.permute.xlu0 %792 }
 0x249   :  { %837 = vmatpush.bf16.xpose.msrb.mxu1 %v819_v35  ;;  %3015 = vmatpush.bf16.xpose.msrb.mxu3 %v819_v35  ;;  %v115_v35 = vfloor.f32 %v108_v30 }
 0x24b   :  { %vm3684_vm15 = vcmp.eq.f32.partialorder %v115_v35, %v120_v53 }
 0x250   :  { %v957_v36 = vpop.permute.xlu0 %956  ;;  %2577 = vmatmul.msk.bf16.vlgmr.msrb.gmra.mxu1 %vm591_vm8, %v787_v31  ;;  %2580 = vmatmul.msk.bf16.vlgmr.msrb.gmra.mxu3 %vm591_vm8, %v793_v23  ;;  %v92_v31 = vcvt.s32.f32 %v85_v27 }
 0x251   :  { %v974_v37 = vsel %vm746_vm9, %v957_v36, 0 }
 0x252   :  { %980 = vmatpush.bf16.msra.mxu2 %v974_v37  ;;  %v102_v36 = vadd.f32 0.5, %v92_v31  ;;  %v86_v37 = vadd.s32 48, %v80_v41 }
 0x254   :  { %v109_v42 = vmul.f32 0.2, %v102_v36 }
 0x256   :  { %v116_v46 = vfloor.f32 %v109_v42 }
 0x258   :  { %vm3694_vm1 = vcmp.eq.f32.partialorder %v116_v46, %v120_v53 }
 0x260   :  { %2578 = vmatmul.msk.bf16.gmra.mxu1 %vm591_vm8, %v789_v43  ;;  %v93_v43 = vcvt.s32.f32 %v86_v37 }
 0x262   :  { %v103_v47 = vadd.f32 0.5, %v93_v43 }
 0x264   :  { %v110_v50 = vmul.f32 0.2, %v103_v47 }
 0x266   :  { %v117_v49 = vfloor.f32 %v110_v50 }
 0x268   :  { %vm127_vm2 = vcmp.eq.f32.partialorder %v117_v49, %v120_v53 }
 0x270   :  { %2579 = vmatmul.msk.bf16.gmra.mxu1 %vm591_vm8, %v791_v55 }
 0x271   :  { %v625_v60 = vpop.f32.mrf.mxu3 }
 0x272   :  { %v3650_v61 = vsel %vm3643_vm10, %v625_v60, -1e+30 }
 0x273   :  { %v652_v62 = vsel %vm651_vm11, %v3650_v61, -inf }
 0x274   :  { %653 = vmax.xlane.f32.xlu2 %v652_v62 }
 0x279   :  { %v627_v15 = vpop.f32.mrf.mxu3 }
 0x27a   :  { %v3660_v12 = vsel %vm3654_vm12, %v627_v15, -1e+30 }
 0x27b   :  { %v655_v45 = vsel %vm651_vm11, %v3660_v12, -inf }
 0x27c   :  { %656 = vmax.xlane.f32.xlu1 %v655_v45 }
 0x281   :  { %v630_v26 = vpop.f32.mrf.mxu3 }
 0x282   :  { %v3670_v25 = vsel %vm3664_vm13, %v630_v26, -1e+30 }
 0x283   :  { %v658_v9 = vsel %vm651_vm11, %v3670_v25, -inf }
 0x284   :  { %659 = vmax.xlane.f32.xlu1 %v658_v9 }
 0x289   :  { %v632_v32 = vpop.f32.mrf.mxu3 }
 0x28a   :  { %v3680_v33 = vsel %vm3674_vm14, %v632_v32, -1e+30 }
 0x28b   :  { %v661_v23 = vsel %vm651_vm11, %v3680_v33, -inf }
 0x28c   :  { %662 = vmax.xlane.f32.xlu0 %v661_v23 }
 0x291   :  { %v635_v40 = vpop.f32.mrf.mxu3 }
 0x292   :  { %v3690_v44 = vsel %vm3684_vm15, %v635_v40, -1e+30 }
 0x293   :  { %v664_v29 = vsel %vm651_vm11, %v3690_v44, -inf }
 0x294   :  { %665 = vmax.xlane.f32.xlu2 %v664_v29 }
 0x299   :  { %v637_v51 = vpop.f32.mrf.mxu3 }
 0x29a   :  { %v3700_v52 = vsel %vm3694_vm1, %v637_v51, -1e+30 }
 0x29b   :  { %v667_v48 = vsel %vm651_vm11, %v3700_v52, -inf }
 0x29c   :  { %668 = vmax.xlane.f32.xlu1 %v667_v48 }
 0x2a1   :  { %v640_v54 = vpop.f32.mrf.mxu3 }
 0x2a2   :  { %v650_v55 = vsel %vm127_vm2, %v640_v54, -1e+30 }
 0x2a3   :  { %v671_v58 = vsel %vm670_vm3, %v650_v55, -inf }
 0x2a4   :  { %672 = vmax.xlane.f32.xlu2 %v671_v58 }
 0x2a9   :  { %v642_v59 = vpop.f32.mrf.mxu3 }
 0x2cd   :  { %v839_v60 = vpop.f32.mrf.mxu1 }
 0x2ce   :  { %v858_v62 = vsel %vm3643_vm10, %v839_v60, -1e+30 }
 0x2cf   :  { %v865_v24 = vsel %vm651_vm11, %v858_v62, -inf }
 0x2d0   :  { %866 = vmax.xlane.f32.xlu1 %v865_v24 }
 0x2d3   :  { %v854_v39 = vpop.f32.mrf.mxu3 }
 0x2d4   :  { %v3708_v63 = vsel %vm127_vm2, %v854_v39, -1e+30 }
 0x2d5   :  { %v841_v1 = vpop.f32.mrf.mxu1 }
 0x2d6   :  { %v859_v53 = vsel %vm3654_vm12, %v841_v1, -1e+30 }
 0x2d7   :  { %v868_v11 = vsel %vm651_vm11, %v859_v53, -inf }
 0x2d8   :  { %869 = vmax.xlane.f32.xlu0 %v868_v11 }
 0x2db   :  { %v856_v15 = vpop.f32.mrf.mxu3 }
 0x2dd   :  { %v844_v45 = vpop.f32.mrf.mxu1 }
 0x2de   :  { %v3715_v57 = vsel %vm3664_vm13, %v844_v45, -1e+30 }
 0x2df   :  { %v871_v56 = vsel %vm651_vm11, %v3715_v57, -inf }
 0x2e0   :  { %872 = vmax.xlane.f32.xlu0 %v871_v56 }
 0x2e5   :  { %v846_v16 = vpop.f32.mrf.mxu1 }
 0x2e6   :  { %v861_v34 = vsel %vm3674_vm14, %v846_v16, -1e+30 }
 0x2e7   :  { %v874_v0 = vsel %vm651_vm11, %v861_v34, -inf  ;;  %v654_v20 = vpop.xlane.xlu2 %653 }
 0x2e8   :  { %875 = vmax.xlane.f32.xlu2 %v874_v0  ;;  %v674_v51 = vsub.f32 %v3650_v61, %v654_v20 }
 0x2ed   :  { %v849_v14 = vpop.f32.mrf.mxu1 }
 0x2ee   :  { %v3724_v22 = vsel %vm3684_vm15, %v849_v14, -1e+30 }
 0x2ef   :  { %v877_v17 = vsel %vm651_vm11, %v3724_v22, -inf  ;;  %v657_v35 = vpop.xlane.xlu1 %656 }
 0x2f0   :  { %878 = vmax.xlane.f32.xlu2 %v877_v17 }
 0x2f5   :  { %v851_v26 = vpop.f32.mrf.mxu1 }
 0x2f6   :  { %v863_v9 = vsel %vm3694_vm1, %v851_v26, -1e+30 }
 0x2f7   :  { %v880_v13 = vsel %vm651_vm11, %v863_v9, -inf  ;;  %v660_v36 = vpop.xlane.xlu1 %659 }
 0x2f8   :  { %881 = vmax.xlane.f32.xlu1 %v880_v13  ;;  %v676_v60 = vsub.f32 %v3670_v25, %v660_v36 }
 0x2ff   :  { %v663_v38 = vpop.xlane.xlu0 %662 }
 0x300   :  { %v677_v13 = vsub.f32 %v3680_v33, %v663_v38 }
 0x307   :  { %v3731_v27 = vpop.xlane.xlu2 %665 }
 0x30f   :  { %v3739_v37 = vpop.xlane.xlu1 %668 }
 0x317   :  { %v673_v28 = vpop.xlane.xlu2 %672 }
 0x318   :  { %v680_v30 = vsub.f32 %v650_v55, %v673_v28 }
 0x31a   :  { %v693_v31 = vmul.f32 1.442695, %v680_v30 }
 0x31c   :  { %3047 = vpow2.f32 %v693_v31  ;;  %v678_v31 = vsub.f32 %v3690_v44, %v3731_v27 }
 0x31e   :  { %v689_v36 = vmul.f32 1.442695, %v678_v31 }
 0x322   :  { %v3733_v32 = vpop.eup %3047 }
 0x323   :  { %v713_v23 = vsel %vm670_vm3, %v3733_v32, 0.0 }
 0x324   :  { %714 = vadd.xlane.f32.xlu0 %v713_v23 }
 0x338   :  { %950 = vrot.lane.b32.xlu0 %v3625_v21, %s3215_s28  ;;  %v681_v21 = vmul.f32 1.442695, %v674_v51 }
 0x343   :  { %v867_v42 = vpop.xlane.xlu1 %866 }
 0x344   :  { %v886_v43 = vsub.f32 %v858_v62, %v867_v42  ;;  %v685_v62 = vmul.f32 1.442695, %v676_v60 }
 0x346   :  { %v893_v40 = vmul.f32 1.442695, %v886_v43 }
 0x348   :  { %3049 = vpow2.f32 %v893_v40 }
 0x34b   :  { %v870_v29 = vpop.xlane.xlu0 %869 }
 0x34c   :  { %v887_v46 = vsub.f32 %v859_v53, %v870_v29 }
 0x34e   :  { %v3741_v47 = vpop.eup %3049  ;;  %v895_v41 = vmul.f32 1.442695, %v887_v46 }
 0x34f   :  { %v907_v50 = vsel %vm651_vm11, %v3741_v47, 0.0 }
 0x350   :  { %3051 = vpow2.f32 %v895_v41  ;;  %908 = vadd.xlane.f32.xlu2 %v907_v50 }
 0x351   :  { %3053 = vpow2.f32 %v681_v21 }
 0x356   :  { %v3746_v48 = vpop.eup %3051 }
 0x357   :  { %v910_v49 = vsel %vm651_vm11, %v3746_v48, 0.0  ;;  %v3750_v58 = vpop.eup %3053 }
 0x358   :  { %911 = vadd.xlane.f32.xlu1 %v910_v49  ;;  %v695_v61 = vsel %vm651_vm11, %v3750_v58, 0.0 }
 0x35b   :  { %v876_v54 = vpop.xlane.xlu2 %875 }
 0x35c   :  { %v889_v55 = vsub.f32 %v861_v34, %v876_v54  ;;  %v873_v34 = vpop.xlane.xlu0 %872 }
 0x35d   :  { %v888_v0 = vsub.f32 %v3715_v57, %v873_v34  ;;  %v679_v57 = vsub.f32 %v3700_v52, %v3739_v37 }
 0x35e   :  { %v899_v59 = vmul.f32 1.442695, %v889_v55 }
 0x35f   :  { %v691_v23 = vmul.f32 1.442695, %v679_v57 }
 0x360   :  { %3055 = vpow2.f32 %v899_v59 }
 0x361   :  { %3057 = vpow2.f32 %v685_v62 }
 0x362   :  { %696 = vadd.xlane.f32.xlu0 %v695_v61 }
 0x363   :  { %v879_v14 = vpop.xlane.xlu2 %878 }
 0x364   :  { %v890_v26 = vsub.f32 %v3724_v22, %v879_v14  ;;  %v883_v22 = vsel %vm670_vm3, %v3708_v63, -inf }
 0x366   :  { %v3755_v24 = vpop.eup %3055  ;;  %v901_v20 = vmul.f32 1.442695, %v890_v26 }
 0x367   :  { %v916_v39 = vsel %vm651_vm11, %v3755_v24, 0.0  ;;  %v3761_v11 = vpop.eup %3057 }
 0x368   :  { %954 = vrot.lane.b32.xlu2 %v3610_v2, %s3215_s28  ;;  %v701_v15 = vsel %vm651_vm11, %v3761_v11, 0.0  ;;  %v675_v2 = vsub.f32 %v3660_v12, %v657_v35  ;;  %v687_v12 = vmul.f32 1.442695, %v677_v13 }
 0x36a   :  { %917 = vadd.xlane.f32.xlu0 %v916_v39  ;;  %v683_v16 = vmul.f32 1.442695, %v675_v2 }
 0x36b   :  { %v882_v1 = vpop.xlane.xlu1 %881 }
 0x36c   :  { %v891_v53 = vsub.f32 %v863_v9, %v882_v1 }
 0x36e   :  { %v903_v25 = vmul.f32 1.442695, %v891_v53 }
 0x370   :  { %3059 = vpow2.f32 %v903_v25 }
 0x371   :  { %952 = vrot.lane.b32.xlu1 %v3616_v19, %s3215_s28  ;;  %3061 = vpow2.f32 %v683_v16  ;;  %v897_v19 = vmul.f32 1.442695, %v888_v0  ;;  %v2912_v0 = vld [vmem:[%s4585_s5 + $0x38] sm:$0xff] }
 0x372   :  { %702 = vadd.xlane.f32.xlu0 %v701_v15  ;;  %1048 = vmatpush.bf16.msra.mxu3 %v2912_v0 }
 0x373   :  { %3063 = vpow2.f32 %v897_v19 }
 0x374   :  { %3065 = vpow2.f32 %v901_v20 }
 0x376   :  { %v3767_v45 = vpop.eup %3059 }
 0x377   :  { %v922_v56 = vsel %vm651_vm11, %v3767_v45, 0.0  ;;  %v3773_v17 = vpop.eup %3061 }
 0x378   :  { %v698_v9 = vsel %vm651_vm11, %v3773_v17, 0.0 }
 0x379   :  { %v3779_v28 = vpop.eup %3063 }
 0x37a   :  { %923 = vadd.xlane.f32.xlu0 %v922_v56  ;;  %v913_v33 = vsel %vm651_vm11, %v3779_v28, 0.0  ;;  %v3789_v35 = vpop.eup %3065 }
 0x37b   :  { %v919_v42 = vsel %vm651_vm11, %v3789_v35, 0.0 }
 0x391   :  { %699 = vadd.xlane.f32.xlu2 %v698_v9 }
 0x397   :  { %v715_v30 = vpop.xlane.xlu0 %714 }
 0x398   :  { %3067 = vrcp.f32 %v715_v30 }
 0x399   :  { %3069 = vpow2.f32 %v687_v12  ;;  %884 = vmax.xlane.f32.xlu2 %v883_v22 }
 0x39a   :  { %3071 = vpow2.f32 %v691_v23 }
 0x39b   :  { %914 = vadd.xlane.f32.xlu1 %v913_v33  ;;  %3073 = vpow2.f32 %v689_v36 }
 0x39e   :  { %v3068_v52 = vpop.eup %3067 }
 0x39f   :  { %v3791_v37 = vpop.eup %3069  ;;  %v729_v38 = vmul.f32 %v3068_v52, %v3733_v32 }
 0x3a0   :  { %v704_v27 = vsel %vm651_vm11, %v3791_v37, 0.0  ;;  %v3799_v43 = vpop.eup %3071 }
 0x3a1   :  { %920 = vadd.xlane.f32.xlu2 %v919_v42  ;;  %v733_v44 = vpack.c.bf16 %v729_v38, %v729_v38  ;;  %v3801_v40 = vpop.eup %3073  ;;  %v710_v29 = vsel %vm651_vm11, %v3799_v43, 0.0 }
 0x3a2   :  { %v707_v32 = vsel %vm651_vm11, %v3801_v40, 0.0 }
 0x3a3   :  { %2576 = vmatmul.msk.bf16.vlgmr.msrb.gmra.mxu2 %vm651_vm11, %v733_v44  ;;  %705 = vadd.xlane.f32.xlu1 %v704_v27 }
 0x3a9   :  { %711 = vadd.xlane.f32.xlu2 %v710_v29 }
 0x3aa   :  { %v951_v55 = vpop.permute.xlu0 %950 }
 0x3ab   :  { %708 = vadd.xlane.f32.xlu1 %v707_v32 }
 0x3c3   :  { %v909_v46 = vpop.xlane.xlu2 %908 }
 0x3cb   :  { %v955_v41 = vpop.permute.xlu2 %954  ;;  %v912_v50 = vpop.xlane.xlu1 %911 }
 0x3cc   :  { %981 = vmatpush.bf16.msra.mxu2 %v955_v41  ;;  %3075 = vrcp.f32 %v912_v50  ;;  %v2907_v41 = vld [vmem:[%s4585_s5 + $0x10] sm:$0xff] }
 0x3cd   :  { %3077 = vrcp.f32 %v909_v46 }
 0x3d2   :  { %v3076_v51 = vpop.eup %3075 }
 0x3d3   :  { %v3078_v49 = vpop.eup %3077  ;;  %v936_v54 = vmul.f32 %v3076_v51, %v3746_v48  ;;  %v2906_v51 = vld [vmem:[%s4585_s5 + $0x8] sm:$0xff] }
 0x3d4   :  { %v935_v59 = vmul.f32 %v3078_v49, %v3741_v47 }
 0x3d5   :  { %v697_v61 = vpop.xlane.xlu0 %696 }
 0x3d6   :  { %v942_v60 = vpack.c.bf16 %v936_v54, %v935_v59  ;;  %3079 = vrcp.f32 %v697_v61 }
 0x3dc   :  { %v3080_v1 = vpop.eup %3079 }
 0x3dd   :  { %v918_v39 = vpop.xlane.xlu0 %917  ;;  %v723_v25 = vmul.f32 %v3080_v1, %v3750_v58 }
 0x3e3   :  { %v953_v21 = vpop.permute.xlu1 %952 }
 0x3e4   :  { %982 = vmatpush.bf16.msra.mxu2 %v953_v21  ;;  %v2905_v21 = vld [vmem:[%s4585_s5] sm:$0xff] }
 0x3e5   :  { %v703_v34 = vpop.xlane.xlu0 %702 }
 0x3e8   :  { %983 = vmatpush.bf16.msra.mxu2 %v951_v55 }
 0x3eb   :  { %2581 = vmatmul.msk.bf16.vlgmr.msra.gmra.mxu2 %vm651_vm11, %v942_v60 }
 0x3ed   :  { %v924_v12 = vpop.xlane.xlu0 %923 }
 0x404   :  { %v700_v62 = vpop.xlane.xlu2 %699 }
 0x405   :  { %3081 = vrcp.f32 %v700_v62 }
 0x406   :  { %3083 = vrcp.f32 %v918_v39 }
 0x40b   :  { %v3082_v53 = vpop.eup %3081 }
 0x40c   :  { %v724_v15 = vmul.f32 %v3082_v53, %v3773_v17  ;;  %v885_v56 = vpop.xlane.xlu2 %884  ;;  %v3084_v14 = vpop.eup %3083 }
 0x40d   :  { %v892_v48 = vsub.f32 %v3708_v63, %v885_v56  ;;  %v938_v63 = vmul.f32 %v3084_v14, %v3755_v24 }
 0x40e   :  { %v915_v47 = vpop.xlane.xlu1 %914  ;;  %v730_v2 = vpack.c.bf16 %v724_v15, %v723_v25 }
 0x40f   :  { %v905_v16 = vmul.f32 1.442695, %v892_v48  ;;  %3085 = vrcp.f32 %v915_v47 }
 0x410   :  { %2573 = vmatmul.msk.bf16.vlgmr.msrb.gmra.mxu0 %vm651_vm11, %v730_v2 }
 0x411   :  { %3087 = vpow2.f32 %v905_v16 }
 0x412   :  { %3089 = vrcp.f32 %v703_v34 }
 0x414   :  { %v921_v9 = vpop.xlane.xlu2 %920 }
 0x415   :  { %v3086_v58 = vpop.eup %3085 }
 0x416   :  { %v706_v17 = vpop.xlane.xlu1 %705  ;;  %v937_v19 = vmul.f32 %v3086_v58, %v3779_v28 }
 0x417   :  { %v3088_v26 = vpop.eup %3087  ;;  %3091 = vrcp.f32 %v706_v17 }
 0x418   :  { %v925_v13 = vsel %vm670_vm3, %v3088_v26, 0.0  ;;  %v943_v20 = vpack.c.bf16 %v938_v63, %v937_v19  ;;  %v3090_v57 = vpop.eup %3089  ;;  %3093 = vrcp.f32 %v921_v9  ;;  %v3025_v9 = vld [vmem:[%s4586_s6] ss:$0 sm:$0xff] }
 0x419   :  { %926 = vadd.xlane.f32.xlu0 %v925_v13  ;;  %3095 = vrcp.f32 %v924_v12  ;;  %v725_v22 = vmul.f32 %v3090_v57, %v3761_v11 }
 0x41a   :  { %2582 = vmatmul.msk.bf16.gmra.mxu2 %vm651_vm11, %v943_v20 }
 0x41c   :  { %v712_v23 = vpop.xlane.xlu2 %711 }
 0x41d   :  { %v3092_v30 = vpop.eup %3091 }
 0x41e   :  { %v726_v28 = vmul.f32 %v3092_v30, %v3791_v37  ;;  %v709_v31 = vpop.xlane.xlu1 %708  ;;  %v3094_v33 = vpop.eup %3093 }
 0x41f   :  { %v3096_v36 = vpop.eup %3095  ;;  %3097 = vrcp.f32 %v709_v31  ;;  %v939_v52 = vmul.f32 %v3094_v33, %v3789_v35  ;;  %v2911_v35 = vld [vmem:[%s4585_s5 + $0x30] sm:$0xff] }
 0x420   :  { %v731_v24 = vpack.c.bf16 %v726_v28, %v725_v22  ;;  %3099 = vrcp.f32 %v712_v23  ;;  %v940_v42 = vmul.f32 %v3096_v36, %v3767_v45  ;;  %1049 = vmatpush.bf16.msra.mxu3 %v2911_v35  ;;  %v2910_v45 = vld [vmem:[%s4585_s5 + $0x28] sm:$0xff] }
 0x422   :  { %2574 = vmatmul.msk.bf16.gmra.mxu0 %vm651_vm11, %v731_v24  ;;  %v944_v44 = vpack.c.bf16 %v940_v42, %v939_v52 }
 0x424   :  { %1050 = vmatpush.bf16.msra.mxu3 %v2910_v45 }
 0x425   :  { %v3098_v27 = vpop.eup %3097 }
 0x426   :  { %v774_v38 = vpop.f32.mrf.mxu2  ;;  %v3100_v11 = vpop.eup %3099  ;;  %v727_v37 = vmul.f32 %v3098_v27, %v3801_v40  ;;  %v2909_v40 = vld [vmem:[%s4585_s5 + $0x20] sm:$0xff] }
 0x427   :  { %v728_v32 = vmul.f32 %v3100_v11, %v3799_v43  ;;  %v2908_v43 = vld [vmem:[%s4585_s5 + $0x18] sm:$0xff]  ;;  %v781_v17 = vpack.c.bf16 %v774_v38, %v774_v38 }
 0x428   :  { %1051 = vmatpush.bf16.msra.mxu3 %v2909_v40  ;;  %1112 = vmatpush.bf16.msra.mxu0 %v2908_v43 }
 0x429   :  { %v732_v46 = vpack.c.bf16 %v728_v32, %v727_v37  ;;  %3016 = vmatpush.bf16.msra.mxu1 %v2908_v43 }
 0x42a   :  { %2583 = vmatmul.msk.bf16.gmra.mxu2 %vm651_vm11, %v944_v44 }
 0x42c   :  { %1113 = vmatpush.bf16.msra.mxu0 %v2907_v41 }
 0x42d   :  { %3017 = vmatpush.bf16.msra.mxu1 %v2907_v41 }
 0x42e   :  { %v776_v29 = vpop.f32.mrf.mxu2 }
 0x430   :  { %1114 = vmatpush.bf16.msra.mxu0 %v2906_v51 }
 0x431   :  { %3018 = vmatpush.bf16.msra.mxu1 %v2906_v51 }
 0x432   :  { %2575 = vmatmul.msk.bf16.gmra.mxu0 %vm651_vm11, %v732_v46 }
 0x434   :  { %1115 = vmatpush.bf16.msra.mxu0 %v2905_v21 }
 0x435   :  { %3019 = vmatpush.bf16.msra.mxu1 %v2905_v21 }
 0x46e   :  { %v985_v50 = vpop.f32.mrf.mxu2 }
 0x476   :  { %v987_v49 = vpop.f32.mrf.mxu2 }
 0x477   :  { %v1004_v54 = vpack.c.bf16 %v987_v49, %v985_v50 }
 0x479   :  { %2601 = vmatmul.msk.bf16.vlgmr.msra.gmra.mxu3 %vm591_vm8, %v1004_v54 }
 0x48c   :  { %v927_v55 = vpop.xlane.xlu0 %926 }
 0x48d   :  { %3101 = vrcp.f32 %v927_v55  ;;  %v759_v59 = vpop.f32.mrf.mxu0 }
 0x493   :  { %v3102_v60 = vpop.eup %3101 }
 0x494   :  { %v941_v61 = vmul.f32 %v3102_v60, %v3088_v26 }
 0x495   :  { %v761_v62 = vpop.f32.mrf.mxu0 }
 0x496   :  { %v778_v39 = vpack.c.bf16 %v761_v62, %v759_v59  ;;  %v945_v1 = vpack.c.bf16 %v941_v61, %v941_v61 }
 0x498   :  { %2584 = vmatmul.msk.bf16.gmra.mxu2 %vm651_vm11, %v945_v1  ;;  %2621 = vmatmul.msk.bf16.vlgmr.msra.gmra.mxu0 %vm591_vm8, %v778_v39 }
 0x49d   :  { %v990_v53 = vpop.f32.mrf.mxu2 }
 0x49f   :  { %v764_v25 = vpop.f32.mrf.mxu0 }
 0x4a5   :  { %v992_v15 = vpop.f32.mrf.mxu2 }
 0x4a6   :  { %v1005_v56 = vpack.c.bf16 %v992_v15, %v990_v53 }
 0x4a7   :  { %v766_v48 = vpop.f32.mrf.mxu0 }
 0x4a8   :  { %v779_v47 = vpack.c.bf16 %v766_v48, %v764_v25  ;;  %2602 = vmatmul.msk.bf16.gmra.mxu3 %vm591_vm8, %v1005_v56 }
 0x4aa   :  { %2622 = vmatmul.msk.bf16.gmra.mxu0 %vm591_vm8, %v779_v47 }
 0x4ad   :  { %v995_v2 = vpop.f32.mrf.mxu2 }
 0x4af   :  { %v769_v16 = vpop.f32.mrf.mxu0 }
 0x4b5   :  { %v997_v34 = vpop.f32.mrf.mxu2 }
 0x4b6   :  { %v1006_v0 = vpack.c.bf16 %v997_v34, %v995_v2 }
 0x4b7   :  { %v771_v14 = vpop.f32.mrf.mxu0 }
 0x4b8   :  { %v780_v58 = vpack.c.bf16 %v771_v14, %v769_v16  ;;  %2603 = vmatmul.msk.bf16.gmra.mxu3 %vm591_vm8, %v1006_v0 }
 0x4ba   :  { %2623 = vmatmul.msk.bf16.vlgmr.msra.gmra.mxu1 %vm591_vm8, %v780_v58 }
 0x4ca   :  { %2624 = vmatmul.msk.bf16.gmra.mxu1 %vm591_vm8, %v781_v17 }
 0x4fc   :  { %v1053_v19 = vpop.f32.mrf.mxu3 }
 0x504   :  { %v1055_v30 = vpop.f32.mrf.mxu3 }
 0x515   :  { %v1117_v63 = vpop.f32.mrf.mxu0 }
 0x516   :  { %v1118_v26 = vadd.f32 %v1117_v63, %v1053_v19 }
 0x518   :  { %v1136_v13 = vadd.f32 %v3310_v4, %v1118_v26 }
 0x51a   :  { %v3863_v20 = vadd.f32 %v3025_v9, %v1136_v13  ;;  %v2943_v13 = vld [vmem:[%s4589_s9 + $0xec] sm:$0xf0] }
 0x51b   :  { %v1000_v12 = vpop.f32.mrf.mxu2 }
 0x51c   :  { %v1007_v57 = vpack.c.bf16 %v1000_v12, %v1000_v12  ;;  %1154 = vadd.xlane.f32.xlu1 %v3863_v20  ;;  %v2941_v12 = vld [vmem:[%s4589_s9 + $0xe4] sm:$0xf] }
 0x51d   :  { %v1119_v22 = vpop.f32.mrf.mxu0 }
 0x51e   :  { %v1120_v28 = vadd.f32 %v1119_v22, %v1055_v30  ;;  %2604 = vmatmul.msk.bf16.gmra.mxu3 %vm591_vm8, %v1007_v57  ;;  %v2741_v30 = vld [vmem:[%s4589_s9 + $0xf0] sm:$0xf0]  ;;  %v2747_v22 = vld [vmem:[%s4589_s9 + $0xe8] sm:$0xf] }
 0x520   :  { %v1137_v31 = vadd.f32 %v3317_v6, %v1120_v28  ;;  %v2944_v28 = vld [vmem:[%s4589_s9 + $0xf4] sm:$0xf0] }
 0x522   :  { %v3868_v24 = vadd.f32 %v3025_v9, %v1137_v31  ;;  %v2744_v31 = vor.u32 %v2941_v12, %v2741_v30  ;;  %v2677_v12 = vld [vmem:[%s4589_s9 + $0x70] sm:$0xf0]  ;;  %v2928_v30 = vld [vmem:[%s4589_s9 + $0x74] sm:$0xf0] }
 0x523   :  { %v1002_v33 = vpop.f32.mrf.mxu2 }
 0x524   :  { %1156 = vadd.xlane.f32.xlu2 %v3868_v24  ;;  %v2748_v33 = vor.u32 %v2944_v28, %v2747_v22  ;;  %1552 = vmatpush.bf16.msrb.mxu2 %v2744_v31  ;;  %v2926_v31 = vld [vmem:[%s4589_s9 + $0x6c] sm:$0xf] }
 0x526   :  { %1580 = vmatpush.bf16.msrb.mxu3 %v2748_v33  ;;  %v2685_v33 = vld [vmem:[%s4589_s9 + $0x78] sm:$0xf0] }
 0x527   :  { %v1122_v23 = vpop.f32.mrf.mxu0 }
 0x52b   :  { %v1058_v4 = vpop.f32.mrf.mxu3 }
 0x52c   :  { %v1123_v36 = vadd.f32 %v1122_v23, %v1058_v4  ;;  %v2942_v23 = vld [vmem:[%s4589_s9 + $0xec] sm:$0xf]  ;;  %v2749_v4 = vld [vmem:[%s4589_s9 + $0xf8] sm:$0xf0] }
 0x52e   :  { %v1138_v52 = vadd.f32 %v3312_v5, %v1123_v36  ;;  %v2752_v36 = vor.u32 %v2942_v23, %v2749_v4  ;;  %v2688_v23 = vor.u32 %v2926_v31, %v2685_v33  ;;  %v2659_v4 = vld [vmem:[%s4589_s9 + $0x40] sm:$0xf] }
 0x52f   :  { %v1124_v42 = vpop.f32.mrf.mxu0 }
 0x530   :  { %v3872_v38 = vadd.f32 %v3025_v9, %v1138_v52  ;;  %v2723_v52 = vld [vmem:[%s4589_s9 + $0xc0] sm:$0xf]  ;;  %1608 = vmatpush.bf16.msrb.mxu0 %v2752_v36  ;;  %v2923_v36 = vld [vmem:[%s4589_s9 + $0x4c] sm:$0xf0] }
 0x532   :  { %1158 = vadd.xlane.f32.xlu0 %v3872_v38 }
 0x533   :  { %v1060_v44 = vpop.f32.mrf.mxu3 }
 0x534   :  { %v1125_v27 = vadd.f32 %v1124_v42, %v1060_v44  ;;  %v2939_v42 = vld [vmem:[%s4589_s9 + $0xcc] sm:$0xf0]  ;;  %v2937_v44 = vld [vmem:[%s4589_s9 + $0xc4] sm:$0xf] }
 0x536   :  { %v1139_v11 = vadd.f32 %v3321_v8, %v1125_v27  ;;  %v2724_v27 = vor.u32 %v2939_v42, %v2723_v52  ;;  %v2921_v52 = vld [vmem:[%s4589_s9 + $0x44] sm:$0xf]  ;;  %v2660_v42 = vor.u32 %v2923_v36, %v2659_v4 }
 0x537   :  { %v1127_v6 = vpop.f32.mrf.mxu1 }
 0x538   :  { %v3876_v37 = vadd.f32 %v3025_v9, %v1139_v11  ;;  %v2725_v11 = vld [vmem:[%s4589_s9 + $0xd0] sm:$0xf0] }
 0x53a   :  { %1160 = vadd.xlane.f32.xlu1 %v3876_v37 }
 0x53b   :  { %v1063_v29 = vpop.f32.mrf.mxu3 }
 0x53c   :  { %v1128_v32 = vadd.f32 %v1127_v6, %v1063_v29  ;;  %v2731_v6 = vld [vmem:[%s4589_s9 + $0xc8] sm:$0xf]  ;;  %v2940_v29 = vld [vmem:[%s4589_s9 + $0xd4] sm:$0xf0] }
 0x53e   :  { %v1140_v46 = vadd.f32 %v3308_v3, %v1128_v32  ;;  %v2728_v32 = vor.u32 %v2937_v44, %v2725_v11  ;;  %v2661_v44 = vld [vmem:[%s4589_s9 + $0x50] sm:$0xf0]  ;;  %v2924_v11 = vld [vmem:[%s4589_s9 + $0x54] sm:$0xf0] }
 0x53f   :  { %v1129_v35 = vpop.f32.mrf.mxu1 }
 0x540   :  { %v3880_v5 = vadd.f32 %v3025_v9, %v1140_v46  ;;  %v2732_v46 = vor.u32 %v2940_v29, %v2731_v6  ;;  %1553 = vmatpush.bf16.msrb.mxu2 %v2728_v32  ;;  %v2664_v6 = vor.u32 %v2921_v52, %v2661_v44  ;;  %v2922_v32 = vld [vmem:[%s4589_s9 + $0x4c] sm:$0xf] }
 0x542   :  { %1162 = vadd.xlane.f32.xlu2 %v3880_v5  ;;  %1581 = vmatpush.bf16.msrb.mxu3 %v2732_v46  ;;  %v2669_v46 = vld [vmem:[%s4589_s9 + $0x58] sm:$0xf0] }
 0x543   :  { %v1065_v45 = vpop.f32.mrf.mxu3 }
 0x544   :  { %v1130_v40 = vadd.f32 %v1129_v35, %v1065_v45  ;;  %v2938_v35 = vld [vmem:[%s4589_s9 + $0xcc] sm:$0xf]  ;;  %v2733_v45 = vld [vmem:[%s4589_s9 + $0xd8] sm:$0xf0] }
 0x546   :  { %v1141_v43 = vadd.f32 %v3319_v7, %v1130_v40  ;;  %v2736_v40 = vor.u32 %v2938_v35, %v2733_v45  ;;  %v2672_v35 = vor.u32 %v2922_v32, %v2669_v46  ;;  %v2643_v45 = vld [vmem:[%s4589_s9 + $0x20] sm:$0xf] }
 0x547   :  { %v1132_v41 = vpop.f32.mrf.mxu1 }
 0x548   :  { %v3884_v8 = vadd.f32 %v3025_v9, %v1141_v43  ;;  %v2707_v43 = vld [vmem:[%s4589_s9 + $0xa0] sm:$0xf]  ;;  %1609 = vmatpush.bf16.msrb.mxu0 %v2736_v40  ;;  %v2919_v40 = vld [vmem:[%s4589_s9 + $0x2c] sm:$0xf0] }
 0x54a   :  { %1164 = vadd.xlane.f32.xlu0 %v3884_v8 }
 0x54f   :  { %v1134_v50 = vpop.f32.mrf.mxu1 }
 0x550   :  { %v2933_v50 = vld [vmem:[%s4589_s9 + $0xa4] sm:$0xf] }
 0x58f   :  { %v1155_v51 = vpop.xlane.xlu1 %1154 }
 0x590   :  { %v1169_v21 = vmul.f32 %v1155_v51, %v3333_v18 }
 0x592   :  { %v3889_v3 = vsub.f32 %v3863_v20, %v1169_v21  ;;  %v2709_v21 = vld [vmem:[%s4589_s9 + $0xb0] sm:$0xf0] }
 0x594   :  { %v1183_v49 = vmul.f32 %v3889_v3, %v3889_v3 }
 0x596   :  { %1190 = vadd.xlane.f32.xlu1 %v1183_v49  ;;  %v2715_v49 = vld [vmem:[%s4589_s9 + $0xa8] sm:$0xf] }
 0x597   :  { %v1157_v54 = vpop.xlane.xlu2 %1156 }
 0x598   :  { %v1170_v55 = vmul.f32 %v1157_v54, %v3333_v18  ;;  %v2936_v54 = vld [vmem:[%s4589_s9 + $0xb4] sm:$0xf0] }
 0x59a   :  { %v3895_v7 = vsub.f32 %v3868_v24, %v1170_v55  ;;  %v2712_v55 = vor.u32 %v2933_v50, %v2709_v21  ;;  %v2645_v50 = vld [vmem:[%s4589_s9 + $0x30] sm:$0xf0]  ;;  %v2920_v21 = vld [vmem:[%s4589_s9 + $0x34] sm:$0xf0] }
 0x59c   :  { %v1184_v59 = vmul.f32 %v3895_v7, %v3895_v7  ;;  %1554 = vmatpush.bf16.msrb.mxu2 %v2712_v55 }
 0x59e   :  { %1192 = vadd.xlane.f32.xlu2 %v1184_v59  ;;  %v2716_v59 = vor.u32 %v2936_v54, %v2715_v49 }
 0x5a0   :  { %1582 = vmatpush.bf16.msrb.mxu3 %v2716_v59  ;;  %v2918_v59 = vld [vmem:[%s4589_s9 + $0x2c] sm:$0xf] }
 0x5a1   :  { %v1068_v60 = vpop.f32.mrf.mxu3 }
 0x5a2   :  { %v1133_v61 = vadd.f32 %v1132_v41, %v1068_v60  ;;  %v2935_v41 = vld [vmem:[%s4589_s9 + $0xac] sm:$0xf0]  ;;  %v2934_v60 = vld [vmem:[%s4589_s9 + $0xac] sm:$0xf] }
 0x5a3   :  { %v2708_v51 = vor.u32 %v2935_v41, %v2707_v43  ;;  %v2917_v43 = vld [vmem:[%s4589_s9 + $0x24] sm:$0xf]  ;;  %v2644_v41 = vor.u32 %v2919_v40, %v2643_v45  ;;  %v4134_v40 = vld [vmem:[%s4587_s7] ss:$0 sm:$0xff] }
 0x5a4   :  { %v1142_v62 = vadd.f32 %v1133_v61, %v3329_v10  ;;  %v2717_v61 = vld [vmem:[%s4589_s9 + $0xb8] sm:$0xf0]  ;;  %v2648_v54 = vor.u32 %v2917_v43, %v2645_v50 }
 0x5a5   :  { %v1159_v39 = vpop.xlane.xlu0 %1158 }
 0x5a6   :  { %v3900_v1 = vadd.f32 %v3025_v9, %v1142_v62  ;;  %v1171_v53 = vmul.f32 %v1159_v39, %v3333_v18  ;;  %v2739_v9 = vld [vmem:[%s4589_s9 + $0xe0] sm:$0xf]  ;;  %v2720_v62 = vor.u32 %v2934_v60, %v2717_v61  ;;  %v2653_v60 = vld [vmem:[%s4589_s9 + $0x38] sm:$0xf0] }
 0x5a7   :  { %v2740_v57 = vor.u32 %v2943_v13, %v2739_v9  ;;  %v2691_v39 = vld [vmem:[%s4589_s9 + $0x80] sm:$0xf]  ;;  %v2925_v9 = vld [vmem:[%s4589_s9 + $0x64] sm:$0xf] }
 0x5a8   :  { %v3904_v25 = vsub.f32 %v3872_v38, %v1171_v53  ;;  %v1166_v15 = vsel %vm140_vm0, %v3900_v1, 0.0  ;;  %v2931_v53 = vld [vmem:[%s4589_s9 + $0x8c] sm:$0xf0]  ;;  %1610 = vmatpush.bf16.msrb.mxu0 %v2720_v62  ;;  %v2680_v22 = vor.u32 %v2925_v9, %v2677_v12  ;;  %v2656_v62 = vor.u32 %v2918_v59, %v2653_v60 }
 0x5a9   :  { %1167 = vadd.xlane.f32.xlu0 %v1166_v15  ;;  %v1070_v56 = vpop.f32.mrf.mxu3  ;;  %1524 = vmatpush.bf16.msrb.mxu1 %v2740_v57  ;;  %v2929_v15 = vld [vmem:[%s4589_s9 + $0x84] sm:$0xf]  ;;  %v2683_v57 = vld [vmem:[%s4589_s9 + $0x68] sm:$0xf] }
 0x5aa   :  { %v1185_v48 = vmul.f32 %v3904_v25, %v3904_v25  ;;  %v2692_v56 = vor.u32 %v2931_v53, %v2691_v39  ;;  %v2684_v28 = vor.u32 %v2928_v30, %v2683_v57  ;;  %v2627_v39 = vld [vmem:[%s4589_s9] sm:$0xf]  ;;  %v2915_v53 = vld [vmem:[%s4589_s9 + $0xc] sm:$0xf0] }
 0x5ac   :  { %1194 = vadd.xlane.f32.xlu1 %v1185_v48  ;;  %v2693_v48 = vld [vmem:[%s4589_s9 + $0x90] sm:$0xf0] }
 0x5ad   :  { %v1161_v47 = vpop.xlane.xlu1 %1160  ;;  %1525 = vmatpush.bf16.msrb.mxu1 %v2724_v27  ;;  %v2667_v27 = vld [vmem:[%s4589_s9 + $0x48] sm:$0xf] }
 0x5ae   :  { %v1172_v10 = vmul.f32 %v1161_v47, %v3333_v18  ;;  %v2699_v47 = vld [vmem:[%s4589_s9 + $0x88] sm:$0xf]  ;;  %v2668_v29 = vor.u32 %v2924_v11, %v2667_v27 }
 0x5b0   :  { %v3912_v2 = vsub.f32 %v3876_v37, %v1172_v10  ;;  %v2932_v10 = vld [vmem:[%s4589_s9 + $0x94] sm:$0xf0] }
 0x5b1   :  { %1526 = vmatpush.bf16.msrb.mxu1 %v2708_v51  ;;  %v2651_v51 = vld [vmem:[%s4589_s9 + $0x28] sm:$0xf] }
 0x5b2   :  { %v1186_v16 = vmul.f32 %v3912_v2, %v3912_v2  ;;  %v2652_v55 = vor.u32 %v2920_v21, %v2651_v51 }
 0x5b4   :  { %1196 = vadd.xlane.f32.xlu2 %v1186_v16  ;;  %v2696_v16 = vor.u32 %v2929_v15, %v2693_v48  ;;  %v2913_v15 = vld [vmem:[%s4589_s9 + $0x4] sm:$0xf]  ;;  %v2628_v48 = vor.u32 %v2915_v53, %v2627_v39 }
 0x5b5   :  { %v1163_v34 = vpop.xlane.xlu2 %1162  ;;  %1527 = vmatpush.bf16.msrb.mxu1 %v2692_v56 }
 0x5b6   :  { %v1173_v0 = vmul.f32 %v1163_v34, %v3333_v18  ;;  %v2700_v34 = vor.u32 %v2932_v10, %v2699_v47  ;;  %1555 = vmatpush.bf16.msrb.mxu2 %v2696_v16  ;;  %v2629_v47 = vld [vmem:[%s4589_s9 + $0x10] sm:$0xf0]  ;;  %v2635_v10 = vld [vmem:[%s4589_s9 + $0x8] sm:$0xf] }
 0x5b7   :  { %v2632_v16 = vor.u32 %v2913_v15, %v2629_v47 }
 0x5b8   :  { %v3918_v14 = vsub.f32 %v3880_v5, %v1173_v0  ;;  %v2930_v0 = vld [vmem:[%s4589_s9 + $0x8c] sm:$0xf]  ;;  %1583 = vmatpush.bf16.msrb.mxu3 %v2700_v34  ;;  %v2916_v34 = vld [vmem:[%s4589_s9 + $0x14] sm:$0xf0] }
 0x5ba   :  { %v1187_v58 = vmul.f32 %v3918_v14, %v3918_v14  ;;  %1556 = vmatpush.bf16.msrb.mxu2 %v2680_v22 }
 0x5bc   :  { %1198 = vadd.xlane.f32.xlu0 %v1187_v58  ;;  %v2701_v58 = vld [vmem:[%s4589_s9 + $0x98] sm:$0xf0]  ;;  %1584 = vmatpush.bf16.msrb.mxu3 %v2684_v28 }
 0x5bd   :  { %v1165_v17 = vpop.xlane.xlu0 %1164 }
 0x5be   :  { %v1174_v19 = vmul.f32 %v1165_v17, %v3333_v18  ;;  %v2704_v17 = vor.u32 %v2930_v0, %v2701_v58  ;;  %1557 = vmatpush.bf16.msrb.mxu2 %v2664_v6  ;;  %v2914_v0 = vld [vmem:[%s4589_s9 + $0xc] sm:$0xf]  ;;  %v2637_v58 = vld [vmem:[%s4589_s9 + $0x18] sm:$0xf0] }
 0x5c0   :  { %v3924_v63 = vsub.f32 %v3884_v8, %v1174_v19  ;;  %v2675_v19 = vld [vmem:[%s4589_s9 + $0x60] sm:$0xf]  ;;  %1611 = vmatpush.bf16.msrb.mxu0 %v2704_v17  ;;  %1585 = vmatpush.bf16.msrb.mxu3 %v2668_v29  ;;  %v2636_v17 = vor.u32 %v2916_v34, %v2635_v10 }
 0x5c2   :  { %v1188_v26 = vmul.f32 %v3924_v63, %v3924_v63  ;;  %1558 = vmatpush.bf16.msrb.mxu2 %v2648_v54 }
 0x5c4   :  { %1200 = vadd.xlane.f32.xlu1 %v1188_v26  ;;  %v2927_v26 = vld [vmem:[%s4589_s9 + $0x6c] sm:$0xf0]  ;;  %1612 = vmatpush.bf16.msrb.mxu0 %v2688_v23 }
 0x5c5   :  { %v2676_v13 = vor.u32 %v2927_v26, %v2675_v19  ;;  %1586 = vmatpush.bf16.msrb.mxu3 %v2652_v55  ;;  %v2640_v19 = vor.u32 %v2914_v0, %v2637_v58 }
 0x5c6   :  { %1559 = vmatpush.bf16.msrb.mxu2 %v2632_v16 }
 0x5c7   :  { %1528 = vmatpush.bf16.msrb.mxu1 %v2676_v13 }
 0x5c8   :  { %1613 = vmatpush.bf16.msrb.mxu0 %v2672_v35 }
 0x5c9   :  { %1587 = vmatpush.bf16.msrb.mxu3 %v2636_v17 }
 0x5cb   :  { %1529 = vmatpush.bf16.msrb.mxu1 %v2660_v42 }
 0x5cc   :  { %1614 = vmatpush.bf16.msrb.mxu0 %v2656_v62 }
 0x5cf   :  { %1530 = vmatpush.bf16.msrb.mxu1 %v2644_v41 }
 0x5d0   :  { %1615 = vmatpush.bf16.msrb.mxu0 %v2640_v19 }
 0x5d3   :  { %1531 = vmatpush.bf16.msrb.mxu1 %v2628_v48 }
 0x609   :  { %v1191_v49 = vpop.xlane.xlu1 %1190 }
 0x60a   :  { %v1205_v61 = vmul.f32 %v1191_v49, %v3333_v18 }
 0x60c   :  { %v1212_v56 = vadd.f32 1e-05, %v1205_v61 }
 0x60e   :  { %3103 = vrsqrt.f32 %v1212_v56  ;;  %vm1225_vm5 = vweird.f32 %v1212_v56 }
 0x611   :  { %v1193_v26 = vpop.xlane.xlu2 %1192 }
 0x612   :  { %v1206_v9 = vmul.f32 %v1193_v26, %v3333_v18 }
 0x614   :  { %v3104_v13 = vpop.eup %3103  ;;  %v1213_v12 = vadd.f32 1e-05, %v1206_v9 }
 0x615   :  { %v1220_v57 = vmul.f32 %v3104_v13, %v1212_v56  ;;  %vm1226_vm4 = vweird.f32 %v3104_v13 }
 0x616   :  { %3105 = vrsqrt.f32 %v1213_v12  ;;  %vm1227_vm6 = vmor %vm1225_vm5, %vm1226_vm4  ;;  %vm1235_vm8 = vweird.f32 %v1213_v12 }
 0x617   :  { %v1221_v30 = vmul.f32 %v3104_v13, %v1220_v57 }
 0x619   :  { %v1222_v22 = vmul.f32 0.5, %v1221_v30 }
 0x61b   :  { %v1223_v28 = vsub.f32 1.5, %v1222_v22 }
 0x61c   :  { %v3106_v31 = vpop.eup %3105  ;;  %v1168_v33 = vpop.xlane.xlu0 %1167 }
 0x61d   :  { %v1224_v23 = vmul.f32 %v3104_v13, %v1223_v28  ;;  %v1230_v4 = vmul.f32 %v3106_v31, %v1213_v12  ;;  %v1175_v36 = vmul.f32 %v1168_v33, %v3333_v18  ;;  %vm1236_vm7 = vweird.f32 %v3106_v31 }
 0x61e   :  { %vm1237_vm9 = vmor %vm1235_vm8, %vm1236_vm7 }
 0x61f   :  { %v1231_v52 = vmul.f32 %v3106_v31, %v1230_v4  ;;  %v4124_v42 = vsub.f32 %v3900_v1, %v1175_v36  ;;  %v1195_v44 = vpop.xlane.xlu1 %1194  ;;  %v1228_v11 = vsel %vm1227_vm6, %v3104_v13, %v1224_v23 }
 0x620   :  { %v1207_v27 = vmul.f32 %v1195_v44, %v3333_v18  ;;  %v1289_v45 = vmul.f32 %v1228_v11, %v3889_v3  ;;  %v4142_v3 = vld [vmem:[%s4588_s8] ss:$0 sm:$0xff] }
 0x621   :  { %v1232_v6 = vmul.f32 0.5, %v1231_v52  ;;  %v1189_v29 = vmul.f32 %v4124_v42, %v4124_v42 }
 0x622   :  { %v1214_v32 = vadd.f32 1e-05, %v1207_v27  ;;  %v1300_v49 = vmul.f32 %v4134_v40, %v1289_v45 }
 0x623   :  { %v1233_v46 = vsub.f32 1.5, %v1232_v6  ;;  %v1202_v35 = vsel %vm140_vm0, %v1189_v29, 0.0 }
 0x624   :  { %3107 = vrsqrt.f32 %v1214_v32  ;;  %1203 = vadd.xlane.f32.xlu2 %v1202_v35  ;;  %v1311_v61 = vadd.f32 %v4142_v3, %v1300_v49  ;;  %vm1245_vm11 = vweird.f32 %v1214_v32 }
 0x625   :  { %v1234_v43 = vmul.f32 %v3106_v31, %v1233_v46 }
 0x627   :  { %v1238_v41 = vsel %vm1237_vm9, %v3106_v31, %v1234_v43  ;;  %v1197_v50 = vpop.xlane.xlu2 %1196 }
 0x628   :  { %v1290_v51 = vmul.f32 %v1238_v41, %v3895_v7  ;;  %v1208_v21 = vmul.f32 %v1197_v50, %v3333_v18 }
 0x62a   :  { %v3108_v54 = vpop.eup %3107  ;;  %v1215_v55 = vadd.f32 1e-05, %v1208_v21  ;;  %v1301_v59 = vmul.f32 %v4134_v40, %v1290_v51 }
 0x62b   :  { %v1240_v60 = vmul.f32 %v3108_v54, %v1214_v32  ;;  %vm1246_vm10 = vweird.f32 %v3108_v54 }
 0x62c   :  { %3109 = vrsqrt.f32 %v1215_v55  ;;  %v1312_v62 = vadd.f32 %v4142_v3, %v1301_v59  ;;  %vm1247_vm12 = vmor %vm1245_vm11, %vm1246_vm10  ;;  %vm1255_vm14 = vweird.f32 %v1215_v55  ;;  %v2951_v59 = vld [vmem:[%s4591_s11 + $0x30] sm:$0xff] }
 0x62d   :  { %v1241_v7 = vmul.f32 %v3108_v54, %v1240_v60  ;;  %v2975_v60 = vld [vmem:[%s4591_s11 + $0xf0] sm:$0xff] }
 0x62e   :  { %v1318_v39 = vpack.c.bf16 %v1312_v62, %v1311_v61  ;;  %v2960_v62 = vld [vmem:[%s4591_s11 + $0x78] sm:$0xff] }
 0x62f   :  { %v1242_v53 = vmul.f32 0.5, %v1241_v7  ;;  %v1199_v15 = vpop.xlane.xlu0 %1198  ;;  %v2968_v7 = vld [vmem:[%s4591_s11 + $0xb8] sm:$0xff]  ;;  %2188 = vmatpush.bf16.msra.mxu2 %v2960_v62 }
 0x630   :  { %v1209_v56 = vmul.f32 %v1199_v15, %v3333_v18  ;;  %1532 = vmatmul.bf16.vlgmr.msrb.gmra.mxu1 %v1318_v39  ;;  %1560 = vmatmul.bf16.vlgmr.msrb.gmra.mxu2 %v1318_v39  ;;  %v2974_v15 = vld [vmem:[%s4591_s11 + $0xe8] sm:$0xff] }
 0x631   :  { %v1243_v48 = vsub.f32 1.5, %v1242_v53  ;;  %1588 = vmatmul.bf16.vlgmr.msrb.gmra.mxu3 %v1318_v39  ;;  %1616 = vmatmul.bf16.vlgmr.msrb.gmra.mxu0 %v1318_v39  ;;  %v2950_v53 = vld [vmem:[%s4591_s11 + $0x28] sm:$0xff] }
 0x632   :  { %v3110_v47 = vpop.eup %3109  ;;  %v1216_v10 = vadd.f32 1e-05, %v1209_v56  ;;  %2216 = vmatpush.bf16.msra.mxu3 %v2968_v7 }
 0x633   :  { %v1244_v16 = vmul.f32 %v3108_v54, %v1243_v48  ;;  %v1250_v34 = vmul.f32 %v3110_v47, %v1215_v55  ;;  %vm1256_vm13 = vweird.f32 %v3110_v47  ;;  %v2959_v48 = vld [vmem:[%s4591_s11 + $0x70] sm:$0xff] }
 0x634   :  { %3111 = vrsqrt.f32 %v1216_v10  ;;  %vm1257_vm15 = vmor %vm1255_vm14, %vm1256_vm13  ;;  %vm1265_vm2 = vweird.f32 %v1216_v10  ;;  %2189 = vmatpush.bf16.msra.mxu2 %v2959_v48 }
 0x635   :  { %v1251_v0 = vmul.f32 %v3110_v47, %v1250_v34  ;;  %v1248_v58 = vsel %vm1247_vm12, %v3108_v54, %v1244_v16  ;;  %v2973_v16 = vld [vmem:[%s4591_s11 + $0xe0] sm:$0xff]  ;;  %v2958_v34 = vld [vmem:[%s4591_s11 + $0x68] sm:$0xff] }
 0x636   :  { %v1291_v12 = vmul.f32 %v1248_v58, %v3904_v25  ;;  %v2948_v58 = vld [vmem:[%s4591_s11 + $0x18] sm:$0xff] }
 0x637   :  { %v1252_v17 = vmul.f32 0.5, %v1251_v0  ;;  %v1201_v19 = vpop.xlane.xlu1 %1200  ;;  %v2966_v0 = vld [vmem:[%s4591_s11 + $0xa8] sm:$0xff] }
 0x638   :  { %v1210_v26 = vmul.f32 %v1201_v19, %v3333_v18  ;;  %v1302_v23 = vmul.f32 %v4134_v40, %v1291_v12  ;;  %2190 = vmatpush.bf16.msra.mxu2 %v2958_v34 }
 0x639   :  { %v1253_v9 = vsub.f32 1.5, %v1252_v17  ;;  %v2972_v17 = vld [vmem:[%s4591_s11 + $0xd8] sm:$0xff] }
 0x63a   :  { %v3112_v13 = vpop.eup %3111  ;;  %v1217_v57 = vadd.f32 1e-05, %v1210_v26  ;;  %v1313_v27 = vadd.f32 %v4142_v3, %v1302_v23 }
 0x63b   :  { %v1254_v30 = vmul.f32 %v3110_v47, %v1253_v9  ;;  %v1260_v22 = vmul.f32 %v3112_v13, %v1216_v10  ;;  %vm1266_vm1 = vweird.f32 %v3112_v13  ;;  %v2949_v10 = vld [vmem:[%s4591_s11 + $0x20] sm:$0xff] }
 0x63c   :  { %3113 = vrsqrt.f32 %v1217_v57  ;;  %vm1267_vm3 = vmor %vm1265_vm2, %vm1266_vm1  ;;  %vm1275_vm5 = vweird.f32 %v1217_v57  ;;  %v2957_v9 = vld [vmem:[%s4591_s11 + $0x60] sm:$0xff] }
 0x63d   :  { %v1258_v28 = vsel %vm1257_vm15, %v3110_v47, %v1254_v30  ;;  %v1261_v31 = vmul.f32 %v3112_v13, %v1260_v22  ;;  %v2967_v47 = vld [vmem:[%s4591_s11 + $0xb0] sm:$0xff]  ;;  %2191 = vmatpush.bf16.msra.mxu2 %v2957_v9 }
 0x63e   :  { %v1292_v33 = vmul.f32 %v1258_v28, %v3912_v2  ;;  %2217 = vmatpush.bf16.msra.mxu3 %v2967_v47  ;;  %v2971_v30 = vld [vmem:[%s4591_s11 + $0xd0] sm:$0xff]  ;;  %v1354_v28 = vld [vmem:[%s4590_s10] sm:$0xf] }
 0x63f   :  { %v1262_v4 = vmul.f32 0.5, %v1261_v31  ;;  %v2956_v31 = vld [vmem:[%s4591_s11 + $0x58] sm:$0xff]  ;;  %v2953_v47 = vld [vmem:[%s4591_s11 + $0x40] sm:$0xff] }
 0x640   :  { %v1303_v36 = vmul.f32 %v4134_v40, %v1292_v33  ;;  %v2964_v33 = vld [vmem:[%s4591_s11 + $0x98] sm:$0xff] }
 0x641   :  { %v1263_v52 = vsub.f32 1.5, %v1262_v4  ;;  %2192 = vmatpush.bf16.msra.mxu2 %v2956_v31  ;;  %v2946_v4 = vld [vmem:[%s4591_s11 + $0x8] sm:$0xff] }
 0x642   :  { %v3114_v44 = vpop.eup %3113  ;;  %v1314_v25 = vadd.f32 %v4142_v3, %v1303_v36  ;;  %2218 = vmatpush.bf16.msra.mxu3 %v2966_v0  ;;  %v2970_v36 = vld [vmem:[%s4591_s11 + $0xc8] sm:$0xff] }
 0x643   :  { %v1264_v11 = vmul.f32 %v3112_v13, %v1263_v52  ;;  %v1270_v6 = vmul.f32 %v3114_v44, %v1217_v57  ;;  %vm1276_vm4 = vweird.f32 %v3114_v44  ;;  %v2947_v57 = vld [vmem:[%s4591_s11 + $0x10] sm:$0xff]  ;;  %v4237_v52 = vperm.slane %v1354_v28, 0 }
 0x644   :  { %v1319_v29 = vpack.c.bf16 %v1314_v25, %v1313_v27  ;;  %vm1277_vm6 = vmor %vm1275_vm5, %vm1276_vm4  ;;  %v4239_v27 = vperm.slane %v1354_v28, 3 }
 0x645   :  { %v1271_v32 = vmul.f32 %v3114_v44, %v1270_v6  ;;  %v1268_v2 = vsel %vm1267_vm3, %v3112_v13, %v1264_v11  ;;  %v2965_v13 = vld [vmem:[%s4591_s11 + $0xa0] sm:$0xff] }
 0x646   :  { %1537 = vmatmul.bf16.gmra.mxu1 %v1319_v29  ;;  %1565 = vmatmul.bf16.gmra.mxu2 %v1319_v29  ;;  %v1293_v45 = vmul.f32 %v1268_v2, %v3918_v14  ;;  %v2952_v14 = vld [vmem:[%s4591_s11 + $0x38] sm:$0xff]  ;;  %v2955_v2 = vld [vmem:[%s4591_s11 + $0x50] sm:$0xff] }
 0x647   :  { %v1272_v46 = vmul.f32 0.5, %v1271_v32  ;;  %1593 = vmatmul.bf16.gmra.mxu3 %v1319_v29  ;;  %1621 = vmatmul.bf16.gmra.mxu0 %v1319_v29 }
 0x648   :  { %v1304_v51 = vmul.f32 %v4134_v40, %v1293_v45  ;;  %2160 = vmatpush.bf16.msra.mxu1 %v2952_v14  ;;  %2219 = vmatpush.bf16.msra.mxu3 %v2965_v13 }
 0x649   :  { %v1273_v35 = vsub.f32 1.5, %v1272_v46  ;;  %v2963_v46 = vld [vmem:[%s4591_s11 + $0x90] sm:$0xff]  ;;  %2193 = vmatpush.bf16.msra.mxu2 %v2955_v2 }
 0x64a   :  { %v1315_v49 = vadd.f32 %v4142_v3, %v1304_v51 }
 0x64b   :  { %v1274_v43 = vmul.f32 %v3114_v44, %v1273_v35 }
 0x64c   :  { %2161 = vmatpush.bf16.msra.mxu1 %v2951_v59  ;;  %2220 = vmatpush.bf16.msra.mxu3 %v2964_v33 }
 0x64d   :  { %v1278_v41 = vsel %vm1277_vm6, %v3114_v44, %v1274_v43  ;;  %v4256_v43 = vperm.slane %v1354_v28, 1 }
 0x64e   :  { %v1294_v50 = vmul.f32 %v1278_v41, %v3924_v63  ;;  %v2976_v63 = vld [vmem:[%s4591_s11 + $0xf8] sm:$0xff]  ;;  %v2945_v41 = vld [vmem:[%s4591_s11] sm:$0xff] }
 0x64f   :  { %2244 = vmatpush.bf16.msra.mxu0 %v2976_v63 }
 0x650   :  { %v1305_v21 = vmul.f32 %v4134_v40, %v1294_v50  ;;  %2162 = vmatpush.bf16.msra.mxu1 %v2950_v53  ;;  %2221 = vmatpush.bf16.msra.mxu3 %v2963_v46  ;;  %v2969_v50 = vld [vmem:[%s4591_s11 + $0xc0] sm:$0xff] }
 0x652   :  { %v1316_v54 = vadd.f32 %v4142_v3, %v1305_v21  ;;  %v4267_v21 = vperm.slane %v1354_v28, 2 }
 0x653   :  { %2245 = vmatpush.bf16.msra.mxu0 %v2975_v60 }
 0x654   :  { %v1320_v55 = vpack.c.bf16 %v1316_v54, %v1315_v49  ;;  %2163 = vmatpush.bf16.msra.mxu1 %v2949_v10  ;;  %v2961_v10 = vld [vmem:[%s4591_s11 + $0x80] sm:$0xff] }
 0x656   :  { %1542 = vmatmul.bf16.gmra.mxu1 %v1320_v55  ;;  %1570 = vmatmul.bf16.gmra.mxu2 %v1320_v55 }
 0x657   :  { %1598 = vmatmul.bf16.gmra.mxu3 %v1320_v55  ;;  %1626 = vmatmul.bf16.gmra.mxu0 %v1320_v55  ;;  %v2962_v55 = vld [vmem:[%s4591_s11 + $0x88] sm:$0xff] }
 0x658   :  { %2246 = vmatpush.bf16.msra.mxu0 %v2974_v15  ;;  %2164 = vmatpush.bf16.msra.mxu1 %v2948_v58 }
 0x659   :  { %2222 = vmatpush.bf16.msra.mxu3 %v2962_v55 }
 0x65c   :  { %2247 = vmatpush.bf16.msra.mxu0 %v2973_v16  ;;  %2165 = vmatpush.bf16.msra.mxu1 %v2947_v57 }
 0x65d   :  { %2223 = vmatpush.bf16.msra.mxu3 %v2961_v10 }
 0x660   :  { %2248 = vmatpush.bf16.msra.mxu0 %v2972_v17  ;;  %2166 = vmatpush.bf16.msra.mxu1 %v2946_v4 }
 0x664   :  { %2249 = vmatpush.bf16.msra.mxu0 %v2971_v30  ;;  %2167 = vmatpush.bf16.msra.mxu1 %v2945_v41 }
 0x668   :  { %2250 = vmatpush.bf16.msra.mxu0 %v2970_v36 }
 0x66c   :  { %2251 = vmatpush.bf16.msra.mxu0 %v2969_v50 }
 0x697   :  { %v1204_v61 = vpop.xlane.xlu2 %1203 }
 0x698   :  { %v1211_v39 = vmul.f32 %v1204_v61, %v3333_v18 }
 0x69a   :  { %v1218_v56 = vadd.f32 1e-05, %v1211_v39 }
 0x69c   :  { %3115 = vrsqrt.f32 %v1218_v56  ;;  %vm1285_vm8 = vweird.f32 %v1218_v56 }
 0x6a2   :  { %v3116_v19 = vpop.eup %3115 }
 0x6a3   :  { %v1280_v26 = vmul.f32 %v3116_v19, %v1218_v56  ;;  %vm1286_vm7 = vweird.f32 %v3116_v19 }
 0x6a4   :  { %vm1287_vm9 = vmor %vm1285_vm8, %vm1286_vm7 }
 0x6a5   :  { %v1281_v12 = vmul.f32 %v3116_v19, %v1280_v26 }
 0x6a7   :  { %v1282_v22 = vmul.f32 0.5, %v1281_v12 }
 0x6a9   :  { %v1283_v23 = vsub.f32 1.5, %v1282_v22 }
 0x6ab   :  { %v1284_v44 = vmul.f32 %v3116_v19, %v1283_v23 }
 0x6ad   :  { %v1288_v25 = vsel %vm1287_vm9, %v3116_v19, %v1284_v44  ;;  %v1533_v11 = vpop.f32.mrf.mxu1 }
 0x6ae   :  { %v1295_v6 = vmul.f32 %v1288_v25, %v4124_v42  ;;  %v4243_v29 = vadd.f32 %v1533_v11, %v4237_v52  ;;  %v1617_v32 = vpop.f32.mrf.mxu0 }
 0x6af   :  { %v4252_v35 = vadd.f32 %v1617_v32, %v4239_v27 }
 0x6b0   :  { %v1636_v45 = vmul.f32 %v4243_v29, %v4243_v29  ;;  %v1306_v42 = vmul.f32 %v4134_v40, %v1295_v6  ;;  %v2954_v40 = vld [vmem:[%s4591_s11 + $0x48] sm:$0xff] }
 0x6b1   :  { %v1639_v51 = vmul.f32 %v4252_v35, %v4252_v35  ;;  %2194 = vmatpush.bf16.msra.mxu2 %v2954_v40 }
 0x6b2   :  { %v1664_v49 = vmul.f32 %v1636_v45, %v4243_v29  ;;  %v1317_v54 = vadd.f32 %v4142_v3, %v1306_v42 }
 0x6b3   :  { %v1667_v14 = vmul.f32 %v1639_v51, %v4252_v35  ;;  %v1561_v63 = vpop.f32.mrf.mxu2 }
 0x6b4   :  { %v1692_v59 = vmul.f32 0.044715, %v1664_v49  ;;  %v4279_v60 = vadd.f32 %v1561_v63, %v4256_v43  ;;  %v1589_v61 = vpop.f32.mrf.mxu3  ;;  %v1321_v62 = vpack.c.bf16 %v1317_v54, %v1317_v54 }
 0x6b5   :  { %v1695_v3 = vmul.f32 0.044715, %v1667_v14  ;;  %v4282_v7 = vadd.f32 %v1589_v61, %v4267_v21  ;;  %v1535_v39 = vpop.f32.mrf.mxu1  ;;  %2195 = vmatpush.bf16.msra.mxu2 %v2953_v47 }
 0x6b6   :  { %v1720_v53 = vadd.f32 %v1692_v59, %v4243_v29  ;;  %v1637_v15 = vmul.f32 %v4279_v60, %v4279_v60  ;;  %v4288_v56 = vadd.f32 %v1535_v39, %v4237_v52  ;;  %v1619_v48 = vpop.f32.mrf.mxu0  ;;  %1547 = vmatmul.bf16.gmra.mxu1 %v1321_v62  ;;  %1575 = vmatmul.bf16.gmra.mxu2 %v1321_v62 }
 0x6b7   :  { %v1723_v16 = vadd.f32 %v1695_v3, %v4252_v35  ;;  %v1638_v34 = vmul.f32 %v4282_v7, %v4282_v7  ;;  %v4300_v0 = vadd.f32 %v1619_v48, %v4239_v27  ;;  %1603 = vmatmul.bf16.gmra.mxu3 %v1321_v62  ;;  %1631 = vmatmul.bf16.gmra.mxu0 %v1321_v62 }
 0x6b8   :  { %v1748_v58 = vmul.f32 0.7978846, %v1720_v53  ;;  %v1665_v17 = vmul.f32 %v1637_v15, %v4279_v60  ;;  %v1640_v19 = vmul.f32 %v4288_v56, %v4288_v56 }
 0x6b9   :  { %v1751_v26 = vmul.f32 0.7978846, %v1723_v16  ;;  %v1666_v9 = vmul.f32 %v1638_v34, %v4282_v7  ;;  %v1643_v13 = vmul.f32 %v4300_v0, %v4300_v0 }
 0x6ba   :  { %3117 = vtanh.f32 %v1748_v58  ;;  %v1693_v12 = vmul.f32 0.044715, %v1665_v17  ;;  %v1668_v57 = vmul.f32 %v1640_v19, %v4288_v56 }
 0x6bb   :  { %3119 = vtanh.f32 %v1751_v26  ;;  %v1694_v30 = vmul.f32 0.044715, %v1666_v9  ;;  %v1671_v22 = vmul.f32 %v1643_v13, %v4300_v0  ;;  %v1563_v28 = vpop.f32.mrf.mxu2 }
 0x6bc   :  { %v1721_v31 = vadd.f32 %v1693_v12, %v4279_v60  ;;  %v1696_v33 = vmul.f32 0.044715, %v1668_v57  ;;  %v4312_v23 = vadd.f32 %v1563_v28, %v4256_v43  ;;  %v1591_v4 = vpop.f32.mrf.mxu3 }
 0x6bd   :  { %v1722_v36 = vadd.f32 %v1694_v30, %v4282_v7  ;;  %v1699_v44 = vmul.f32 0.044715, %v1671_v22  ;;  %v4316_v25 = vadd.f32 %v1591_v4, %v4267_v21 }
 0x6be   :  { %v1749_v11 = vmul.f32 0.7978846, %v1721_v31  ;;  %v1724_v6 = vadd.f32 %v1696_v33, %v4288_v56  ;;  %v1641_v32 = vmul.f32 %v4312_v23, %v4312_v23 }
 0x6bf   :  { %v1750_v2 = vmul.f32 0.7978846, %v1722_v36  ;;  %v1727_v46 = vadd.f32 %v1699_v44, %v4300_v0  ;;  %v1642_v45 = vmul.f32 %v4316_v25, %v4316_v25 }
 0x6c0   :  { %v3118_v42 = vpop.eup %3117  ;;  %3121 = vtanh.f32 %v1749_v11  ;;  %v1752_v41 = vmul.f32 0.7978846, %v1724_v6  ;;  %v1669_v50 = vmul.f32 %v1641_v32, %v4312_v23 }
 0x6c1   :  { %v3120_v51 = vpop.eup %3119  ;;  %v1804_v49 = vadd.f32 1.0, %v3118_v42  ;;  %3123 = vtanh.f32 %v1750_v2  ;;  %v1755_v54 = vmul.f32 0.7978846, %v1727_v46  ;;  %v1670_v40 = vmul.f32 %v1642_v45, %v4316_v25 }
 0x6c2   :  { %v1807_v55 = vadd.f32 1.0, %v3120_v51  ;;  %3125 = vtanh.f32 %v1752_v41  ;;  %v1697_v14 = vmul.f32 0.044715, %v1669_v50 }
 0x6c3   :  { %v1832_v63 = vmul.f32 0.5, %v1804_v49  ;;  %3127 = vtanh.f32 %v1755_v54  ;;  %v1698_v59 = vmul.f32 0.044715, %v1670_v40  ;;  %v1538_v61 = vpop.f32.mrf.mxu1 }
 0x6c4   :  { %v1835_v62 = vmul.f32 0.5, %v1807_v55  ;;  %v1725_v3 = vadd.f32 %v1697_v14, %v4312_v23  ;;  %v4328_v39 = vadd.f32 %v1538_v61, %v4237_v52  ;;  %v1622_v53 = vpop.f32.mrf.mxu0 }
 0x6c5   :  { %v1726_v15 = vadd.f32 %v1698_v59, %v4316_v25  ;;  %v4332_v48 = vadd.f32 %v1622_v53, %v4239_v27  ;;  %v1860_v58 = vmul.f32 %v1832_v63, %v4243_v29 }
 0x6c6   :  { %v3122_v47 = vpop.eup %3121  ;;  %v1753_v10 = vmul.f32 0.7978846, %v1725_v3  ;;  %v1644_v16 = vmul.f32 %v4328_v39, %v4328_v39  ;;  %v1863_v13 = vmul.f32 %v1835_v62, %v4252_v35 }
 0x6c7   :  { %v3124_v34 = vpop.eup %3123  ;;  %v1805_v17 = vadd.f32 1.0, %v3122_v47  ;;  %v1754_v19 = vmul.f32 0.7978846, %v1726_v15  ;;  %v1647_v26 = vmul.f32 %v4332_v48, %v4332_v48 }
 0x6c8   :  { %v3126_v9 = vpop.eup %3125  ;;  %v1806_v12 = vadd.f32 1.0, %v3124_v34  ;;  %3129 = vtanh.f32 %v1753_v10  ;;  %v1672_v57 = vmul.f32 %v1644_v16, %v4328_v39 }
 0x6c9   :  { %v3128_v30 = vpop.eup %3127  ;;  %v1833_v22 = vmul.f32 0.5, %v1805_v17  ;;  %v1808_v28 = vadd.f32 1.0, %v3126_v9  ;;  %3131 = vtanh.f32 %v1754_v19  ;;  %v1675_v31 = vmul.f32 %v1647_v26, %v4332_v48  ;;  %v1566_v33 = vpop.f32.mrf.mxu2 }
 0x6ca   :  { %v1834_v29 = vmul.f32 0.5, %v1806_v12  ;;  %v1811_v4 = vadd.f32 1.0, %v3128_v30  ;;  %v1700_v36 = vmul.f32 0.044715, %v1672_v57  ;;  %v4343_v44 = vadd.f32 %v1566_v33, %v4256_v43  ;;  %v1594_v11 = vpop.f32.mrf.mxu3 }
 0x6cb   :  { %v4346_v35 = vmul.f32 %v1833_v22, %v4279_v60  ;;  %v1836_v6 = vmul.f32 0.5, %v1808_v28  ;;  %v1703_v32 = vmul.f32 0.044715, %v1675_v31  ;;  %v4349_v2 = vadd.f32 %v1594_v11, %v4267_v21  ;;  %v1540_v46 = vpop.f32.mrf.mxu1 }
 0x6cc   :  { %v4352_v45 = vmul.f32 %v1834_v29, %v4282_v7  ;;  %v1839_v42 = vmul.f32 0.5, %v1811_v4  ;;  %v1728_v41 = vadd.f32 %v1700_v36, %v4328_v39  ;;  %v1645_v50 = vmul.f32 %v4343_v44, %v4343_v44  ;;  %v1624_v51 = vpop.f32.mrf.mxu0 }
 0x6cd   :  { %v1864_v49 = vmul.f32 %v1836_v6, %v4288_v56  ;;  %v1731_v60 = vadd.f32 %v1703_v32, %v4332_v48  ;;  %v1646_v54 = vmul.f32 %v4349_v2, %v4349_v2  ;;  %v4362_v40 = vadd.f32 %v1540_v46, %v4237_v52 }
 0x6ce   :  { %v3130_v55 = vpop.eup %3129  ;;  %v1867_v7 = vmul.f32 %v1839_v42, %v4300_v0  ;;  %v1756_v14 = vmul.f32 0.7978846, %v1728_v41  ;;  %v1673_v63 = vmul.f32 %v1645_v50, %v4343_v44  ;;  %v4367_v59 = vadd.f32 %v1624_v51, %v4239_v27 }
 0x6cf   :  { %v3132_v61 = vpop.eup %3131  ;;  %v1888_v62 = vpack.c.bf16 %v1864_v49, %v1860_v58  ;;  %v1809_v56 = vadd.f32 1.0, %v3130_v55  ;;  %v1759_v3 = vmul.f32 0.7978846, %v1731_v60  ;;  %v1674_v53 = vmul.f32 %v1646_v54, %v4349_v2 }
 0x6d0   :  { %v1891_v15 = vpack.c.bf16 %v1867_v7, %v1863_v13  ;;  %v1810_v47 = vadd.f32 1.0, %v3132_v61  ;;  %3133 = vtanh.f32 %v1756_v14  ;;  %v1701_v10 = vmul.f32 0.044715, %v1673_v63 }
 0x6d1   :  { %v1837_v16 = vmul.f32 0.5, %v1809_v56  ;;  %3135 = vtanh.f32 %v1759_v3  ;;  %v1702_v34 = vmul.f32 0.044715, %v1674_v53  ;;  %v1648_v0 = vmul.f32 %v4362_v40, %v4362_v40  ;;  %v1568_v17 = vpop.f32.mrf.mxu2  ;;  %2168 = vmatmul.bf16.vlgmr.msra.gmra.mxu1 %v1888_v62 }
 0x6d2   :  { %v1838_v19 = vmul.f32 0.5, %v1810_v47  ;;  %v1729_v26 = vadd.f32 %v1701_v10, %v4343_v44  ;;  %v1651_v58 = vmul.f32 %v4367_v59, %v4367_v59  ;;  %v4376_v9 = vadd.f32 %v1568_v17, %v4256_v43  ;;  %v1596_v13 = vpop.f32.mrf.mxu3  ;;  %2252 = vmatmul.bf16.vlgmr.msra.gmra.mxu0 %v1891_v15 }
 0x6d3   :  { %v1865_v12 = vmul.f32 %v1837_v16, %v4312_v23  ;;  %v1730_v57 = vadd.f32 %v1702_v34, %v4349_v2  ;;  %v1676_v30 = vmul.f32 %v1648_v0, %v4362_v40  ;;  %v4382_v22 = vadd.f32 %v1596_v13, %v4267_v21  ;;  %v1543_v28 = vpop.f32.mrf.mxu1 }
 0x6d4   :  { %v1866_v31 = vmul.f32 %v1838_v19, %v4316_v25  ;;  %v1757_v33 = vmul.f32 0.7978846, %v1729_v26  ;;  %v1679_v29 = vmul.f32 %v1651_v58, %v4367_v59  ;;  %v1649_v4 = vmul.f32 %v4376_v9, %v4376_v9  ;;  %v1627_v36 = vpop.f32.mrf.mxu0 }
 0x6d5   :  { %v1889_v11 = vpack.c.bf16 %v1865_v12, %v4346_v35  ;;  %v1758_v23 = vmul.f32 0.7978846, %v1730_v57  ;;  %v1704_v6 = vmul.f32 0.044715, %v1676_v30  ;;  %v1650_v32 = vmul.f32 %v4382_v22, %v4382_v22 }
 0x6d6   :  { %v3134_v46 = vpop.eup %3133  ;;  %v1890_v42 = vpack.c.bf16 %v1866_v31, %v4352_v45  ;;  %v1707_v41 = vmul.f32 0.044715, %v1679_v29  ;;  %v1677_v25 = vmul.f32 %v1649_v4, %v4376_v9  ;;  %3137 = vtanh.f32 %v1757_v33 }
 0x6d7   :  { %v3136_v50 = vpop.eup %3135  ;;  %v1732_v51 = vadd.f32 %v1704_v6, %v4362_v40  ;;  %v1678_v49 = vmul.f32 %v1650_v32, %v4382_v22  ;;  %v4396_v60 = vadd.f32 %v1543_v28, %v4237_v52  ;;  %2196 = vmatmul.bf16.vlgmr.msra.gmra.mxu2 %v1889_v11  ;;  %3139 = vtanh.f32 %v1758_v23 }
 0x6d8   :  { %v1735_v35 = vadd.f32 %v1707_v41, %v4367_v59  ;;  %v1705_v54 = vmul.f32 0.044715, %v1677_v25  ;;  %v4400_v55 = vadd.f32 %v1627_v36, %v4239_v27  ;;  %2224 = vmatmul.bf16.vlgmr.msra.gmra.mxu3 %v1890_v42  ;;  %v1812_v61 = vadd.f32 1.0, %v3134_v46 }
 0x6d9   :  { %v1760_v45 = vmul.f32 0.7978846, %v1732_v51  ;;  %v1706_v7 = vmul.f32 0.044715, %v1678_v49  ;;  %v1652_v14 = vmul.f32 %v4396_v60, %v4396_v60  ;;  %v1571_v63 = vpop.f32.mrf.mxu2  ;;  %v1815_v0 = vadd.f32 1.0, %v3136_v50 }
 0x6da   :  { %v1763_v62 = vmul.f32 0.7978846, %v1735_v35  ;;  %v1733_v56 = vadd.f32 %v1705_v54, %v4376_v9  ;;  %v1655_v3 = vmul.f32 %v4400_v55, %v4400_v55  ;;  %v4408_v53 = vadd.f32 %v1571_v63, %v4256_v43  ;;  %v1599_v15 = vpop.f32.mrf.mxu3 }
 0x6db   :  { %v1734_v47 = vadd.f32 %v1706_v7, %v4382_v22  ;;  %v1680_v10 = vmul.f32 %v1652_v14, %v4396_v60  ;;  %v4413_v16 = vadd.f32 %v1599_v15, %v4267_v21  ;;  %v1545_v34 = vpop.f32.mrf.mxu1  ;;  %3141 = vtanh.f32 %v1760_v45 }
 0x6dc   :  { %v1761_v17 = vmul.f32 0.7978846, %v1733_v56  ;;  %v1683_v19 = vmul.f32 %v1655_v3, %v4400_v55  ;;  %v1653_v26 = vmul.f32 %v4408_v53, %v4408_v53  ;;  %v1629_v58 = vpop.f32.mrf.mxu0  ;;  %v3138_v13 = vpop.eup %3137  ;;  %v4421_v28 = vadd.f32 %v1545_v34, %v4237_v52 }
 0x6dd   :  { %v1762_v12 = vmul.f32 0.7978846, %v1734_v47  ;;  %v1708_v57 = vmul.f32 0.044715, %v1680_v10  ;;  %v1654_v30 = vmul.f32 %v4413_v16, %v4413_v16  ;;  %v4423_v31 = vpop.eup %3139  ;;  %3143 = vtanh.f32 %v1763_v62 }
 0x6de   :  { %v1711_v33 = vmul.f32 0.044715, %v1683_v19  ;;  %v1681_v29 = vmul.f32 %v1653_v26, %v4408_v53  ;;  %v4427_v4 = vadd.f32 %v1629_v58, %v4239_v27  ;;  %3145 = vtanh.f32 %v1761_v17 }
 0x6df   :  { %v1736_v36 = vadd.f32 %v1708_v57, %v4396_v60  ;;  %v1682_v11 = vmul.f32 %v1654_v30, %v4413_v16  ;;  %v1656_v23 = vmul.f32 %v4421_v28, %v4421_v28  ;;  %3147 = vtanh.f32 %v1762_v12 }
 0x6e0   :  { %v1739_v6 = vadd.f32 %v1711_v33, %v4400_v55  ;;  %v1709_v32 = vmul.f32 0.044715, %v1681_v29  ;;  %v1659_v46 = vmul.f32 %v4427_v4, %v4427_v4  ;;  %v1840_v51 = vmul.f32 0.5, %v1812_v61 }
 0x6e1   :  { %v1764_v42 = vmul.f32 0.7978846, %v1736_v36  ;;  %v1710_v41 = vmul.f32 0.044715, %v1682_v11  ;;  %v1684_v25 = vmul.f32 %v1656_v23, %v4421_v28  ;;  %v1573_v50 = vpop.f32.mrf.mxu2  ;;  %v3142_v49 = vpop.eup %3141  ;;  %v1843_v3 = vmul.f32 0.5, %v1815_v0 }
 0x6e2   :  { %v1767_v35 = vmul.f32 0.7978846, %v1739_v6  ;;  %v1737_v54 = vadd.f32 %v1709_v32, %v4408_v53  ;;  %v1687_v45 = vmul.f32 %v1659_v46, %v4427_v4  ;;  %v4440_v7 = vadd.f32 %v1573_v50, %v4256_v43  ;;  %v1601_v14 = vpop.f32.mrf.mxu3 }
 0x6e3   :  { %v1738_v63 = vadd.f32 %v1710_v41, %v4413_v16  ;;  %v1712_v62 = vmul.f32 0.044715, %v1684_v25  ;;  %v4444_v56 = vadd.f32 %v1601_v14, %v4267_v21  ;;  %v3144_v15 = vpop.eup %3143  ;;  %3149 = vtanh.f32 %v1764_v42 }
 0x6e4   :  { %v1765_v61 = vmul.f32 0.7978846, %v1737_v54  ;;  %v1715_v47 = vmul.f32 0.044715, %v1687_v45  ;;  %v1657_v10 = vmul.f32 %v4440_v7, %v4440_v7  ;;  %v3146_v34 = vpop.eup %3145  ;;  %3151 = vtanh.f32 %v1767_v35 }
 0x6e5   :  { %v1740_v17 = vadd.f32 %v1712_v62, %v4421_v28  ;;  %v1658_v19 = vmul.f32 %v4444_v56, %v4444_v56  ;;  %v1816_v26 = vadd.f32 1.0, %v3142_v49  ;;  %v3148_v58 = vpop.eup %3147  ;;  %v1766_v12 = vmul.f32 0.7978846, %v1738_v63 }
 0x6e6   :  { %3153 = vtanh.f32 %v1765_v61  ;;  %v1743_v0 = vadd.f32 %v1715_v47, %v4427_v4  ;;  %v1685_v57 = vmul.f32 %v1657_v10, %v4440_v7  ;;  %v1868_v36 = vmul.f32 %v1840_v51, %v4328_v39 }
 0x6e7   :  { %v1768_v30 = vmul.f32 0.7978846, %v1740_v17  ;;  %v1686_v33 = vmul.f32 %v1658_v19, %v4444_v56  ;;  %v1844_v29 = vmul.f32 0.5, %v1816_v26  ;;  %v1819_v6 = vadd.f32 1.0, %v3144_v15 }
 0x6e8   :  { %v1771_v11 = vmul.f32 0.7978846, %v1743_v0  ;;  %v1713_v23 = vmul.f32 0.044715, %v1685_v57  ;;  %v1871_v32 = vmul.f32 %v1843_v3, %v4332_v48  ;;  %v1813_v41 = vadd.f32 1.0, %v3138_v13 }
 0x6e9   :  { %3155 = vtanh.f32 %v1768_v30  ;;  %v1714_v46 = vmul.f32 0.044715, %v1686_v33  ;;  %v1872_v42 = vmul.f32 %v1844_v29, %v4362_v40  ;;  %v3150_v25 = vpop.eup %3149  ;;  %v1847_v49 = vmul.f32 0.5, %v1819_v6 }
 0x6ea   :  { %3157 = vtanh.f32 %v1771_v11  ;;  %v1741_v50 = vadd.f32 %v1713_v23, %v4440_v7  ;;  %v1817_v35 = vadd.f32 1.0, %v3146_v34  ;;  %v3152_v54 = vpop.eup %3151  ;;  %v1841_v51 = vmul.f32 0.5, %v1813_v41 }
 0x6eb   :  { %v1742_v45 = vadd.f32 %v1714_v46, %v4444_v56  ;;  %v1892_v39 = vpack.c.bf16 %v1872_v42, %v1868_v36  ;;  %v1814_v14 = vadd.f32 1.0, %v4423_v31  ;;  %v1875_v62 = vmul.f32 %v1847_v49, %v4367_v59 }
 0x6ec   :  { %v3154_v63 = vpop.eup %3153  ;;  %v1769_v48 = vmul.f32 0.7978846, %v1741_v50  ;;  %v1845_v3 = vmul.f32 0.5, %v1817_v35  ;;  %v1818_v40 = vadd.f32 1.0, %v3148_v58  ;;  %3159 = vtanh.f32 %v1766_v12 }
 0x6ed   :  { %v1770_v13 = vmul.f32 0.7978846, %v1742_v45  ;;  %2173 = vmatmul.bf16.gmra.mxu1 %v1892_v39  ;;  %v1869_v15 = vmul.f32 %v1841_v51, %v4343_v44  ;;  %v1842_v61 = vmul.f32 0.5, %v1814_v14  ;;  %v1895_v47 = vpack.c.bf16 %v1875_v62, %v1871_v32 }
 0x6ee   :  { %3161 = vtanh.f32 %v1769_v48  ;;  %v1873_v10 = vmul.f32 %v1845_v3, %v4376_v9  ;;  %v1846_v34 = vmul.f32 0.5, %v1818_v40  ;;  %v1820_v31 = vadd.f32 1.0, %v3150_v25 }
 0x6ef   :  { %v3156_v17 = vpop.eup %3155  ;;  %3163 = vtanh.f32 %v1770_v13  ;;  %2257 = vmatmul.bf16.gmra.mxu0 %v1895_v47  ;;  %v1870_v59 = vmul.f32 %v1842_v61, %v4349_v2  ;;  %v1823_v30 = vadd.f32 1.0, %v3152_v54  ;;  %v1821_v11 = vadd.f32 1.0, %v3154_v63 }
 0x6f0   :  { %v3158_v19 = vpop.eup %3157  ;;  %v1893_v26 = vpack.c.bf16 %v1873_v10, %v1869_v15  ;;  %v1874_v58 = vmul.f32 %v1846_v34, %v4382_v22  ;;  %v1824_v12 = vadd.f32 1.0, %v3156_v17  ;;  %v1848_v29 = vmul.f32 0.5, %v1820_v31 }
 0x6f1   :  { %v1827_v0 = vadd.f32 1.0, %v3158_v19  ;;  %v1851_v46 = vmul.f32 0.5, %v1823_v30  ;;  %v1849_v50 = vmul.f32 0.5, %v1821_v11 }
 0x6f2   :  { %2201 = vmatmul.bf16.gmra.mxu2 %v1893_v26  ;;  %v1894_v44 = vpack.c.bf16 %v1874_v58, %v1870_v59  ;;  %v1852_v57 = vmul.f32 0.5, %v1824_v12  ;;  %v3160_v33 = vpop.eup %3159  ;;  %v1876_v22 = vmul.f32 %v1848_v29, %v4396_v60 }
 0x6f3   :  { %v1855_v36 = vmul.f32 0.5, %v1827_v0  ;;  %v1822_v2 = vadd.f32 1.0, %v3160_v33  ;;  %v1879_v54 = vmul.f32 %v1851_v46, %v4400_v55 }
 0x6f4   :  { %v3162_v9 = vpop.eup %3161  ;;  %2229 = vmatmul.bf16.gmra.mxu3 %v1894_v44  ;;  %v1880_v6 = vmul.f32 %v1852_v57, %v4421_v28  ;;  %v1877_v28 = vmul.f32 %v1849_v50, %v4408_v53 }
 0x6f5   :  { %v3164_v23 = vpop.eup %3163  ;;  %v1825_v32 = vadd.f32 1.0, %v3162_v9  ;;  %v1883_v25 = vmul.f32 %v1855_v36, %v4427_v4  ;;  %v1850_v39 = vmul.f32 0.5, %v1822_v2 }
 0x6f6   :  { %v1826_v42 = vadd.f32 1.0, %v3164_v23  ;;  %v1896_v35 = vpack.c.bf16 %v1880_v6, %v1876_v22 }
 0x6f7   :  { %v1853_v41 = vmul.f32 0.5, %v1825_v32  ;;  %v1899_v51 = vpack.c.bf16 %v1883_v25, %v1879_v54  ;;  %v1878_v60 = vmul.f32 %v1850_v39, %v4413_v16 }
 0x6f8   :  { %v1854_v49 = vmul.f32 0.5, %v1826_v42 }
 0x6f9   :  { %v1881_v45 = vmul.f32 %v1853_v41, %v4440_v7 }
 0x6fa   :  { %v1882_v14 = vmul.f32 %v1854_v49, %v4444_v56 }
 0x6fb   :  { %v1897_v63 = vpack.c.bf16 %v1881_v45, %v1877_v28 }
 0x6fc   :  { %v1898_v48 = vpack.c.bf16 %v1882_v14, %v1878_v60 }
 0x6fd   :  { %2178 = vmatmul.bf16.gmra.mxu1 %v1896_v35 }
 0x6ff   :  { %2262 = vmatmul.bf16.gmra.mxu0 %v1899_v51 }
 0x702   :  { %2206 = vmatmul.bf16.gmra.mxu2 %v1897_v63 }
 0x704   :  { %2234 = vmatmul.bf16.gmra.mxu3 %v1898_v48 }
 0x733   :  { %v1548_v4 = vpop.f32.mrf.mxu1 }
 0x734   :  { %v1549_v62 = vadd.f32 %v1548_v4, %v4237_v52  ;;  %v1632_v55 = vpop.f32.mrf.mxu0 }
 0x735   :  { %v1633_v7 = vadd.f32 %v1632_v55, %v4239_v27 }
 0x736   :  { %v1660_v3 = vmul.f32 %v1549_v62, %v1549_v62 }
 0x737   :  { %v1663_v40 = vmul.f32 %v1633_v7, %v1633_v7 }
 0x738   :  { %v1688_v13 = vmul.f32 %v1660_v3, %v1549_v62 }
 0x739   :  { %v1691_v53 = vmul.f32 %v1663_v40, %v1633_v7  ;;  %v1576_v15 = vpop.f32.mrf.mxu2 }
 0x73a   :  { %v1716_v56 = vmul.f32 0.044715, %v1688_v13  ;;  %v1577_v61 = vadd.f32 %v1576_v15, %v4256_v43  ;;  %v1604_v47 = vpop.f32.mrf.mxu3 }
 0x73b   :  { %v1719_v16 = vmul.f32 0.044715, %v1691_v53  ;;  %v1605_v10 = vadd.f32 %v1604_v47, %v4267_v21  ;;  %v1550_v34 = vpop.f32.mrf.mxu1 }
 0x73c   :  { %v1744_v17 = vadd.f32 %v1716_v56, %v1549_v62  ;;  %v1661_v31 = vmul.f32 %v1577_v61, %v1577_v61  ;;  %v1634_v19 = vpop.f32.mrf.mxu0 }
 0x73d   :  { %v1747_v52 = vadd.f32 %v1719_v16, %v1633_v7  ;;  %v1662_v26 = vmul.f32 %v1605_v10, %v1605_v10 }
 0x73e   :  { %v1772_v59 = vmul.f32 0.7978846, %v1744_v17  ;;  %v1689_v27 = vmul.f32 %v1661_v31, %v1577_v61 }
 0x73f   :  { %v1775_v58 = vmul.f32 0.7978846, %v1747_v52  ;;  %v1690_v12 = vmul.f32 %v1662_v26, %v1605_v10 }
 0x740   :  { %v1717_v0 = vmul.f32 0.044715, %v1689_v27  ;;  %3165 = vtanh.f32 %v1772_v59 }
 0x741   :  { %v1718_v44 = vmul.f32 0.044715, %v1690_v12  ;;  %v1578_v57 = vpop.f32.mrf.mxu2  ;;  %3167 = vtanh.f32 %v1775_v58 }
 0x742   :  { %v1745_v43 = vadd.f32 %v1717_v0, %v1577_v61  ;;  %v1606_v30 = vpop.f32.mrf.mxu3 }
 0x743   :  { %v1746_v33 = vadd.f32 %v1718_v44, %v1605_v10 }
 0x744   :  { %v1773_v29 = vmul.f32 0.7978846, %v1745_v43 }
 0x745   :  { %v1774_v21 = vmul.f32 0.7978846, %v1746_v33 }
 0x746   :  { %v3166_v9 = vpop.eup %3165  ;;  %3169 = vtanh.f32 %v1773_v29 }
 0x747   :  { %v3168_v36 = vpop.eup %3167  ;;  %v1828_v11 = vadd.f32 1.0, %v3166_v9  ;;  %3171 = vtanh.f32 %v1774_v21 }
 0x748   :  { %v1831_v23 = vadd.f32 1.0, %v3168_v36 }
 0x749   :  { %v1856_v6 = vmul.f32 0.5, %v1828_v11 }
 0x74a   :  { %v1859_v32 = vmul.f32 0.5, %v1831_v23 }
 0x74b   :  { %v1884_v46 = vmul.f32 %v1856_v6, %v1549_v62 }
 0x74c   :  { %v3170_v2 = vpop.eup %3169  ;;  %v1887_v42 = vmul.f32 %v1859_v32, %v1633_v7  ;;  %v4480_v7 = vld [vmem:[%s4592_s12] ss:$0 sm:$0xff] }
 0x74d   :  { %v3172_v22 = vpop.eup %3171  ;;  %v1900_v41 = vpack.c.bf16 %v1884_v46, %v1884_v46  ;;  %v1829_v25 = vadd.f32 1.0, %v3170_v2 }
 0x74e   :  { %v1903_v50 = vpack.c.bf16 %v1887_v42, %v1887_v42  ;;  %v1830_v49 = vadd.f32 1.0, %v3172_v22  ;;  %v2169_v14 = vpop.f32.mrf.mxu1 }
 0x74f   :  { %2183 = vmatmul.bf16.gmra.mxu1 %v1900_v41  ;;  %v1857_v35 = vmul.f32 0.5, %v1829_v25  ;;  %v2253_v4 = vpop.f32.mrf.mxu0 }
 0x750   :  { %2267 = vmatmul.bf16.gmra.mxu0 %v1903_v50  ;;  %v1858_v54 = vmul.f32 0.5, %v1830_v49 }
 0x751   :  { %v1885_v45 = vmul.f32 %v1857_v35, %v1577_v61 }
 0x752   :  { %v1886_v39 = vmul.f32 %v1858_v54, %v1605_v10 }
 0x753   :  { %v1901_v51 = vpack.c.bf16 %v1885_v45, %v1885_v45 }
 0x754   :  { %v1902_v28 = vpack.c.bf16 %v1886_v39, %v1886_v39 }
 0x755   :  { %2211 = vmatmul.bf16.gmra.mxu2 %v1901_v51 }
 0x756   :  { %2239 = vmatmul.bf16.gmra.mxu3 %v1902_v28  ;;  %v2171_v40 = vpop.f32.mrf.mxu1 }
 0x757   :  { %v2255_v47 = vpop.f32.mrf.mxu0 }
 0x75a   :  { %v2197_v63 = vpop.f32.mrf.mxu2 }
 0x75b   :  { %v2198_v60 = vadd.f32 %v2197_v63, %v2169_v14  ;;  %v2225_v48 = vpop.f32.mrf.mxu3 }
 0x75d   :  { %v2226_v62 = vadd.f32 %v2225_v48, %v2198_v60 }
 0x75f   :  { %v2254_v55 = vadd.f32 %v2253_v4, %v2226_v62 }
 0x761   :  { %v2272_v3 = vadd.f32 %v2254_v55, %v3863_v20 }
 0x762   :  { %v2199_v13 = vpop.f32.mrf.mxu2 }
 0x763   :  { %v2200_v53 = vadd.f32 %v2199_v13, %v2171_v40  ;;  %v2283_v15 = vadd.f32 %v4480_v7, %v2272_v3  ;;  %v2227_v56 = vpop.f32.mrf.mxu3 }
 0x765   :  { %v2228_v61 = vadd.f32 %v2227_v56, %v2200_v53  ;;  %2290 = vadd.xlane.f32.xlu1 %v2283_v15 }
 0x767   :  { %v2256_v16 = vadd.f32 %v2255_v47, %v2228_v61 }
 0x769   :  { %v2273_v10 = vadd.f32 %v2256_v16, %v3868_v24 }
 0x76a   :  { %v2174_v17 = vpop.f32.mrf.mxu1 }
 0x76b   :  { %v2284_v34 = vadd.f32 %v4480_v7, %v2273_v10 }
 0x76c   :  { %v2258_v31 = vpop.f32.mrf.mxu0 }
 0x76d   :  { %2292 = vadd.xlane.f32.xlu2 %v2284_v34 }
 0x772   :  { %v2176_v27 = vpop.f32.mrf.mxu1 }
 0x774   :  { %v2260_v57 = vpop.f32.mrf.mxu0 }
 0x775   :  { %v2202_v19 = vpop.f32.mrf.mxu2 }
 0x776   :  { %v2203_v52 = vadd.f32 %v2202_v19, %v2174_v17 }
 0x777   :  { %v2230_v20 = vpop.f32.mrf.mxu3 }
 0x778   :  { %v2231_v26 = vadd.f32 %v2230_v20, %v2203_v52 }
 0x77a   :  { %v2259_v59 = vadd.f32 %v2258_v31, %v2231_v26  ;;  %v2179_v29 = vpop.f32.mrf.mxu1 }
 0x77c   :  { %v2274_v58 = vadd.f32 %v2259_v59, %v3872_v38  ;;  %v2263_v38 = vpop.f32.mrf.mxu0 }
 0x77d   :  { %v2204_v12 = vpop.f32.mrf.mxu2 }
 0x77e   :  { %v2205_v0 = vadd.f32 %v2204_v12, %v2176_v27  ;;  %v2285_v44 = vadd.f32 %v4480_v7, %v2274_v58 }
 0x77f   :  { %v2232_v43 = vpop.f32.mrf.mxu3 }
 0x780   :  { %v2233_v24 = vadd.f32 %v2232_v43, %v2205_v0  ;;  %2294 = vadd.xlane.f32.xlu0 %v2285_v44 }
 0x782   :  { %v2261_v30 = vadd.f32 %v2260_v57, %v2233_v24  ;;  %v2181_v2 = vpop.f32.mrf.mxu1 }
 0x784   :  { %v2275_v33 = vadd.f32 %v2261_v30, %v3876_v37  ;;  %v2265_v42 = vpop.f32.mrf.mxu0 }
 0x785   :  { %v2207_v21 = vpop.f32.mrf.mxu2 }
 0x786   :  { %v2208_v9 = vadd.f32 %v2207_v21, %v2179_v29  ;;  %v2286_v36 = vadd.f32 %v4480_v7, %v2275_v33 }
 0x787   :  { %v2235_v11 = vpop.f32.mrf.mxu3 }
 0x788   :  { %v2236_v23 = vadd.f32 %v2235_v11, %v2208_v9  ;;  %2296 = vadd.xlane.f32.xlu1 %v2286_v36 }
 0x78a   :  { %v2264_v6 = vadd.f32 %v2263_v38, %v2236_v23 }
 0x78c   :  { %v2276_v32 = vadd.f32 %v2264_v6, %v3880_v5 }
 0x78d   :  { %v2209_v37 = vpop.f32.mrf.mxu2 }
 0x78e   :  { %v2287_v46 = vadd.f32 %v4480_v7, %v2276_v32  ;;  %v2210_v28 = vadd.f32 %v2209_v37, %v2181_v2 }
 0x78f   :  { %v2237_v25 = vpop.f32.mrf.mxu3 }
 0x790   :  { %2298 = vadd.xlane.f32.xlu2 %v2287_v46  ;;  %v2238_v48 = vadd.f32 %v2237_v25, %v2210_v28 }
 0x792   :  { %v2266_v53 = vadd.f32 %v2265_v42, %v2238_v48 }
 0x794   :  { %v2277_v47 = vadd.f32 %v2266_v53, %v3884_v8 }
 0x7cc   :  { %v2184_v22 = vpop.f32.mrf.mxu1 }
 0x7cd   :  { %v2268_v41 = vpop.f32.mrf.mxu0 }
 0x7d4   :  { %v2186_v50 = vpop.f32.mrf.mxu1 }
 0x7d5   :  { %v2270_v49 = vpop.f32.mrf.mxu0 }
 0x7d6   :  { %v4538_v49 = vld [vmem:[%s4593_s13] ss:$0 sm:$0xff] }
 0x7d8   :  { %v2212_v35 = vpop.f32.mrf.mxu2  ;;  %v2291_v54 = vpop.xlane.xlu1 %2290 }
 0x7d9   :  { %v2213_v45 = vadd.f32 %v2212_v35, %v2184_v22  ;;  %v2240_v39 = vpop.f32.mrf.mxu3  ;;  %v2305_v51 = vmul.f32 %v2291_v54, %v3333_v18 }
 0x7db   :  { %v2241_v14 = vadd.f32 %v2240_v39, %v2213_v45  ;;  %v4493_v5 = vsub.f32 %v2283_v15, %v2305_v51 }
 0x7dd   :  { %v2269_v63 = vadd.f32 %v2268_v41, %v2241_v14  ;;  %v2319_v60 = vmul.f32 %v4493_v5, %v4493_v5  ;;  %v4542_v14 = vld [vmem:[#allocation2] ss:$0 sm:$0xff] }
 0x7df   :  { %2326 = vadd.xlane.f32.xlu1 %v2319_v60  ;;  %v2278_v4 = vadd.f32 %v2269_v63, %v3900_v1  ;;  %v2288_v1 = vadd.f32 %v4480_v7, %v2277_v47 }
 0x7e0   :  { %v2214_v62 = vpop.f32.mrf.mxu2  ;;  %v2293_v55 = vpop.xlane.xlu2 %2292 }
 0x7e1   :  { %v2242_v3 = vpop.f32.mrf.mxu3  ;;  %v2306_v40 = vmul.f32 %v2293_v55, %v3333_v18  ;;  %v2289_v13 = vadd.f32 %v4480_v7, %v2278_v4 }
 0x7e3   :  { %v4500_v56 = vsub.f32 %v2284_v34, %v2306_v40  ;;  %v2302_v15 = vsel %vm140_vm0, %v2289_v13, 0.0 }
 0x7e4   :  { %2303 = vadd.xlane.f32.xlu0 %v2302_v15 }
 0x7e5   :  { %v2320_v61 = vmul.f32 %v4500_v56, %v4500_v56 }
 0x7e7   :  { %2328 = vadd.xlane.f32.xlu2 %v2320_v61 }
 0x7ec   :  { %2300 = vadd.xlane.f32.xlu0 %v2288_v1 }
 0x7f3   :  { %v2295_v16 = vpop.xlane.xlu0 %2294 }
 0x7f4   :  { %v2307_v10 = vmul.f32 %v2295_v16, %v3333_v18 }
 0x7f6   :  { %v4508_v17 = vsub.f32 %v2285_v44, %v2307_v10 }
 0x7f8   :  { %v2321_v34 = vmul.f32 %v4508_v17, %v4508_v17 }
 0x7fa   :  { %2330 = vadd.xlane.f32.xlu0 %v2321_v34 }
 0x7fb   :  { %v2297_v31 = vpop.xlane.xlu1 %2296 }
 0x7fc   :  { %v2308_v19 = vmul.f32 %v2297_v31, %v3333_v18 }
 0x7fe   :  { %v4513_v52 = vsub.f32 %v2286_v36, %v2308_v19 }
 0x800   :  { %v2322_v8 = vmul.f32 %v4513_v52, %v4513_v52 }
 0x802   :  { %2332 = vadd.xlane.f32.xlu1 %v2322_v8 }
 0x803   :  { %v2299_v7 = vpop.xlane.xlu2 %2298 }
 0x804   :  { %v2309_v20 = vmul.f32 %v2299_v7, %v3333_v18 }
 0x806   :  { %v4518_v26 = vsub.f32 %v2287_v46, %v2309_v20 }
 0x808   :  { %v2323_v59 = vmul.f32 %v4518_v26, %v4518_v26 }
 0x80a   :  { %2334 = vadd.xlane.f32.xlu2 %v2323_v59 }
 0x852   :  { %v2327_v27 = vpop.xlane.xlu1 %2326 }
 0x853   :  { %v2341_v58 = vmul.f32 %v2327_v27, %v3333_v18 }
 0x855   :  { %v2348_v12 = vadd.f32 1e-05, %v2341_v58 }
 0x857   :  { %3173 = vrsqrt.f32 %v2348_v12  ;;  %v2304_v0 = vpop.xlane.xlu0 %2303  ;;  %vm2361_vm11 = vweird.f32 %v2348_v12 }
 0x858   :  { %v2311_v44 = vmul.f32 %v2304_v0, %v3333_v18 }
 0x85a   :  { %v4524_v57 = vsub.f32 %v2289_v13, %v2311_v44  ;;  %v2329_v43 = vpop.xlane.xlu2 %2328 }
 0x85b   :  { %v2342_v24 = vmul.f32 %v2329_v43, %v3333_v18 }
 0x85c   :  { %v2325_v30 = vmul.f32 %v4524_v57, %v4524_v57 }
 0x85d   :  { %v3174_v33 = vpop.eup %3173  ;;  %v2349_v29 = vadd.f32 1e-05, %v2342_v24 }
 0x85e   :  { %v2356_v21 = vmul.f32 %v3174_v33, %v2348_v12  ;;  %v2338_v9 = vsel %vm140_vm0, %v2325_v30, 0.0  ;;  %vm2362_vm10 = vweird.f32 %v3174_v33 }
 0x85f   :  { %3175 = vrsqrt.f32 %v2349_v29  ;;  %v2301_v36 = vpop.xlane.xlu0 %2300  ;;  %2339 = vadd.xlane.f32.xlu1 %v2338_v9  ;;  %vm2363_vm0 = vmor %vm2361_vm11, %vm2362_vm10  ;;  %vm2371_vm13 = vweird.f32 %v2349_v29 }
 0x860   :  { %v2357_v11 = vmul.f32 %v3174_v33, %v2356_v21  ;;  %v2310_v23 = vmul.f32 %v2301_v36, %v3333_v18 }
 0x862   :  { %v2358_v38 = vmul.f32 0.5, %v2357_v11  ;;  %v4531_v6 = vsub.f32 %v2288_v1, %v2310_v23 }
 0x864   :  { %v2359_v32 = vsub.f32 1.5, %v2358_v38  ;;  %v2324_v46 = vmul.f32 %v4531_v6, %v4531_v6 }
 0x865   :  { %v3176_v2 = vpop.eup %3175 }
 0x866   :  { %v2360_v42 = vmul.f32 %v3174_v33, %v2359_v32  ;;  %v2366_v22 = vmul.f32 %v3176_v2, %v2349_v29  ;;  %2336 = vadd.xlane.f32.xlu0 %v2324_v46  ;;  %vm2372_vm12 = vweird.f32 %v3176_v2 }
 0x867   :  { %vm2373_vm14 = vmor %vm2371_vm13, %vm2372_vm12 }
 0x868   :  { %v2367_v41 = vmul.f32 %v3176_v2, %v2366_v22  ;;  %v2364_v37 = vsel %vm2363_vm0, %v3174_v33, %v2360_v42 }
 0x869   :  { %v2425_v35 = vmul.f32 %v2364_v37, %v4493_v5 }
 0x86a   :  { %v2368_v25 = vmul.f32 0.5, %v2367_v41 }
 0x86b   :  { %v2436_v63 = vmul.f32 %v4538_v49, %v2425_v35 }
 0x86c   :  { %v2369_v50 = vsub.f32 1.5, %v2368_v25 }
 0x86d   :  { %v2331_v54 = vpop.xlane.xlu0 %2330  ;;  %v2447_v4 = vadd.f32 %v4542_v14, %v2436_v63 }
 0x86e   :  { %v2370_v45 = vmul.f32 %v3176_v2, %v2369_v50  ;;  %v2343_v39 = vmul.f32 %v2331_v54, %v3333_v18 }
 0x870   :  { %v2374_v51 = vsel %vm2373_vm14, %v3176_v2, %v2370_v45  ;;  %v2350_v28 = vadd.f32 1e-05, %v2343_v39 }
 0x871   :  { %v2426_v60 = vmul.f32 %v2374_v51, %v4500_v56 }
 0x872   :  { %3177 = vrsqrt.f32 %v2350_v28  ;;  %vm2381_vm1 = vweird.f32 %v2350_v28 }
 0x873   :  { %v2437_v48 = vmul.f32 %v4538_v49, %v2426_v60 }
 0x875   :  { %v2448_v5 = vadd.f32 %v4542_v14, %v2437_v48  ;;  %v2333_v62 = vpop.xlane.xlu1 %2332 }
 0x876   :  { %v2344_v55 = vmul.f32 %v2333_v62, %v3333_v18 }
 0x877   :  { %v2992_v3 = vpack.c.bf16 %v2448_v5, %v2447_v4 }
 0x878   :  { %v3178_v40 = vpop.eup %3177  ;;  %v2351_v13 = vadd.f32 1e-05, %v2344_v55 }
 0x879   :  { %2993 = vst [vmem:[%s4595_s15] sm:$0xff] %v2992_v3   ;;  %v2376_v53 = vmul.f32 %v3178_v40, %v2350_v28  ;;  %vm2382_vm15 = vweird.f32 %v3178_v40 }
 0x87a   :  { %3179 = vrsqrt.f32 %v2351_v13  ;;  %vm2383_vm2 = vmor %vm2381_vm1, %vm2382_vm15  ;;  %vm2391_vm4 = vweird.f32 %v2351_v13 }
 0x87b   :  { %v2377_v56 = vmul.f32 %v3178_v40, %v2376_v53 }
 0x87d   :  { %v2378_v15 = vmul.f32 0.5, %v2377_v56 }
 0x87f   :  { %v2379_v61 = vsub.f32 1.5, %v2378_v15 }
 0x880   :  { %v3180_v47 = vpop.eup %3179 }
 0x881   :  { %v2380_v1 = vmul.f32 %v3178_v40, %v2379_v61  ;;  %v2386_v16 = vmul.f32 %v3180_v47, %v2351_v13  ;;  %vm2392_vm3 = vweird.f32 %v3180_v47 }
 0x882   :  { %vm2393_vm5 = vmor %vm2391_vm4, %vm2392_vm3 }
 0x883   :  { %v2387_v10 = vmul.f32 %v3180_v47, %v2386_v16  ;;  %v2384_v34 = vsel %vm2383_vm2, %v3178_v40, %v2380_v1 }
 0x884   :  { %v2427_v8 = vmul.f32 %v2384_v34, %v4508_v17  ;;  %v2335_v17 = vpop.xlane.xlu2 %2334 }
 0x885   :  { %v2388_v31 = vmul.f32 0.5, %v2387_v10  ;;  %v2345_v43 = vmul.f32 %v2335_v17, %v3333_v18 }
 0x886   :  { %v2438_v59 = vmul.f32 %v4538_v49, %v2427_v8 }
 0x887   :  { %v2389_v19 = vsub.f32 1.5, %v2388_v31  ;;  %v2352_v24 = vadd.f32 1e-05, %v2345_v43 }
 0x888   :  { %v2449_v12 = vadd.f32 %v4542_v14, %v2438_v59 }
 0x889   :  { %v2390_v7 = vmul.f32 %v3180_v47, %v2389_v19  ;;  %3181 = vrsqrt.f32 %v2352_v24  ;;  %vm2401_vm9 = vweird.f32 %v2352_v24 }
 0x88b   :  { %v2394_v20 = vsel %vm2393_vm5, %v3180_v47, %v2390_v7 }
 0x88c   :  { %v2428_v27 = vmul.f32 %v2394_v20, %v4513_v52 }
 0x88e   :  { %v2439_v58 = vmul.f32 %v4538_v49, %v2428_v27 }
 0x88f   :  { %v3182_v30 = vpop.eup %3181 }
 0x890   :  { %v2450_v0 = vadd.f32 %v4542_v14, %v2439_v58  ;;  %v2396_v29 = vmul.f32 %v3182_v30, %v2352_v24  ;;  %vm2402_vm7 = vweird.f32 %v3182_v30 }
 0x891   :  { %vm2403_vm11 = vmor %vm2401_vm9, %vm2402_vm7 }
 0x892   :  { %v2997_v44 = vpack.c.bf16 %v2450_v0, %v2449_v12  ;;  %v2397_v9 = vmul.f32 %v3182_v30, %v2396_v29 }
 0x894   :  { %3006 = vst [vmem:[%s4595_s15 + $0x8] sm:$0xff] %v2997_v44   ;;  %v2398_v32 = vmul.f32 0.5, %v2397_v9 }
 0x896   :  { %v2399_v42 = vsub.f32 1.5, %v2398_v32 }
 0x898   :  { %v2400_v25 = vmul.f32 %v3182_v30, %v2399_v42 }
 0x89a   :  { %v2404_v45 = vsel %vm2403_vm11, %v3182_v30, %v2400_v25 }
 0x89b   :  { %v2429_v60 = vmul.f32 %v2404_v45, %v4518_v26 }
 0x89d   :  { %v2440_v55 = vmul.f32 %v4538_v49, %v2429_v60 }
 0x89f   :  { %v2451_v40 = vadd.f32 %v4542_v14, %v2440_v55 }
 0x8d2   :  { %v2340_v33 = vpop.xlane.xlu1 %2339 }
 0x8d3   :  { %v2347_v52 = vmul.f32 %v2340_v33, %v3333_v18 }
 0x8d5   :  { %v2354_v21 = vadd.f32 1e-05, %v2347_v52 }
 0x8d7   :  { %3183 = vrsqrt.f32 %v2354_v21  ;;  %vm2421_vm8 = vweird.f32 %v2354_v21 }
 0x8d9   :  { %v2337_v36 = vpop.xlane.xlu0 %2336 }
 0x8da   :  { %v2346_v11 = vmul.f32 %v2337_v36, %v3333_v18 }
 0x8dc   :  { %v2353_v23 = vadd.f32 1e-05, %v2346_v11 }
 0x8dd   :  { %v3184_v38 = vpop.eup %3183 }
 0x8de   :  { %v2416_v46 = vmul.f32 %v3184_v38, %v2354_v21  ;;  %3185 = vrsqrt.f32 %v2353_v23  ;;  %vm2422_vm6 = vweird.f32 %v3184_v38  ;;  %vm2411_vm12 = vweird.f32 %v2353_v23 }
 0x8df   :  { %vm2423_vm10 = vmor %vm2421_vm8, %vm2422_vm6 }
 0x8e0   :  { %v2417_v2 = vmul.f32 %v3184_v38, %v2416_v46 }
 0x8e2   :  { %v2418_v22 = vmul.f32 0.5, %v2417_v2 }
 0x8e4   :  { %v3186_v41 = vpop.eup %3185  ;;  %v2419_v37 = vsub.f32 1.5, %v2418_v22 }
 0x8e5   :  { %v2406_v50 = vmul.f32 %v3186_v41, %v2353_v23  ;;  %vm2412_vm0 = vweird.f32 %v3186_v41 }
 0x8e6   :  { %v2420_v35 = vmul.f32 %v3184_v38, %v2419_v37  ;;  %vm2413_vm13 = vmor %vm2411_vm12, %vm2412_vm0 }
 0x8e7   :  { %v2407_v54 = vmul.f32 %v3186_v41, %v2406_v50 }
 0x8e8   :  { %v2424_v18 = vsel %vm2423_vm10, %v3184_v38, %v2420_v35 }
 0x8e9   :  { %v2431_v39 = vmul.f32 %v2424_v18, %v4524_v57  ;;  %v2408_v51 = vmul.f32 0.5, %v2407_v54 }
 0x8eb   :  { %v2442_v28 = vmul.f32 %v4538_v49, %v2431_v39  ;;  %v2409_v63 = vsub.f32 1.5, %v2408_v51 }
 0x8ed   :  { %v2453_v48 = vadd.f32 %v4542_v14, %v2442_v28  ;;  %v2410_v4 = vmul.f32 %v3186_v41, %v2409_v63 }
 0x8ef   :  { %v2460_v5 = vpack.c.bf16 %v2453_v48, %v2453_v48  ;;  %v2414_v62 = vsel %vm2413_vm13, %v3186_v41, %v2410_v4 }
 0x8f0   :  { %v2430_v3 = vmul.f32 %v2414_v62, %v4531_v6 }
 0x8f1   :  { %2467 = vst [vmem:[%s4595_s15 + $0x18] sm:$0x1] %v2460_v5 }
 0x8f2   :  { %v2441_v57 = vmul.f32 %v4538_v49, %v2430_v3 }
 0x8f4   :  { %v2452_v26 = vadd.f32 %v4542_v14, %v2441_v57 }
 0x8f6   :  { %v3002_v13 = vpack.c.bf16 %v2452_v26, %v2451_v40 }
 0x8f8   :  { %3007 = vst [vmem:[%s4595_s15 + $0x10] sm:$0xff] %v3002_v13  }
 0x8f9   :  { %2472 = vsyncpa [#allocation3], 1 }

// kernel: squeeze.1
= control target key start
LH: loop header
LB: loop body
LE: loop exit
PB: predicated region body
PF: predicated region fallthrough
CT: control target
= control target key end

     0   :  { %s81_s0 = inlined_call_operand.vmem [shape: bf16[10,1,128], index: 0, kind: input, shape index: {}]   ;;  %s82_s1 = inlined_call_operand.vmem [shape: bf16[2,5,128], index: 1, kind: output, shape index: {}]  }
   0x1   :  { %v57_v0 = vld [vmem:[%s81_s0] sm:$0xff]  }
   0x2   :  { %v58_v1 = vunpack.c.l.bf16 %v57_v0  ;;  %v59_v2 = vunpack.c.h.bf16 %v57_v0 }
   0x4   :  { %18 = vst [vmem:[#allocation1 + $0x8] sm:$0xff] %v59_v2 }
   0x5   :  { %33 = vst [vmem:[#allocation0] sm:$0x1f] %v58_v1  }
   0x6   :  { %35 = vst [vmem:[#allocation0 + $0x3] sm:$0xe0] %v58_v1  }
   0xb   :  { %v37_v3 = vld [vmem:[#allocation1 + $0x8] sm:$0x3]  }
   0xc   :  { %39 = vst [vmem:[#allocation0 + $0xb] sm:$0x3] %v37_v3   ;;  %v42_v4 = vld [vmem:[#allocation0] sm:$0xff] }
  0x13   :  { %v48_v5 = vld [vmem:[#allocation0 + $0x8] sm:$0xff] }
  0x14   :  { %v63_v6 = vpack.c.bf16 %v48_v5, %v42_v4 }
  0x16   :  { %64 = vst [vmem:[%s82_s1] sm:$0xff] %v63_v6  }

// kernel: dino_v2_a_forward.11
= control target key start
LH: loop header
LB: loop body
LE: loop exit
PB: predicated region body
PF: predicated region fallthrough
CT: control target
= control target key end

     0   :  { %18 = vsyncpa [#allocation3], 0  ;;  %v799_v2 = vmov 5.0   ;;  %vm50_vm0 = vcmask 1044480   ;;  %s1014_s0 = inlined_call_operand.vmem [shape: bf16[2,5,128], index: 0, kind: input, shape index: {}]   ;;  %s1015_s1 = inlined_call_operand.vmem [shape: bf16[2,5,128], index: 1, kind: input, shape index: {}]   ;;  %s1016_s2 = inlined_call_operand.vmem [shape: bf16[128,128], index: 2, kind: input, shape index: {}]   ;;  %s1017_s3 = inlined_call_operand.vmem [shape: f32[1,128], index: 3, kind: input, shape index: {}]   ;;  %s1018_s4 = inlined_call_operand.vmem [shape: bf16[128,128], index: 4, kind: input, shape index: {}]   ;;  %s1019_s5 = inlined_call_operand.vmem [shape: f32[1,128], index: 5, kind: input, shape index: {}]   ;;  %s1020_s6 = inlined_call_operand.vmem [shape: bf16[128,128], index: 6, kind: input, shape index: {}]   ;;  %s1021_s7 = inlined_call_operand.vmem [shape: f32[1,128], index: 7, kind: input, shape index: {}]   ;;  %s1022_s8 = inlined_call_operand.vmem [shape: bf16[128,128], index: 8, kind: input, shape index: {}]   ;;  %s1023_s9 = inlined_call_operand.vmem [shape: f32[1,128], index: 9, kind: input, shape index: {}]   ;;  %s1024_s10 = inlined_call_operand.hbm [shape: f32[2,128], index: 10, kind: output, shape index: {0}]   ;;  %s1025_s11 = inlined_call_operand.hbm [shape: f32[2,128], index: 11, kind: output, shape index: {1}]   ;;  %s1026_s12 = inlined_call_operand.hbm [shape: f32[2,128], index: 12, kind: output, shape index: {2}]  }
   0x1   :  { %v692_v0 = vld [vmem:[%s1018_s4 + $0x38] sm:$0xff]  ;;  %709 = vrcp.f32 %v799_v2  ;;  %v691_v3 = vld [vmem:[%s1018_s4 + $0x30] sm:$0xff]  ;;  %v690_v5 = vld [vmem:[%s1018_s4 + $0x28] sm:$0xff] }
   0x2   :  { %v676_v1 = vld [vmem:[%s1016_s2 + $0x38] sm:$0xff]  ;;  %359 = vmatpush.bf16.msra.mxu2 %v692_v0  ;;  %v675_v4 = vld [vmem:[%s1016_s2 + $0x30] sm:$0xff]  ;;  %v40_v6 = vld [vmem:[%s1014_s0] sm:$0x7] }
   0x3   :  { %157 = vmatpush.bf16.msra.mxu0 %v676_v1  ;;  %v41_v7 = vld [vmem:[%s1014_s0 + $0x4] sm:$0x7]  ;;  %v44_v8 = vld [vmem:[%s1015_s1] sm:$0x7]  ;;  %v674_v9 = vld [vmem:[%s1016_s2 + $0x28] sm:$0xff]  ;;  %v42_v10 = vunpack.c.l.bf16 %v40_v6 }
   0x4   :  { %v43_v11 = vunpack.c.l.bf16 %v41_v7  ;;  %v45_v12 = vld [vmem:[%s1015_s1 + $0x4] sm:$0x7]  ;;  %v46_v13 = vunpack.c.l.bf16 %v44_v8 }
   0x5   :  { %v47_v15 = vunpack.c.l.bf16 %v45_v12 }
   0x6   :  { %360 = vmatpush.bf16.msra.mxu2 %v691_v3  ;;  %v48_v16 = vadd.f32 %v46_v13, %v42_v10 }
   0x7   :  { %158 = vmatpush.bf16.msra.mxu0 %v675_v4  ;;  %v710_v14 = vpop.eup %709 }
   0x8   :  { %v66_v17 = vmul.f32 5.0, %v710_v14 }
   0x9   :  { %19 = vsyncpa [#allocation5], 0  ;;  %v49_v18 = vadd.f32 %v47_v15, %v43_v11  ;;  %v689_v19 = vld [vmem:[%s1018_s4 + $0x20] sm:$0xff]  ;;  %v51_v21 = vsel %vm50_vm0, %v48_v16, 0.0  ;;  %v688_v28 = vld [vmem:[%s1018_s4 + $0x18] sm:$0xff]  ;;  %vm70_vm1 = vweird.f32 %v710_v14  ;;  %vm76_vm2 = vcmask 1041409  }
   0xa   :  { %361 = vmatpush.bf16.msra.mxu2 %v690_v5  ;;  %v673_v20 = vld [vmem:[%s1016_s2 + $0x20] sm:$0xff]  ;;  %v67_v22 = vsub.f32 1.0, %v66_v17  ;;  %v52_v23 = vrot.slane %v51_v21, 4  ;;  %v672_v29 = vld [vmem:[%s1016_s2 + $0x18] sm:$0xff]  ;;  %v687_v35 = vld [vmem:[%s1018_s4 + $0x10] sm:$0xff]  ;;  %vm171_vm3 = vcmask 1041408  }
   0xb   :  { %159 = vmatpush.bf16.msra.mxu0 %v674_v9  ;;  %v58_v24 = vsel %vm50_vm0, %v49_v18, 0.0  ;;  %v671_v36 = vld [vmem:[%s1016_s2 + $0x10] sm:$0xff]  ;;  %v686_v42 = vld [vmem:[%s1018_s4 + $0x8] sm:$0xff]  ;;  %v685_v48 = vld [vmem:[%s1018_s4] sm:$0xff]  ;;  %s499_s13 = sshll.u32 %s1024_s10, 4  ;;  %s801_s18 = smov [#allocation4]   ;;  %s500_s13 = int_to_ptr.hbm [resolvable:$true] %s499_s13 }
   0xc   :  { %v59_v25 = vrot.slane %v58_v24, 4  ;;  %v68_v26 = vmul.f32 %v710_v14, %v67_v22  ;;  %v53_v27 = vadd.f32 %v52_v23, %v51_v21  ;;  %v670_v43 = vld [vmem:[%s1016_s2 + $0x8] sm:$0xff]  ;;  %v669_v50 = vld [vmem:[%s1016_s2] sm:$0xff]  ;;  %v700_v3 = vld [vmem:[%s1022_s8 + $0x38] sm:$0xff]  ;;  %s508_s19 = sshll.u32 %s801_s18, 4  ;;  %s510_s21 = sshll.u32 %s1025_s11, 4  ;;  %s509_s19 = int_to_ptr.vmem [resolvable:$true] %s508_s19  ;;  %s511_s21 = int_to_ptr.hbm [resolvable:$true] %s510_s21 }
   0xd   :  { %v706_v56 = vld [vmem:[%s1019_s5] ss:$0 sm:$0xff]  ;;  %478 = vmatpush.bf16.msra.mxu3 %v700_v3  ;;  %v699_v4 = vld [vmem:[%s1022_s8 + $0x30] sm:$0xff]  ;;  %v684_v5 = vld [vmem:[%s1020_s6 + $0x38] sm:$0xff]  ;;  %s802_s22 = smov [#allocation6]   ;;  %s521_s24 = sshll.u32 %s1026_s12, 4  ;;  %s522_s24 = int_to_ptr.hbm [resolvable:$true] %s521_s24 }
   0xe   :  { %362 = vmatpush.bf16.msra.mxu2 %v689_v19  ;;  %v60_v30 = vadd.f32 %v59_v25, %v58_v24  ;;  %v54_v31 = vrot.slane %v53_v27, 2  ;;  %v69_v33 = vadd.f32 %v710_v14, %v68_v26  ;;  %v705_v57 = vld [vmem:[%s1017_s3] ss:$0 sm:$0xff]  ;;  %277 = vmatpush.bf16.msra.mxu1 %v684_v5  ;;  %v683_v6 = vld [vmem:[%s1020_s6 + $0x30] sm:$0xff]  ;;  %v698_v7 = vld [vmem:[%s1022_s8 + $0x28] sm:$0xff]  ;;  %s519_s4 = sshll.u32 %s802_s22, 4  ;;  %s520_s4 = int_to_ptr.vmem [resolvable:$true] %s519_s4 }
   0xf   :  { %160 = vmatpush.bf16.msra.mxu0 %v673_v20  ;;  %v682_v9 = vld [vmem:[%s1020_s6 + $0x28] sm:$0xff]  ;;  %v697_v11 = vld [vmem:[%s1022_s8 + $0x20] sm:$0xff]  ;;  %v696_v13 = vld [vmem:[%s1022_s8 + $0x18] sm:$0xff] }
  0x10   :  { %v61_v32 = vrot.slane %v60_v30, 2  ;;  %v55_v34 = vadd.f32 %v54_v31, %v53_v27  ;;  %v71_v40 = vsel %vm70_vm1, %v710_v14, %v69_v33  ;;  %v681_v12 = vld [vmem:[%s1020_s6 + $0x20] sm:$0xff]  ;;  %v680_v15 = vld [vmem:[%s1020_s6 + $0x18] sm:$0xff]  ;;  %v695_v19 = vld [vmem:[%s1022_s8 + $0x10] sm:$0xff] }
  0x11   :  { %479 = vmatpush.bf16.msra.mxu3 %v699_v4  ;;  %v679_v21 = vld [vmem:[%s1020_s6 + $0x10] sm:$0xff]  ;;  %v694_v23 = vld [vmem:[%s1022_s8 + $0x8] sm:$0xff]  ;;  %v693_v27 = vld [vmem:[%s1022_s8] sm:$0xff] }
  0x12   :  { %363 = vmatpush.bf16.msra.mxu2 %v688_v28  ;;  %v62_v37 = vadd.f32 %v61_v32, %v60_v30  ;;  %v56_v38 = vrot.slane %v55_v34, 1  ;;  %278 = vmatpush.bf16.msra.mxu1 %v683_v6 }
  0x13   :  { %161 = vmatpush.bf16.msra.mxu0 %v672_v29 }
  0x14   :  { %v63_v39 = vrot.slane %v62_v37, 1  ;;  %v57_v41 = vadd.f32 %v56_v38, %v55_v34  ;;  %v677_v38 = vld [vmem:[%s1020_s6] sm:$0xff] }
  0x15   :  { %480 = vmatpush.bf16.msra.mxu3 %v698_v7 }
  0x16   :  { %364 = vmatpush.bf16.msra.mxu2 %v687_v35  ;;  %v64_v44 = vadd.f32 %v63_v39, %v62_v37  ;;  %v922_v45 = vmul.f32 %v71_v40, %v57_v41  ;;  %279 = vmatpush.bf16.msra.mxu1 %v682_v9  ;;  %v678_v35 = vld [vmem:[%s1020_s6 + $0x8] sm:$0xff]  ;;  %s800_s6 = smov [#allocation2]  }
  0x17   :  { %162 = vmatpush.bf16.msra.mxu0 %v671_v36  ;;  %s497_s28 = sshll.u32 %s800_s6, 4  ;;  %s498_s28 = int_to_ptr.vmem [resolvable:$true] %s497_s28 }
  0x18   :  { %v924_v46 = vmul.f32 %v71_v40, %v64_v44  ;;  %v80_v47 = vpack.c.bf16 %v922_v45, %v922_v45 }
  0x19   :  { %481 = vmatpush.bf16.msra.mxu3 %v697_v11  ;;  %v708_v11 = vld [vmem:[%s1021_s7] ss:$0 sm:$0xff] }
  0x1a   :  { %365 = vmatpush.bf16.msra.mxu2 %v686_v42  ;;  %v81_v49 = vpack.c.bf16 %v924_v46, %v924_v46  ;;  %v104_v51 = vunpack.c.l.b16 %v80_v47  ;;  %280 = vmatpush.bf16.msra.mxu1 %v681_v12  ;;  %v77_v9 = vsel %vm76_vm2, %v924_v46, %v922_v45 }
  0x1b   :  { %163 = vmatpush.bf16.msra.mxu0 %v670_v43  ;;  %79 = vst [vmem:[#allocation2] sm:$0x3] %v77_v9 }
  0x1c   :  { %v105_v52 = vunpack.c.l.b16 %v81_v49  ;;  %502 = dma.vmem_to_hbm [thread:$0]  %s498_s28, 32, %s500_s13, [#allocation3]  }
  0x1d   :  { %482 = vmatpush.bf16.msra.mxu3 %v696_v13 }
  0x1e   :  { %366 = vmatpush.bf16.msra.mxu2 %v685_v48  ;;  %v106_v53 = vsel %vm76_vm2, %v105_v52, %v104_v51  ;;  %281 = vmatpush.bf16.msra.mxu1 %v680_v15 }
  0x1f   :  { %164 = vmatpush.bf16.msra.mxu0 %v669_v50  ;;  %v107_v54 = vpack.c.b16 %v106_v53, %v106_v53 }
  0x21   :  { %367 = vmatmul.bf16.vlgmr.msra.gmra.mxu2 %v107_v54  ;;  %483 = vmatpush.bf16.msra.mxu3 %v695_v19 }
  0x22   :  { %165 = vmatmul.bf16.vlgmr.msra.gmra.mxu0 %v107_v54  ;;  %282 = vmatpush.bf16.msra.mxu1 %v679_v21 }
  0x25   :  { %484 = vmatpush.bf16.msra.mxu3 %v694_v23 }
  0x26   :  { %283 = vmatpush.bf16.msra.mxu1 %v678_v35 }
  0x29   :  { %485 = vmatpush.bf16.msra.mxu3 %v693_v27 }
  0x2a   :  { %284 = vmatpush.bf16.msra.mxu1 %v677_v38 }
  0x9f   :  { %v166_v55 = vpop.f32.mrf.mxu0 }
  0xa0   :  { %v943_v61 = vadd.f32 %v705_v57, %v166_v55 }
  0xa2   :  { %v170_v0 = vmul.f32 %v943_v61, %v943_v61 }
  0xa4   :  { %v368_v58 = vpop.f32.mrf.mxu2  ;;  %v172_v2 = vsel %vm171_vm3, %v170_v0, 0.0 }
  0xa5   :  { %v369_v59 = vadd.f32 %v706_v56, %v368_v58 }
  0xa7   :  { %v168_v60 = vpop.f32.mrf.mxu0  ;;  %v372_v62 = vmul.f32 %v369_v59, %v369_v59 }
  0xa9   :  { %v373_v63 = vsel %vm171_vm3, %v372_v62, 0.0 }
  0xaa   :  { %374 = vadd.xlane.f32.xlu0 %v373_v63 }
  0xac   :  { %v370_v1 = vpop.f32.mrf.mxu2 }
  0xb2   :  { %173 = vadd.xlane.f32.xlu0 %v172_v2 }
 0x11d   :  { %v375_v8 = vpop.xlane.xlu0 %374 }
 0x11e   :  { %v376_v10 = vadd.f32 1e-12, %v375_v8 }
 0x120   :  { %711 = vrsqrt.f32 %v376_v10  ;;  %vm383_vm5 = vweird.f32 %v376_v10 }
 0x125   :  { %v174_v14 = vpop.xlane.xlu0 %173 }
 0x126   :  { %v712_v16 = vpop.eup %711  ;;  %v175_v17 = vadd.f32 1e-12, %v174_v14 }
 0x127   :  { %v378_v18 = vmul.f32 %v712_v16, %v376_v10  ;;  %vm384_vm4 = vweird.f32 %v712_v16  ;;  %v707_v10 = vld [vmem:[%s1023_s9] ss:$0 sm:$0xff] }
 0x128   :  { %713 = vrsqrt.f32 %v175_v17  ;;  %vm385_vm6 = vmor %vm383_vm5, %vm384_vm4  ;;  %vm182_vm8 = vweird.f32 %v175_v17 }
 0x129   :  { %v379_v20 = vmul.f32 %v712_v16, %v378_v18 }
 0x12b   :  { %v380_v22 = vmul.f32 0.5, %v379_v20 }
 0x12d   :  { %v381_v24 = vsub.f32 1.5, %v380_v22 }
 0x12e   :  { %v714_v25 = vpop.eup %713 }
 0x12f   :  { %v177_v26 = vmul.f32 %v714_v25, %v175_v17  ;;  %v382_v28 = vmul.f32 %v712_v16, %v381_v24  ;;  %vm183_vm7 = vweird.f32 %v714_v25 }
 0x130   :  { %vm184_vm9 = vmor %vm182_vm8, %vm183_vm7 }
 0x131   :  { %v178_v29 = vmul.f32 %v714_v25, %v177_v26  ;;  %v386_v30 = vsel %vm385_vm6, %v712_v16, %v382_v28 }
 0x132   :  { %v387_v31 = vmul.f32 %v386_v30, %v369_v59 }
 0x133   :  { %v179_v32 = vmul.f32 0.5, %v178_v29 }
 0x134   :  { %v636_v33 = vmul.f32 -1.702, %v387_v31 }
 0x135   :  { %v180_v34 = vsub.f32 1.5, %v179_v32 }
 0x136   :  { %v390_v36 = vmul.f32 1.442695, %v636_v33 }
 0x137   :  { %v181_v37 = vmul.f32 %v714_v25, %v180_v34 }
 0x138   :  { %715 = vpow2.f32 %v390_v36 }
 0x139   :  { %v185_v39 = vsel %vm184_vm9, %v714_v25, %v181_v37 }
 0x13a   :  { %v186_v40 = vmul.f32 %v185_v39, %v943_v61 }
 0x13c   :  { %v571_v41 = vmul.f32 -1.702, %v186_v40 }
 0x13e   :  { %v716_v42 = vpop.eup %715  ;;  %v189_v43 = vmul.f32 1.442695, %v571_v41 }
 0x13f   :  { %v392_v44 = vadd.f32 1.0, %v716_v42 }
 0x140   :  { %717 = vpow2.f32 %v189_v43 }
 0x141   :  { %719 = vrcp.f32 %v392_v44  ;;  %v404_v52 = vand.u32 2147483648, %v392_v44  ;;  %v402_v54 = vand.u32 2147483647, %v392_v44  ;;  %vm398_vm11 = vweird.f32 %v392_v44 }
 0x143   :  { %v405_v57 = vor.u32 1.1754944e-38, %v404_v52  ;;  %vm403_vm13 = vcmp.eq.f32.partialorder %v402_v54, 8.507059e+37 }
 0x146   :  { %v718_v47 = vpop.eup %717 }
 0x147   :  { %v720_v48 = vpop.eup %719  ;;  %v191_v49 = vadd.f32 1.0, %v718_v47 }
 0x148   :  { %v394_v50 = vmul.f32 %v720_v48, %v392_v44  ;;  %vm399_vm10 = vweird.f32 %v720_v48 }
 0x149   :  { %721 = vrcp.f32 %v191_v49  ;;  %vm400_vm12 = vmor %vm398_vm11, %vm399_vm10  ;;  %v203_v63 = vand.u32 2147483648, %v191_v49  ;;  %v201_v2 = vand.u32 2147483647, %v191_v49  ;;  %vm197_vm15 = vweird.f32 %v191_v49 }
 0x14a   :  { %v395_v51 = vsub.f32 1.0, %v394_v50 }
 0x14b   :  { %v204_v4 = vor.u32 1.1754944e-38, %v203_v63  ;;  %vm202_vm1 = vcmp.eq.f32.partialorder %v201_v2, 8.507059e+37 }
 0x14c   :  { %v396_v53 = vmul.f32 %v720_v48, %v395_v51 }
 0x14e   :  { %v397_v55 = vadd.f32 %v720_v48, %v396_v53 }
 0x14f   :  { %v722_v56 = vpop.eup %721 }
 0x150   :  { %v401_v58 = vsel %vm400_vm12, %v720_v48, %v397_v55  ;;  %v193_v59 = vmul.f32 %v722_v56, %v191_v49  ;;  %vm198_vm14 = vweird.f32 %v722_v56 }
 0x151   :  { %v406_v60 = vsel %vm403_vm13, %v405_v57, %v401_v58  ;;  %vm199_vm0 = vmor %vm197_vm15, %vm198_vm14 }
 0x152   :  { %v408_v61 = vmul.f32 %v406_v60, %v387_v31  ;;  %v194_v62 = vsub.f32 1.0, %v193_v59 }
 0x154   :  { %v409_v0 = vpack.c.bf16 %v408_v61, %v408_v61  ;;  %v195_v1 = vmul.f32 %v722_v56, %v194_v62 }
 0x156   :  { %486 = vmatmul.bf16.vlgmr.msra.gmra.mxu3 %v409_v0  ;;  %v196_v3 = vadd.f32 %v722_v56, %v195_v1 }
 0x158   :  { %v200_v5 = vsel %vm199_vm0, %v722_v56, %v196_v3 }
 0x159   :  { %v205_v6 = vsel %vm202_vm1, %v204_v4, %v200_v5 }
 0x15a   :  { %v207_v7 = vmul.f32 %v205_v6, %v186_v40 }
 0x15c   :  { %v208_v8 = vpack.c.bf16 %v207_v7, %v207_v7 }
 0x15e   :  { %285 = vmatmul.bf16.vlgmr.msra.gmra.mxu1 %v208_v8 }
 0x1d9   :  { %v487_v12 = vpop.f32.mrf.mxu3 }
 0x1da   :  { %v488_v13 = vadd.f32 %v707_v10, %v487_v12 }
 0x1db   :  { %v286_v45 = vpop.f32.mrf.mxu1 }
 0x1dc   :  { %491 = vst [vmem:[#allocation6] sm:$0x3] %v488_v13  ;;  %v287_v46 = vadd.f32 %v708_v11, %v286_v45 }
 0x1de   :  { %290 = vst [vmem:[#allocation4] sm:$0x3] %v287_v46 }
 0x1df   :  { %513 = dma.vmem_to_hbm [thread:$0]  %s509_s19, 32, %s511_s21, [#allocation5]  }
 0x1e0   :  { %524 = dma.vmem_to_hbm [thread:$0]  %s520_s4, 32, %s522_s24, [#allocation5]  }
 0x1e1   :  { %v489_v14 = vpop.f32.mrf.mxu3 }
 0x1e3   :  { %v288_v15 = vpop.f32.mrf.mxu1 }
 0x1e4   :  { %795 = dma.done.wait [#allocation3], 32  }
 0x1e5   :  { %796 = vsyncadd [#allocation3], 4294967264 }
 0x1e6   :  { %797 = dma.done.wait [#allocation5], 64  }
 0x1e7   :  { %798 = vsyncadd [#allocation5], 4294967232 }
 0x1e8   :  { %537 = vsyncpa [#allocation3], 1 }
 0x1e9   :  { %538 = vsyncpa [#allocation5], 1 }

</bundles_post_ra>
